<compile_context>
chip_gen: v7x
topology: tpu7x:2x2x1
jax: 0.10.0
libtpu: 0.0.40
codegen_flags: <defaults>
</compile_context>

<pallas_src>
import functools

import jax
import jax.numpy as jnp
from jax.experimental import pallas as pl
from jax.experimental.pallas import tpu as pltpu


# --------------------------------------------------------------------------
# Tiling helpers (pure Python -> static under jit).
# --------------------------------------------------------------------------
def _round_up(x, m):
    return (x + m - 1) // m * m


def _pick_tm(M):
    """Row tile: single tile for small M, else 512/256/128 with <=12.5% padding."""
    if M <= 512:
        return _round_up(M, 16)            # bf16 sublane packing -> multiple of 16
    for tm in (512, 256, 128):
        if (_round_up(M, tm) - M) * 8 <= _round_up(M, tm):
            return tm
    return 128


def _pick_tk(K):
    """Reduction tile: prefer 512/256 (fewer grid steps, better MXU cadence)."""
    for tk in (512, 256, 128):
        if (_round_up(K, tk) - K) * 8 <= _round_up(K, tk):
            return tk
    return 128


def _pick_tn(N):
    """Column tile: 256 fills the 256-wide MXU on v6e/v7x (128 would suit v5e)."""
    return 256 if N >= 256 else _round_up(N, 128)


# --------------------------------------------------------------------------
# Pallas kernel: O = relu?(A @ B + bias), accumulated in-place in the output
# block across the innermost K grid axis.
# --------------------------------------------------------------------------
def matmul_bias_kernel(a_ref, b_ref, bias_ref, o_ref, *, apply_relu):
    k = pl.program_id(2)

    @pl.when(k == 0)
    def _():
        o_ref[...] = jnp.zeros_like(o_ref)

    # bf16 x bf16 -> f32, accumulated directly into the resident output block.
    o_ref[...] += jnp.dot(a_ref[...], b_ref[...], preferred_element_type=jnp.float32)

    @pl.when(k == pl.num_programs(2) - 1)
    def _():
        out = o_ref[...] + bias_ref[...]
        if apply_relu:
            out = jnp.maximum(out, 0.0)
        o_ref[...] = out


def _matmul_padded(a_p, w_p, bias_p, tm, tk, tn, relu):
    """a_p: [Mp, Kp] bf16, w_p: [Kp, Np] bf16, bias_p: [1, Np] f32 -> [Mp, Np] f32."""
    Mp, Kp = a_p.shape
    Kp2, Np = w_p.shape
    assert Kp == Kp2 and Mp % tm == 0 and Kp % tk == 0 and Np % tn == 0
    kernel = functools.partial(matmul_bias_kernel, apply_relu=relu)
    return pl.pallas_call(
        kernel,
        out_shape=jax.ShapeDtypeStruct((Mp, Np), jnp.float32),
        grid_spec=pltpu.PrefetchScalarGridSpec(
            num_scalar_prefetch=0,
            grid=(Mp // tm, Np // tn, Kp // tk),        # K innermost (reduction)
            in_specs=[
                pl.BlockSpec((tm, tk), lambda i, j, k: (i, k)),
                pl.BlockSpec((tk, tn), lambda i, j, k: (k, j)),
                pl.BlockSpec((1, tn), lambda i, j, k: (0, j)),
            ],
            out_specs=pl.BlockSpec((tm, tn), lambda i, j, k: (i, j)),
        ),
        compiler_params=pltpu.CompilerParams(
            dimension_semantics=("parallel", "parallel", "arbitrary"),
            # Tiles use ~2 MiB; explicit limit keeps the kernel portable
            # (v7x has only 64 MiB physical VMEM).
            vmem_limit_bytes=32 * 1024 * 1024,
        ),
    )(a_p, w_p, bias_p)


# --------------------------------------------------------------------------
# One-time weight packing (bf16, pre-transposed, pre-padded to the tile grid).
# --------------------------------------------------------------------------
def _pack_matmul_weight(wmat, bias):
    """wmat: [K, N] f32, bias: [N] -> (bf16 [Kp, Np], f32 [1, Np]) zero-padded."""
    K, N = wmat.shape
    Kp = _round_up(K, _pick_tk(K))
    Np = _round_up(N, _pick_tn(N))
    w_p = jnp.zeros((Kp, Np), jnp.bfloat16).at[:K, :N].set(wmat.astype(jnp.bfloat16))
    b_p = jnp.zeros((1, Np), jnp.float32).at[0, :N].set(bias.astype(jnp.float32))
    return w_p, b_p


def _pack_conv_weight(w_pt, bias):
    """PyTorch conv weight [Cout, Cin, kh, kw] -> matmul-ready (K, N) pack."""
    Cout, Cin, kh, kw = w_pt.shape
    wmat = jnp.transpose(w_pt, (2, 3, 1, 0)).reshape(kh * kw * Cin, Cout)
    return _pack_matmul_weight(wmat, bias)


def pack_params(p):
    """Pack all weights once (shared conv2/conv4 weights packed a single time)."""
    packed = {
        "c1": _pack_conv_weight(p["w1"], p["b1"]),
        "c2": _pack_conv_weight(p["w2"], p["b2"]),
        "c3": _pack_conv_weight(p["w3"], p["b3"]),
        "c4": _pack_conv_weight(p["w4"], p["b4"]),
        "c5": _pack_conv_weight(p["w5"], p["b5"]),
    }
    # fc1: permute columns from PyTorch NCHW-flatten order (c*49 + h*7 + w) to
    # NHWC-flatten order (h*7*256 + w*256 + c) so the forward pass flattens the
    # NHWC activation with a free reshape (no per-forward transpose).
    wo1_nhwc = (
        p["wo1"].reshape(1024, 256, 7, 7).transpose(0, 2, 3, 1).reshape(1024, 12544)
    )
    packed["fc1"] = _pack_matmul_weight(wo1_nhwc.T, p["bo1"])
    packed["fc2"] = _pack_matmul_weight(p["wo2"].T, p["bo2"])
    return packed


# --------------------------------------------------------------------------
# Layer wrappers (im2col / padding glue feeding the Pallas matmul kernel).
# --------------------------------------------------------------------------
def _im2col_padded(x, kh, kw, stride, pad, Mp, Kp):
    """NHWC x -> bf16 patch matrix [Mp, Kp], zero-padded, cols in (kh, kw, C) order."""
    x = x.astype(jnp.bfloat16)
    B, H, W, C = x.shape
    Ho = (H + 2 * pad - kh) // stride + 1
    Wo = (W + 2 * pad - kw) // stride + 1
    M = B * Ho * Wo
    xp = jnp.pad(x, ((0, 0), (pad, pad), (pad, pad), (0, 0)))
    out = jnp.zeros((Mp, Kp), jnp.bfloat16)
    col = 0
    for i in range(kh):
        for j in range(kw):
            win = xp[:, i:i + stride * Ho:stride, j:j + stride * Wo:stride, :]
            out = out.at[:M, col:col + C].set(win.reshape(M, C))
            col += C
    return out


def conv2d(x, pw, cout, kh, kw, stride, pad, relu=False):
    """x: NHWC, pw: packed (w_p, bias_p). Returns NHWC f32."""
    w_p, bias_p = pw
    B, H, W, C = x.shape
    K = kh * kw * C
    tk = _pick_tk(K)
    Kp = _round_up(K, tk)
    tn = _pick_tn(cout)
    assert w_p.shape == (Kp, _round_up(cout, tn))
    Ho = (H + 2 * pad - kh) // stride + 1
    Wo = (W + 2 * pad - kw) // stride + 1
    M = B * Ho * Wo
    tm = _pick_tm(M)
    Mp = _round_up(M, tm)
    a_p = _im2col_padded(x, kh, kw, stride, pad, Mp, Kp)
    y = _matmul_padded(a_p, w_p, bias_p, tm, tk, tn, relu)
    return y[:M, :cout].reshape(B, Ho, Wo, cout)


def linear(x, pw, n_out, relu=False):
    """x: [M, K], pw: packed (w_p, bias_p). Returns [M, n_out] f32."""
    w_p, bias_p = pw
    M, K = x.shape
    tk = _pick_tk(K)
    Kp = _round_up(K, tk)
    tn = _pick_tn(n_out)
    assert w_p.shape == (Kp, _round_up(n_out, tn))
    tm = _pick_tm(M)
    Mp = _round_up(M, tm)
    a_p = jnp.zeros((Mp, Kp), jnp.bfloat16).at[:M, :K].set(x.astype(jnp.bfloat16))
    y = _matmul_padded(a_p, w_p, bias_p, tm, tk, tn, relu)
    return y[:M, :n_out]


def maxpool2(x):
    B, H, W, C = x.shape
    return x.reshape(B, H // 2, 2, W // 2, 2, C).max(axis=(2, 4))


# --------------------------------------------------------------------------
# Full CNN forward (matches the PyTorch module, eval mode).
# --------------------------------------------------------------------------
@jax.jit
def cnn_forward(x_nchw, packed):
    x = jnp.transpose(x_nchw, (0, 2, 3, 1))  # NCHW -> NHWC

    # conv1: Conv(1->64, k7, p3) + ReLU + MaxPool(2)
    x1 = conv2d(x, packed["c1"], 64, 7, 7, stride=1, pad=3, relu=True)
    x1 = maxpool2(x1)                                     # [B, 14, 14, 64]

    # residual block 1 (shared conv2 weights)
    t = conv2d(x1, packed["c2"], 64, 3, 3, 1, 1, relu=True)
    t = conv2d(t, packed["c2"], 64, 3, 3, 1, 1, relu=False)
    x2_1 = jnp.maximum(x1 + t, 0.0)

    # residual block 2 (shared conv2 weights)
    t = conv2d(x2_1, packed["c2"], 64, 3, 3, 1, 1, relu=True)
    t = conv2d(t, packed["c2"], 64, 3, 3, 1, 1, relu=False)
    x2_2 = jnp.maximum(x2_1 + t, 0.0)

    # conv3 (+ReLU+pool) -> conv4, plus conv5 strided 1x1 shortcut
    x3_1 = conv2d(x2_2, packed["c3"], 256, 3, 3, 1, 1, relu=True)
    x3_1 = maxpool2(x3_1)                                 # [B, 7, 7, 256]
    x3_1 = conv2d(x3_1, packed["c4"], 256, 3, 3, 1, 1, relu=False)
    shortcut = conv2d(x2_2, packed["c5"], 256, 1, 1, stride=2, pad=0, relu=False)
    x3_1 = jnp.maximum(x3_1 + shortcut, 0.0)

    # residual block 3 (shared conv4 weights)
    t = conv2d(x3_1, packed["c4"], 256, 3, 3, 1, 1, relu=True)
    t = conv2d(t, packed["c4"], 256, 3, 3, 1, 1, relu=False)
    x3_2 = jnp.maximum(x3_1 + t, 0.0)

    # flatten in NHWC order (fc1 columns were pre-permuted to match) -> [B, 12544]
    B = x3_2.shape[0]
    flat = x3_2.reshape(B, 7 * 7 * 256)

    # out1: Linear(12544 -> 1024) + ReLU
    o1 = linear(flat, packed["fc1"], 1024, relu=True)
    # Dropout(0.2): identity in eval/inference mode.
    # TODO(synk): training-mode dropout (random mask) not implemented.
    o2 = linear(o1, packed["fc2"], 10, relu=False)

    # F.softmax on a 2-D tensor defaults to dim=1
    return jax.nn.softmax(o2, axis=1)


def init_params(key):
    ks = jax.random.split(key, 14)
    n = lambda k, shape, s=0.02: s * jax.random.normal(k, shape, jnp.float32)
    return {
        "w1": n(ks[0], (64, 1, 7, 7)),
        "b1": n(ks[1], (64,)),
        "w2": n(ks[2], (64, 64, 3, 3)),
        "b2": n(ks[3], (64,)),
        "w3": n(ks[4], (256, 64, 3, 3)),
        "b3": n(ks[5], (256,)),
        "w4": n(ks[6], (256, 256, 3, 3)),
        "b4": n(ks[7], (256,)),
        "w5": n(ks[8], (256, 64, 1, 1)),
        "b5": n(ks[9], (256,)),
        "wo1": n(ks[10], (1024, 12544), 0.005),
        "bo1": n(ks[11], (1024,)),
        "wo2": n(ks[12], (10, 1024), 0.02),
        "bo2": n(ks[13], (10,)),
    }


if __name__ == "__main__":
    key = jax.random.PRNGKey(0)
    kx, kp = jax.random.split(key)
    # MNIST-shaped input (28x28 is required by the Linear(12544, ...) layer);
    # small batch of 2.
    x = jax.random.normal(kx, (2, 1, 28, 28), jnp.float32)
    params = init_params(kp)
    packed = pack_params(params)   # one-time weight packing (bf16, padded)

    out = cnn_forward(x, packed)
    out = jax.block_until_ready(out)
    assert out.shape == (2, 10)
    assert bool(jnp.all(jnp.isfinite(out)))
    # rows of a softmax sum to 1
    assert bool(jnp.allclose(out.sum(axis=1), 1.0, atol=1e-5))
    print("KERNEL_OK")
</pallas_src>

<mosaic_0001>
module attributes {stable_mosaic.version = 11 : i64} {
  func.func @matmul_bias_kernel(%arg0: i32, %arg1: i32, %arg2: i32, %arg3: memref<256x128xbf16, #tpu.memory_space<vmem>>, %arg4: memref<128x128xbf16, #tpu.memory_space<vmem>>, %arg5: memref<1x128xf32, #tpu.memory_space<vmem>>, %arg6: memref<256x128xf32, #tpu.memory_space<vmem>>) attributes {dimension_semantics = [#tpu.dimension_semantics<parallel>, #tpu.dimension_semantics<parallel>, #tpu.dimension_semantics<arbitrary>], iteration_bounds = array<i64: 7, 1, 1>, scalar_prefetch = 0 : i64, scratch_operands = 0 : i64, tpu.core_type = #tpu.core_type<tc>, window_params = [{transform_indices = @transform_0, window_bounds = array<i64: 256, 128>}, {transform_indices = @transform_1, window_bounds = array<i64: 128, 128>}, {transform_indices = @transform_2, window_bounds = array<i64: 1, 128>}, {transform_indices = @transform_3, window_bounds = array<i64: 256, 128>}]} {
    %c0_i32 = arith.constant 0 : i32
    %0 = arith.cmpi eq, %arg2, %c0_i32 : i32
    %1 = arith.extui %0 : i1 to i32
    %c0_i32_0 = arith.constant 0 : i32
    %2 = arith.cmpi ne, %1, %c0_i32_0 : i32
    scf.if %2 {
      %cst_10 = arith.constant 0.000000e+00 : f32
      %12 = vector.broadcast %cst_10 : f32 to vector<256x128xf32>
      %c0_11 = arith.constant 0 : index
      %c0_12 = arith.constant 0 : index
      %13 = vector.load %arg6[%c0_11, %c0_12] : memref<256x128xf32, #tpu.memory_space<vmem>>, vector<256x128xf32>
      tpu.vector_store %arg6[%c0_11, %c0_12], %12 {strides = array<i32>} : memref<256x128xf32, #tpu.memory_space<vmem>>, vector<256x128xf32>,
    } else {
    }
    %c0 = arith.constant 0 : index
    %c0_1 = arith.constant 0 : index
    %3 = vector.load %arg6[%c0, %c0_1] : memref<256x128xf32, #tpu.memory_space<vmem>>, vector<256x128xf32>
    %c0_2 = arith.constant 0 : index
    %c0_3 = arith.constant 0 : index
    %4 = vector.load %arg3[%c0_2, %c0_3] : memref<256x128xbf16, #tpu.memory_space<vmem>>, vector<256x128xbf16>
    %c0_4 = arith.constant 0 : index
    %c0_5 = arith.constant 0 : index
    %5 = vector.load %arg4[%c0_4, %c0_5] : memref<128x128xbf16, #tpu.memory_space<vmem>>, vector<128x128xbf16>
    %cst = arith.constant dense<0.000000e+00> : vector<256x128xf32>
    %6 = tpu.matmul %4, %5, %cst {dimension_numbers = #tpu.dot_dimension_numbers<[1], [0], [0], [1], [0, 0, 1, 1], [], []>} : vector<256x128xbf16>, vector<128x128xbf16>, vector<256x128xf32> -> vector<256x128xf32>
    %7 = arith.addf %3, %6 : vector<256x128xf32>
    %c0_6 = arith.constant 0 : index
    %c0_7 = arith.constant 0 : index
    %8 = vector.load %arg6[%c0_6, %c0_7] : memref<256x128xf32, #tpu.memory_space<vmem>>, vector<256x128xf32>
    tpu.vector_store %arg6[%c0_6, %c0_7], %7 {strides = array<i32>} : memref<256x128xf32, #tpu.memory_space<vmem>>, vector<256x128xf32>,
    %c0_i32_8 = arith.constant 0 : i32
    %9 = arith.cmpi eq, %arg2, %c0_i32_8 : i32
    %10 = arith.extui %9 : i1 to i32
    %c0_i32_9 = arith.constant 0 : i32
    %11 = arith.cmpi ne, %10, %c0_i32_9 : i32
    scf.if %11 {
      %c0_10 = arith.constant 0 : index
      %c0_11 = arith.constant 0 : index
      %12 = vector.load %arg6[%c0_10, %c0_11] : memref<256x128xf32, #tpu.memory_space<vmem>>, vector<256x128xf32>
      %c0_12 = arith.constant 0 : index
      %c0_13 = arith.constant 0 : index
      %13 = vector.load %arg5[%c0_12, %c0_13] : memref<1x128xf32, #tpu.memory_space<vmem>>, vector<1x128xf32>
      %14 = vector.broadcast %13 : vector<1x128xf32> to vector<256x128xf32>
      %15 = arith.addf %12, %14 : vector<256x128xf32>
      %cst_14 = arith.constant 0.000000e+00 : f32
      %16 = vector.broadcast %cst_14 : f32 to vector<256x128xf32>
      %17 = arith.maximumf %15, %16 : vector<256x128xf32>
      %c0_15 = arith.constant 0 : index
      %c0_16 = arith.constant 0 : index
      %18 = vector.load %arg6[%c0_15, %c0_16] : memref<256x128xf32, #tpu.memory_space<vmem>>, vector<256x128xf32>
      tpu.vector_store %arg6[%c0_15, %c0_16], %17 {strides = array<i32>} : memref<256x128xf32, #tpu.memory_space<vmem>>, vector<256x128xf32>,
    } else {
    }
    return
  }
  func.func @transform_0(%arg0: i32, %arg1: i32, %arg2: i32) -> (i32, i32) {
    %c0_i32 = arith.constant 0 : i32
    return %arg0, %arg2 : i32, i32
  }
  func.func @transform_1(%arg0: i32, %arg1: i32, %arg2: i32) -> (i32, i32) {
    %c0_i32 = arith.constant 0 : i32
    return %arg2, %arg1 : i32, i32
  }
  func.func @transform_2(%arg0: i32, %arg1: i32, %arg2: i32) -> (i32, i32) {
    %c0_i32 = arith.constant 0 : i32
    %c0_i32_0 = arith.constant 0 : i32
    return %c0_i32, %arg1 : i32, i32
  }
  func.func @transform_3(%arg0: i32, %arg1: i32, %arg2: i32) -> (i32, i32) {
    %c0_i32 = arith.constant 0 : i32
    return %arg0, %arg1 : i32, i32
  }
}

module attributes {stable_mosaic.version = 11 : i64} {
  func.func @matmul_bias_kernel(%arg0: i32, %arg1: i32, %arg2: i32, %arg3: memref<400x128xbf16, #tpu.memory_space<vmem>>, %arg4: memref<128x128xbf16, #tpu.memory_space<vmem>>, %arg5: memref<1x128xf32, #tpu.memory_space<vmem>>, %arg6: memref<400x128xf32, #tpu.memory_space<vmem>>) attributes {dimension_semantics = [#tpu.dimension_semantics<parallel>, #tpu.dimension_semantics<parallel>, #tpu.dimension_semantics<arbitrary>], iteration_bounds = array<i64: 1, 1, 5>, scalar_prefetch = 0 : i64, scratch_operands = 0 : i64, tpu.core_type = #tpu.core_type<tc>, window_params = [{transform_indices = @transform_0, window_bounds = array<i64: 400, 128>}, {transform_indices = @transform_1, window_bounds = array<i64: 128, 128>}, {transform_indices = @transform_2, window_bounds = array<i64: 1, 128>}, {transform_indices = @transform_3, window_bounds = array<i64: 400, 128>}]} {
    %c0_i32 = arith.constant 0 : i32
    %0 = arith.cmpi eq, %arg2, %c0_i32 : i32
    %1 = arith.extui %0 : i1 to i32
    %c0_i32_0 = arith.constant 0 : i32
    %2 = arith.cmpi ne, %1, %c0_i32_0 : i32
    scf.if %2 {
      %cst_9 = arith.constant 0.000000e+00 : f32
      %12 = vector.broadcast %cst_9 : f32 to vector<400x128xf32>
      %c0_10 = arith.constant 0 : index
      %c0_11 = arith.constant 0 : index
      %13 = vector.load %arg6[%c0_10, %c0_11] : memref<400x128xf32, #tpu.memory_space<vmem>>, vector<400x128xf32>
      tpu.vector_store %arg6[%c0_10, %c0_11], %12 {strides = array<i32>} : memref<400x128xf32, #tpu.memory_space<vmem>>, vector<400x128xf32>,
    } else {
    }
    %c0 = arith.constant 0 : index
    %c0_1 = arith.constant 0 : index
    %3 = vector.load %arg6[%c0, %c0_1] : memref<400x128xf32, #tpu.memory_space<vmem>>, vector<400x128xf32>
    %c0_2 = arith.constant 0 : index
    %c0_3 = arith.constant 0 : index
    %4 = vector.load %arg3[%c0_2, %c0_3] : memref<400x128xbf16, #tpu.memory_space<vmem>>, vector<400x128xbf16>
    %c0_4 = arith.constant 0 : index
    %c0_5 = arith.constant 0 : index
    %5 = vector.load %arg4[%c0_4, %c0_5] : memref<128x128xbf16, #tpu.memory_space<vmem>>, vector<128x128xbf16>
    %cst = arith.constant dense<0.000000e+00> : vector<400x128xf32>
    %6 = tpu.matmul %4, %5, %cst {dimension_numbers = #tpu.dot_dimension_numbers<[1], [0], [0], [1], [0, 0, 1, 1], [], []>} : vector<400x128xbf16>, vector<128x128xbf16>, vector<400x128xf32> -> vector<400x128xf32>
    %7 = arith.addf %3, %6 : vector<400x128xf32>
    %c0_6 = arith.constant 0 : index
    %c0_7 = arith.constant 0 : index
    %8 = vector.load %arg6[%c0_6, %c0_7] : memref<400x128xf32, #tpu.memory_space<vmem>>, vector<400x128xf32>
    tpu.vector_store %arg6[%c0_6, %c0_7], %7 {strides = array<i32>} : memref<400x128xf32, #tpu.memory_space<vmem>>, vector<400x128xf32>,
    %c4_i32 = arith.constant 4 : i32
    %9 = arith.cmpi eq, %arg2, %c4_i32 : i32
    %10 = arith.extui %9 : i1 to i32
    %c0_i32_8 = arith.constant 0 : i32
    %11 = arith.cmpi ne, %10, %c0_i32_8 : i32
    scf.if %11 {
      %c0_9 = arith.constant 0 : index
      %c0_10 = arith.constant 0 : index
      %12 = vector.load %arg6[%c0_9, %c0_10] : memref<400x128xf32, #tpu.memory_space<vmem>>, vector<400x128xf32>
      %c0_11 = arith.constant 0 : index
      %c0_12 = arith.constant 0 : index
      %13 = vector.load %arg5[%c0_11, %c0_12] : memref<1x128xf32, #tpu.memory_space<vmem>>, vector<1x128xf32>
      %14 = vector.broadcast %13 : vector<1x128xf32> to vector<400x128xf32>
      %15 = arith.addf %12, %14 : vector<400x128xf32>
      %cst_13 = arith.constant 0.000000e+00 : f32
      %16 = vector.broadcast %cst_13 : f32 to vector<400x128xf32>
      %17 = arith.maximumf %15, %16 : vector<400x128xf32>
      %c0_14 = arith.constant 0 : index
      %c0_15 = arith.constant 0 : index
      %18 = vector.load %arg6[%c0_14, %c0_15] : memref<400x128xf32, #tpu.memory_space<vmem>>, vector<400x128xf32>
      tpu.vector_store %arg6[%c0_14, %c0_15], %17 {strides = array<i32>} : memref<400x128xf32, #tpu.memory_space<vmem>>, vector<400x128xf32>,
    } else {
    }
    return
  }
  func.func @transform_0(%arg0: i32, %arg1: i32, %arg2: i32) -> (i32, i32) {
    %c0_i32 = arith.constant 0 : i32
    return %arg0, %arg2 : i32, i32
  }
  func.func @transform_1(%arg0: i32, %arg1: i32, %arg2: i32) -> (i32, i32) {
    %c0_i32 = arith.constant 0 : i32
    return %arg2, %arg1 : i32, i32
  }
  func.func @transform_2(%arg0: i32, %arg1: i32, %arg2: i32) -> (i32, i32) {
    %c0_i32 = arith.constant 0 : i32
    %c0_i32_0 = arith.constant 0 : i32
    return %c0_i32, %arg1 : i32, i32
  }
  func.func @transform_3(%arg0: i32, %arg1: i32, %arg2: i32) -> (i32, i32) {
    %c0_i32 = arith.constant 0 : i32
    return %arg0, %arg1 : i32, i32
  }
}

module attributes {stable_mosaic.version = 11 : i64} {
  func.func @matmul_bias_kernel(%arg0: i32, %arg1: i32, %arg2: i32, %arg3: memref<400x128xbf16, #tpu.memory_space<vmem>>, %arg4: memref<128x128xbf16, #tpu.memory_space<vmem>>, %arg5: memref<1x128xf32, #tpu.memory_space<vmem>>, %arg6: memref<400x128xf32, #tpu.memory_space<vmem>>) attributes {dimension_semantics = [#tpu.dimension_semantics<parallel>, #tpu.dimension_semantics<parallel>, #tpu.dimension_semantics<arbitrary>], iteration_bounds = array<i64: 1, 1, 5>, scalar_prefetch = 0 : i64, scratch_operands = 0 : i64, tpu.core_type = #tpu.core_type<tc>, window_params = [{transform_indices = @transform_0, window_bounds = array<i64: 400, 128>}, {transform_indices = @transform_1, window_bounds = array<i64: 128, 128>}, {transform_indices = @transform_2, window_bounds = array<i64: 1, 128>}, {transform_indices = @transform_3, window_bounds = array<i64: 400, 128>}]} {
    %c0_i32 = arith.constant 0 : i32
    %0 = arith.cmpi eq, %arg2, %c0_i32 : i32
    %1 = arith.extui %0 : i1 to i32
    %c0_i32_0 = arith.constant 0 : i32
    %2 = arith.cmpi ne, %1, %c0_i32_0 : i32
    scf.if %2 {
      %cst_9 = arith.constant 0.000000e+00 : f32
      %12 = vector.broadcast %cst_9 : f32 to vector<400x128xf32>
      %c0_10 = arith.constant 0 : index
      %c0_11 = arith.constant 0 : index
      %13 = vector.load %arg6[%c0_10, %c0_11] : memref<400x128xf32, #tpu.memory_space<vmem>>, vector<400x128xf32>
      tpu.vector_store %arg6[%c0_10, %c0_11], %12 {strides = array<i32>} : memref<400x128xf32, #tpu.memory_space<vmem>>, vector<400x128xf32>,
    } else {
    }
    %c0 = arith.constant 0 : index
    %c0_1 = arith.constant 0 : index
    %3 = vector.load %arg6[%c0, %c0_1] : memref<400x128xf32, #tpu.memory_space<vmem>>, vector<400x128xf32>
    %c0_2 = arith.constant 0 : index
    %c0_3 = arith.constant 0 : index
    %4 = vector.load %arg3[%c0_2, %c0_3] : memref<400x128xbf16, #tpu.memory_space<vmem>>, vector<400x128xbf16>
    %c0_4 = arith.constant 0 : index
    %c0_5 = arith.constant 0 : index
    %5 = vector.load %arg4[%c0_4, %c0_5] : memref<128x128xbf16, #tpu.memory_space<vmem>>, vector<128x128xbf16>
    %cst = arith.constant dense<0.000000e+00> : vector<400x128xf32>
    %6 = tpu.matmul %4, %5, %cst {dimension_numbers = #tpu.dot_dimension_numbers<[1], [0], [0], [1], [0, 0, 1, 1], [], []>} : vector<400x128xbf16>, vector<128x128xbf16>, vector<400x128xf32> -> vector<400x128xf32>
    %7 = arith.addf %3, %6 : vector<400x128xf32>
    %c0_6 = arith.constant 0 : index
    %c0_7 = arith.constant 0 : index
    %8 = vector.load %arg6[%c0_6, %c0_7] : memref<400x128xf32, #tpu.memory_space<vmem>>, vector<400x128xf32>
    tpu.vector_store %arg6[%c0_6, %c0_7], %7 {strides = array<i32>} : memref<400x128xf32, #tpu.memory_space<vmem>>, vector<400x128xf32>,
    %c4_i32 = arith.constant 4 : i32
    %9 = arith.cmpi eq, %arg2, %c4_i32 : i32
    %10 = arith.extui %9 : i1 to i32
    %c0_i32_8 = arith.constant 0 : i32
    %11 = arith.cmpi ne, %10, %c0_i32_8 : i32
    scf.if %11 {
      %c0_9 = arith.constant 0 : index
      %c0_10 = arith.constant 0 : index
      %12 = vector.load %arg6[%c0_9, %c0_10] : memref<400x128xf32, #tpu.memory_space<vmem>>, vector<400x128xf32>
      %c0_11 = arith.constant 0 : index
      %c0_12 = arith.constant 0 : index
      %13 = vector.load %arg5[%c0_11, %c0_12] : memref<1x128xf32, #tpu.memory_space<vmem>>, vector<1x128xf32>
      %14 = vector.broadcast %13 : vector<1x128xf32> to vector<400x128xf32>
      %15 = arith.addf %12, %14 : vector<400x128xf32>
      %c0_13 = arith.constant 0 : index
      %c0_14 = arith.constant 0 : index
      %16 = vector.load %arg6[%c0_13, %c0_14] : memref<400x128xf32, #tpu.memory_space<vmem>>, vector<400x128xf32>
      tpu.vector_store %arg6[%c0_13, %c0_14], %15 {strides = array<i32>} : memref<400x128xf32, #tpu.memory_space<vmem>>, vector<400x128xf32>,
    } else {
    }
    return
  }
  func.func @transform_0(%arg0: i32, %arg1: i32, %arg2: i32) -> (i32, i32) {
    %c0_i32 = arith.constant 0 : i32
    return %arg0, %arg2 : i32, i32
  }
  func.func @transform_1(%arg0: i32, %arg1: i32, %arg2: i32) -> (i32, i32) {
    %c0_i32 = arith.constant 0 : i32
    return %arg2, %arg1 : i32, i32
  }
  func.func @transform_2(%arg0: i32, %arg1: i32, %arg2: i32) -> (i32, i32) {
    %c0_i32 = arith.constant 0 : i32
    %c0_i32_0 = arith.constant 0 : i32
    return %c0_i32, %arg1 : i32, i32
  }
  func.func @transform_3(%arg0: i32, %arg1: i32, %arg2: i32) -> (i32, i32) {
    %c0_i32 = arith.constant 0 : i32
    return %arg0, %arg1 : i32, i32
  }
}

module attributes {stable_mosaic.version = 11 : i64} {
  func.func @matmul_bias_kernel(%arg0: i32, %arg1: i32, %arg2: i32, %arg3: memref<400x128xbf16, #tpu.memory_space<vmem>>, %arg4: memref<128x256xbf16, #tpu.memory_space<vmem>>, %arg5: memref<1x256xf32, #tpu.memory_space<vmem>>, %arg6: memref<400x256xf32, #tpu.memory_space<vmem>>) attributes {dimension_semantics = [#tpu.dimension_semantics<parallel>, #tpu.dimension_semantics<parallel>, #tpu.dimension_semantics<arbitrary>], iteration_bounds = array<i64: 1, 1, 5>, scalar_prefetch = 0 : i64, scratch_operands = 0 : i64, tpu.core_type = #tpu.core_type<tc>, window_params = [{transform_indices = @transform_0, window_bounds = array<i64: 400, 128>}, {transform_indices = @transform_1, window_bounds = array<i64: 128, 256>}, {transform_indices = @transform_2, window_bounds = array<i64: 1, 256>}, {transform_indices = @transform_3, window_bounds = array<i64: 400, 256>}]} {
    %c0_i32 = arith.constant 0 : i32
    %0 = arith.cmpi eq, %arg2, %c0_i32 : i32
    %1 = arith.extui %0 : i1 to i32
    %c0_i32_0 = arith.constant 0 : i32
    %2 = arith.cmpi ne, %1, %c0_i32_0 : i32
    scf.if %2 {
      %cst_9 = arith.constant 0.000000e+00 : f32
      %12 = vector.broadcast %cst_9 : f32 to vector<400x256xf32>
      %c0_10 = arith.constant 0 : index
      %c0_11 = arith.constant 0 : index
      %13 = vector.load %arg6[%c0_10, %c0_11] : memref<400x256xf32, #tpu.memory_space<vmem>>, vector<400x256xf32>
      tpu.vector_store %arg6[%c0_10, %c0_11], %12 {strides = array<i32>} : memref<400x256xf32, #tpu.memory_space<vmem>>, vector<400x256xf32>,
    } else {
    }
    %c0 = arith.constant 0 : index
    %c0_1 = arith.constant 0 : index
    %3 = vector.load %arg6[%c0, %c0_1] : memref<400x256xf32, #tpu.memory_space<vmem>>, vector<400x256xf32>
    %c0_2 = arith.constant 0 : index
    %c0_3 = arith.constant 0 : index
    %4 = vector.load %arg3[%c0_2, %c0_3] : memref<400x128xbf16, #tpu.memory_space<vmem>>, vector<400x128xbf16>
    %c0_4 = arith.constant 0 : index
    %c0_5 = arith.constant 0 : index
    %5 = vector.load %arg4[%c0_4, %c0_5] : memref<128x256xbf16, #tpu.memory_space<vmem>>, vector<128x256xbf16>
    %cst = arith.constant dense<0.000000e+00> : vector<400x256xf32>
    %6 = tpu.matmul %4, %5, %cst {dimension_numbers = #tpu.dot_dimension_numbers<[1], [0], [0], [1], [0, 0, 1, 1], [], []>} : vector<400x128xbf16>, vector<128x256xbf16>, vector<400x256xf32> -> vector<400x256xf32>
    %7 = arith.addf %3, %6 : vector<400x256xf32>
    %c0_6 = arith.constant 0 : index
    %c0_7 = arith.constant 0 : index
    %8 = vector.load %arg6[%c0_6, %c0_7] : memref<400x256xf32, #tpu.memory_space<vmem>>, vector<400x256xf32>
    tpu.vector_store %arg6[%c0_6, %c0_7], %7 {strides = array<i32>} : memref<400x256xf32, #tpu.memory_space<vmem>>, vector<400x256xf32>,
    %c4_i32 = arith.constant 4 : i32
    %9 = arith.cmpi eq, %arg2, %c4_i32 : i32
    %10 = arith.extui %9 : i1 to i32
    %c0_i32_8 = arith.constant 0 : i32
    %11 = arith.cmpi ne, %10, %c0_i32_8 : i32
    scf.if %11 {
      %c0_9 = arith.constant 0 : index
      %c0_10 = arith.constant 0 : index
      %12 = vector.load %arg6[%c0_9, %c0_10] : memref<400x256xf32, #tpu.memory_space<vmem>>, vector<400x256xf32>
      %c0_11 = arith.constant 0 : index
      %c0_12 = arith.constant 0 : index
      %13 = vector.load %arg5[%c0_11, %c0_12] : memref<1x256xf32, #tpu.memory_space<vmem>>, vector<1x256xf32>
      %14 = vector.broadcast %13 : vector<1x256xf32> to vector<400x256xf32>
      %15 = arith.addf %12, %14 : vector<400x256xf32>
      %cst_13 = arith.constant 0.000000e+00 : f32
      %16 = vector.broadcast %cst_13 : f32 to vector<400x256xf32>
      %17 = arith.maximumf %15, %16 : vector<400x256xf32>
      %c0_14 = arith.constant 0 : index
      %c0_15 = arith.constant 0 : index
      %18 = vector.load %arg6[%c0_14, %c0_15] : memref<400x256xf32, #tpu.memory_space<vmem>>, vector<400x256xf32>
      tpu.vector_store %arg6[%c0_14, %c0_15], %17 {strides = array<i32>} : memref<400x256xf32, #tpu.memory_space<vmem>>, vector<400x256xf32>,
    } else {
    }
    return
  }
  func.func @transform_0(%arg0: i32, %arg1: i32, %arg2: i32) -> (i32, i32) {
    %c0_i32 = arith.constant 0 : i32
    return %arg0, %arg2 : i32, i32
  }
  func.func @transform_1(%arg0: i32, %arg1: i32, %arg2: i32) -> (i32, i32) {
    %c0_i32 = arith.constant 0 : i32
    return %arg2, %arg1 : i32, i32
  }
  func.func @transform_2(%arg0: i32, %arg1: i32, %arg2: i32) -> (i32, i32) {
    %c0_i32 = arith.constant 0 : i32
    %c0_i32_0 = arith.constant 0 : i32
    return %c0_i32, %arg1 : i32, i32
  }
  func.func @transform_3(%arg0: i32, %arg1: i32, %arg2: i32) -> (i32, i32) {
    %c0_i32 = arith.constant 0 : i32
    return %arg0, %arg1 : i32, i32
  }
}

module attributes {stable_mosaic.version = 11 : i64} {
  func.func @matmul_bias_kernel(%arg0: i32, %arg1: i32, %arg2: i32, %arg3: memref<112x512xbf16, #tpu.memory_space<vmem>>, %arg4: memref<512x256xbf16, #tpu.memory_space<vmem>>, %arg5: memref<1x256xf32, #tpu.memory_space<vmem>>, %arg6: memref<112x256xf32, #tpu.memory_space<vmem>>) attributes {dimension_semantics = [#tpu.dimension_semantics<parallel>, #tpu.dimension_semantics<parallel>, #tpu.dimension_semantics<arbitrary>], iteration_bounds = array<i64: 1, 1, 5>, scalar_prefetch = 0 : i64, scratch_operands = 0 : i64, tpu.core_type = #tpu.core_type<tc>, window_params = [{transform_indices = @transform_0, window_bounds = array<i64: 112, 512>}, {transform_indices = @transform_1, window_bounds = array<i64: 512, 256>}, {transform_indices = @transform_2, window_bounds = array<i64: 1, 256>}, {transform_indices = @transform_3, window_bounds = array<i64: 112, 256>}]} {
    %c0_i32 = arith.constant 0 : i32
    %0 = arith.cmpi eq, %arg2, %c0_i32 : i32
    %1 = arith.extui %0 : i1 to i32
    %c0_i32_0 = arith.constant 0 : i32
    %2 = arith.cmpi ne, %1, %c0_i32_0 : i32
    scf.if %2 {
      %cst_9 = arith.constant 0.000000e+00 : f32
      %12 = vector.broadcast %cst_9 : f32 to vector<112x256xf32>
      %c0_10 = arith.constant 0 : index
      %c0_11 = arith.constant 0 : index
      %13 = vector.load %arg6[%c0_10, %c0_11] : memref<112x256xf32, #tpu.memory_space<vmem>>, vector<112x256xf32>
      tpu.vector_store %arg6[%c0_10, %c0_11], %12 {strides = array<i32>} : memref<112x256xf32, #tpu.memory_space<vmem>>, vector<112x256xf32>,
    } else {
    }
    %c0 = arith.constant 0 : index
    %c0_1 = arith.constant 0 : index
    %3 = vector.load %arg6[%c0, %c0_1] : memref<112x256xf32, #tpu.memory_space<vmem>>, vector<112x256xf32>
    %c0_2 = arith.constant 0 : index
    %c0_3 = arith.constant 0 : index
    %4 = vector.load %arg3[%c0_2, %c0_3] : memref<112x512xbf16, #tpu.memory_space<vmem>>, vector<112x512xbf16>
    %c0_4 = arith.constant 0 : index
    %c0_5 = arith.constant 0 : index
    %5 = vector.load %arg4[%c0_4, %c0_5] : memref<512x256xbf16, #tpu.memory_space<vmem>>, vector<512x256xbf16>
    %cst = arith.constant dense<0.000000e+00> : vector<112x256xf32>
    %6 = tpu.matmul %4, %5, %cst {dimension_numbers = #tpu.dot_dimension_numbers<[1], [0], [0], [1], [0, 0, 1, 1], [], []>} : vector<112x512xbf16>, vector<512x256xbf16>, vector<112x256xf32> -> vector<112x256xf32>
    %7 = arith.addf %3, %6 : vector<112x256xf32>
    %c0_6 = arith.constant 0 : index
    %c0_7 = arith.constant 0 : index
    %8 = vector.load %arg6[%c0_6, %c0_7] : memref<112x256xf32, #tpu.memory_space<vmem>>, vector<112x256xf32>
    tpu.vector_store %arg6[%c0_6, %c0_7], %7 {strides = array<i32>} : memref<112x256xf32, #tpu.memory_space<vmem>>, vector<112x256xf32>,
    %c4_i32 = arith.constant 4 : i32
    %9 = arith.cmpi eq, %arg2, %c4_i32 : i32
    %10 = arith.extui %9 : i1 to i32
    %c0_i32_8 = arith.constant 0 : i32
    %11 = arith.cmpi ne, %10, %c0_i32_8 : i32
    scf.if %11 {
      %c0_9 = arith.constant 0 : index
      %c0_10 = arith.constant 0 : index
      %12 = vector.load %arg6[%c0_9, %c0_10] : memref<112x256xf32, #tpu.memory_space<vmem>>, vector<112x256xf32>
      %c0_11 = arith.constant 0 : index
      %c0_12 = arith.constant 0 : index
      %13 = vector.load %arg5[%c0_11, %c0_12] : memref<1x256xf32, #tpu.memory_space<vmem>>, vector<1x256xf32>
      %14 = vector.broadcast %13 : vector<1x256xf32> to vector<112x256xf32>
      %15 = arith.addf %12, %14 : vector<112x256xf32>
      %c0_13 = arith.constant 0 : index
      %c0_14 = arith.constant 0 : index
      %16 = vector.load %arg6[%c0_13, %c0_14] : memref<112x256xf32, #tpu.memory_space<vmem>>, vector<112x256xf32>
      tpu.vector_store %arg6[%c0_13, %c0_14], %15 {strides = array<i32>} : memref<112x256xf32, #tpu.memory_space<vmem>>, vector<112x256xf32>,
    } else {
    }
    return
  }
  func.func @transform_0(%arg0: i32, %arg1: i32, %arg2: i32) -> (i32, i32) {
    %c0_i32 = arith.constant 0 : i32
    return %arg0, %arg2 : i32, i32
  }
  func.func @transform_1(%arg0: i32, %arg1: i32, %arg2: i32) -> (i32, i32) {
    %c0_i32 = arith.constant 0 : i32
    return %arg2, %arg1 : i32, i32
  }
  func.func @transform_2(%arg0: i32, %arg1: i32, %arg2: i32) -> (i32, i32) {
    %c0_i32 = arith.constant 0 : i32
    %c0_i32_0 = arith.constant 0 : i32
    return %c0_i32, %arg1 : i32, i32
  }
  func.func @transform_3(%arg0: i32, %arg1: i32, %arg2: i32) -> (i32, i32) {
    %c0_i32 = arith.constant 0 : i32
    return %arg0, %arg1 : i32, i32
  }
}

module attributes {stable_mosaic.version = 11 : i64} {
  func.func @matmul_bias_kernel(%arg0: i32, %arg1: i32, %arg2: i32, %arg3: memref<112x128xbf16, #tpu.memory_space<vmem>>, %arg4: memref<128x256xbf16, #tpu.memory_space<vmem>>, %arg5: memref<1x256xf32, #tpu.memory_space<vmem>>, %arg6: memref<112x256xf32, #tpu.memory_space<vmem>>) attributes {dimension_semantics = [#tpu.dimension_semantics<parallel>, #tpu.dimension_semantics<parallel>, #tpu.dimension_semantics<arbitrary>], iteration_bounds = array<i64: 1, 1, 1>, scalar_prefetch = 0 : i64, scratch_operands = 0 : i64, tpu.core_type = #tpu.core_type<tc>, window_params = [{transform_indices = @transform_0, window_bounds = array<i64: 112, 128>}, {transform_indices = @transform_1, window_bounds = array<i64: 128, 256>}, {transform_indices = @transform_2, window_bounds = array<i64: 1, 256>}, {transform_indices = @transform_3, window_bounds = array<i64: 112, 256>}]} {
    %c0_i32 = arith.constant 0 : i32
    %0 = arith.cmpi eq, %arg2, %c0_i32 : i32
    %1 = arith.extui %0 : i1 to i32
    %c0_i32_0 = arith.constant 0 : i32
    %2 = arith.cmpi ne, %1, %c0_i32_0 : i32
    scf.if %2 {
      %cst_10 = arith.constant 0.000000e+00 : f32
      %12 = vector.broadcast %cst_10 : f32 to vector<112x256xf32>
      %c0_11 = arith.constant 0 : index
      %c0_12 = arith.constant 0 : index
      %13 = vector.load %arg6[%c0_11, %c0_12] : memref<112x256xf32, #tpu.memory_space<vmem>>, vector<112x256xf32>
      tpu.vector_store %arg6[%c0_11, %c0_12], %12 {strides = array<i32>} : memref<112x256xf32, #tpu.memory_space<vmem>>, vector<112x256xf32>,
    } else {
    }
    %c0 = arith.constant 0 : index
    %c0_1 = arith.constant 0 : index
    %3 = vector.load %arg6[%c0, %c0_1] : memref<112x256xf32, #tpu.memory_space<vmem>>, vector<112x256xf32>
    %c0_2 = arith.constant 0 : index
    %c0_3 = arith.constant 0 : index
    %4 = vector.load %arg3[%c0_2, %c0_3] : memref<112x128xbf16, #tpu.memory_space<vmem>>, vector<112x128xbf16>
    %c0_4 = arith.constant 0 : index
    %c0_5 = arith.constant 0 : index
    %5 = vector.load %arg4[%c0_4, %c0_5] : memref<128x256xbf16, #tpu.memory_space<vmem>>, vector<128x256xbf16>
    %cst = arith.constant dense<0.000000e+00> : vector<112x256xf32>
    %6 = tpu.matmul %4, %5, %cst {dimension_numbers = #tpu.dot_dimension_numbers<[1], [0], [0], [1], [0, 0, 1, 1], [], []>} : vector<112x128xbf16>, vector<128x256xbf16>, vector<112x256xf32> -> vector<112x256xf32>
    %7 = arith.addf %3, %6 : vector<112x256xf32>
    %c0_6 = arith.constant 0 : index
    %c0_7 = arith.constant 0 : index
    %8 = vector.load %arg6[%c0_6, %c0_7] : memref<112x256xf32, #tpu.memory_space<vmem>>, vector<112x256xf32>
    tpu.vector_store %arg6[%c0_6, %c0_7], %7 {strides = array<i32>} : memref<112x256xf32, #tpu.memory_space<vmem>>, vector<112x256xf32>,
    %c0_i32_8 = arith.constant 0 : i32
    %9 = arith.cmpi eq, %arg2, %c0_i32_8 : i32
    %10 = arith.extui %9 : i1 to i32
    %c0_i32_9 = arith.constant 0 : i32
    %11 = arith.cmpi ne, %10, %c0_i32_9 : i32
    scf.if %11 {
      %c0_10 = arith.constant 0 : index
      %c0_11 = arith.constant 0 : index
      %12 = vector.load %arg6[%c0_10, %c0_11] : memref<112x256xf32, #tpu.memory_space<vmem>>, vector<112x256xf32>
      %c0_12 = arith.constant 0 : index
      %c0_13 = arith.constant 0 : index
      %13 = vector.load %arg5[%c0_12, %c0_13] : memref<1x256xf32, #tpu.memory_space<vmem>>, vector<1x256xf32>
      %14 = vector.broadcast %13 : vector<1x256xf32> to vector<112x256xf32>
      %15 = arith.addf %12, %14 : vector<112x256xf32>
      %c0_14 = arith.constant 0 : index
      %c0_15 = arith.constant 0 : index
      %16 = vector.load %arg6[%c0_14, %c0_15] : memref<112x256xf32, #tpu.memory_space<vmem>>, vector<112x256xf32>
      tpu.vector_store %arg6[%c0_14, %c0_15], %15 {strides = array<i32>} : memref<112x256xf32, #tpu.memory_space<vmem>>, vector<112x256xf32>,
    } else {
    }
    return
  }
  func.func @transform_0(%arg0: i32, %arg1: i32, %arg2: i32) -> (i32, i32) {
    %c0_i32 = arith.constant 0 : i32
    return %arg0, %arg2 : i32, i32
  }
  func.func @transform_1(%arg0: i32, %arg1: i32, %arg2: i32) -> (i32, i32) {
    %c0_i32 = arith.constant 0 : i32
    return %arg2, %arg1 : i32, i32
  }
  func.func @transform_2(%arg0: i32, %arg1: i32, %arg2: i32) -> (i32, i32) {
    %c0_i32 = arith.constant 0 : i32
    %c0_i32_0 = arith.constant 0 : i32
    return %c0_i32, %arg1 : i32, i32
  }
  func.func @transform_3(%arg0: i32, %arg1: i32, %arg2: i32) -> (i32, i32) {
    %c0_i32 = arith.constant 0 : i32
    return %arg0, %arg1 : i32, i32
  }
}

module attributes {stable_mosaic.version = 11 : i64} {
  func.func @matmul_bias_kernel(%arg0: i32, %arg1: i32, %arg2: i32, %arg3: memref<112x512xbf16, #tpu.memory_space<vmem>>, %arg4: memref<512x256xbf16, #tpu.memory_space<vmem>>, %arg5: memref<1x256xf32, #tpu.memory_space<vmem>>, %arg6: memref<112x256xf32, #tpu.memory_space<vmem>>) attributes {dimension_semantics = [#tpu.dimension_semantics<parallel>, #tpu.dimension_semantics<parallel>, #tpu.dimension_semantics<arbitrary>], iteration_bounds = array<i64: 1, 1, 5>, scalar_prefetch = 0 : i64, scratch_operands = 0 : i64, tpu.core_type = #tpu.core_type<tc>, window_params = [{transform_indices = @transform_0, window_bounds = array<i64: 112, 512>}, {transform_indices = @transform_1, window_bounds = array<i64: 512, 256>}, {transform_indices = @transform_2, window_bounds = array<i64: 1, 256>}, {transform_indices = @transform_3, window_bounds = array<i64: 112, 256>}]} {
    %c0_i32 = arith.constant 0 : i32
    %0 = arith.cmpi eq, %arg2, %c0_i32 : i32
    %1 = arith.extui %0 : i1 to i32
    %c0_i32_0 = arith.constant 0 : i32
    %2 = arith.cmpi ne, %1, %c0_i32_0 : i32
    scf.if %2 {
      %cst_9 = arith.constant 0.000000e+00 : f32
      %12 = vector.broadcast %cst_9 : f32 to vector<112x256xf32>
      %c0_10 = arith.constant 0 : index
      %c0_11 = arith.constant 0 : index
      %13 = vector.load %arg6[%c0_10, %c0_11] : memref<112x256xf32, #tpu.memory_space<vmem>>, vector<112x256xf32>
      tpu.vector_store %arg6[%c0_10, %c0_11], %12 {strides = array<i32>} : memref<112x256xf32, #tpu.memory_space<vmem>>, vector<112x256xf32>,
    } else {
    }
    %c0 = arith.constant 0 : index
    %c0_1 = arith.constant 0 : index
    %3 = vector.load %arg6[%c0, %c0_1] : memref<112x256xf32, #tpu.memory_space<vmem>>, vector<112x256xf32>
    %c0_2 = arith.constant 0 : index
    %c0_3 = arith.constant 0 : index
    %4 = vector.load %arg3[%c0_2, %c0_3] : memref<112x512xbf16, #tpu.memory_space<vmem>>, vector<112x512xbf16>
    %c0_4 = arith.constant 0 : index
    %c0_5 = arith.constant 0 : index
    %5 = vector.load %arg4[%c0_4, %c0_5] : memref<512x256xbf16, #tpu.memory_space<vmem>>, vector<512x256xbf16>
    %cst = arith.constant dense<0.000000e+00> : vector<112x256xf32>
    %6 = tpu.matmul %4, %5, %cst {dimension_numbers = #tpu.dot_dimension_numbers<[1], [0], [0], [1], [0, 0, 1, 1], [], []>} : vector<112x512xbf16>, vector<512x256xbf16>, vector<112x256xf32> -> vector<112x256xf32>
    %7 = arith.addf %3, %6 : vector<112x256xf32>
    %c0_6 = arith.constant 0 : index
    %c0_7 = arith.constant 0 : index
    %8 = vector.load %arg6[%c0_6, %c0_7] : memref<112x256xf32, #tpu.memory_space<vmem>>, vector<112x256xf32>
    tpu.vector_store %arg6[%c0_6, %c0_7], %7 {strides = array<i32>} : memref<112x256xf32, #tpu.memory_space<vmem>>, vector<112x256xf32>,
    %c4_i32 = arith.constant 4 : i32
    %9 = arith.cmpi eq, %arg2, %c4_i32 : i32
    %10 = arith.extui %9 : i1 to i32
    %c0_i32_8 = arith.constant 0 : i32
    %11 = arith.cmpi ne, %10, %c0_i32_8 : i32
    scf.if %11 {
      %c0_9 = arith.constant 0 : index
      %c0_10 = arith.constant 0 : index
      %12 = vector.load %arg6[%c0_9, %c0_10] : memref<112x256xf32, #tpu.memory_space<vmem>>, vector<112x256xf32>
      %c0_11 = arith.constant 0 : index
      %c0_12 = arith.constant 0 : index
      %13 = vector.load %arg5[%c0_11, %c0_12] : memref<1x256xf32, #tpu.memory_space<vmem>>, vector<1x256xf32>
      %14 = vector.broadcast %13 : vector<1x256xf32> to vector<112x256xf32>
      %15 = arith.addf %12, %14 : vector<112x256xf32>
      %cst_13 = arith.constant 0.000000e+00 : f32
      %16 = vector.broadcast %cst_13 : f32 to vector<112x256xf32>
      %17 = arith.maximumf %15, %16 : vector<112x256xf32>
      %c0_14 = arith.constant 0 : index
      %c0_15 = arith.constant 0 : index
      %18 = vector.load %arg6[%c0_14, %c0_15] : memref<112x256xf32, #tpu.memory_space<vmem>>, vector<112x256xf32>
      tpu.vector_store %arg6[%c0_14, %c0_15], %17 {strides = array<i32>} : memref<112x256xf32, #tpu.memory_space<vmem>>, vector<112x256xf32>,
    } else {
    }
    return
  }
  func.func @transform_0(%arg0: i32, %arg1: i32, %arg2: i32) -> (i32, i32) {
    %c0_i32 = arith.constant 0 : i32
    return %arg0, %arg2 : i32, i32
  }
  func.func @transform_1(%arg0: i32, %arg1: i32, %arg2: i32) -> (i32, i32) {
    %c0_i32 = arith.constant 0 : i32
    return %arg2, %arg1 : i32, i32
  }
  func.func @transform_2(%arg0: i32, %arg1: i32, %arg2: i32) -> (i32, i32) {
    %c0_i32 = arith.constant 0 : i32
    %c0_i32_0 = arith.constant 0 : i32
    return %c0_i32, %arg1 : i32, i32
  }
  func.func @transform_3(%arg0: i32, %arg1: i32, %arg2: i32) -> (i32, i32) {
    %c0_i32 = arith.constant 0 : i32
    return %arg0, %arg1 : i32, i32
  }
}

module attributes {stable_mosaic.version = 11 : i64} {
  func.func @matmul_bias_kernel(%arg0: i32, %arg1: i32, %arg2: i32, %arg3: memref<16x512xbf16, #tpu.memory_space<vmem>>, %arg4: memref<512x256xbf16, #tpu.memory_space<vmem>>, %arg5: memref<1x256xf32, #tpu.memory_space<vmem>>, %arg6: memref<16x256xf32, #tpu.memory_space<vmem>>) attributes {dimension_semantics = [#tpu.dimension_semantics<parallel>, #tpu.dimension_semantics<parallel>, #tpu.dimension_semantics<arbitrary>], iteration_bounds = array<i64: 1, 4, 25>, scalar_prefetch = 0 : i64, scratch_operands = 0 : i64, tpu.core_type = #tpu.core_type<tc>, window_params = [{transform_indices = @transform_0, window_bounds = array<i64: 16, 512>}, {transform_indices = @transform_1, window_bounds = array<i64: 512, 256>}, {transform_indices = @transform_2, window_bounds = array<i64: 1, 256>}, {transform_indices = @transform_3, window_bounds = array<i64: 16, 256>}]} {
    %c0_i32 = arith.constant 0 : i32
    %0 = arith.cmpi eq, %arg2, %c0_i32 : i32
    %1 = arith.extui %0 : i1 to i32
    %c0_i32_0 = arith.constant 0 : i32
    %2 = arith.cmpi ne, %1, %c0_i32_0 : i32
    scf.if %2 {
      %cst_9 = arith.constant 0.000000e+00 : f32
      %12 = vector.broadcast %cst_9 : f32 to vector<16x256xf32>
      %c0_10 = arith.constant 0 : index
      %c0_11 = arith.constant 0 : index
      %13 = vector.load %arg6[%c0_10, %c0_11] : memref<16x256xf32, #tpu.memory_space<vmem>>, vector<16x256xf32>
      tpu.vector_store %arg6[%c0_10, %c0_11], %12 {strides = array<i32>} : memref<16x256xf32, #tpu.memory_space<vmem>>, vector<16x256xf32>,
    } else {
    }
    %c0 = arith.constant 0 : index
    %c0_1 = arith.constant 0 : index
    %3 = vector.load %arg6[%c0, %c0_1] : memref<16x256xf32, #tpu.memory_space<vmem>>, vector<16x256xf32>
    %c0_2 = arith.constant 0 : index
    %c0_3 = arith.constant 0 : index
    %4 = vector.load %arg3[%c0_2, %c0_3] : memref<16x512xbf16, #tpu.memory_space<vmem>>, vector<16x512xbf16>
    %c0_4 = arith.constant 0 : index
    %c0_5 = arith.constant 0 : index
    %5 = vector.load %arg4[%c0_4, %c0_5] : memref<512x256xbf16, #tpu.memory_space<vmem>>, vector<512x256xbf16>
    %cst = arith.constant dense<0.000000e+00> : vector<16x256xf32>
    %6 = tpu.matmul %4, %5, %cst {dimension_numbers = #tpu.dot_dimension_numbers<[1], [0], [0], [1], [0, 0, 1, 1], [], []>} : vector<16x512xbf16>, vector<512x256xbf16>, vector<16x256xf32> -> vector<16x256xf32>
    %7 = arith.addf %3, %6 : vector<16x256xf32>
    %c0_6 = arith.constant 0 : index
    %c0_7 = arith.constant 0 : index
    %8 = vector.load %arg6[%c0_6, %c0_7] : memref<16x256xf32, #tpu.memory_space<vmem>>, vector<16x256xf32>
    tpu.vector_store %arg6[%c0_6, %c0_7], %7 {strides = array<i32>} : memref<16x256xf32, #tpu.memory_space<vmem>>, vector<16x256xf32>,
    %c24_i32 = arith.constant 24 : i32
    %9 = arith.cmpi eq, %arg2, %c24_i32 : i32
    %10 = arith.extui %9 : i1 to i32
    %c0_i32_8 = arith.constant 0 : i32
    %11 = arith.cmpi ne, %10, %c0_i32_8 : i32
    scf.if %11 {
      %c0_9 = arith.constant 0 : index
      %c0_10 = arith.constant 0 : index
      %12 = vector.load %arg6[%c0_9, %c0_10] : memref<16x256xf32, #tpu.memory_space<vmem>>, vector<16x256xf32>
      %c0_11 = arith.constant 0 : index
      %c0_12 = arith.constant 0 : index
      %13 = vector.load %arg5[%c0_11, %c0_12] : memref<1x256xf32, #tpu.memory_space<vmem>>, vector<1x256xf32>
      %14 = vector.broadcast %13 : vector<1x256xf32> to vector<16x256xf32>
      %15 = arith.addf %12, %14 : vector<16x256xf32>
      %cst_13 = arith.constant 0.000000e+00 : f32
      %16 = vector.broadcast %cst_13 : f32 to vector<16x256xf32>
      %17 = arith.maximumf %15, %16 : vector<16x256xf32>
      %c0_14 = arith.constant 0 : index
      %c0_15 = arith.constant 0 : index
      %18 = vector.load %arg6[%c0_14, %c0_15] : memref<16x256xf32, #tpu.memory_space<vmem>>, vector<16x256xf32>
      tpu.vector_store %arg6[%c0_14, %c0_15], %17 {strides = array<i32>} : memref<16x256xf32, #tpu.memory_space<vmem>>, vector<16x256xf32>,
    } else {
    }
    return
  }
  func.func @transform_0(%arg0: i32, %arg1: i32, %arg2: i32) -> (i32, i32) {
    %c0_i32 = arith.constant 0 : i32
    return %arg0, %arg2 : i32, i32
  }
  func.func @transform_1(%arg0: i32, %arg1: i32, %arg2: i32) -> (i32, i32) {
    %c0_i32 = arith.constant 0 : i32
    return %arg2, %arg1 : i32, i32
  }
  func.func @transform_2(%arg0: i32, %arg1: i32, %arg2: i32) -> (i32, i32) {
    %c0_i32 = arith.constant 0 : i32
    %c0_i32_0 = arith.constant 0 : i32
    return %c0_i32, %arg1 : i32, i32
  }
  func.func @transform_3(%arg0: i32, %arg1: i32, %arg2: i32) -> (i32, i32) {
    %c0_i32 = arith.constant 0 : i32
    return %arg0, %arg1 : i32, i32
  }
}

module attributes {stable_mosaic.version = 11 : i64} {
  func.func @matmul_bias_kernel(%arg0: i32, %arg1: i32, %arg2: i32, %arg3: memref<16x512xbf16, #tpu.memory_space<vmem>>, %arg4: memref<512x128xbf16, #tpu.memory_space<vmem>>, %arg5: memref<1x128xf32, #tpu.memory_space<vmem>>, %arg6: memref<16x128xf32, #tpu.memory_space<vmem>>) attributes {dimension_semantics = [#tpu.dimension_semantics<parallel>, #tpu.dimension_semantics<parallel>, #tpu.dimension_semantics<arbitrary>], iteration_bounds = array<i64: 1, 1, 2>, scalar_prefetch = 0 : i64, scratch_operands = 0 : i64, tpu.core_type = #tpu.core_type<tc>, window_params = [{transform_indices = @transform_0, window_bounds = array<i64: 16, 512>}, {transform_indices = @transform_1, window_bounds = array<i64: 512, 128>}, {transform_indices = @transform_2, window_bounds = array<i64: 1, 128>}, {transform_indices = @transform_3, window_bounds = array<i64: 16, 128>}]} {
    %c0_i32 = arith.constant 0 : i32
    %0 = arith.cmpi eq, %arg2, %c0_i32 : i32
    %1 = arith.extui %0 : i1 to i32
    %c0_i32_0 = arith.constant 0 : i32
    %2 = arith.cmpi ne, %1, %c0_i32_0 : i32
    scf.if %2 {
      %cst_9 = arith.constant 0.000000e+00 : f32
      %12 = vector.broadcast %cst_9 : f32 to vector<16x128xf32>
      %c0_10 = arith.constant 0 : index
      %c0_11 = arith.constant 0 : index
      %13 = vector.load %arg6[%c0_10, %c0_11] : memref<16x128xf32, #tpu.memory_space<vmem>>, vector<16x128xf32>
      tpu.vector_store %arg6[%c0_10, %c0_11], %12 {strides = array<i32>} : memref<16x128xf32, #tpu.memory_space<vmem>>, vector<16x128xf32>,
    } else {
    }
    %c0 = arith.constant 0 : index
    %c0_1 = arith.constant 0 : index
    %3 = vector.load %arg6[%c0, %c0_1] : memref<16x128xf32, #tpu.memory_space<vmem>>, vector<16x128xf32>
    %c0_2 = arith.constant 0 : index
    %c0_3 = arith.constant 0 : index
    %4 = vector.load %arg3[%c0_2, %c0_3] : memref<16x512xbf16, #tpu.memory_space<vmem>>, vector<16x512xbf16>
    %c0_4 = arith.constant 0 : index
    %c0_5 = arith.constant 0 : index
    %5 = vector.load %arg4[%c0_4, %c0_5] : memref<512x128xbf16, #tpu.memory_space<vmem>>, vector<512x128xbf16>
    %cst = arith.constant dense<0.000000e+00> : vector<16x128xf32>
    %6 = tpu.matmul %4, %5, %cst {dimension_numbers = #tpu.dot_dimension_numbers<[1], [0], [0], [1], [0, 0, 1, 1], [], []>} : vector<16x512xbf16>, vector<512x128xbf16>, vector<16x128xf32> -> vector<16x128xf32>
    %7 = arith.addf %3, %6 : vector<16x128xf32>
    %c0_6 = arith.constant 0 : index
    %c0_7 = arith.constant 0 : index
    %8 = vector.load %arg6[%c0_6, %c0_7] : memref<16x128xf32, #tpu.memory_space<vmem>>, vector<16x128xf32>
    tpu.vector_store %arg6[%c0_6, %c0_7], %7 {strides = array<i32>} : memref<16x128xf32, #tpu.memory_space<vmem>>, vector<16x128xf32>,
    %c1_i32 = arith.constant 1 : i32
    %9 = arith.cmpi eq, %arg2, %c1_i32 : i32
    %10 = arith.extui %9 : i1 to i32
    %c0_i32_8 = arith.constant 0 : i32
    %11 = arith.cmpi ne, %10, %c0_i32_8 : i32
    scf.if %11 {
      %c0_9 = arith.constant 0 : index
      %c0_10 = arith.constant 0 : index
      %12 = vector.load %arg6[%c0_9, %c0_10] : memref<16x128xf32, #tpu.memory_space<vmem>>, vector<16x128xf32>
      %c0_11 = arith.constant 0 : index
      %c0_12 = arith.constant 0 : index
      %13 = vector.load %arg5[%c0_11, %c0_12] : memref<1x128xf32, #tpu.memory_space<vmem>>, vector<1x128xf32>
      %14 = vector.broadcast %13 : vector<1x128xf32> to vector<16x128xf32>
      %15 = arith.addf %12, %14 : vector<16x128xf32>
      %c0_13 = arith.constant 0 : index
      %c0_14 = arith.constant 0 : index
      %16 = vector.load %arg6[%c0_13, %c0_14] : memref<16x128xf32, #tpu.memory_space<vmem>>, vector<16x128xf32>
      tpu.vector_store %arg6[%c0_13, %c0_14], %15 {strides = array<i32>} : memref<16x128xf32, #tpu.memory_space<vmem>>, vector<16x128xf32>,
    } else {
    }
    return
  }
  func.func @transform_0(%arg0: i32, %arg1: i32, %arg2: i32) -> (i32, i32) {
    %c0_i32 = arith.constant 0 : i32
    return %arg0, %arg2 : i32, i32
  }
  func.func @transform_1(%arg0: i32, %arg1: i32, %arg2: i32) -> (i32, i32) {
    %c0_i32 = arith.constant 0 : i32
    return %arg2, %arg1 : i32, i32
  }
  func.func @transform_2(%arg0: i32, %arg1: i32, %arg2: i32) -> (i32, i32) {
    %c0_i32 = arith.constant 0 : i32
    %c0_i32_0 = arith.constant 0 : i32
    return %c0_i32, %arg1 : i32, i32
  }
  func.func @transform_3(%arg0: i32, %arg1: i32, %arg2: i32) -> (i32, i32) {
    %c0_i32 = arith.constant 0 : i32
    return %arg0, %arg1 : i32, i32
  }
}

</mosaic_0001>

<bundles_post_ra>
// kernel: cnn_forward.12
= control target key start
LH: loop header
LB: loop body
LE: loop exit
PB: predicated region body
PF: predicated region fallthrough
CT: control target
= control target key end

     0   :  { %s1213_s12 = smov 0   ;;  %s1215_s13 = smov 0   ;;  %s1363_s0 = inlined_call_operand.vmem [shape: bf16[1792,128], index: 0, kind: input, shape index: {}]   ;;  %s1364_s1 = inlined_call_operand.vmem [shape: bf16[128,128], index: 1, kind: input, shape index: {}]   ;;  %s1365_s2 = inlined_call_operand.vmem [shape: f32[1,128], index: 2, kind: input, shape index: {}]   ;;  %s1366_s3 = inlined_call_operand.vmem [shape: f32[1792,128], index: 3, kind: output, shape index: {}]  }
   0x1   :  { %s1217_s14 = smov 0  }
   0x2 LB: > { %s32_s15 = sadd.s32 1, %s1187_s13  ;;  %p1000_p0 = scmp.ge.s32.totalorder %s1191_s14, 1  ;;  %s1191_s14 = sphi %s1217_s14, %s13_s14   ;;  %s1187_s13 = sphi %s1215_s13, %s1368_s13   ;;  %s1183_s12 = sphi %s1213_s12, %s1367_s12  }
   0x3   : > { %p34_p1 = scmp.ge.s32.totalorder %s32_s15, 7  ;;  %p188_p2 = scmp.lt.s32.totalorder %s1191_s14, 8 }
   0x5   : > { %s1370_s15 = smov (%p34_p1, %s32_s15), 0  ;;  %p189_p3 = pnand %p1000_p0, %p188_p2 }
   0x6   : > { %v1145_v0 = vld [vmem:[%s1364_s1] sm:$0xff] (!%p189_p3)   ;;  %s1001_s18 = sshll.u32 (!%p189_p3), %s1183_s12, 5  ;;  %v1146_v1 = vld [vmem:[%s1364_s1 + $0x8] sm:$0xff] (!%p189_p3)   ;;  %v1147_v2 = vld [vmem:[%s1364_s1 + $0x10] sm:$0xff] (!%p189_p3)  }
   0x7   : > { %192 = sbr.rel (%p189_p3) target bundleno = 283 (0x11b), region = 32  ;;  %p230_p4 = scmp.lt.s32.totalorder (!%p189_p3), %s1001_s18, 223  ;;  %1056 = vmatprep.subr.bf16.mxu0 (!%p189_p3), %v1145_v0  ;;  %1104 = vmatprep.subr.bf16.mxu1 (!%p189_p3), %v1145_v0  ;;  %v1148_v3 = vld [vmem:[%s1364_s1 + $0x18] sm:$0xff] (!%p189_p3)   ;;  %v1149_v6 = vld [vmem:[%s1364_s1 + $0x20] sm:$0xff] (!%p189_p3)   ;;  %v1150_v7 = vld [vmem:[%s1364_s1 + $0x28] sm:$0xff] (!%p189_p3)  }
   0x8   : > { %1057 = vmatpush3.bf16.msra.mxu0 (!%p189_p3), %v1145_v0  ;;  %1112 = vmatpush3.bf16.msra.mxu1 (!%p189_p3), %v1145_v0  ;;  %v1151_v8 = vld [vmem:[%s1364_s1 + $0x30] sm:$0xff] (!%p189_p3)   ;;  %v1152_v9 = vld [vmem:[%s1364_s1 + $0x38] sm:$0xff] (!%p189_p3)   ;;  %v1282_v25 = vld [vmem:[%s1365_s2] ss:$0 sm:$0xff] (!%p189_p3) }
   0x9   : > { %1058 = vmatprep.subr.bf16.mxu0 (!%p189_p3), %v1146_v1  ;;  %1105 = vmatprep.subr.bf16.mxu1 (!%p189_p3), %v1146_v1 }
   0xc   : > { %1059 = vmatpush3.bf16.msra.mxu0 (!%p189_p3), %v1146_v1  ;;  %1113 = vmatpush3.bf16.msra.mxu1 (!%p189_p3), %v1146_v1 }
   0xd   : > { %1060 = vmatprep.subr.bf16.mxu0 (!%p189_p3), %v1147_v2  ;;  %1106 = vmatprep.subr.bf16.mxu1 (!%p189_p3), %v1147_v2 }
   0xe   : > { %s1372_s18 = smov (!%p230_p4, %s1001_s18), 223 }
   0xf   : > { %s1002_s23 = sshll.u32 %s1372_s18, 2  ;;  %s1004_s12 = sshll.u32 %s1372_s18, 3 }
  0x10   : > { %s1246_s26 = scalar_lea.vmem %s1363_s0, %s1002_s23  ;;  %1061 = vmatpush3.bf16.msra.mxu0 %v1147_v2  ;;  %1114 = vmatpush3.bf16.msra.mxu1 %v1147_v2  ;;  %s1290_s19 = scalar_lea.vmem %s1366_s3, %s1004_s12 }
  0x11   : > { %v1153_v4 = vld [vmem:[%s1246_s26] sm:$0xff]   ;;  %1062 = vmatprep.subr.bf16.mxu0 %v1148_v3  ;;  %1107 = vmatprep.subr.bf16.mxu1 %v1148_v3  ;;  %v1155_v10 = vld [vmem:[%s1246_s26 + $0x8] sm:$0xff]   ;;  %v1157_v12 = vld [vmem:[%s1246_s26 + $0x10] sm:$0xff]  }
  0x12   : > { %v1154_v5 = vld [vmem:[%s1246_s26 + $0x40] sm:$0xff]   ;;  %1072 = vmatprep.mubr.bf16.mxu0 %v1153_v4  ;;  %v1156_v11 = vld [vmem:[%s1246_s26 + $0x48] sm:$0xff]   ;;  %v1158_v13 = vld [vmem:[%s1246_s26 + $0x50] sm:$0xff]  }
  0x13   : > { %1088 = vmatprep.mubr.bf16.mxu1 %v1154_v5  ;;  %v1159_v14 = vld [vmem:[%s1246_s26 + $0x18] sm:$0xff]   ;;  %v1161_v16 = vld [vmem:[%s1246_s26 + $0x20] sm:$0xff]   ;;  %v1163_v18 = vld [vmem:[%s1246_s26 + $0x28] sm:$0xff]  }
  0x14   : > { %1063 = vmatpush3.bf16.msra.mxu0 %v1148_v3  ;;  %1115 = vmatpush3.bf16.msra.mxu1 %v1148_v3  ;;  %v1160_v15 = vld [vmem:[%s1246_s26 + $0x58] sm:$0xff]   ;;  %v1162_v17 = vld [vmem:[%s1246_s26 + $0x60] sm:$0xff]   ;;  %v1164_v19 = vld [vmem:[%s1246_s26 + $0x68] sm:$0xff]  }
  0x15   : > { %1064 = vmatprep.subr.bf16.mxu0 %v1149_v6  ;;  %1108 = vmatprep.subr.bf16.mxu1 %v1149_v6  ;;  %v1165_v20 = vld [vmem:[%s1246_s26 + $0x30] sm:$0xff]   ;;  %v1167_v22 = vld [vmem:[%s1246_s26 + $0x38] sm:$0xff]  }
  0x16   : > { %v1166_v21 = vld [vmem:[%s1246_s26 + $0x70] sm:$0xff]   ;;  %v1168_v23 = vld [vmem:[%s1246_s26 + $0x78] sm:$0xff]  }
  0x18   : > { %1065 = vmatpush3.bf16.msra.mxu0 %v1149_v6  ;;  %1116 = vmatpush3.bf16.msra.mxu1 %v1149_v6 }
  0x19   : > { %1066 = vmatprep.subr.bf16.mxu0 %v1150_v7  ;;  %1109 = vmatprep.subr.bf16.mxu1 %v1150_v7 }
  0x1c   : > { %1067 = vmatpush3.bf16.msra.mxu0 %v1150_v7  ;;  %1117 = vmatpush3.bf16.msra.mxu1 %v1150_v7 }
  0x1d   : > { %1068 = vmatprep.subr.bf16.mxu0 %v1151_v8  ;;  %1110 = vmatprep.subr.bf16.mxu1 %v1151_v8 }
  0x20   : > { %1069 = vmatpush3.bf16.msra.mxu0 %v1151_v8  ;;  %1118 = vmatpush3.bf16.msra.mxu1 %v1151_v8 }
  0x21   : > { %1070 = vmatprep.subr.bf16.mxu0 %v1152_v9  ;;  %1111 = vmatprep.subr.bf16.mxu1 %v1152_v9 }
  0x24   : > { %1071 = vmatpush3.bf16.msra.mxu0 %v1152_v9  ;;  %1119 = vmatpush3.bf16.msra.mxu1 %v1152_v9 }
  0x27   : > { %1073 = vmatmul.mubr.bf16.vlgmr.msra.gmra.mrb[0].mxu0 %v1155_v10  ;;  %1089 = vmatmul.mubr.bf16.vlgmr.msra.gmra.mrb[0].mxu1 %v1156_v11 }
  0x28   : > { %1076 = vmatprep.mubr.bf16.mxu0 %v1157_v12  ;;  %1092 = vmatprep.mubr.bf16.mxu1 %v1158_v13 }
  0x2f   : > { %1077 = vmatmul.mubr.bf16.gmra.mrb[4].mxu0 %v1159_v14  ;;  %1093 = vmatmul.mubr.bf16.gmra.mrb[4].mxu1 %v1160_v15 }
  0x30   : > { %1080 = vmatprep.mubr.bf16.mxu0 %v1161_v16  ;;  %1096 = vmatprep.mubr.bf16.mxu1 %v1162_v17 }
  0x37   : > { %1081 = vmatmul.mubr.bf16.gmra.mrb[8].mxu0 %v1163_v18  ;;  %1097 = vmatmul.mubr.bf16.gmra.mrb[8].mxu1 %v1164_v19 }
  0x38   : > { %1084 = vmatprep.mubr.bf16.mxu0 %v1165_v20  ;;  %1100 = vmatprep.mubr.bf16.mxu1 %v1166_v21 }
  0x3f   : > { %1085 = vmatmul.mubr.bf16.gmra.mrb[12].mxu0 %v1167_v22  ;;  %1101 = vmatmul.mubr.bf16.gmra.mrb[12].mxu1 %v1168_v23 }
  0xfa   : > { %v1074_v24 = vpop.f32.mrb[0].mxu0  ;;  %v1090_v26 = vpop.f32.mrb[0].mxu1 }
  0xfb   : > { %v554_v27 = vpop.f32.mrb[1].mxu0  ;;  %v618_v28 = vpop.f32.mrb[1].mxu1  ;;  %v789_v31 = vadd.f32 %v1074_v24, %v1282_v25  ;;  %v805_v32 = vadd.f32 %v1090_v26, %v1282_v25 }
  0xfc   : > { %v1075_v29 = vpop.f32.mrb[2].mxu0  ;;  %v1091_v30 = vpop.f32.mrb[2].mxu1  ;;  %v787_v35 = vadd.f32 %v1282_v25, %v554_v27  ;;  %v803_v36 = vadd.f32 %v1282_v25, %v618_v28 }
  0xfd   : > { %v557_v33 = vpop.f32.mrb[3].mxu0  ;;  %v621_v34 = vpop.f32.mrb[3].mxu1  ;;  %v821_v37 = vmax.f32 %v789_v31, 0.0  ;;  %v837_v38 = vmax.f32 %v805_v32, 0.0  ;;  %v790_v39 = vadd.f32 %v1075_v29, %v1282_v25  ;;  %v806_v40 = vadd.f32 %v1091_v30, %v1282_v25 }
  0xfe   : > { %v819_v41 = vmax.f32 %v787_v35, 0.0  ;;  %v835_v42 = vmax.f32 %v803_v36, 0.0  ;;  %v788_v43 = vadd.f32 %v1282_v25, %v557_v33  ;;  %v804_v44 = vadd.f32 %v1282_v25, %v621_v34 }
  0xff   : > { %853 = vst [vmem:[%s1290_s19 + $0x10] sm:$0xff] %v821_v37  ;;  %869 = vst [vmem:[%s1290_s19 + $0x90] sm:$0xff] %v837_v38  ;;  %v822_v45 = vmax.f32 %v790_v39, 0.0  ;;  %v838_v46 = vmax.f32 %v806_v40, 0.0 }
 0x100   : > { %851 = vst [vmem:[%s1290_s19] sm:$0xff] %v819_v41  ;;  %867 = vst [vmem:[%s1290_s19 + $0x80] sm:$0xff] %v835_v42  ;;  %v820_v47 = vmax.f32 %v788_v43, 0.0  ;;  %v836_v48 = vmax.f32 %v804_v44, 0.0 }
 0x101   : > { %854 = vst [vmem:[%s1290_s19 + $0x18] sm:$0xff] %v822_v45  ;;  %870 = vst [vmem:[%s1290_s19 + $0x98] sm:$0xff] %v838_v46 }
 0x102   : > { %v1078_v49 = vpop.f32.mrb[4].mxu0  ;;  %v1094_v50 = vpop.f32.mrb[4].mxu1  ;;  %852 = vst [vmem:[%s1290_s19 + $0x8] sm:$0xff] %v820_v47  ;;  %868 = vst [vmem:[%s1290_s19 + $0x88] sm:$0xff] %v836_v48 }
 0x103   : > { %v570_v51 = vpop.f32.mrb[5].mxu0  ;;  %v634_v52 = vpop.f32.mrb[5].mxu1  ;;  %v793_v55 = vadd.f32 %v1078_v49, %v1282_v25  ;;  %v809_v56 = vadd.f32 %v1094_v50, %v1282_v25 }
 0x104   : > { %v1079_v53 = vpop.f32.mrb[6].mxu0  ;;  %v1095_v54 = vpop.f32.mrb[6].mxu1  ;;  %v791_v59 = vadd.f32 %v1282_v25, %v570_v51  ;;  %v807_v60 = vadd.f32 %v1282_v25, %v634_v52 }
 0x105   : > { %v573_v57 = vpop.f32.mrb[7].mxu0  ;;  %v637_v58 = vpop.f32.mrb[7].mxu1  ;;  %v825_v61 = vmax.f32 %v793_v55, 0.0  ;;  %v841_v62 = vmax.f32 %v809_v56, 0.0  ;;  %v794_v63 = vadd.f32 %v1079_v53, %v1282_v25  ;;  %v810_v0 = vadd.f32 %v1095_v54, %v1282_v25 }
 0x106   : > { %v823_v1 = vmax.f32 %v791_v59, 0.0  ;;  %v839_v2 = vmax.f32 %v807_v60, 0.0  ;;  %v792_v3 = vadd.f32 %v1282_v25, %v573_v57  ;;  %v808_v4 = vadd.f32 %v1282_v25, %v637_v58 }
 0x107   : > { %857 = vst [vmem:[%s1290_s19 + $0x30] sm:$0xff] %v825_v61  ;;  %873 = vst [vmem:[%s1290_s19 + $0xb0] sm:$0xff] %v841_v62  ;;  %v826_v5 = vmax.f32 %v794_v63, 0.0  ;;  %v842_v6 = vmax.f32 %v810_v0, 0.0 }
 0x108   : > { %855 = vst [vmem:[%s1290_s19 + $0x20] sm:$0xff] %v823_v1  ;;  %871 = vst [vmem:[%s1290_s19 + $0xa0] sm:$0xff] %v839_v2  ;;  %v824_v7 = vmax.f32 %v792_v3, 0.0  ;;  %v840_v8 = vmax.f32 %v808_v4, 0.0 }
 0x109   : > { %858 = vst [vmem:[%s1290_s19 + $0x38] sm:$0xff] %v826_v5  ;;  %874 = vst [vmem:[%s1290_s19 + $0xb8] sm:$0xff] %v842_v6 }
 0x10a   : > { %v1082_v9 = vpop.f32.mrb[8].mxu0  ;;  %v1098_v10 = vpop.f32.mrb[8].mxu1  ;;  %856 = vst [vmem:[%s1290_s19 + $0x28] sm:$0xff] %v824_v7  ;;  %872 = vst [vmem:[%s1290_s19 + $0xa8] sm:$0xff] %v840_v8 }
 0x10b   : > { %v586_v11 = vpop.f32.mrb[9].mxu0  ;;  %v650_v12 = vpop.f32.mrb[9].mxu1  ;;  %v797_v15 = vadd.f32 %v1082_v9, %v1282_v25  ;;  %v813_v16 = vadd.f32 %v1098_v10, %v1282_v25 }
 0x10c   : > { %v1083_v13 = vpop.f32.mrb[10].mxu0  ;;  %v1099_v14 = vpop.f32.mrb[10].mxu1  ;;  %v795_v19 = vadd.f32 %v1282_v25, %v586_v11  ;;  %v811_v20 = vadd.f32 %v1282_v25, %v650_v12 }
 0x10d   : > { %v589_v17 = vpop.f32.mrb[11].mxu0  ;;  %v653_v18 = vpop.f32.mrb[11].mxu1  ;;  %v829_v21 = vmax.f32 %v797_v15, 0.0  ;;  %v845_v22 = vmax.f32 %v813_v16, 0.0  ;;  %v798_v23 = vadd.f32 %v1083_v13, %v1282_v25  ;;  %v814_v24 = vadd.f32 %v1099_v14, %v1282_v25 }
 0x10e   : > { %v827_v26 = vmax.f32 %v795_v19, 0.0  ;;  %v843_v27 = vmax.f32 %v811_v20, 0.0  ;;  %v796_v28 = vadd.f32 %v1282_v25, %v589_v17  ;;  %v812_v29 = vadd.f32 %v1282_v25, %v653_v18 }
 0x10f   : > { %861 = vst [vmem:[%s1290_s19 + $0x50] sm:$0xff] %v829_v21  ;;  %877 = vst [vmem:[%s1290_s19 + $0xd0] sm:$0xff] %v845_v22  ;;  %v830_v30 = vmax.f32 %v798_v23, 0.0  ;;  %v846_v31 = vmax.f32 %v814_v24, 0.0 }
 0x110   : > { %859 = vst [vmem:[%s1290_s19 + $0x40] sm:$0xff] %v827_v26  ;;  %875 = vst [vmem:[%s1290_s19 + $0xc0] sm:$0xff] %v843_v27  ;;  %v828_v32 = vmax.f32 %v796_v28, 0.0  ;;  %v844_v33 = vmax.f32 %v812_v29, 0.0 }
 0x111   : > { %862 = vst [vmem:[%s1290_s19 + $0x58] sm:$0xff] %v830_v30  ;;  %878 = vst [vmem:[%s1290_s19 + $0xd8] sm:$0xff] %v846_v31 }
 0x112   : > { %v1086_v34 = vpop.f32.mrb[12].mxu0  ;;  %v1102_v35 = vpop.f32.mrb[12].mxu1  ;;  %860 = vst [vmem:[%s1290_s19 + $0x48] sm:$0xff] %v828_v32  ;;  %876 = vst [vmem:[%s1290_s19 + $0xc8] sm:$0xff] %v844_v33 }
 0x113   : > { %v602_v36 = vpop.f32.mrb[13].mxu0  ;;  %v666_v37 = vpop.f32.mrb[13].mxu1  ;;  %v801_v40 = vadd.f32 %v1086_v34, %v1282_v25  ;;  %v817_v41 = vadd.f32 %v1102_v35, %v1282_v25 }
 0x114   : > { %v1087_v38 = vpop.f32.mrb[14].mxu0  ;;  %v1103_v39 = vpop.f32.mrb[14].mxu1  ;;  %v799_v44 = vadd.f32 %v1282_v25, %v602_v36  ;;  %v815_v45 = vadd.f32 %v1282_v25, %v666_v37 }
 0x115   : > { %v605_v42 = vpop.f32.mrb[15].mxu0  ;;  %v669_v43 = vpop.f32.mrb[15].mxu1  ;;  %v833_v46 = vmax.f32 %v801_v40, 0.0  ;;  %v849_v47 = vmax.f32 %v817_v41, 0.0  ;;  %v802_v48 = vadd.f32 %v1087_v38, %v1282_v25  ;;  %v818_v49 = vadd.f32 %v1103_v39, %v1282_v25 }
 0x116   : > { %v831_v50 = vmax.f32 %v799_v44, 0.0  ;;  %v847_v51 = vmax.f32 %v815_v45, 0.0  ;;  %v800_v52 = vadd.f32 %v1282_v25, %v605_v42  ;;  %v816_v53 = vadd.f32 %v1282_v25, %v669_v43 }
 0x117   : > { %865 = vst [vmem:[%s1290_s19 + $0x70] sm:$0xff] %v833_v46  ;;  %881 = vst [vmem:[%s1290_s19 + $0xf0] sm:$0xff] %v849_v47  ;;  %v834_v54 = vmax.f32 %v802_v48, 0.0  ;;  %v850_v55 = vmax.f32 %v818_v49, 0.0 }
 0x118   : > { %863 = vst [vmem:[%s1290_s19 + $0x60] sm:$0xff] %v831_v50  ;;  %879 = vst [vmem:[%s1290_s19 + $0xe0] sm:$0xff] %v847_v51  ;;  %v832_v56 = vmax.f32 %v800_v52, 0.0  ;;  %v848_v57 = vmax.f32 %v816_v53, 0.0 }
 0x119   : > { %866 = vst [vmem:[%s1290_s19 + $0x78] sm:$0xff] %v834_v54  ;;  %882 = vst [vmem:[%s1290_s19 + $0xf8] sm:$0xff] %v850_v55 }
 0x11a   : > { %864 = vst [vmem:[%s1290_s19 + $0x68] sm:$0xff] %v832_v56  ;;  %880 = vst [vmem:[%s1290_s19 + $0xe8] sm:$0xff] %v848_v57 }
 0x11b PF: > { %s13_s14 = sadd.s32 1, %s1191_s14   ;;  %s1367_s12 = smov %s1187_s13 }
 0x11c   : > { %p10_p5 = scmp.ge.s32.totalorder %s13_s14, 9   ;;  %s1368_s13 = smov %s1370_s15 }
 0x11e   :  { %12 = sbr.rel (!%p10_p5) target bundleno = 2 (0x2), region = 76 }

// kernel: cnn_forward.13
= control target key start
LH: loop header
LB: loop body
LE: loop exit
PB: predicated region body
PF: predicated region fallthrough
CT: control target
= control target key end

     0   :  { %s1866_s12 = smov 0   ;;  %s1868_s13 = smov 0   ;;  %s2945_s0 = inlined_call_operand.vmem [shape: bf16[400,640], index: 0, kind: input, shape index: {}]   ;;  %s2946_s1 = inlined_call_operand.vmem [shape: bf16[640,128], index: 1, kind: input, shape index: {}]   ;;  %s2947_s2 = inlined_call_operand.vmem [shape: f32[1,128], index: 2, kind: input, shape index: {}]   ;;  %s2948_s3 = inlined_call_operand.vmem [shape: f32[400,128], index: 3, kind: output, shape index: {}]  }
   0x1   :  { %s1870_s14 = smov 0   ;;  %s1872_s15 = smov 0  }
   0x2   :  { %s1874_s16 = smov 0  }
   0x3 LB: > { %s25_s17 = sadd.s32 1, %s1837_s15  ;;  %p48_p1 = scmp.ne.s32.totalorder %s1829_s13, %s1825_s12  ;;  %s1841_s16 = sphi %s1874_s16, %s13_s16   ;;  %s1837_s15 = sphi %s1872_s15, %s2952_s15   ;;  %s1833_s14 = sphi %s1870_s14, %s2951_s14   ;;  %s1829_s13 = sphi %s1868_s13, %s2950_s13   ;;  %s1825_s12 = sphi %s1866_s12, %s2949_s12  }
   0x4   : > { %p26_p0 = scmp.ge.s32.totalorder %s25_s17, 5  ;;  %p49_p2 = scmp.eq.s32.totalorder %s1841_s16, 0 }
   0x5   : > { %s41_s19 = sadd.s32 1, %s1829_s13  ;;  %p1515_p5 = scmp.ge.s32.totalorder %s1841_s16, 5 }
   0x6   : > { %s2954_s17 = smov (%p26_p0, %s25_s17), 0  ;;  %p50_p3 = por %p49_p2, %p48_p1 }
   0x7   : > { %s37_s18 = ssub.s32 %s1837_s15, %s2954_s17  ;;  %162 = sbr.rel (%p1515_p5) target bundleno = 51 (0x33), region = 20 }
   0x8   : > { %p39_p4 = scmp.eq.s32.totalorder %s37_s18, 0 }
   0xa   : > { %s1901_s20 = scalar_select %p39_p4, %s1829_s13, %s41_s19  }
   0xe   : > { %165 = sbr.rel (!%p50_p3) target bundleno = 51 (0x33), region = 24  ;;  %s167_s21 = sand.u32 (%p50_p3), 1, %s1829_s13  }
   0xf   : > { %s1516_s22 = sshll.u32 (%p50_p3), %s1837_s15, 2  ;;  %s1725_s23 = smul.u32 (%p50_p3), 200, %s167_s21 }
  0x10   : > { %s1909_s26 = scalar_lea.vmem (%p50_p3), %s2945_s0, %s1516_s22 }
  0x11   : > { %v190_v0 = vld [vmem:[%s1909_s26] sm:$0xf] (%p50_p3)  ;;  %v192_v1 = vld [vmem:[%s1909_s26 + $0x14] sm:$0xf] (%p50_p3)  ;;  %v194_v2 = vld [vmem:[%s1909_s26 + $0x28] sm:$0xf] (%p50_p3) }
  0x12   : > { %v196_v3 = vld [vmem:[%s1909_s26 + $0x3c] sm:$0xf] (%p50_p3)  ;;  %v198_v4 = vld [vmem:[%s1909_s26 + $0x50] sm:$0xf] (%p50_p3)  ;;  %s1916_s27 = scalar_lea.vmem (%p50_p3), [#allocation2], %s1725_s23 }
  0x13   : > { %191 = vst [vmem:[%s1916_s27] sm:$0xf] (%p50_p3), %v190_v0  ;;  %193 = vst [vmem:[%s1916_s27 + $0x4] sm:$0xf] (%p50_p3), %v192_v1  ;;  %v200_v5 = vld [vmem:[%s1909_s26 + $0x64] sm:$0xf] (%p50_p3) }
  0x14   : > { %195 = vst [vmem:[%s1916_s27 + $0x8] sm:$0xf] (%p50_p3), %v194_v2  ;;  %197 = vst [vmem:[%s1916_s27 + $0xc] sm:$0xf] (%p50_p3), %v196_v3  ;;  %v202_v6 = vld [vmem:[%s1909_s26 + $0x78] sm:$0xf] (%p50_p3) }
  0x15   : > { %199 = vst [vmem:[%s1916_s27 + $0x10] sm:$0xf] %v198_v4  ;;  %v204_v7 = vld [vmem:[%s1909_s26 + $0x8c] sm:$0xf]  ;;  %201 = vst [vmem:[%s1916_s27 + $0x14] sm:$0xf] %v200_v5 }
  0x16   : > { %203 = vst [vmem:[%s1916_s27 + $0x18] sm:$0xf] %v202_v6  ;;  %205 = vst [vmem:[%s1916_s27 + $0x1c] sm:$0xf] %v204_v7  ;;  %v206_v8 = vld [vmem:[%s1909_s26 + $0xa0] sm:$0xf] }
  0x17   : > { %v208_v9 = vld [vmem:[%s1909_s26 + $0xb4] sm:$0xf]  ;;  %v210_v10 = vld [vmem:[%s1909_s26 + $0xc8] sm:$0xf]  ;;  %207 = vst [vmem:[%s1916_s27 + $0x20] sm:$0xf] %v206_v8 }
  0x18   : > { %209 = vst [vmem:[%s1916_s27 + $0x24] sm:$0xf] %v208_v9  ;;  %211 = vst [vmem:[%s1916_s27 + $0x28] sm:$0xf] %v210_v10  ;;  %v212_v11 = vld [vmem:[%s1909_s26 + $0xdc] sm:$0xf] }
  0x19   : > { %v214_v12 = vld [vmem:[%s1909_s26 + $0xf0] sm:$0xf]  ;;  %v216_v13 = vld [vmem:[%s1909_s26 + $0x104] sm:$0xf]  ;;  %213 = vst [vmem:[%s1916_s27 + $0x2c] sm:$0xf] %v212_v11 }
  0x1a   : > { %215 = vst [vmem:[%s1916_s27 + $0x30] sm:$0xf] %v214_v12  ;;  %217 = vst [vmem:[%s1916_s27 + $0x34] sm:$0xf] %v216_v13  ;;  %v218_v14 = vld [vmem:[%s1909_s26 + $0x118] sm:$0xf] }
  0x1b   : > { %v220_v15 = vld [vmem:[%s1909_s26 + $0x12c] sm:$0xf]  ;;  %v222_v16 = vld [vmem:[%s1909_s26 + $0x140] sm:$0xf]  ;;  %219 = vst [vmem:[%s1916_s27 + $0x38] sm:$0xf] %v218_v14 }
  0x1c   : > { %221 = vst [vmem:[%s1916_s27 + $0x3c] sm:$0xf] %v220_v15  ;;  %223 = vst [vmem:[%s1916_s27 + $0x40] sm:$0xf] %v222_v16  ;;  %v224_v17 = vld [vmem:[%s1909_s26 + $0x154] sm:$0xf] }
  0x1d   : > { %v226_v18 = vld [vmem:[%s1909_s26 + $0x168] sm:$0xf]  ;;  %v228_v19 = vld [vmem:[%s1909_s26 + $0x17c] sm:$0xf]  ;;  %225 = vst [vmem:[%s1916_s27 + $0x44] sm:$0xf] %v224_v17 }
  0x1e   : > { %227 = vst [vmem:[%s1916_s27 + $0x48] sm:$0xf] %v226_v18  ;;  %229 = vst [vmem:[%s1916_s27 + $0x4c] sm:$0xf] %v228_v19  ;;  %v230_v20 = vld [vmem:[%s1909_s26 + $0x190] sm:$0xf] }
  0x1f   : > { %v232_v21 = vld [vmem:[%s1909_s26 + $0x1a4] sm:$0xf]  ;;  %v234_v22 = vld [vmem:[%s1909_s26 + $0x1b8] sm:$0xf]  ;;  %231 = vst [vmem:[%s1916_s27 + $0x50] sm:$0xf] %v230_v20 }
  0x20   : > { %233 = vst [vmem:[%s1916_s27 + $0x54] sm:$0xf] %v232_v21  ;;  %235 = vst [vmem:[%s1916_s27 + $0x58] sm:$0xf] %v234_v22  ;;  %v236_v23 = vld [vmem:[%s1909_s26 + $0x1cc] sm:$0xf] }
  0x21   : > { %v238_v24 = vld [vmem:[%s1909_s26 + $0x1e0] sm:$0xf]  ;;  %v240_v25 = vld [vmem:[%s1909_s26 + $0x1f4] sm:$0xf]  ;;  %237 = vst [vmem:[%s1916_s27 + $0x5c] sm:$0xf] %v236_v23 }
  0x22   : > { %239 = vst [vmem:[%s1916_s27 + $0x60] sm:$0xf] %v238_v24  ;;  %241 = vst [vmem:[%s1916_s27 + $0x64] sm:$0xf] %v240_v25  ;;  %v242_v26 = vld [vmem:[%s1909_s26 + $0x208] sm:$0xf] }
  0x23   : > { %v244_v27 = vld [vmem:[%s1909_s26 + $0x21c] sm:$0xf]  ;;  %v246_v28 = vld [vmem:[%s1909_s26 + $0x230] sm:$0xf]  ;;  %243 = vst [vmem:[%s1916_s27 + $0x68] sm:$0xf] %v242_v26 }
  0x24   : > { %245 = vst [vmem:[%s1916_s27 + $0x6c] sm:$0xf] %v244_v27  ;;  %247 = vst [vmem:[%s1916_s27 + $0x70] sm:$0xf] %v246_v28  ;;  %v248_v29 = vld [vmem:[%s1909_s26 + $0x244] sm:$0xf] }
  0x25   : > { %v250_v30 = vld [vmem:[%s1909_s26 + $0x258] sm:$0xf]  ;;  %v252_v31 = vld [vmem:[%s1909_s26 + $0x26c] sm:$0xf]  ;;  %249 = vst [vmem:[%s1916_s27 + $0x74] sm:$0xf] %v248_v29 }
  0x26   : > { %251 = vst [vmem:[%s1916_s27 + $0x78] sm:$0xf] %v250_v30  ;;  %253 = vst [vmem:[%s1916_s27 + $0x7c] sm:$0xf] %v252_v31  ;;  %v254_v32 = vld [vmem:[%s1909_s26 + $0x280] sm:$0xf] }
  0x27   : > { %v256_v33 = vld [vmem:[%s1909_s26 + $0x294] sm:$0xf]  ;;  %v258_v34 = vld [vmem:[%s1909_s26 + $0x2a8] sm:$0xf]  ;;  %255 = vst [vmem:[%s1916_s27 + $0x80] sm:$0xf] %v254_v32 }
  0x28   : > { %257 = vst [vmem:[%s1916_s27 + $0x84] sm:$0xf] %v256_v33  ;;  %259 = vst [vmem:[%s1916_s27 + $0x88] sm:$0xf] %v258_v34  ;;  %v260_v35 = vld [vmem:[%s1909_s26 + $0x2bc] sm:$0xf] }
  0x29   : > { %v262_v36 = vld [vmem:[%s1909_s26 + $0x2d0] sm:$0xf]  ;;  %v264_v37 = vld [vmem:[%s1909_s26 + $0x2e4] sm:$0xf]  ;;  %261 = vst [vmem:[%s1916_s27 + $0x8c] sm:$0xf] %v260_v35 }
  0x2a   : > { %263 = vst [vmem:[%s1916_s27 + $0x90] sm:$0xf] %v262_v36  ;;  %265 = vst [vmem:[%s1916_s27 + $0x94] sm:$0xf] %v264_v37  ;;  %v266_v38 = vld [vmem:[%s1909_s26 + $0x2f8] sm:$0xf] }
  0x2b   : > { %v268_v39 = vld [vmem:[%s1909_s26 + $0x30c] sm:$0xf]  ;;  %v270_v40 = vld [vmem:[%s1909_s26 + $0x320] sm:$0xf]  ;;  %267 = vst [vmem:[%s1916_s27 + $0x98] sm:$0xf] %v266_v38 }
  0x2c   : > { %269 = vst [vmem:[%s1916_s27 + $0x9c] sm:$0xf] %v268_v39  ;;  %271 = vst [vmem:[%s1916_s27 + $0xa0] sm:$0xf] %v270_v40  ;;  %v272_v41 = vld [vmem:[%s1909_s26 + $0x334] sm:$0xf] }
  0x2d   : > { %v274_v42 = vld [vmem:[%s1909_s26 + $0x348] sm:$0xf]  ;;  %v276_v43 = vld [vmem:[%s1909_s26 + $0x35c] sm:$0xf]  ;;  %273 = vst [vmem:[%s1916_s27 + $0xa4] sm:$0xf] %v272_v41 }
  0x2e   : > { %275 = vst [vmem:[%s1916_s27 + $0xa8] sm:$0xf] %v274_v42  ;;  %277 = vst [vmem:[%s1916_s27 + $0xac] sm:$0xf] %v276_v43  ;;  %v278_v44 = vld [vmem:[%s1909_s26 + $0x370] sm:$0xf] }
  0x2f   : > { %v280_v45 = vld [vmem:[%s1909_s26 + $0x384] sm:$0xf]  ;;  %v282_v46 = vld [vmem:[%s1909_s26 + $0x398] sm:$0xf]  ;;  %279 = vst [vmem:[%s1916_s27 + $0xb0] sm:$0xf] %v278_v44 }
  0x30   : > { %281 = vst [vmem:[%s1916_s27 + $0xb4] sm:$0xf] %v280_v45  ;;  %283 = vst [vmem:[%s1916_s27 + $0xb8] sm:$0xf] %v282_v46  ;;  %v284_v47 = vld [vmem:[%s1909_s26 + $0x3ac] sm:$0xf] }
  0x31   : > { %v286_v48 = vld [vmem:[%s1909_s26 + $0x3c0] sm:$0xf]  ;;  %v288_v49 = vld [vmem:[%s1909_s26 + $0x3d4] sm:$0xf]  ;;  %285 = vst [vmem:[%s1916_s27 + $0xbc] sm:$0xf] %v284_v47 }
  0x32   : > { %287 = vst [vmem:[%s1916_s27 + $0xc0] sm:$0xf] %v286_v48  ;;  %289 = vst [vmem:[%s1916_s27 + $0xc4] sm:$0xf] %v288_v49 }
  0x33 PF: > { %p1517_p6 = scmp.ge.s32.totalorder %s1841_s16, 1  ;;  %p423_p7 = scmp.lt.s32.totalorder %s1841_s16, 6 }
  0x35   : > { %p424_p8 = pnand %p1517_p6, %p423_p7 }
  0x36   : > { %s430_s28 = sand.u32 (!%p424_p8), 1, %s1825_s12   ;;  %s1518_s29 = sshll.u32 (!%p424_p8), %s1833_s14, 4 }
  0x37   : > { %427 = sbr.rel (%p424_p8) target bundleno = 449 (0x1c1), region = 69  ;;  %p469_p9 = scmp.lt.s32.totalorder (!%p424_p8), %s1518_s29, 79 }
  0x38   : > { %s1726_s30 = smul.u32 (!%p424_p8), 200, %s430_s28  ;;  %p1520_p10 = scmp.ne.s32.totalorder (!%p424_p8), %s1833_s14, 0 }
  0x3a   : > { %s2022_s8 = scalar_lea.vmem (!%p424_p8), [#allocation2], %s1726_s30 }
  0x3e   : > { %s2956_s29 = smov (!%p469_p9, %s1518_s29), 79  ;;  %493 = sbr.rel (%p1520_p10) target bundleno = 89 (0x59), region = 77 }
  0x3f   : > { %s1519_s4 = sshll.u32 %s2956_s29, 2  ;;  %v1843_v50 = vmov (!%p1520_p10), 0.0  }
  0x40   : > { %s2020_s7 = scalar_lea.vmem %s2946_s1, %s1519_s4  ;;  %494 = vst [vmem:[%s2948_s3] sm:$0xff] (!%p1520_p10), %v1843_v50  ;;  %495 = vst [vmem:[%s2948_s3 + $0x8] sm:$0xff] (!%p1520_p10), %v1843_v50 }
  0x41   : > { %496 = vst [vmem:[%s2948_s3 + $0x10] sm:$0xff] (!%p1520_p10), %v1843_v50  ;;  %497 = vst [vmem:[%s2948_s3 + $0x18] sm:$0xff] (!%p1520_p10), %v1843_v50 }
  0x42   : > { %498 = vst [vmem:[%s2948_s3 + $0x20] sm:$0xff] (!%p1520_p10), %v1843_v50  ;;  %499 = vst [vmem:[%s2948_s3 + $0x28] sm:$0xff] (!%p1520_p10), %v1843_v50 }
  0x43   : > { %500 = vst [vmem:[%s2948_s3 + $0x30] sm:$0xff] (!%p1520_p10), %v1843_v50  ;;  %501 = vst [vmem:[%s2948_s3 + $0x38] sm:$0xff] (!%p1520_p10), %v1843_v50 }
  0x44   : > { %502 = vst [vmem:[%s2948_s3 + $0x40] sm:$0xff] (!%p1520_p10), %v1843_v50  ;;  %503 = vst [vmem:[%s2948_s3 + $0x48] sm:$0xff] (!%p1520_p10), %v1843_v50 }
  0x45   : > { %504 = vst [vmem:[%s2948_s3 + $0x50] sm:$0xff] %v1843_v50  ;;  %505 = vst [vmem:[%s2948_s3 + $0x58] sm:$0xff] %v1843_v50 }
  0x46   : > { %506 = vst [vmem:[%s2948_s3 + $0x60] sm:$0xff] %v1843_v50  ;;  %507 = vst [vmem:[%s2948_s3 + $0x68] sm:$0xff] %v1843_v50 }
  0x47   : > { %508 = vst [vmem:[%s2948_s3 + $0x70] sm:$0xff] %v1843_v50  ;;  %509 = vst [vmem:[%s2948_s3 + $0x78] sm:$0xff] %v1843_v50 }
  0x48   : > { %510 = vst [vmem:[%s2948_s3 + $0x80] sm:$0xff] %v1843_v50  ;;  %511 = vst [vmem:[%s2948_s3 + $0x88] sm:$0xff] %v1843_v50 }
  0x49   : > { %512 = vst [vmem:[%s2948_s3 + $0x90] sm:$0xff] %v1843_v50  ;;  %513 = vst [vmem:[%s2948_s3 + $0x98] sm:$0xff] %v1843_v50 }
  0x4a   : > { %514 = vst [vmem:[%s2948_s3 + $0xa0] sm:$0xff] %v1843_v50  ;;  %515 = vst [vmem:[%s2948_s3 + $0xa8] sm:$0xff] %v1843_v50 }
  0x4b   : > { %516 = vst [vmem:[%s2948_s3 + $0xb0] sm:$0xff] %v1843_v50  ;;  %517 = vst [vmem:[%s2948_s3 + $0xb8] sm:$0xff] %v1843_v50 }
  0x4c   : > { %518 = vst [vmem:[%s2948_s3 + $0xc0] sm:$0xff] %v1843_v50  ;;  %519 = vst [vmem:[%s2948_s3 + $0xc8] sm:$0xff] %v1843_v50 }
  0x4d   : > { %520 = vst [vmem:[%s2948_s3 + $0xd0] sm:$0xff] %v1843_v50  ;;  %521 = vst [vmem:[%s2948_s3 + $0xd8] sm:$0xff] %v1843_v50 }
  0x4e   : > { %522 = vst [vmem:[%s2948_s3 + $0xe0] sm:$0xff] %v1843_v50  ;;  %523 = vst [vmem:[%s2948_s3 + $0xe8] sm:$0xff] %v1843_v50 }
  0x4f   : > { %524 = vst [vmem:[%s2948_s3 + $0xf0] sm:$0xff] %v1843_v50  ;;  %525 = vst [vmem:[%s2948_s3 + $0xf8] sm:$0xff] %v1843_v50 }
  0x50   : > { %526 = vst [vmem:[%s2948_s3 + $0x100] sm:$0xff] %v1843_v50  ;;  %527 = vst [vmem:[%s2948_s3 + $0x108] sm:$0xff] %v1843_v50 }
  0x51   : > { %528 = vst [vmem:[%s2948_s3 + $0x110] sm:$0xff] %v1843_v50  ;;  %529 = vst [vmem:[%s2948_s3 + $0x118] sm:$0xff] %v1843_v50 }
  0x52   : > { %530 = vst [vmem:[%s2948_s3 + $0x120] sm:$0xff] %v1843_v50  ;;  %531 = vst [vmem:[%s2948_s3 + $0x128] sm:$0xff] %v1843_v50 }
  0x53   : > { %532 = vst [vmem:[%s2948_s3 + $0x130] sm:$0xff] %v1843_v50  ;;  %533 = vst [vmem:[%s2948_s3 + $0x138] sm:$0xff] %v1843_v50 }
  0x54   : > { %534 = vst [vmem:[%s2948_s3 + $0x140] sm:$0xff] %v1843_v50  ;;  %535 = vst [vmem:[%s2948_s3 + $0x148] sm:$0xff] %v1843_v50 }
  0x55   : > { %536 = vst [vmem:[%s2948_s3 + $0x150] sm:$0xff] %v1843_v50  ;;  %537 = vst [vmem:[%s2948_s3 + $0x158] sm:$0xff] %v1843_v50 }
  0x56   : > { %538 = vst [vmem:[%s2948_s3 + $0x160] sm:$0xff] %v1843_v50  ;;  %539 = vst [vmem:[%s2948_s3 + $0x168] sm:$0xff] %v1843_v50 }
  0x57   : > { %540 = vst [vmem:[%s2948_s3 + $0x170] sm:$0xff] %v1843_v50  ;;  %541 = vst [vmem:[%s2948_s3 + $0x178] sm:$0xff] %v1843_v50 }
  0x58   : > { %542 = vst [vmem:[%s2948_s3 + $0x180] sm:$0xff] %v1843_v50  ;;  %543 = vst [vmem:[%s2948_s3 + $0x188] sm:$0xff] %v1843_v50 }
  0x59 PF: > { %v1770_v51 = vld [vmem:[%s2020_s7] sm:$0xff]   ;;  %v1844_v52 = vmov 0.0   ;;  %v1771_v53 = vld [vmem:[%s2020_s7 + $0x8] sm:$0xff]   ;;  %vm1845_vm0 = vmmov 0   ;;  %v1772_v54 = vld [vmem:[%s2020_s7 + $0x10] sm:$0xff]   ;;  %p1554_p11 = scmp.ne.s32.totalorder %s1833_s14, 4 }
  0x5a   : > { %1593 = vmatprep.subr.bf16.mxu0 %v1844_v52  ;;  %1709 = vmatprep.subr.bf16.mxu1 %v1844_v52  ;;  %v1773_v55 = vld [vmem:[%s2020_s7 + $0x18] sm:$0xff]   ;;  %v1774_v56 = vld [vmem:[%s2020_s7 + $0x20] sm:$0xff]   ;;  %v1775_v57 = vld [vmem:[%s2020_s7 + $0x28] sm:$0xff]  }
  0x5b   : > { %1594 = vmatpush3.bf16.msra.mxu0 %v1770_v51  ;;  %1717 = vmatpush3.bf16.msra.mxu1 %v1770_v51  ;;  %v1776_v58 = vld [vmem:[%s2020_s7 + $0x30] sm:$0xff]   ;;  %v1777_v59 = vld [vmem:[%s2020_s7 + $0x38] sm:$0xff]   ;;  %v1778_v60 = vld [vmem:[%s2022_s8] sm:$0xff]  }
  0x5c   : > { %1595 = vmatprep.subr.bf16.mxu0 %v1844_v52  ;;  %1710 = vmatprep.subr.bf16.mxu1 %v1844_v52  ;;  %v1779_v61 = vld [vmem:[%s2022_s8 + $0x68] sm:$0xff]   ;;  %v1781_v63 = vld [vmem:[%s2022_s8 + $0x70] sm:$0xff]   ;;  %v1783_v1 = vld [vmem:[%s2022_s8 + $0x78] sm:$0xff]  }
  0x5d   : > { %1609 = vmatprep.mubr.msk.bf16.mxu0 %vm1845_vm0, %v1844_v52  ;;  %1661 = vmatprep.mubr.msk.bf16.mxu1 %vm1845_vm0, %v1844_v52  ;;  %v1780_v62 = vld [vmem:[%s2022_s8 + $0x8] sm:$0xff]   ;;  %v1782_v0 = vld [vmem:[%s2022_s8 + $0x10] sm:$0xff]   ;;  %v1784_v2 = vld [vmem:[%s2022_s8 + $0x18] sm:$0xff]  }
  0x5e   : > { %v1785_v3 = vld [vmem:[%s2022_s8 + $0x80] sm:$0xff]   ;;  %v1787_v5 = vld [vmem:[%s2022_s8 + $0x88] sm:$0xff]   ;;  %v1789_v7 = vld [vmem:[%s2022_s8 + $0x90] sm:$0xff]  }
  0x5f   : > { %1596 = vmatpush3.bf16.msra.mxu0 %v1771_v53  ;;  %1718 = vmatpush3.bf16.msra.mxu1 %v1771_v53  ;;  %v1786_v4 = vld [vmem:[%s2022_s8 + $0x20] sm:$0xff]   ;;  %v1788_v6 = vld [vmem:[%s2022_s8 + $0x28] sm:$0xff]   ;;  %v1790_v8 = vld [vmem:[%s2022_s8 + $0x30] sm:$0xff]  }
  0x60   : > { %1597 = vmatprep.subr.bf16.mxu0 %v1844_v52  ;;  %1711 = vmatprep.subr.bf16.mxu1 %v1844_v52  ;;  %v1791_v9 = vld [vmem:[%s2022_s8 + $0x98] sm:$0xff]   ;;  %v1793_v11 = vld [vmem:[%s2022_s8 + $0xa0] sm:$0xff]   ;;  %v1795_v13 = vld [vmem:[%s2022_s8 + $0xa8] sm:$0xff]  }
  0x61   : > { %v1792_v10 = vld [vmem:[%s2022_s8 + $0x38] sm:$0xff]   ;;  %v1794_v12 = vld [vmem:[%s2022_s8 + $0x40] sm:$0xff]   ;;  %v1796_v14 = vld [vmem:[%s2022_s8 + $0x48] sm:$0xff]  }
  0x62   : > { %v1797_v15 = vld [vmem:[%s2022_s8 + $0xb0] sm:$0xff]   ;;  %v1799_v17 = vld [vmem:[%s2022_s8 + $0xb8] sm:$0xff]   ;;  %v1801_v19 = vld [vmem:[%s2022_s8 + $0xc0] sm:$0xff]  }
  0x63   : > { %1598 = vmatpush3.bf16.msra.mxu0 %v1772_v54  ;;  %1719 = vmatpush3.bf16.msra.mxu1 %v1772_v54  ;;  %v1798_v16 = vld [vmem:[%s2022_s8 + $0x50] sm:$0xff]   ;;  %v1800_v18 = vld [vmem:[%s2022_s8 + $0x58] sm:$0xff]   ;;  %v1802_v20 = vld [vmem:[%s2022_s8 + $0x60] sm:$0xff]  }
  0x64   : > { %1599 = vmatprep.subr.bf16.mxu0 %v1844_v52  ;;  %1712 = vmatprep.subr.bf16.mxu1 %v1844_v52  ;;  %v544_v21 = vld [vmem:[%s2948_s3] sm:$0xff]  ;;  %v570_v22 = vld [vmem:[%s2948_s3 + $0xd0] sm:$0xff]  ;;  %v545_v24 = vld [vmem:[%s2948_s3 + $0x8] sm:$0xff] }
  0x65   : > { %v571_v26 = vld [vmem:[%s2948_s3 + $0xd8] sm:$0xff]  ;;  %v546_v37 = vld [vmem:[%s2948_s3 + $0x10] sm:$0xff]  ;;  %v572_v38 = vld [vmem:[%s2948_s3 + $0xe0] sm:$0xff] }
  0x66   : > { %v547_v40 = vld [vmem:[%s2948_s3 + $0x18] sm:$0xff]  ;;  %v573_v42 = vld [vmem:[%s2948_s3 + $0xe8] sm:$0xff]  ;;  %v548_v53 = vld [vmem:[%s2948_s3 + $0x20] sm:$0xff] }
  0x67   : > { %1600 = vmatpush3.bf16.msra.mxu0 %v1773_v55  ;;  %1720 = vmatpush3.bf16.msra.mxu1 %v1773_v55  ;;  %v574_v54 = vld [vmem:[%s2948_s3 + $0xf0] sm:$0xff] }
  0x68   : > { %1601 = vmatprep.subr.bf16.mxu0 %v1844_v52  ;;  %1713 = vmatprep.subr.bf16.mxu1 %v1844_v52 }
  0x6b   : > { %1602 = vmatpush3.bf16.msra.mxu0 %v1774_v56  ;;  %1721 = vmatpush3.bf16.msra.mxu1 %v1774_v56  ;;  %v549_v56 = vld [vmem:[%s2948_s3 + $0x28] sm:$0xff] }
  0x6c   : > { %1603 = vmatprep.subr.bf16.mxu0 %v1844_v52  ;;  %1714 = vmatprep.subr.bf16.mxu1 %v1844_v52 }
  0x6f   : > { %1604 = vmatpush3.bf16.msra.mxu0 %v1775_v57  ;;  %1722 = vmatpush3.bf16.msra.mxu1 %v1775_v57 }
  0x70   : > { %1605 = vmatprep.subr.bf16.mxu0 %v1844_v52  ;;  %1715 = vmatprep.subr.bf16.mxu1 %v1844_v52 }
  0x73   : > { %1606 = vmatpush3.bf16.msra.mxu0 %v1776_v58  ;;  %1723 = vmatpush3.bf16.msra.mxu1 %v1776_v58  ;;  %v575_v58 = vld [vmem:[%s2948_s3 + $0xf8] sm:$0xff] }
  0x74   : > { %1607 = vmatprep.subr.bf16.mxu0 %v1844_v52  ;;  %1716 = vmatprep.subr.bf16.mxu1 %v1844_v52 }
  0x77   : > { %1608 = vmatpush3.bf16.msra.mxu0 %v1777_v59  ;;  %1724 = vmatpush3.bf16.msra.mxu1 %v1777_v59 }
  0x7a   : > { %1610 = vmatmul.mubr.bf16.vlgmr.msra.gmra.mrb[0].mxu0 %v1778_v60  ;;  %1662 = vmatmul.mubr.bf16.vlgmr.msra.gmra.mrb[0].mxu1 %v1779_v61 }
  0x7b   : > { %1613 = vmatprep.mubr.msk.bf16.mxu0 %vm1845_vm0, %v1844_v52  ;;  %1665 = vmatprep.mubr.msk.bf16.mxu1 %vm1845_vm0, %v1844_v52 }
  0x82   : > { %1614 = vmatmul.mubr.bf16.gmra.mrb[4].mxu0 %v1780_v62  ;;  %1666 = vmatmul.mubr.bf16.gmra.mrb[4].mxu1 %v1781_v63 }
  0x83   : > { %1617 = vmatprep.mubr.msk.bf16.mxu0 %vm1845_vm0, %v1844_v52  ;;  %1669 = vmatprep.mubr.msk.bf16.mxu1 %vm1845_vm0, %v1844_v52 }
  0x8a   : > { %1618 = vmatmul.mubr.bf16.gmra.mrb[8].mxu0 %v1782_v0  ;;  %1670 = vmatmul.mubr.bf16.gmra.mrb[8].mxu1 %v1783_v1 }
  0x8b   : > { %1621 = vmatprep.mubr.msk.bf16.mxu0 %vm1845_vm0, %v1844_v52  ;;  %1673 = vmatprep.mubr.msk.bf16.mxu1 %vm1845_vm0, %v1844_v52 }
  0x92   : > { %1622 = vmatmul.mubr.bf16.gmra.mrb[12].mxu0 %v1784_v2  ;;  %1674 = vmatmul.mubr.bf16.gmra.mrb[12].mxu1 %v1785_v3 }
  0x93   : > { %1625 = vmatprep.mubr.msk.bf16.mxu0 %vm1845_vm0, %v1844_v52  ;;  %1677 = vmatprep.mubr.msk.bf16.mxu1 %vm1845_vm0, %v1844_v52 }
  0x9a   : > { %1626 = vmatmul.mubr.bf16.gmra.mrb[16].mxu0 %v1786_v4  ;;  %1678 = vmatmul.mubr.bf16.gmra.mrb[16].mxu1 %v1787_v5  ;;  %v550_v5 = vld [vmem:[%s2948_s3 + $0x30] sm:$0xff] }
  0x9b   : > { %1629 = vmatprep.mubr.msk.bf16.mxu0 %vm1845_vm0, %v1844_v52  ;;  %1681 = vmatprep.mubr.msk.bf16.mxu1 %vm1845_vm0, %v1844_v52 }
  0xa2   : > { %1630 = vmatmul.mubr.bf16.gmra.mrb[20].mxu0 %v1788_v6  ;;  %1682 = vmatmul.mubr.bf16.gmra.mrb[20].mxu1 %v1789_v7  ;;  %v576_v6 = vld [vmem:[%s2948_s3 + $0x100] sm:$0xff] }
  0xa3   : > { %1633 = vmatprep.mubr.msk.bf16.mxu0 %vm1845_vm0, %v1844_v52  ;;  %1685 = vmatprep.mubr.msk.bf16.mxu1 %vm1845_vm0, %v1844_v52 }
  0xaa   : > { %1634 = vmatmul.mubr.bf16.gmra.mrb[24].mxu0 %v1790_v8  ;;  %1686 = vmatmul.mubr.bf16.gmra.mrb[24].mxu1 %v1791_v9  ;;  %v551_v8 = vld [vmem:[%s2948_s3 + $0x38] sm:$0xff] }
  0xab   : > { %1637 = vmatprep.mubr.msk.bf16.mxu0 %vm1845_vm0, %v1844_v52  ;;  %1689 = vmatprep.mubr.msk.bf16.mxu1 %vm1845_vm0, %v1844_v52 }
  0xb2   : > { %1638 = vmatmul.mubr.bf16.gmra.mrb[28].mxu0 %v1792_v10  ;;  %1690 = vmatmul.mubr.bf16.gmra.mrb[28].mxu1 %v1793_v11  ;;  %v577_v10 = vld [vmem:[%s2948_s3 + $0x108] sm:$0xff] }
  0xb3   : > { %1641 = vmatprep.mubr.msk.bf16.mxu0 %vm1845_vm0, %v1844_v52  ;;  %1693 = vmatprep.mubr.msk.bf16.mxu1 %vm1845_vm0, %v1844_v52 }
  0xba   : > { %1642 = vmatmul.mubr.bf16.gmra.mrb[32].mxu0 %v1794_v12  ;;  %1694 = vmatmul.mubr.bf16.gmra.mrb[32].mxu1 %v1795_v13 }
  0xbb   : > { %1645 = vmatprep.mubr.msk.bf16.mxu0 %vm1845_vm0, %v1844_v52  ;;  %1697 = vmatprep.mubr.msk.bf16.mxu1 %vm1845_vm0, %v1844_v52 }
  0xc2   : > { %1646 = vmatmul.mubr.bf16.gmra.mrb[36].mxu0 %v1796_v14  ;;  %1698 = vmatmul.mubr.bf16.gmra.mrb[36].mxu1 %v1797_v15 }
  0xc3   : > { %1649 = vmatprep.mubr.msk.bf16.mxu0 %vm1845_vm0, %v1844_v52  ;;  %1701 = vmatprep.mubr.msk.bf16.mxu1 %vm1845_vm0, %v1844_v52 }
  0xca   : > { %1650 = vmatmul.mubr.bf16.gmra.mrb[40].mxu0 %v1798_v16  ;;  %1702 = vmatmul.mubr.bf16.gmra.mrb[40].mxu1 %v1799_v17 }
  0xcb   : > { %1653 = vmatprep.mubr.msk.bf16.mxu0 %vm1845_vm0, %v1844_v52  ;;  %1705 = vmatprep.mubr.msk.bf16.mxu1 %vm1845_vm0, %v1844_v52 }
  0xd2   : > { %1654 = vmatmul.mubr.bf16.gmra.mrb[44].mxu0 %v1800_v18  ;;  %1706 = vmatmul.mubr.bf16.gmra.mrb[44].mxu1 %v1801_v19 }
  0xd3   : > { %1657 = vmatprep.mubr.msk.bf16.mxu0 %vm1845_vm0, %v1844_v52 }
  0xda   : > { %1658 = vmatmul.mubr.bf16.gmra.mrb[48].mxu0 %v1802_v20 }
 0x14d   : > { %v892_v23 = vpop.f32.mrb[0].mxu0  ;;  %v996_v25 = vpop.f32.mrb[0].mxu1 }
 0x14e   : > { %v1091_v27 = vadd.f32 %v892_v23, %v544_v21  ;;  %v1611_v28 = vpop.f32.mrb[1].mxu0  ;;  %v1117_v29 = vadd.f32 %v996_v25, %v570_v22  ;;  %v1663_v30 = vpop.f32.mrb[1].mxu1  ;;  %v552_v21 = vld [vmem:[%s2948_s3 + $0x40] sm:$0xff]  ;;  %v578_v22 = vld [vmem:[%s2948_s3 + $0x110] sm:$0xff] }
 0x14f   : > { %v895_v31 = vpop.f32.mrb[2].mxu0  ;;  %v999_v32 = vpop.f32.mrb[2].mxu1 }
 0x150   : > { %1141 = vst [vmem:[%s2948_s3] sm:$0xff] %v1091_v27  ;;  %v1092_v33 = vadd.f32 %v895_v31, %v545_v24  ;;  %v1612_v34 = vpop.f32.mrb[3].mxu0  ;;  %1167 = vst [vmem:[%s2948_s3 + $0xd0] sm:$0xff] %v1117_v29  ;;  %v1118_v35 = vadd.f32 %v999_v32, %v571_v26  ;;  %v1664_v36 = vpop.f32.mrb[3].mxu1  ;;  %v553_v24 = vld [vmem:[%s2948_s3 + $0x48] sm:$0xff]  ;;  %v579_v26 = vld [vmem:[%s2948_s3 + $0x118] sm:$0xff] }
 0x152   : > { %1142 = vst [vmem:[%s2948_s3 + $0x8] sm:$0xff] %v1092_v33  ;;  %1168 = vst [vmem:[%s2948_s3 + $0xd8] sm:$0xff] %v1118_v35 }
 0x155   : > { %v900_v39 = vpop.f32.mrb[4].mxu0  ;;  %v1004_v41 = vpop.f32.mrb[4].mxu1 }
 0x156   : > { %v1093_v43 = vadd.f32 %v900_v39, %v546_v37  ;;  %v1615_v44 = vpop.f32.mrb[5].mxu0  ;;  %v1119_v45 = vadd.f32 %v1004_v41, %v572_v38  ;;  %v1667_v46 = vpop.f32.mrb[5].mxu1  ;;  %v554_v37 = vld [vmem:[%s2948_s3 + $0x50] sm:$0xff]  ;;  %v580_v38 = vld [vmem:[%s2948_s3 + $0x120] sm:$0xff] }
 0x157   : > { %v903_v47 = vpop.f32.mrb[6].mxu0  ;;  %v1007_v48 = vpop.f32.mrb[6].mxu1 }
 0x158   : > { %1143 = vst [vmem:[%s2948_s3 + $0x10] sm:$0xff] %v1093_v43  ;;  %v1094_v49 = vadd.f32 %v903_v47, %v547_v40  ;;  %v1616_v50 = vpop.f32.mrb[7].mxu0  ;;  %1169 = vst [vmem:[%s2948_s3 + $0xe0] sm:$0xff] %v1119_v45  ;;  %v1120_v51 = vadd.f32 %v1007_v48, %v573_v42  ;;  %v1668_v52 = vpop.f32.mrb[7].mxu1  ;;  %v555_v40 = vld [vmem:[%s2948_s3 + $0x58] sm:$0xff]  ;;  %v581_v42 = vld [vmem:[%s2948_s3 + $0x128] sm:$0xff] }
 0x15a   : > { %1144 = vst [vmem:[%s2948_s3 + $0x18] sm:$0xff] %v1094_v49  ;;  %1170 = vst [vmem:[%s2948_s3 + $0xe8] sm:$0xff] %v1120_v51 }
 0x15d   : > { %v908_v55 = vpop.f32.mrb[8].mxu0  ;;  %v1012_v57 = vpop.f32.mrb[8].mxu1 }
 0x15e   : > { %v1095_v59 = vadd.f32 %v908_v55, %v548_v53  ;;  %v1619_v60 = vpop.f32.mrb[9].mxu0  ;;  %v1121_v61 = vadd.f32 %v1012_v57, %v574_v54  ;;  %v1671_v62 = vpop.f32.mrb[9].mxu1  ;;  %v556_v53 = vld [vmem:[%s2948_s3 + $0x60] sm:$0xff]  ;;  %v582_v54 = vld [vmem:[%s2948_s3 + $0x130] sm:$0xff] }
 0x15f   : > { %v911_v63 = vpop.f32.mrb[10].mxu0  ;;  %v1015_v0 = vpop.f32.mrb[10].mxu1 }
 0x160   : > { %1145 = vst [vmem:[%s2948_s3 + $0x20] sm:$0xff] %v1095_v59  ;;  %v1096_v1 = vadd.f32 %v911_v63, %v549_v56  ;;  %v1620_v2 = vpop.f32.mrb[11].mxu0  ;;  %1171 = vst [vmem:[%s2948_s3 + $0xf0] sm:$0xff] %v1121_v61  ;;  %v1122_v3 = vadd.f32 %v1015_v0, %v575_v58  ;;  %v1672_v4 = vpop.f32.mrb[11].mxu1  ;;  %v557_v56 = vld [vmem:[%s2948_s3 + $0x68] sm:$0xff]  ;;  %v583_v58 = vld [vmem:[%s2948_s3 + $0x138] sm:$0xff] }
 0x162   : > { %1146 = vst [vmem:[%s2948_s3 + $0x28] sm:$0xff] %v1096_v1  ;;  %1172 = vst [vmem:[%s2948_s3 + $0xf8] sm:$0xff] %v1122_v3 }
 0x165   : > { %v916_v7 = vpop.f32.mrb[12].mxu0  ;;  %v1020_v9 = vpop.f32.mrb[12].mxu1 }
 0x166   : > { %v1097_v11 = vadd.f32 %v916_v7, %v550_v5  ;;  %v1623_v12 = vpop.f32.mrb[13].mxu0  ;;  %v1123_v13 = vadd.f32 %v1020_v9, %v576_v6  ;;  %v1675_v14 = vpop.f32.mrb[13].mxu1  ;;  %v558_v5 = vld [vmem:[%s2948_s3 + $0x70] sm:$0xff]  ;;  %v584_v6 = vld [vmem:[%s2948_s3 + $0x140] sm:$0xff] }
 0x167   : > { %v919_v15 = vpop.f32.mrb[14].mxu0  ;;  %v1023_v16 = vpop.f32.mrb[14].mxu1 }
 0x168   : > { %1147 = vst [vmem:[%s2948_s3 + $0x30] sm:$0xff] %v1097_v11  ;;  %v1098_v17 = vadd.f32 %v919_v15, %v551_v8  ;;  %v1624_v18 = vpop.f32.mrb[15].mxu0  ;;  %1173 = vst [vmem:[%s2948_s3 + $0x100] sm:$0xff] %v1123_v13  ;;  %v1124_v19 = vadd.f32 %v1023_v16, %v577_v10  ;;  %v1676_v20 = vpop.f32.mrb[15].mxu1  ;;  %v559_v8 = vld [vmem:[%s2948_s3 + $0x78] sm:$0xff]  ;;  %v585_v10 = vld [vmem:[%s2948_s3 + $0x148] sm:$0xff] }
 0x16a   : > { %1148 = vst [vmem:[%s2948_s3 + $0x38] sm:$0xff] %v1098_v17  ;;  %1174 = vst [vmem:[%s2948_s3 + $0x108] sm:$0xff] %v1124_v19 }
 0x16d   : > { %v924_v23 = vpop.f32.mrb[16].mxu0  ;;  %v1028_v25 = vpop.f32.mrb[16].mxu1 }
 0x16e   : > { %v1099_v27 = vadd.f32 %v924_v23, %v552_v21  ;;  %v1627_v28 = vpop.f32.mrb[17].mxu0  ;;  %v1125_v29 = vadd.f32 %v1028_v25, %v578_v22  ;;  %v1679_v30 = vpop.f32.mrb[17].mxu1  ;;  %v560_v21 = vld [vmem:[%s2948_s3 + $0x80] sm:$0xff]  ;;  %v586_v22 = vld [vmem:[%s2948_s3 + $0x150] sm:$0xff] }
 0x16f   : > { %v927_v31 = vpop.f32.mrb[18].mxu0  ;;  %v1031_v32 = vpop.f32.mrb[18].mxu1 }
 0x170   : > { %1149 = vst [vmem:[%s2948_s3 + $0x40] sm:$0xff] %v1099_v27  ;;  %v1100_v33 = vadd.f32 %v927_v31, %v553_v24  ;;  %v1628_v34 = vpop.f32.mrb[19].mxu0  ;;  %1175 = vst [vmem:[%s2948_s3 + $0x110] sm:$0xff] %v1125_v29  ;;  %v1126_v35 = vadd.f32 %v1031_v32, %v579_v26  ;;  %v1680_v36 = vpop.f32.mrb[19].mxu1  ;;  %v561_v24 = vld [vmem:[%s2948_s3 + $0x88] sm:$0xff]  ;;  %v587_v26 = vld [vmem:[%s2948_s3 + $0x158] sm:$0xff] }
 0x172   : > { %1150 = vst [vmem:[%s2948_s3 + $0x48] sm:$0xff] %v1100_v33  ;;  %1176 = vst [vmem:[%s2948_s3 + $0x118] sm:$0xff] %v1126_v35 }
 0x175   : > { %v932_v39 = vpop.f32.mrb[20].mxu0  ;;  %v1036_v41 = vpop.f32.mrb[20].mxu1 }
 0x176   : > { %v1101_v43 = vadd.f32 %v932_v39, %v554_v37  ;;  %v1631_v44 = vpop.f32.mrb[21].mxu0  ;;  %v1127_v45 = vadd.f32 %v1036_v41, %v580_v38  ;;  %v1683_v46 = vpop.f32.mrb[21].mxu1  ;;  %v562_v37 = vld [vmem:[%s2948_s3 + $0x90] sm:$0xff]  ;;  %v588_v38 = vld [vmem:[%s2948_s3 + $0x160] sm:$0xff] }
 0x177   : > { %v935_v47 = vpop.f32.mrb[22].mxu0  ;;  %v1039_v48 = vpop.f32.mrb[22].mxu1 }
 0x178   : > { %1151 = vst [vmem:[%s2948_s3 + $0x50] sm:$0xff] %v1101_v43  ;;  %v1102_v49 = vadd.f32 %v935_v47, %v555_v40  ;;  %v1632_v50 = vpop.f32.mrb[23].mxu0  ;;  %1177 = vst [vmem:[%s2948_s3 + $0x120] sm:$0xff] %v1127_v45  ;;  %v1128_v51 = vadd.f32 %v1039_v48, %v581_v42  ;;  %v1684_v52 = vpop.f32.mrb[23].mxu1  ;;  %v563_v40 = vld [vmem:[%s2948_s3 + $0x98] sm:$0xff]  ;;  %v589_v42 = vld [vmem:[%s2948_s3 + $0x168] sm:$0xff] }
 0x17a   : > { %1152 = vst [vmem:[%s2948_s3 + $0x58] sm:$0xff] %v1102_v49  ;;  %1178 = vst [vmem:[%s2948_s3 + $0x128] sm:$0xff] %v1128_v51 }
 0x17d   : > { %v940_v55 = vpop.f32.mrb[24].mxu0  ;;  %v1044_v57 = vpop.f32.mrb[24].mxu1 }
 0x17e   : > { %v1103_v59 = vadd.f32 %v940_v55, %v556_v53  ;;  %v1635_v60 = vpop.f32.mrb[25].mxu0  ;;  %v1129_v61 = vadd.f32 %v1044_v57, %v582_v54  ;;  %v1687_v62 = vpop.f32.mrb[25].mxu1  ;;  %v564_v53 = vld [vmem:[%s2948_s3 + $0xa0] sm:$0xff]  ;;  %v590_v54 = vld [vmem:[%s2948_s3 + $0x170] sm:$0xff] }
 0x17f   : > { %v943_v63 = vpop.f32.mrb[26].mxu0  ;;  %v1047_v0 = vpop.f32.mrb[26].mxu1 }
 0x180   : > { %1153 = vst [vmem:[%s2948_s3 + $0x60] sm:$0xff] %v1103_v59  ;;  %v1104_v1 = vadd.f32 %v943_v63, %v557_v56  ;;  %v1636_v2 = vpop.f32.mrb[27].mxu0  ;;  %1179 = vst [vmem:[%s2948_s3 + $0x130] sm:$0xff] %v1129_v61  ;;  %v1130_v3 = vadd.f32 %v1047_v0, %v583_v58  ;;  %v1688_v4 = vpop.f32.mrb[27].mxu1  ;;  %v565_v56 = vld [vmem:[%s2948_s3 + $0xa8] sm:$0xff]  ;;  %v591_v58 = vld [vmem:[%s2948_s3 + $0x178] sm:$0xff] }
 0x182   : > { %1154 = vst [vmem:[%s2948_s3 + $0x68] sm:$0xff] %v1104_v1  ;;  %1180 = vst [vmem:[%s2948_s3 + $0x138] sm:$0xff] %v1130_v3 }
 0x185   : > { %v948_v7 = vpop.f32.mrb[28].mxu0  ;;  %v1052_v9 = vpop.f32.mrb[28].mxu1 }
 0x186   : > { %v1105_v11 = vadd.f32 %v948_v7, %v558_v5  ;;  %v1639_v12 = vpop.f32.mrb[29].mxu0  ;;  %v1131_v13 = vadd.f32 %v1052_v9, %v584_v6  ;;  %v1691_v14 = vpop.f32.mrb[29].mxu1  ;;  %v566_v5 = vld [vmem:[%s2948_s3 + $0xb0] sm:$0xff]  ;;  %v592_v6 = vld [vmem:[%s2948_s3 + $0x180] sm:$0xff] }
 0x187   : > { %v951_v15 = vpop.f32.mrb[30].mxu0  ;;  %v1055_v16 = vpop.f32.mrb[30].mxu1 }
 0x188   : > { %1155 = vst [vmem:[%s2948_s3 + $0x70] sm:$0xff] %v1105_v11  ;;  %v1106_v17 = vadd.f32 %v951_v15, %v559_v8  ;;  %v1640_v18 = vpop.f32.mrb[31].mxu0  ;;  %1181 = vst [vmem:[%s2948_s3 + $0x140] sm:$0xff] %v1131_v13  ;;  %v1132_v19 = vadd.f32 %v1055_v16, %v585_v10  ;;  %v1692_v20 = vpop.f32.mrb[31].mxu1  ;;  %v567_v8 = vld [vmem:[%s2948_s3 + $0xb8] sm:$0xff]  ;;  %v593_v10 = vld [vmem:[%s2948_s3 + $0x188] sm:$0xff] }
 0x18a   : > { %1156 = vst [vmem:[%s2948_s3 + $0x78] sm:$0xff] %v1106_v17  ;;  %1182 = vst [vmem:[%s2948_s3 + $0x148] sm:$0xff] %v1132_v19 }
 0x18d   : > { %v956_v23 = vpop.f32.mrb[32].mxu0  ;;  %v1060_v25 = vpop.f32.mrb[32].mxu1 }
 0x18e   : > { %v1107_v27 = vadd.f32 %v956_v23, %v560_v21  ;;  %v1643_v28 = vpop.f32.mrb[33].mxu0  ;;  %v1133_v29 = vadd.f32 %v1060_v25, %v586_v22  ;;  %v1695_v30 = vpop.f32.mrb[33].mxu1  ;;  %v568_v21 = vld [vmem:[%s2948_s3 + $0xc0] sm:$0xff]  ;;  %v569_v23 = vld [vmem:[%s2948_s3 + $0xc8] sm:$0xff] }
 0x18f   : > { %v959_v31 = vpop.f32.mrb[34].mxu0  ;;  %v1063_v32 = vpop.f32.mrb[34].mxu1  ;;  %v2581_v30 = vld [vmem:[%s2947_s2] ss:$0 sm:$0xff] (!%p1554_p11) }
 0x190   : > { %1157 = vst [vmem:[%s2948_s3 + $0x80] sm:$0xff] %v1107_v27  ;;  %v1108_v33 = vadd.f32 %v959_v31, %v561_v24  ;;  %v1644_v34 = vpop.f32.mrb[35].mxu0  ;;  %1183 = vst [vmem:[%s2948_s3 + $0x150] sm:$0xff] %v1133_v29  ;;  %v1134_v35 = vadd.f32 %v1063_v32, %v587_v26  ;;  %v1696_v36 = vpop.f32.mrb[35].mxu1  ;;  %v1195_v29 = vld [vmem:[%s2948_s3] sm:$0xff] (!%p1554_p11)  ;;  %v1196_v31 = vld [vmem:[%s2948_s3 + $0x8] sm:$0xff] (!%p1554_p11) }
 0x191   : > { %v1252_v32 = vadd.f32 (!%p1554_p11), %v2581_v30, %v1195_v29  ;;  %v1197_v34 = vld [vmem:[%s2948_s3 + $0x10] sm:$0xff] (!%p1554_p11)  ;;  %v1199_v36 = vld [vmem:[%s2948_s3 + $0x20] sm:$0xff] (!%p1554_p11) }
 0x192   : > { %1158 = vst [vmem:[%s2948_s3 + $0x88] sm:$0xff] %v1108_v33  ;;  %1184 = vst [vmem:[%s2948_s3 + $0x158] sm:$0xff] %v1134_v35  ;;  %v1253_v33 = vadd.f32 (!%p1554_p11), %v2581_v30, %v1196_v31  ;;  %v1198_v35 = vld [vmem:[%s2948_s3 + $0x18] sm:$0xff] (!%p1554_p11) }
 0x195   : > { %v964_v39 = vpop.f32.mrb[36].mxu0  ;;  %v1068_v41 = vpop.f32.mrb[36].mxu1 }
 0x196   : > { %v1109_v43 = vadd.f32 %v964_v39, %v562_v37  ;;  %v1647_v44 = vpop.f32.mrb[37].mxu0  ;;  %v1135_v45 = vadd.f32 %v1068_v41, %v588_v38  ;;  %v1699_v46 = vpop.f32.mrb[37].mxu1  ;;  %v1254_v37 = vadd.f32 (!%p1554_p11), %v2581_v30, %v1197_v34  ;;  %v1255_v38 = vadd.f32 (!%p1554_p11), %v2581_v30, %v1198_v35  ;;  %v1201_v41 = vld [vmem:[%s2948_s3 + $0x30] sm:$0xff] (!%p1554_p11)  ;;  %v1222_v35 = vld [vmem:[%s2948_s3 + $0xd8] sm:$0xff] (!%p1554_p11) }
 0x197   : > { %v967_v47 = vpop.f32.mrb[38].mxu0  ;;  %v1071_v48 = vpop.f32.mrb[38].mxu1  ;;  %v1256_v39 = vadd.f32 (!%p1554_p11), %v2581_v30, %v1199_v36  ;;  %v1303_v44 = vmax.f32 (!%p1554_p11), %v1253_v33, 0.0  ;;  %v1258_v46 = vadd.f32 (!%p1554_p11), %v2581_v30, %v1201_v41  ;;  %v1221_v34 = vld [vmem:[%s2948_s3 + $0xd0] sm:$0xff] (!%p1554_p11)  ;;  %v1223_v36 = vld [vmem:[%s2948_s3 + $0xe0] sm:$0xff] (!%p1554_p11)  ;;  %v1224_v41 = vld [vmem:[%s2948_s3 + $0xe8] sm:$0xff] (!%p1554_p11) }
 0x198   : > { %1159 = vst [vmem:[%s2948_s3 + $0x90] sm:$0xff] %v1109_v43  ;;  %v1110_v49 = vadd.f32 %v967_v47, %v563_v40  ;;  %v1648_v50 = vpop.f32.mrb[39].mxu0  ;;  %1185 = vst [vmem:[%s2948_s3 + $0x160] sm:$0xff] %v1135_v45  ;;  %v1136_v51 = vadd.f32 %v1071_v48, %v589_v42  ;;  %v1700_v52 = vpop.f32.mrb[39].mxu1  ;;  %v1200_v40 = vld [vmem:[%s2948_s3 + $0x28] sm:$0xff] (!%p1554_p11)  ;;  %v1202_v42 = vld [vmem:[%s2948_s3 + $0x38] sm:$0xff] (!%p1554_p11) }
 0x199   : > { %v1302_v43 = vmax.f32 (!%p1554_p11), %v1252_v32, 0.0  ;;  %v1257_v45 = vadd.f32 (!%p1554_p11), %v2581_v30, %v1200_v40  ;;  %v1203_v47 = vld [vmem:[%s2948_s3 + $0x40] sm:$0xff] (!%p1554_p11)  ;;  %v1204_v48 = vld [vmem:[%s2948_s3 + $0x48] sm:$0xff] (!%p1554_p11)  ;;  %v1304_v50 = vmax.f32 (!%p1554_p11), %v1254_v37, 0.0  ;;  %v1306_v52 = vmax.f32 (!%p1554_p11), %v1256_v39, 0.0  ;;  %1353 = vst [vmem:[%s2948_s3 + $0x8] sm:$0xff] (!%p1554_p11), %v1303_v44 }
 0x19a   : > { %1160 = vst [vmem:[%s2948_s3 + $0x98] sm:$0xff] %v1110_v49  ;;  %1186 = vst [vmem:[%s2948_s3 + $0x168] sm:$0xff] %v1136_v51  ;;  %v1205_v49 = vld [vmem:[%s2948_s3 + $0x50] sm:$0xff] (!%p1554_p11)  ;;  %v1305_v51 = vmax.f32 (!%p1554_p11), %v1255_v38, 0.0 }
 0x19b   : > { %1352 = vst [vmem:[%s2948_s3] sm:$0xff] (!%p1554_p11), %v1302_v43  ;;  %1354 = vst [vmem:[%s2948_s3 + $0x10] sm:$0xff] (!%p1554_p11), %v1304_v50  ;;  %v1279_v50 = vadd.f32 (!%p1554_p11), %v2581_v30, %v1222_v35 }
 0x19c   : > { %1355 = vst [vmem:[%s2948_s3 + $0x18] sm:$0xff] (!%p1554_p11), %v1305_v51  ;;  %1356 = vst [vmem:[%s2948_s3 + $0x20] sm:$0xff] (!%p1554_p11), %v1306_v52  ;;  %v1280_v51 = vadd.f32 (!%p1554_p11), %v2581_v30, %v1223_v36  ;;  %v1227_v52 = vld [vmem:[%s2948_s3 + $0x100] sm:$0xff] (!%p1554_p11) }
 0x19d   : > { %v972_v55 = vpop.f32.mrb[40].mxu0  ;;  %v1076_v57 = vpop.f32.mrb[40].mxu1 }
 0x19e   : > { %v1111_v59 = vadd.f32 %v972_v55, %v564_v53  ;;  %v1651_v60 = vpop.f32.mrb[41].mxu0  ;;  %v1137_v61 = vadd.f32 %v1076_v57, %v590_v54  ;;  %v1703_v62 = vpop.f32.mrb[41].mxu1  ;;  %v1259_v53 = vadd.f32 (!%p1554_p11), %v2581_v30, %v1202_v42  ;;  %v1206_v54 = vld [vmem:[%s2948_s3 + $0x58] sm:$0xff] (!%p1554_p11)  ;;  %v1207_v55 = vld [vmem:[%s2948_s3 + $0x60] sm:$0xff] (!%p1554_p11)  ;;  %v1307_v57 = vmax.f32 (!%p1554_p11), %v1257_v45, 0.0  ;;  %v1225_v42 = vld [vmem:[%s2948_s3 + $0xf0] sm:$0xff] (!%p1554_p11) }
 0x19f   : > { %v975_v63 = vpop.f32.mrb[42].mxu0  ;;  %v1079_v0 = vpop.f32.mrb[42].mxu1  ;;  %v1261_v60 = vadd.f32 (!%p1554_p11), %v2581_v30, %v1204_v48  ;;  %v1210_v62 = vld [vmem:[%s2948_s3 + $0x78] sm:$0xff] (!%p1554_p11) }
 0x1a0   : > { %1161 = vst [vmem:[%s2948_s3 + $0xa0] sm:$0xff] %v1111_v59  ;;  %v1112_v1 = vadd.f32 %v975_v63, %v565_v56  ;;  %v1652_v2 = vpop.f32.mrb[43].mxu0  ;;  %1187 = vst [vmem:[%s2948_s3 + $0x170] sm:$0xff] %v1137_v61  ;;  %v1138_v3 = vadd.f32 %v1079_v0, %v591_v58  ;;  %v1704_v4 = vpop.f32.mrb[43].mxu1  ;;  %v1208_v56 = vld [vmem:[%s2948_s3 + $0x68] sm:$0xff] (!%p1554_p11)  ;;  %v1308_v58 = vmax.f32 (!%p1554_p11), %v1258_v46, 0.0  ;;  %v1260_v59 = vadd.f32 (!%p1554_p11), %v2581_v30, %v1203_v47 }
 0x1a1   : > { %v1209_v61 = vld [vmem:[%s2948_s3 + $0x70] sm:$0xff] (!%p1554_p11)  ;;  %v1309_v63 = vmax.f32 (!%p1554_p11), %v1259_v53, 0.0  ;;  %v1262_v0 = vadd.f32 (!%p1554_p11), %v2581_v30, %v1205_v49  ;;  %v1264_v2 = vadd.f32 (!%p1554_p11), %v2581_v30, %v1207_v55  ;;  %v1212_v4 = vld [vmem:[%s2948_s3 + $0x88] sm:$0xff] (!%p1554_p11)  ;;  %1357 = vst [vmem:[%s2948_s3 + $0x28] sm:$0xff] (!%p1554_p11), %v1307_v57  ;;  %v1226_v47 = vld [vmem:[%s2948_s3 + $0xf8] sm:$0xff] (!%p1554_p11)  ;;  %v1278_v49 = vadd.f32 (!%p1554_p11), %v2581_v30, %v1221_v34 }
 0x1a2   : > { %1162 = vst [vmem:[%s2948_s3 + $0xa8] sm:$0xff] %v1112_v1  ;;  %1188 = vst [vmem:[%s2948_s3 + $0x178] sm:$0xff] %v1138_v3  ;;  %v1263_v1 = vadd.f32 (!%p1554_p11), %v2581_v30, %v1206_v54  ;;  %v1211_v3 = vld [vmem:[%s2948_s3 + $0x80] sm:$0xff] (!%p1554_p11)  ;;  %v1228_v53 = vld [vmem:[%s2948_s3 + $0x108] sm:$0xff] (!%p1554_p11)  ;;  %v1282_v57 = vadd.f32 (!%p1554_p11), %v2581_v30, %v1225_v42 }
 0x1a3   : > { %1358 = vst [vmem:[%s2948_s3 + $0x30] sm:$0xff] (!%p1554_p11), %v1308_v58  ;;  %1359 = vst [vmem:[%s2948_s3 + $0x38] sm:$0xff] (!%p1554_p11), %v1309_v63  ;;  %v1229_v58 = vld [vmem:[%s2948_s3 + $0x110] sm:$0xff] (!%p1554_p11)  ;;  %v1330_v63 = vmax.f32 (!%p1554_p11), %v1280_v51, 0.0 }
 0x1a5   : > { %v980_v7 = vpop.f32.mrb[44].mxu0  ;;  %v1084_v9 = vpop.f32.mrb[44].mxu1  ;;  %1380 = vst [vmem:[%s2948_s3 + $0xe0] sm:$0xff] (!%p1554_p11), %v1330_v63 }
 0x1a6   : > { %v1113_v11 = vadd.f32 %v980_v7, %v566_v5  ;;  %v1655_v12 = vpop.f32.mrb[45].mxu0  ;;  %v1139_v13 = vadd.f32 %v1084_v9, %v592_v6  ;;  %v1707_v14 = vpop.f32.mrb[45].mxu1  ;;  %v1310_v5 = vmax.f32 (!%p1554_p11), %v1260_v59, 0.0  ;;  %v1311_v6 = vmax.f32 (!%p1554_p11), %v1261_v60, 0.0  ;;  %v1213_v9 = vld [vmem:[%s2948_s3 + $0x90] sm:$0xff] (!%p1554_p11)  ;;  %v1230_v59 = vld [vmem:[%s2948_s3 + $0x118] sm:$0xff] (!%p1554_p11) }
 0x1a7   : > { %v983_v15 = vpop.f32.mrb[46].mxu0  ;;  %v1087_v16 = vpop.f32.mrb[46].mxu1  ;;  %v1265_v7 = vadd.f32 (!%p1554_p11), %v2581_v30, %v1208_v56  ;;  %v1312_v12 = vmax.f32 (!%p1554_p11), %v1262_v0, 0.0  ;;  %v1314_v14 = vmax.f32 (!%p1554_p11), %v1264_v2, 0.0  ;;  %v1281_v56 = vadd.f32 (!%p1554_p11), %v2581_v30, %v1224_v41  ;;  %v1231_v60 = vld [vmem:[%s2948_s3 + $0x120] sm:$0xff] (!%p1554_p11)  ;;  %v1233_v2 = vld [vmem:[%s2948_s3 + $0x130] sm:$0xff] (!%p1554_p11) }
 0x1a8   : > { %1163 = vst [vmem:[%s2948_s3 + $0xb0] sm:$0xff] %v1113_v11  ;;  %v1114_v17 = vadd.f32 %v983_v15, %v567_v8  ;;  %v1656_v18 = vpop.f32.mrb[47].mxu0  ;;  %1189 = vst [vmem:[%s2948_s3 + $0x180] sm:$0xff] %v1139_v13  ;;  %v1140_v19 = vadd.f32 %v1087_v16, %v593_v10  ;;  %v1708_v20 = vpop.f32.mrb[47].mxu1  ;;  %v1266_v8 = vadd.f32 (!%p1554_p11), %v2581_v30, %v1209_v61  ;;  %v1214_v10 = vld [vmem:[%s2948_s3 + $0x98] sm:$0xff] (!%p1554_p11)  ;;  %v1215_v11 = vld [vmem:[%s2948_s3 + $0xa0] sm:$0xff] (!%p1554_p11) }
 0x1a9   : > { %v1313_v13 = vmax.f32 (!%p1554_p11), %v1263_v1, 0.0  ;;  %v1267_v15 = vadd.f32 (!%p1554_p11), %v2581_v30, %v1210_v62  ;;  %v1216_v16 = vld [vmem:[%s2948_s3 + $0xa8] sm:$0xff] (!%p1554_p11)  ;;  %1360 = vst [vmem:[%s2948_s3 + $0x40] sm:$0xff] (!%p1554_p11), %v1310_v5  ;;  %1361 = vst [vmem:[%s2948_s3 + $0x48] sm:$0xff] (!%p1554_p11), %v1311_v6  ;;  %v1315_v18 = vmax.f32 (!%p1554_p11), %v1265_v7, 0.0  ;;  %v1268_v20 = vadd.f32 (!%p1554_p11), %v2581_v30, %v1211_v3  ;;  %v1234_v7 = vld [vmem:[%s2948_s3 + $0x138] sm:$0xff] (!%p1554_p11) }
 0x1aa   : > { %1164 = vst [vmem:[%s2948_s3 + $0xb8] sm:$0xff] %v1114_v17  ;;  %1190 = vst [vmem:[%s2948_s3 + $0x188] sm:$0xff] %v1140_v19  ;;  %v1316_v19 = vmax.f32 (!%p1554_p11), %v1266_v8, 0.0  ;;  %v1273_v32 = vadd.f32 (!%p1554_p11), %v2581_v30, %v1216_v16  ;;  %v1328_v61 = vmax.f32 (!%p1554_p11), %v1278_v49, 0.0  ;;  %v1329_v62 = vmax.f32 (!%p1554_p11), %v1279_v50, 0.0  ;;  %v1232_v1 = vld [vmem:[%s2948_s3 + $0x128] sm:$0xff] (!%p1554_p11) }
 0x1ab   : > { %1362 = vst [vmem:[%s2948_s3 + $0x50] sm:$0xff] (!%p1554_p11), %v1312_v12  ;;  %1363 = vst [vmem:[%s2948_s3 + $0x58] sm:$0xff] (!%p1554_p11), %v1313_v13  ;;  %v1318_v29 = vmax.f32 (!%p1554_p11), %v1268_v20, 0.0  ;;  %v1283_v0 = vadd.f32 (!%p1554_p11), %v2581_v30, %v1226_v47  ;;  %v1331_v3 = vmax.f32 (!%p1554_p11), %v1281_v56, 0.0  ;;  %v1284_v5 = vadd.f32 (!%p1554_p11), %v2581_v30, %v1227_v52  ;;  %v1235_v12 = vld [vmem:[%s2948_s3 + $0x140] sm:$0xff] (!%p1554_p11)  ;;  %v1236_v13 = vld [vmem:[%s2948_s3 + $0x148] sm:$0xff] (!%p1554_p11) }
 0x1ac   : > { %1194 = sbr.rel (%p1554_p11) target bundleno = 449 (0x1c1), region = 81  ;;  %1364 = vst [vmem:[%s2948_s3 + $0x60] sm:$0xff] (!%p1554_p11), %v1314_v14  ;;  %1365 = vst [vmem:[%s2948_s3 + $0x68] sm:$0xff] (!%p1554_p11), %v1315_v18  ;;  %v1323_v43 = vmax.f32 (!%p1554_p11), %v1273_v32, 0.0  ;;  %v1285_v6 = vadd.f32 (!%p1554_p11), %v2581_v30, %v1228_v53  ;;  %v1289_v16 = vadd.f32 (!%p1554_p11), %v2581_v30, %v1232_v1  ;;  %v1237_v18 = vld [vmem:[%s2948_s3 + $0x150] sm:$0xff] (!%p1554_p11)  ;;  %v1239_v20 = vld [vmem:[%s2948_s3 + $0x160] sm:$0xff] (!%p1554_p11) }
 0x1ad   : > { %v988_v22 = vpop.f32.mrb[48].mxu0  ;;  %1366 = vst [vmem:[%s2948_s3 + $0x70] sm:$0xff] (!%p1554_p11), %v1316_v19  ;;  %1368 = vst [vmem:[%s2948_s3 + $0x80] sm:$0xff] (!%p1554_p11), %v1318_v29  ;;  %v1333_v8 = vmax.f32 (!%p1554_p11), %v1283_v0, 0.0  ;;  %v1334_v14 = vmax.f32 (!%p1554_p11), %v1284_v5, 0.0  ;;  %v1238_v19 = vld [vmem:[%s2948_s3 + $0x158] sm:$0xff] (!%p1554_p11)  ;;  %v1292_v29 = vadd.f32 (!%p1554_p11), %v2581_v30, %v1235_v12  ;;  %v1294_v34 = vadd.f32 (!%p1554_p11), %v2581_v30, %v1237_v18 }
 0x1ae   : > { %v1115_v24 = vadd.f32 %v988_v22, %v568_v21  ;;  %v1659_v25 = vpop.f32.mrb[49].mxu0  ;;  %v1269_v21 = vadd.f32 (!%p1554_p11), %v2581_v30, %v1212_v4  ;;  %1373 = vst [vmem:[%s2948_s3 + $0xa8] sm:$0xff] (!%p1554_p11), %v1323_v43  ;;  %v1332_v4 = vmax.f32 (!%p1554_p11), %v1282_v57, 0.0  ;;  %1378 = vst [vmem:[%s2948_s3 + $0xd0] sm:$0xff] (!%p1554_p11), %v1328_v61  ;;  %v1242_v32 = vld [vmem:[%s2948_s3 + $0x178] sm:$0xff] (!%p1554_p11)  ;;  %v1295_v35 = vadd.f32 (!%p1554_p11), %v2581_v30, %v1238_v19 }
 0x1af   : > { %v991_v26 = vpop.f32.mrb[50].mxu0  ;;  %v1217_v17 = vld [vmem:[%s2948_s3 + $0xb0] sm:$0xff] (!%p1554_p11)  ;;  %v1271_v25 = vadd.f32 (!%p1554_p11), %v2581_v30, %v1214_v10  ;;  %1379 = vst [vmem:[%s2948_s3 + $0xd8] sm:$0xff] (!%p1554_p11), %v1329_v62  ;;  %v1287_v10 = vadd.f32 (!%p1554_p11), %v2581_v30, %v1230_v59  ;;  %1381 = vst [vmem:[%s2948_s3 + $0xe8] sm:$0xff] (!%p1554_p11), %v1331_v3  ;;  %v1296_v36 = vadd.f32 (!%p1554_p11), %v2581_v30, %v1239_v20  ;;  %v1344_v43 = vmax.f32 (!%p1554_p11), %v1294_v34, 0.0 }
 0x1b0   : > { %1165 = vst [vmem:[%s2948_s3 + $0xc0] sm:$0xff] %v1115_v24  ;;  %v1116_v27 = vadd.f32 %v991_v26, %v569_v23  ;;  %v1660_v28 = vpop.f32.mrb[51].mxu0  ;;  %v1317_v23 = vmax.f32 (!%p1554_p11), %v1267_v15, 0.0  ;;  %v1270_v24 = vadd.f32 (!%p1554_p11), %v2581_v30, %v1213_v9  ;;  %v1272_v26 = vadd.f32 (!%p1554_p11), %v2581_v30, %v1215_v11  ;;  %1382 = vst [vmem:[%s2948_s3 + $0xf0] sm:$0xff] (!%p1554_p11), %v1332_v4 }
 0x1b1   : > { %v1218_v22 = vld [vmem:[%s2948_s3 + $0xb8] sm:$0xff] (!%p1554_p11)  ;;  %v1319_v31 = vmax.f32 (!%p1554_p11), %v1269_v21, 0.0  ;;  %v1274_v33 = vadd.f32 (!%p1554_p11), %v2581_v30, %v1217_v17  ;;  %v1321_v38 = vmax.f32 (!%p1554_p11), %v1271_v25, 0.0  ;;  %v1286_v9 = vadd.f32 (!%p1554_p11), %v2581_v30, %v1229_v58  ;;  %1383 = vst [vmem:[%s2948_s3 + $0xf8] sm:$0xff] (!%p1554_p11), %v1333_v8  ;;  %v1240_v25 = vld [vmem:[%s2948_s3 + $0x168] sm:$0xff] (!%p1554_p11)  ;;  %1384 = vst [vmem:[%s2948_s3 + $0x100] sm:$0xff] (!%p1554_p11), %v1334_v14 }
 0x1b2   : > { %1166 = vst [vmem:[%s2948_s3 + $0xc8] sm:$0xff] %v1116_v27  ;;  %1367 = vst [vmem:[%s2948_s3 + $0x78] sm:$0xff] (!%p1554_p11), %v1317_v23  ;;  %v1320_v37 = vmax.f32 (!%p1554_p11), %v1270_v24, 0.0  ;;  %v1322_v39 = vmax.f32 (!%p1554_p11), %v1272_v26, 0.0  ;;  %v1275_v40 = vadd.f32 (!%p1554_p11), %v2581_v30, %v1218_v22  ;;  %v1288_v11 = vadd.f32 (!%p1554_p11), %v2581_v30, %v1231_v60  ;;  %v1241_v26 = vld [vmem:[%s2948_s3 + $0x170] sm:$0xff] (!%p1554_p11) }
 0x1b3   : > { %1369 = vst [vmem:[%s2948_s3 + $0x88] sm:$0xff] %v1319_v31  ;;  %v1324_v44 = vmax.f32 %v1274_v33, 0.0  ;;  %1371 = vst [vmem:[%s2948_s3 + $0x98] sm:$0xff] %v1321_v38  ;;  %v1335_v15 = vmax.f32 %v1285_v6, 0.0  ;;  %v1290_v17 = vadd.f32 %v2581_v30, %v1233_v2  ;;  %v1336_v21 = vmax.f32 %v1286_v9, 0.0  ;;  %v1244_v38 = vld [vmem:[%s2948_s3 + $0x188] sm:$0xff] }
 0x1b4   : > { %1370 = vst [vmem:[%s2948_s3 + $0x90] sm:$0xff] %v1320_v37  ;;  %1372 = vst [vmem:[%s2948_s3 + $0xa0] sm:$0xff] %v1322_v39  ;;  %v1325_v48 = vmax.f32 %v1275_v40, 0.0  ;;  %v1337_v22 = vmax.f32 %v1287_v10, 0.0  ;;  %v1338_v23 = vmax.f32 %v1288_v11, 0.0  ;;  %v1291_v24 = vadd.f32 %v2581_v30, %v1234_v7  ;;  %v1243_v37 = vld [vmem:[%s2948_s3 + $0x180] sm:$0xff] }
 0x1b5   : > { %1374 = vst [vmem:[%s2948_s3 + $0xb0] sm:$0xff] %v1324_v44  ;;  %1385 = vst [vmem:[%s2948_s3 + $0x108] sm:$0xff] %v1335_v15  ;;  %v1293_v31 = vadd.f32 %v2581_v30, %v1236_v13  ;;  %v1342_v39 = vmax.f32 %v1292_v29, 0.0  ;;  %v1297_v41 = vadd.f32 %v2581_v30, %v1240_v25  ;;  %v1298_v42 = vadd.f32 %v2581_v30, %v1241_v26 }
 0x1b6   : > { %1375 = vst [vmem:[%s2948_s3 + $0xb8] sm:$0xff] %v1325_v48  ;;  %1386 = vst [vmem:[%s2948_s3 + $0x110] sm:$0xff] %v1336_v21  ;;  %v1341_v33 = vmax.f32 %v1291_v24, 0.0  ;;  %v1345_v44 = vmax.f32 %v1295_v35, 0.0  ;;  %v1300_v49 = vadd.f32 %v2581_v30, %v1243_v37  ;;  %v1301_v50 = vadd.f32 %v2581_v30, %v1244_v38 }
 0x1b7   : > { %v1219_v27 = vld [vmem:[%s2948_s3 + $0xc0] sm:$0xff]  ;;  %1387 = vst [vmem:[%s2948_s3 + $0x118] sm:$0xff] %v1337_v22  ;;  %1388 = vst [vmem:[%s2948_s3 + $0x120] sm:$0xff] %v1338_v23  ;;  %v1343_v40 = vmax.f32 %v1293_v31, 0.0  ;;  %v1347_v47 = vmax.f32 %v1297_v41, 0.0  ;;  %v1348_v48 = vmax.f32 %v1298_v42, 0.0 }
 0x1b8   : > { %v1276_v45 = vadd.f32 %v2581_v30, %v1219_v27  ;;  %v1339_v27 = vmax.f32 %v1289_v16, 0.0  ;;  %1391 = vst [vmem:[%s2948_s3 + $0x138] sm:$0xff] %v1341_v33  ;;  %1392 = vst [vmem:[%s2948_s3 + $0x140] sm:$0xff] %v1342_v39  ;;  %v1351_v52 = vmax.f32 %v1301_v50, 0.0 }
 0x1b9   : > { %v1220_v28 = vld [vmem:[%s2948_s3 + $0xc8] sm:$0xff]  ;;  %1393 = vst [vmem:[%s2948_s3 + $0x148] sm:$0xff] %v1343_v40  ;;  %1394 = vst [vmem:[%s2948_s3 + $0x150] sm:$0xff] %v1344_v43 }
 0x1ba   : > { %v1277_v46 = vadd.f32 %v2581_v30, %v1220_v28  ;;  %v1326_v54 = vmax.f32 %v1276_v45, 0.0  ;;  %v1340_v28 = vmax.f32 %v1290_v17, 0.0  ;;  %1389 = vst [vmem:[%s2948_s3 + $0x128] sm:$0xff] %v1339_v27  ;;  %v1346_v45 = vmax.f32 %v1296_v36, 0.0  ;;  %1395 = vst [vmem:[%s2948_s3 + $0x158] sm:$0xff] %v1345_v44 }
 0x1bb   : > { %1397 = vst [vmem:[%s2948_s3 + $0x168] sm:$0xff] %v1347_v47  ;;  %1398 = vst [vmem:[%s2948_s3 + $0x170] sm:$0xff] %v1348_v48 }
 0x1bc   : > { %v1327_v55 = vmax.f32 %v1277_v46, 0.0  ;;  %1376 = vst [vmem:[%s2948_s3 + $0xc0] sm:$0xff] %v1326_v54  ;;  %1390 = vst [vmem:[%s2948_s3 + $0x130] sm:$0xff] %v1340_v28  ;;  %v1299_v46 = vadd.f32 %v2581_v30, %v1242_v32  ;;  %v1350_v30 = vmax.f32 %v1300_v49, 0.0 }
 0x1bd   : > { %1396 = vst [vmem:[%s2948_s3 + $0x160] sm:$0xff] %v1346_v45  ;;  %1401 = vst [vmem:[%s2948_s3 + $0x188] sm:$0xff] %v1351_v52 }
 0x1be   : > { %1377 = vst [vmem:[%s2948_s3 + $0xc8] sm:$0xff] %v1327_v55  ;;  %v1349_v51 = vmax.f32 %v1299_v46, 0.0  ;;  %1400 = vst [vmem:[%s2948_s3 + $0x180] sm:$0xff] %v1350_v30 }
 0x1c0   : > { %1399 = vst [vmem:[%s2948_s3 + $0x178] sm:$0xff] %v1349_v51 }
 0x1c1 PF: > { %s13_s16 = sadd.s32 1, %s1841_s16   ;;  %s2949_s12 = smov %s1829_s13 }
 0x1c2   : > { %p10_p12 = scmp.ge.s32.totalorder %s13_s16, 7   ;;  %s2950_s13 = smov %s1901_s20 }
 0x1c3   : > { %s2951_s14 = smov %s1837_s15  ;;  %s2952_s15 = smov %s2954_s17 }
 0x1c4   :  { %12 = sbr.rel (!%p10_p12) target bundleno = 3 (0x3), region = 122 }

// kernel: cnn_forward.14
= control target key start
LH: loop header
LB: loop body
LE: loop exit
PB: predicated region body
PF: predicated region fallthrough
CT: control target
= control target key end

     0   :  { %s1816_s12 = smov 0   ;;  %s1818_s13 = smov 0   ;;  %s2895_s0 = inlined_call_operand.vmem [shape: bf16[400,640], index: 0, kind: input, shape index: {}]   ;;  %s2896_s1 = inlined_call_operand.vmem [shape: bf16[640,128], index: 1, kind: input, shape index: {}]   ;;  %s2897_s2 = inlined_call_operand.vmem [shape: f32[1,128], index: 2, kind: input, shape index: {}]   ;;  %s2898_s3 = inlined_call_operand.vmem [shape: f32[400,128], index: 3, kind: output, shape index: {}]  }
   0x1   :  { %s1820_s14 = smov 0   ;;  %s1822_s15 = smov 0  }
   0x2   :  { %s1824_s16 = smov 0  }
   0x3 LB: > { %s25_s17 = sadd.s32 1, %s1787_s15  ;;  %p48_p1 = scmp.ne.s32.totalorder %s1779_s13, %s1775_s12  ;;  %s1791_s16 = sphi %s1824_s16, %s13_s16   ;;  %s1787_s15 = sphi %s1822_s15, %s2902_s15   ;;  %s1783_s14 = sphi %s1820_s14, %s2901_s14   ;;  %s1779_s13 = sphi %s1818_s13, %s2900_s13   ;;  %s1775_s12 = sphi %s1816_s12, %s2899_s12  }
   0x4   : > { %p26_p0 = scmp.ge.s32.totalorder %s25_s17, 5  ;;  %p49_p2 = scmp.eq.s32.totalorder %s1791_s16, 0 }
   0x5   : > { %s41_s19 = sadd.s32 1, %s1779_s13  ;;  %p1465_p5 = scmp.ge.s32.totalorder %s1791_s16, 5 }
   0x6   : > { %s2904_s17 = smov (%p26_p0, %s25_s17), 0  ;;  %p50_p3 = por %p49_p2, %p48_p1 }
   0x7   : > { %s37_s18 = ssub.s32 %s1787_s15, %s2904_s17  ;;  %162 = sbr.rel (%p1465_p5) target bundleno = 51 (0x33), region = 20 }
   0x8   : > { %p39_p4 = scmp.eq.s32.totalorder %s37_s18, 0 }
   0xa   : > { %s1851_s20 = scalar_select %p39_p4, %s1779_s13, %s41_s19  }
   0xe   : > { %165 = sbr.rel (!%p50_p3) target bundleno = 51 (0x33), region = 24  ;;  %s167_s21 = sand.u32 (%p50_p3), 1, %s1779_s13  }
   0xf   : > { %s1466_s22 = sshll.u32 (%p50_p3), %s1787_s15, 2  ;;  %s1675_s23 = smul.u32 (%p50_p3), 200, %s167_s21 }
  0x10   : > { %s1859_s26 = scalar_lea.vmem (%p50_p3), %s2895_s0, %s1466_s22 }
  0x11   : > { %v190_v0 = vld [vmem:[%s1859_s26] sm:$0xf] (%p50_p3)  ;;  %v192_v1 = vld [vmem:[%s1859_s26 + $0x14] sm:$0xf] (%p50_p3)  ;;  %v194_v2 = vld [vmem:[%s1859_s26 + $0x28] sm:$0xf] (%p50_p3) }
  0x12   : > { %v196_v3 = vld [vmem:[%s1859_s26 + $0x3c] sm:$0xf] (%p50_p3)  ;;  %v198_v4 = vld [vmem:[%s1859_s26 + $0x50] sm:$0xf] (%p50_p3)  ;;  %s1866_s27 = scalar_lea.vmem (%p50_p3), [#allocation2], %s1675_s23 }
  0x13   : > { %191 = vst [vmem:[%s1866_s27] sm:$0xf] (%p50_p3), %v190_v0  ;;  %193 = vst [vmem:[%s1866_s27 + $0x4] sm:$0xf] (%p50_p3), %v192_v1  ;;  %v200_v5 = vld [vmem:[%s1859_s26 + $0x64] sm:$0xf] (%p50_p3) }
  0x14   : > { %195 = vst [vmem:[%s1866_s27 + $0x8] sm:$0xf] (%p50_p3), %v194_v2  ;;  %197 = vst [vmem:[%s1866_s27 + $0xc] sm:$0xf] (%p50_p3), %v196_v3  ;;  %v202_v6 = vld [vmem:[%s1859_s26 + $0x78] sm:$0xf] (%p50_p3) }
  0x15   : > { %199 = vst [vmem:[%s1866_s27 + $0x10] sm:$0xf] %v198_v4  ;;  %v204_v7 = vld [vmem:[%s1859_s26 + $0x8c] sm:$0xf]  ;;  %201 = vst [vmem:[%s1866_s27 + $0x14] sm:$0xf] %v200_v5 }
  0x16   : > { %203 = vst [vmem:[%s1866_s27 + $0x18] sm:$0xf] %v202_v6  ;;  %205 = vst [vmem:[%s1866_s27 + $0x1c] sm:$0xf] %v204_v7  ;;  %v206_v8 = vld [vmem:[%s1859_s26 + $0xa0] sm:$0xf] }
  0x17   : > { %v208_v9 = vld [vmem:[%s1859_s26 + $0xb4] sm:$0xf]  ;;  %v210_v10 = vld [vmem:[%s1859_s26 + $0xc8] sm:$0xf]  ;;  %207 = vst [vmem:[%s1866_s27 + $0x20] sm:$0xf] %v206_v8 }
  0x18   : > { %209 = vst [vmem:[%s1866_s27 + $0x24] sm:$0xf] %v208_v9  ;;  %211 = vst [vmem:[%s1866_s27 + $0x28] sm:$0xf] %v210_v10  ;;  %v212_v11 = vld [vmem:[%s1859_s26 + $0xdc] sm:$0xf] }
  0x19   : > { %v214_v12 = vld [vmem:[%s1859_s26 + $0xf0] sm:$0xf]  ;;  %v216_v13 = vld [vmem:[%s1859_s26 + $0x104] sm:$0xf]  ;;  %213 = vst [vmem:[%s1866_s27 + $0x2c] sm:$0xf] %v212_v11 }
  0x1a   : > { %215 = vst [vmem:[%s1866_s27 + $0x30] sm:$0xf] %v214_v12  ;;  %217 = vst [vmem:[%s1866_s27 + $0x34] sm:$0xf] %v216_v13  ;;  %v218_v14 = vld [vmem:[%s1859_s26 + $0x118] sm:$0xf] }
  0x1b   : > { %v220_v15 = vld [vmem:[%s1859_s26 + $0x12c] sm:$0xf]  ;;  %v222_v16 = vld [vmem:[%s1859_s26 + $0x140] sm:$0xf]  ;;  %219 = vst [vmem:[%s1866_s27 + $0x38] sm:$0xf] %v218_v14 }
  0x1c   : > { %221 = vst [vmem:[%s1866_s27 + $0x3c] sm:$0xf] %v220_v15  ;;  %223 = vst [vmem:[%s1866_s27 + $0x40] sm:$0xf] %v222_v16  ;;  %v224_v17 = vld [vmem:[%s1859_s26 + $0x154] sm:$0xf] }
  0x1d   : > { %v226_v18 = vld [vmem:[%s1859_s26 + $0x168] sm:$0xf]  ;;  %v228_v19 = vld [vmem:[%s1859_s26 + $0x17c] sm:$0xf]  ;;  %225 = vst [vmem:[%s1866_s27 + $0x44] sm:$0xf] %v224_v17 }
  0x1e   : > { %227 = vst [vmem:[%s1866_s27 + $0x48] sm:$0xf] %v226_v18  ;;  %229 = vst [vmem:[%s1866_s27 + $0x4c] sm:$0xf] %v228_v19  ;;  %v230_v20 = vld [vmem:[%s1859_s26 + $0x190] sm:$0xf] }
  0x1f   : > { %v232_v21 = vld [vmem:[%s1859_s26 + $0x1a4] sm:$0xf]  ;;  %v234_v22 = vld [vmem:[%s1859_s26 + $0x1b8] sm:$0xf]  ;;  %231 = vst [vmem:[%s1866_s27 + $0x50] sm:$0xf] %v230_v20 }
  0x20   : > { %233 = vst [vmem:[%s1866_s27 + $0x54] sm:$0xf] %v232_v21  ;;  %235 = vst [vmem:[%s1866_s27 + $0x58] sm:$0xf] %v234_v22  ;;  %v236_v23 = vld [vmem:[%s1859_s26 + $0x1cc] sm:$0xf] }
  0x21   : > { %v238_v24 = vld [vmem:[%s1859_s26 + $0x1e0] sm:$0xf]  ;;  %v240_v25 = vld [vmem:[%s1859_s26 + $0x1f4] sm:$0xf]  ;;  %237 = vst [vmem:[%s1866_s27 + $0x5c] sm:$0xf] %v236_v23 }
  0x22   : > { %239 = vst [vmem:[%s1866_s27 + $0x60] sm:$0xf] %v238_v24  ;;  %241 = vst [vmem:[%s1866_s27 + $0x64] sm:$0xf] %v240_v25  ;;  %v242_v26 = vld [vmem:[%s1859_s26 + $0x208] sm:$0xf] }
  0x23   : > { %v244_v27 = vld [vmem:[%s1859_s26 + $0x21c] sm:$0xf]  ;;  %v246_v28 = vld [vmem:[%s1859_s26 + $0x230] sm:$0xf]  ;;  %243 = vst [vmem:[%s1866_s27 + $0x68] sm:$0xf] %v242_v26 }
  0x24   : > { %245 = vst [vmem:[%s1866_s27 + $0x6c] sm:$0xf] %v244_v27  ;;  %247 = vst [vmem:[%s1866_s27 + $0x70] sm:$0xf] %v246_v28  ;;  %v248_v29 = vld [vmem:[%s1859_s26 + $0x244] sm:$0xf] }
  0x25   : > { %v250_v30 = vld [vmem:[%s1859_s26 + $0x258] sm:$0xf]  ;;  %v252_v31 = vld [vmem:[%s1859_s26 + $0x26c] sm:$0xf]  ;;  %249 = vst [vmem:[%s1866_s27 + $0x74] sm:$0xf] %v248_v29 }
  0x26   : > { %251 = vst [vmem:[%s1866_s27 + $0x78] sm:$0xf] %v250_v30  ;;  %253 = vst [vmem:[%s1866_s27 + $0x7c] sm:$0xf] %v252_v31  ;;  %v254_v32 = vld [vmem:[%s1859_s26 + $0x280] sm:$0xf] }
  0x27   : > { %v256_v33 = vld [vmem:[%s1859_s26 + $0x294] sm:$0xf]  ;;  %v258_v34 = vld [vmem:[%s1859_s26 + $0x2a8] sm:$0xf]  ;;  %255 = vst [vmem:[%s1866_s27 + $0x80] sm:$0xf] %v254_v32 }
  0x28   : > { %257 = vst [vmem:[%s1866_s27 + $0x84] sm:$0xf] %v256_v33  ;;  %259 = vst [vmem:[%s1866_s27 + $0x88] sm:$0xf] %v258_v34  ;;  %v260_v35 = vld [vmem:[%s1859_s26 + $0x2bc] sm:$0xf] }
  0x29   : > { %v262_v36 = vld [vmem:[%s1859_s26 + $0x2d0] sm:$0xf]  ;;  %v264_v37 = vld [vmem:[%s1859_s26 + $0x2e4] sm:$0xf]  ;;  %261 = vst [vmem:[%s1866_s27 + $0x8c] sm:$0xf] %v260_v35 }
  0x2a   : > { %263 = vst [vmem:[%s1866_s27 + $0x90] sm:$0xf] %v262_v36  ;;  %265 = vst [vmem:[%s1866_s27 + $0x94] sm:$0xf] %v264_v37  ;;  %v266_v38 = vld [vmem:[%s1859_s26 + $0x2f8] sm:$0xf] }
  0x2b   : > { %v268_v39 = vld [vmem:[%s1859_s26 + $0x30c] sm:$0xf]  ;;  %v270_v40 = vld [vmem:[%s1859_s26 + $0x320] sm:$0xf]  ;;  %267 = vst [vmem:[%s1866_s27 + $0x98] sm:$0xf] %v266_v38 }
  0x2c   : > { %269 = vst [vmem:[%s1866_s27 + $0x9c] sm:$0xf] %v268_v39  ;;  %271 = vst [vmem:[%s1866_s27 + $0xa0] sm:$0xf] %v270_v40  ;;  %v272_v41 = vld [vmem:[%s1859_s26 + $0x334] sm:$0xf] }
  0x2d   : > { %v274_v42 = vld [vmem:[%s1859_s26 + $0x348] sm:$0xf]  ;;  %v276_v43 = vld [vmem:[%s1859_s26 + $0x35c] sm:$0xf]  ;;  %273 = vst [vmem:[%s1866_s27 + $0xa4] sm:$0xf] %v272_v41 }
  0x2e   : > { %275 = vst [vmem:[%s1866_s27 + $0xa8] sm:$0xf] %v274_v42  ;;  %277 = vst [vmem:[%s1866_s27 + $0xac] sm:$0xf] %v276_v43  ;;  %v278_v44 = vld [vmem:[%s1859_s26 + $0x370] sm:$0xf] }
  0x2f   : > { %v280_v45 = vld [vmem:[%s1859_s26 + $0x384] sm:$0xf]  ;;  %v282_v46 = vld [vmem:[%s1859_s26 + $0x398] sm:$0xf]  ;;  %279 = vst [vmem:[%s1866_s27 + $0xb0] sm:$0xf] %v278_v44 }
  0x30   : > { %281 = vst [vmem:[%s1866_s27 + $0xb4] sm:$0xf] %v280_v45  ;;  %283 = vst [vmem:[%s1866_s27 + $0xb8] sm:$0xf] %v282_v46  ;;  %v284_v47 = vld [vmem:[%s1859_s26 + $0x3ac] sm:$0xf] }
  0x31   : > { %v286_v48 = vld [vmem:[%s1859_s26 + $0x3c0] sm:$0xf]  ;;  %v288_v49 = vld [vmem:[%s1859_s26 + $0x3d4] sm:$0xf]  ;;  %285 = vst [vmem:[%s1866_s27 + $0xbc] sm:$0xf] %v284_v47 }
  0x32   : > { %287 = vst [vmem:[%s1866_s27 + $0xc0] sm:$0xf] %v286_v48  ;;  %289 = vst [vmem:[%s1866_s27 + $0xc4] sm:$0xf] %v288_v49 }
  0x33 PF: > { %p1467_p6 = scmp.ge.s32.totalorder %s1791_s16, 1  ;;  %p423_p7 = scmp.lt.s32.totalorder %s1791_s16, 6 }
  0x35   : > { %p424_p8 = pnand %p1467_p6, %p423_p7 }
  0x36   : > { %s430_s28 = sand.u32 (!%p424_p8), 1, %s1775_s12   ;;  %s1468_s29 = sshll.u32 (!%p424_p8), %s1783_s14, 4 }
  0x37   : > { %427 = sbr.rel (%p424_p8) target bundleno = 445 (0x1bd), region = 69  ;;  %p469_p9 = scmp.lt.s32.totalorder (!%p424_p8), %s1468_s29, 79 }
  0x38   : > { %s1676_s30 = smul.u32 (!%p424_p8), 200, %s430_s28  ;;  %p1470_p10 = scmp.ne.s32.totalorder (!%p424_p8), %s1783_s14, 0 }
  0x3a   : > { %s1972_s8 = scalar_lea.vmem (!%p424_p8), [#allocation2], %s1676_s30 }
  0x3e   : > { %s2906_s29 = smov (!%p469_p9, %s1468_s29), 79  ;;  %493 = sbr.rel (%p1470_p10) target bundleno = 89 (0x59), region = 77 }
  0x3f   : > { %s1469_s4 = sshll.u32 %s2906_s29, 2  ;;  %v1793_v50 = vmov (!%p1470_p10), 0.0  }
  0x40   : > { %s1970_s7 = scalar_lea.vmem %s2896_s1, %s1469_s4  ;;  %494 = vst [vmem:[%s2898_s3] sm:$0xff] (!%p1470_p10), %v1793_v50  ;;  %495 = vst [vmem:[%s2898_s3 + $0x8] sm:$0xff] (!%p1470_p10), %v1793_v50 }
  0x41   : > { %496 = vst [vmem:[%s2898_s3 + $0x10] sm:$0xff] (!%p1470_p10), %v1793_v50  ;;  %497 = vst [vmem:[%s2898_s3 + $0x18] sm:$0xff] (!%p1470_p10), %v1793_v50 }
  0x42   : > { %498 = vst [vmem:[%s2898_s3 + $0x20] sm:$0xff] (!%p1470_p10), %v1793_v50  ;;  %499 = vst [vmem:[%s2898_s3 + $0x28] sm:$0xff] (!%p1470_p10), %v1793_v50 }
  0x43   : > { %500 = vst [vmem:[%s2898_s3 + $0x30] sm:$0xff] (!%p1470_p10), %v1793_v50  ;;  %501 = vst [vmem:[%s2898_s3 + $0x38] sm:$0xff] (!%p1470_p10), %v1793_v50 }
  0x44   : > { %502 = vst [vmem:[%s2898_s3 + $0x40] sm:$0xff] (!%p1470_p10), %v1793_v50  ;;  %503 = vst [vmem:[%s2898_s3 + $0x48] sm:$0xff] (!%p1470_p10), %v1793_v50 }
  0x45   : > { %504 = vst [vmem:[%s2898_s3 + $0x50] sm:$0xff] %v1793_v50  ;;  %505 = vst [vmem:[%s2898_s3 + $0x58] sm:$0xff] %v1793_v50 }
  0x46   : > { %506 = vst [vmem:[%s2898_s3 + $0x60] sm:$0xff] %v1793_v50  ;;  %507 = vst [vmem:[%s2898_s3 + $0x68] sm:$0xff] %v1793_v50 }
  0x47   : > { %508 = vst [vmem:[%s2898_s3 + $0x70] sm:$0xff] %v1793_v50  ;;  %509 = vst [vmem:[%s2898_s3 + $0x78] sm:$0xff] %v1793_v50 }
  0x48   : > { %510 = vst [vmem:[%s2898_s3 + $0x80] sm:$0xff] %v1793_v50  ;;  %511 = vst [vmem:[%s2898_s3 + $0x88] sm:$0xff] %v1793_v50 }
  0x49   : > { %512 = vst [vmem:[%s2898_s3 + $0x90] sm:$0xff] %v1793_v50  ;;  %513 = vst [vmem:[%s2898_s3 + $0x98] sm:$0xff] %v1793_v50 }
  0x4a   : > { %514 = vst [vmem:[%s2898_s3 + $0xa0] sm:$0xff] %v1793_v50  ;;  %515 = vst [vmem:[%s2898_s3 + $0xa8] sm:$0xff] %v1793_v50 }
  0x4b   : > { %516 = vst [vmem:[%s2898_s3 + $0xb0] sm:$0xff] %v1793_v50  ;;  %517 = vst [vmem:[%s2898_s3 + $0xb8] sm:$0xff] %v1793_v50 }
  0x4c   : > { %518 = vst [vmem:[%s2898_s3 + $0xc0] sm:$0xff] %v1793_v50  ;;  %519 = vst [vmem:[%s2898_s3 + $0xc8] sm:$0xff] %v1793_v50 }
  0x4d   : > { %520 = vst [vmem:[%s2898_s3 + $0xd0] sm:$0xff] %v1793_v50  ;;  %521 = vst [vmem:[%s2898_s3 + $0xd8] sm:$0xff] %v1793_v50 }
  0x4e   : > { %522 = vst [vmem:[%s2898_s3 + $0xe0] sm:$0xff] %v1793_v50  ;;  %523 = vst [vmem:[%s2898_s3 + $0xe8] sm:$0xff] %v1793_v50 }
  0x4f   : > { %524 = vst [vmem:[%s2898_s3 + $0xf0] sm:$0xff] %v1793_v50  ;;  %525 = vst [vmem:[%s2898_s3 + $0xf8] sm:$0xff] %v1793_v50 }
  0x50   : > { %526 = vst [vmem:[%s2898_s3 + $0x100] sm:$0xff] %v1793_v50  ;;  %527 = vst [vmem:[%s2898_s3 + $0x108] sm:$0xff] %v1793_v50 }
  0x51   : > { %528 = vst [vmem:[%s2898_s3 + $0x110] sm:$0xff] %v1793_v50  ;;  %529 = vst [vmem:[%s2898_s3 + $0x118] sm:$0xff] %v1793_v50 }
  0x52   : > { %530 = vst [vmem:[%s2898_s3 + $0x120] sm:$0xff] %v1793_v50  ;;  %531 = vst [vmem:[%s2898_s3 + $0x128] sm:$0xff] %v1793_v50 }
  0x53   : > { %532 = vst [vmem:[%s2898_s3 + $0x130] sm:$0xff] %v1793_v50  ;;  %533 = vst [vmem:[%s2898_s3 + $0x138] sm:$0xff] %v1793_v50 }
  0x54   : > { %534 = vst [vmem:[%s2898_s3 + $0x140] sm:$0xff] %v1793_v50  ;;  %535 = vst [vmem:[%s2898_s3 + $0x148] sm:$0xff] %v1793_v50 }
  0x55   : > { %536 = vst [vmem:[%s2898_s3 + $0x150] sm:$0xff] %v1793_v50  ;;  %537 = vst [vmem:[%s2898_s3 + $0x158] sm:$0xff] %v1793_v50 }
  0x56   : > { %538 = vst [vmem:[%s2898_s3 + $0x160] sm:$0xff] %v1793_v50  ;;  %539 = vst [vmem:[%s2898_s3 + $0x168] sm:$0xff] %v1793_v50 }
  0x57   : > { %540 = vst [vmem:[%s2898_s3 + $0x170] sm:$0xff] %v1793_v50  ;;  %541 = vst [vmem:[%s2898_s3 + $0x178] sm:$0xff] %v1793_v50 }
  0x58   : > { %542 = vst [vmem:[%s2898_s3 + $0x180] sm:$0xff] %v1793_v50  ;;  %543 = vst [vmem:[%s2898_s3 + $0x188] sm:$0xff] %v1793_v50 }
  0x59 PF: > { %v1720_v51 = vld [vmem:[%s1970_s7] sm:$0xff]   ;;  %v1794_v52 = vmov 0.0   ;;  %v1721_v53 = vld [vmem:[%s1970_s7 + $0x8] sm:$0xff]   ;;  %vm1795_vm0 = vmmov 0   ;;  %v1722_v54 = vld [vmem:[%s1970_s7 + $0x10] sm:$0xff]   ;;  %p1504_p11 = scmp.ne.s32.totalorder %s1783_s14, 4 }
  0x5a   : > { %1543 = vmatprep.subr.bf16.mxu0 %v1794_v52  ;;  %1659 = vmatprep.subr.bf16.mxu1 %v1794_v52  ;;  %v1723_v55 = vld [vmem:[%s1970_s7 + $0x18] sm:$0xff]   ;;  %v1724_v56 = vld [vmem:[%s1970_s7 + $0x20] sm:$0xff]   ;;  %v1725_v57 = vld [vmem:[%s1970_s7 + $0x28] sm:$0xff]  }
  0x5b   : > { %1544 = vmatpush3.bf16.msra.mxu0 %v1720_v51  ;;  %1667 = vmatpush3.bf16.msra.mxu1 %v1720_v51  ;;  %v1726_v58 = vld [vmem:[%s1970_s7 + $0x30] sm:$0xff]   ;;  %v1727_v59 = vld [vmem:[%s1970_s7 + $0x38] sm:$0xff]   ;;  %v1728_v60 = vld [vmem:[%s1972_s8] sm:$0xff]  }
  0x5c   : > { %1545 = vmatprep.subr.bf16.mxu0 %v1794_v52  ;;  %1660 = vmatprep.subr.bf16.mxu1 %v1794_v52  ;;  %v1729_v61 = vld [vmem:[%s1972_s8 + $0x68] sm:$0xff]   ;;  %v1731_v63 = vld [vmem:[%s1972_s8 + $0x70] sm:$0xff]   ;;  %v1733_v1 = vld [vmem:[%s1972_s8 + $0x78] sm:$0xff]  }
  0x5d   : > { %1559 = vmatprep.mubr.msk.bf16.mxu0 %vm1795_vm0, %v1794_v52  ;;  %1611 = vmatprep.mubr.msk.bf16.mxu1 %vm1795_vm0, %v1794_v52  ;;  %v1730_v62 = vld [vmem:[%s1972_s8 + $0x8] sm:$0xff]   ;;  %v1732_v0 = vld [vmem:[%s1972_s8 + $0x10] sm:$0xff]   ;;  %v1734_v2 = vld [vmem:[%s1972_s8 + $0x18] sm:$0xff]  }
  0x5e   : > { %v1735_v3 = vld [vmem:[%s1972_s8 + $0x80] sm:$0xff]   ;;  %v1737_v5 = vld [vmem:[%s1972_s8 + $0x88] sm:$0xff]   ;;  %v1739_v7 = vld [vmem:[%s1972_s8 + $0x90] sm:$0xff]  }
  0x5f   : > { %1546 = vmatpush3.bf16.msra.mxu0 %v1721_v53  ;;  %1668 = vmatpush3.bf16.msra.mxu1 %v1721_v53  ;;  %v1736_v4 = vld [vmem:[%s1972_s8 + $0x20] sm:$0xff]   ;;  %v1738_v6 = vld [vmem:[%s1972_s8 + $0x28] sm:$0xff]   ;;  %v1740_v8 = vld [vmem:[%s1972_s8 + $0x30] sm:$0xff]  }
  0x60   : > { %1547 = vmatprep.subr.bf16.mxu0 %v1794_v52  ;;  %1661 = vmatprep.subr.bf16.mxu1 %v1794_v52  ;;  %v1741_v9 = vld [vmem:[%s1972_s8 + $0x98] sm:$0xff]   ;;  %v1743_v11 = vld [vmem:[%s1972_s8 + $0xa0] sm:$0xff]   ;;  %v1745_v13 = vld [vmem:[%s1972_s8 + $0xa8] sm:$0xff]  }
  0x61   : > { %v1742_v10 = vld [vmem:[%s1972_s8 + $0x38] sm:$0xff]   ;;  %v1744_v12 = vld [vmem:[%s1972_s8 + $0x40] sm:$0xff]   ;;  %v1746_v14 = vld [vmem:[%s1972_s8 + $0x48] sm:$0xff]  }
  0x62   : > { %v1747_v15 = vld [vmem:[%s1972_s8 + $0xb0] sm:$0xff]   ;;  %v1749_v17 = vld [vmem:[%s1972_s8 + $0xb8] sm:$0xff]   ;;  %v1751_v19 = vld [vmem:[%s1972_s8 + $0xc0] sm:$0xff]  }
  0x63   : > { %1548 = vmatpush3.bf16.msra.mxu0 %v1722_v54  ;;  %1669 = vmatpush3.bf16.msra.mxu1 %v1722_v54  ;;  %v1748_v16 = vld [vmem:[%s1972_s8 + $0x50] sm:$0xff]   ;;  %v1750_v18 = vld [vmem:[%s1972_s8 + $0x58] sm:$0xff]   ;;  %v1752_v20 = vld [vmem:[%s1972_s8 + $0x60] sm:$0xff]  }
  0x64   : > { %1549 = vmatprep.subr.bf16.mxu0 %v1794_v52  ;;  %1662 = vmatprep.subr.bf16.mxu1 %v1794_v52  ;;  %v544_v21 = vld [vmem:[%s2898_s3] sm:$0xff]  ;;  %v570_v22 = vld [vmem:[%s2898_s3 + $0xd0] sm:$0xff]  ;;  %v545_v24 = vld [vmem:[%s2898_s3 + $0x8] sm:$0xff] }
  0x65   : > { %v571_v26 = vld [vmem:[%s2898_s3 + $0xd8] sm:$0xff]  ;;  %v546_v37 = vld [vmem:[%s2898_s3 + $0x10] sm:$0xff]  ;;  %v572_v38 = vld [vmem:[%s2898_s3 + $0xe0] sm:$0xff] }
  0x66   : > { %v547_v40 = vld [vmem:[%s2898_s3 + $0x18] sm:$0xff]  ;;  %v573_v42 = vld [vmem:[%s2898_s3 + $0xe8] sm:$0xff]  ;;  %v548_v53 = vld [vmem:[%s2898_s3 + $0x20] sm:$0xff] }
  0x67   : > { %1550 = vmatpush3.bf16.msra.mxu0 %v1723_v55  ;;  %1670 = vmatpush3.bf16.msra.mxu1 %v1723_v55  ;;  %v574_v54 = vld [vmem:[%s2898_s3 + $0xf0] sm:$0xff] }
  0x68   : > { %1551 = vmatprep.subr.bf16.mxu0 %v1794_v52  ;;  %1663 = vmatprep.subr.bf16.mxu1 %v1794_v52 }
  0x6b   : > { %1552 = vmatpush3.bf16.msra.mxu0 %v1724_v56  ;;  %1671 = vmatpush3.bf16.msra.mxu1 %v1724_v56  ;;  %v549_v56 = vld [vmem:[%s2898_s3 + $0x28] sm:$0xff] }
  0x6c   : > { %1553 = vmatprep.subr.bf16.mxu0 %v1794_v52  ;;  %1664 = vmatprep.subr.bf16.mxu1 %v1794_v52 }
  0x6f   : > { %1554 = vmatpush3.bf16.msra.mxu0 %v1725_v57  ;;  %1672 = vmatpush3.bf16.msra.mxu1 %v1725_v57 }
  0x70   : > { %1555 = vmatprep.subr.bf16.mxu0 %v1794_v52  ;;  %1665 = vmatprep.subr.bf16.mxu1 %v1794_v52 }
  0x73   : > { %1556 = vmatpush3.bf16.msra.mxu0 %v1726_v58  ;;  %1673 = vmatpush3.bf16.msra.mxu1 %v1726_v58  ;;  %v575_v58 = vld [vmem:[%s2898_s3 + $0xf8] sm:$0xff] }
  0x74   : > { %1557 = vmatprep.subr.bf16.mxu0 %v1794_v52  ;;  %1666 = vmatprep.subr.bf16.mxu1 %v1794_v52 }
  0x77   : > { %1558 = vmatpush3.bf16.msra.mxu0 %v1727_v59  ;;  %1674 = vmatpush3.bf16.msra.mxu1 %v1727_v59 }
  0x7a   : > { %1560 = vmatmul.mubr.bf16.vlgmr.msra.gmra.mrb[0].mxu0 %v1728_v60  ;;  %1612 = vmatmul.mubr.bf16.vlgmr.msra.gmra.mrb[0].mxu1 %v1729_v61 }
  0x7b   : > { %1563 = vmatprep.mubr.msk.bf16.mxu0 %vm1795_vm0, %v1794_v52  ;;  %1615 = vmatprep.mubr.msk.bf16.mxu1 %vm1795_vm0, %v1794_v52 }
  0x82   : > { %1564 = vmatmul.mubr.bf16.gmra.mrb[4].mxu0 %v1730_v62  ;;  %1616 = vmatmul.mubr.bf16.gmra.mrb[4].mxu1 %v1731_v63 }
  0x83   : > { %1567 = vmatprep.mubr.msk.bf16.mxu0 %vm1795_vm0, %v1794_v52  ;;  %1619 = vmatprep.mubr.msk.bf16.mxu1 %vm1795_vm0, %v1794_v52 }
  0x8a   : > { %1568 = vmatmul.mubr.bf16.gmra.mrb[8].mxu0 %v1732_v0  ;;  %1620 = vmatmul.mubr.bf16.gmra.mrb[8].mxu1 %v1733_v1 }
  0x8b   : > { %1571 = vmatprep.mubr.msk.bf16.mxu0 %vm1795_vm0, %v1794_v52  ;;  %1623 = vmatprep.mubr.msk.bf16.mxu1 %vm1795_vm0, %v1794_v52 }
  0x92   : > { %1572 = vmatmul.mubr.bf16.gmra.mrb[12].mxu0 %v1734_v2  ;;  %1624 = vmatmul.mubr.bf16.gmra.mrb[12].mxu1 %v1735_v3 }
  0x93   : > { %1575 = vmatprep.mubr.msk.bf16.mxu0 %vm1795_vm0, %v1794_v52  ;;  %1627 = vmatprep.mubr.msk.bf16.mxu1 %vm1795_vm0, %v1794_v52 }
  0x9a   : > { %1576 = vmatmul.mubr.bf16.gmra.mrb[16].mxu0 %v1736_v4  ;;  %1628 = vmatmul.mubr.bf16.gmra.mrb[16].mxu1 %v1737_v5  ;;  %v550_v5 = vld [vmem:[%s2898_s3 + $0x30] sm:$0xff] }
  0x9b   : > { %1579 = vmatprep.mubr.msk.bf16.mxu0 %vm1795_vm0, %v1794_v52  ;;  %1631 = vmatprep.mubr.msk.bf16.mxu1 %vm1795_vm0, %v1794_v52 }
  0xa2   : > { %1580 = vmatmul.mubr.bf16.gmra.mrb[20].mxu0 %v1738_v6  ;;  %1632 = vmatmul.mubr.bf16.gmra.mrb[20].mxu1 %v1739_v7  ;;  %v576_v6 = vld [vmem:[%s2898_s3 + $0x100] sm:$0xff] }
  0xa3   : > { %1583 = vmatprep.mubr.msk.bf16.mxu0 %vm1795_vm0, %v1794_v52  ;;  %1635 = vmatprep.mubr.msk.bf16.mxu1 %vm1795_vm0, %v1794_v52 }
  0xaa   : > { %1584 = vmatmul.mubr.bf16.gmra.mrb[24].mxu0 %v1740_v8  ;;  %1636 = vmatmul.mubr.bf16.gmra.mrb[24].mxu1 %v1741_v9  ;;  %v551_v8 = vld [vmem:[%s2898_s3 + $0x38] sm:$0xff] }
  0xab   : > { %1587 = vmatprep.mubr.msk.bf16.mxu0 %vm1795_vm0, %v1794_v52  ;;  %1639 = vmatprep.mubr.msk.bf16.mxu1 %vm1795_vm0, %v1794_v52 }
  0xb2   : > { %1588 = vmatmul.mubr.bf16.gmra.mrb[28].mxu0 %v1742_v10  ;;  %1640 = vmatmul.mubr.bf16.gmra.mrb[28].mxu1 %v1743_v11  ;;  %v577_v10 = vld [vmem:[%s2898_s3 + $0x108] sm:$0xff] }
  0xb3   : > { %1591 = vmatprep.mubr.msk.bf16.mxu0 %vm1795_vm0, %v1794_v52  ;;  %1643 = vmatprep.mubr.msk.bf16.mxu1 %vm1795_vm0, %v1794_v52 }
  0xba   : > { %1592 = vmatmul.mubr.bf16.gmra.mrb[32].mxu0 %v1744_v12  ;;  %1644 = vmatmul.mubr.bf16.gmra.mrb[32].mxu1 %v1745_v13 }
  0xbb   : > { %1595 = vmatprep.mubr.msk.bf16.mxu0 %vm1795_vm0, %v1794_v52  ;;  %1647 = vmatprep.mubr.msk.bf16.mxu1 %vm1795_vm0, %v1794_v52 }
  0xc2   : > { %1596 = vmatmul.mubr.bf16.gmra.mrb[36].mxu0 %v1746_v14  ;;  %1648 = vmatmul.mubr.bf16.gmra.mrb[36].mxu1 %v1747_v15 }
  0xc3   : > { %1599 = vmatprep.mubr.msk.bf16.mxu0 %vm1795_vm0, %v1794_v52  ;;  %1651 = vmatprep.mubr.msk.bf16.mxu1 %vm1795_vm0, %v1794_v52 }
  0xca   : > { %1600 = vmatmul.mubr.bf16.gmra.mrb[40].mxu0 %v1748_v16  ;;  %1652 = vmatmul.mubr.bf16.gmra.mrb[40].mxu1 %v1749_v17 }
  0xcb   : > { %1603 = vmatprep.mubr.msk.bf16.mxu0 %vm1795_vm0, %v1794_v52  ;;  %1655 = vmatprep.mubr.msk.bf16.mxu1 %vm1795_vm0, %v1794_v52 }
  0xd2   : > { %1604 = vmatmul.mubr.bf16.gmra.mrb[44].mxu0 %v1750_v18  ;;  %1656 = vmatmul.mubr.bf16.gmra.mrb[44].mxu1 %v1751_v19 }
  0xd3   : > { %1607 = vmatprep.mubr.msk.bf16.mxu0 %vm1795_vm0, %v1794_v52 }
  0xda   : > { %1608 = vmatmul.mubr.bf16.gmra.mrb[48].mxu0 %v1752_v20 }
 0x14d   : > { %v892_v23 = vpop.f32.mrb[0].mxu0  ;;  %v996_v25 = vpop.f32.mrb[0].mxu1 }
 0x14e   : > { %v1091_v27 = vadd.f32 %v892_v23, %v544_v21  ;;  %v1561_v28 = vpop.f32.mrb[1].mxu0  ;;  %v1117_v29 = vadd.f32 %v996_v25, %v570_v22  ;;  %v1613_v30 = vpop.f32.mrb[1].mxu1  ;;  %v552_v21 = vld [vmem:[%s2898_s3 + $0x40] sm:$0xff]  ;;  %v578_v22 = vld [vmem:[%s2898_s3 + $0x110] sm:$0xff] }
 0x14f   : > { %v895_v31 = vpop.f32.mrb[2].mxu0  ;;  %v999_v32 = vpop.f32.mrb[2].mxu1 }
 0x150   : > { %1141 = vst [vmem:[%s2898_s3] sm:$0xff] %v1091_v27  ;;  %v1092_v33 = vadd.f32 %v895_v31, %v545_v24  ;;  %v1562_v34 = vpop.f32.mrb[3].mxu0  ;;  %1167 = vst [vmem:[%s2898_s3 + $0xd0] sm:$0xff] %v1117_v29  ;;  %v1118_v35 = vadd.f32 %v999_v32, %v571_v26  ;;  %v1614_v36 = vpop.f32.mrb[3].mxu1  ;;  %v553_v24 = vld [vmem:[%s2898_s3 + $0x48] sm:$0xff]  ;;  %v579_v26 = vld [vmem:[%s2898_s3 + $0x118] sm:$0xff] }
 0x152   : > { %1142 = vst [vmem:[%s2898_s3 + $0x8] sm:$0xff] %v1092_v33  ;;  %1168 = vst [vmem:[%s2898_s3 + $0xd8] sm:$0xff] %v1118_v35 }
 0x155   : > { %v900_v39 = vpop.f32.mrb[4].mxu0  ;;  %v1004_v41 = vpop.f32.mrb[4].mxu1 }
 0x156   : > { %v1093_v43 = vadd.f32 %v900_v39, %v546_v37  ;;  %v1565_v44 = vpop.f32.mrb[5].mxu0  ;;  %v1119_v45 = vadd.f32 %v1004_v41, %v572_v38  ;;  %v1617_v46 = vpop.f32.mrb[5].mxu1  ;;  %v554_v37 = vld [vmem:[%s2898_s3 + $0x50] sm:$0xff]  ;;  %v580_v38 = vld [vmem:[%s2898_s3 + $0x120] sm:$0xff] }
 0x157   : > { %v903_v47 = vpop.f32.mrb[6].mxu0  ;;  %v1007_v48 = vpop.f32.mrb[6].mxu1 }
 0x158   : > { %1143 = vst [vmem:[%s2898_s3 + $0x10] sm:$0xff] %v1093_v43  ;;  %v1094_v49 = vadd.f32 %v903_v47, %v547_v40  ;;  %v1566_v50 = vpop.f32.mrb[7].mxu0  ;;  %1169 = vst [vmem:[%s2898_s3 + $0xe0] sm:$0xff] %v1119_v45  ;;  %v1120_v51 = vadd.f32 %v1007_v48, %v573_v42  ;;  %v1618_v52 = vpop.f32.mrb[7].mxu1  ;;  %v555_v40 = vld [vmem:[%s2898_s3 + $0x58] sm:$0xff]  ;;  %v581_v42 = vld [vmem:[%s2898_s3 + $0x128] sm:$0xff] }
 0x15a   : > { %1144 = vst [vmem:[%s2898_s3 + $0x18] sm:$0xff] %v1094_v49  ;;  %1170 = vst [vmem:[%s2898_s3 + $0xe8] sm:$0xff] %v1120_v51 }
 0x15d   : > { %v908_v55 = vpop.f32.mrb[8].mxu0  ;;  %v1012_v57 = vpop.f32.mrb[8].mxu1 }
 0x15e   : > { %v1095_v59 = vadd.f32 %v908_v55, %v548_v53  ;;  %v1569_v60 = vpop.f32.mrb[9].mxu0  ;;  %v1121_v61 = vadd.f32 %v1012_v57, %v574_v54  ;;  %v1621_v62 = vpop.f32.mrb[9].mxu1  ;;  %v556_v53 = vld [vmem:[%s2898_s3 + $0x60] sm:$0xff]  ;;  %v582_v54 = vld [vmem:[%s2898_s3 + $0x130] sm:$0xff] }
 0x15f   : > { %v911_v63 = vpop.f32.mrb[10].mxu0  ;;  %v1015_v0 = vpop.f32.mrb[10].mxu1 }
 0x160   : > { %1145 = vst [vmem:[%s2898_s3 + $0x20] sm:$0xff] %v1095_v59  ;;  %v1096_v1 = vadd.f32 %v911_v63, %v549_v56  ;;  %v1570_v2 = vpop.f32.mrb[11].mxu0  ;;  %1171 = vst [vmem:[%s2898_s3 + $0xf0] sm:$0xff] %v1121_v61  ;;  %v1122_v3 = vadd.f32 %v1015_v0, %v575_v58  ;;  %v1622_v4 = vpop.f32.mrb[11].mxu1  ;;  %v557_v56 = vld [vmem:[%s2898_s3 + $0x68] sm:$0xff]  ;;  %v583_v58 = vld [vmem:[%s2898_s3 + $0x138] sm:$0xff] }
 0x162   : > { %1146 = vst [vmem:[%s2898_s3 + $0x28] sm:$0xff] %v1096_v1  ;;  %1172 = vst [vmem:[%s2898_s3 + $0xf8] sm:$0xff] %v1122_v3 }
 0x165   : > { %v916_v7 = vpop.f32.mrb[12].mxu0  ;;  %v1020_v9 = vpop.f32.mrb[12].mxu1 }
 0x166   : > { %v1097_v11 = vadd.f32 %v916_v7, %v550_v5  ;;  %v1573_v12 = vpop.f32.mrb[13].mxu0  ;;  %v1123_v13 = vadd.f32 %v1020_v9, %v576_v6  ;;  %v1625_v14 = vpop.f32.mrb[13].mxu1  ;;  %v558_v5 = vld [vmem:[%s2898_s3 + $0x70] sm:$0xff]  ;;  %v584_v6 = vld [vmem:[%s2898_s3 + $0x140] sm:$0xff] }
 0x167   : > { %v919_v15 = vpop.f32.mrb[14].mxu0  ;;  %v1023_v16 = vpop.f32.mrb[14].mxu1 }
 0x168   : > { %1147 = vst [vmem:[%s2898_s3 + $0x30] sm:$0xff] %v1097_v11  ;;  %v1098_v17 = vadd.f32 %v919_v15, %v551_v8  ;;  %v1574_v18 = vpop.f32.mrb[15].mxu0  ;;  %1173 = vst [vmem:[%s2898_s3 + $0x100] sm:$0xff] %v1123_v13  ;;  %v1124_v19 = vadd.f32 %v1023_v16, %v577_v10  ;;  %v1626_v20 = vpop.f32.mrb[15].mxu1  ;;  %v559_v8 = vld [vmem:[%s2898_s3 + $0x78] sm:$0xff]  ;;  %v585_v10 = vld [vmem:[%s2898_s3 + $0x148] sm:$0xff] }
 0x16a   : > { %1148 = vst [vmem:[%s2898_s3 + $0x38] sm:$0xff] %v1098_v17  ;;  %1174 = vst [vmem:[%s2898_s3 + $0x108] sm:$0xff] %v1124_v19 }
 0x16d   : > { %v924_v23 = vpop.f32.mrb[16].mxu0  ;;  %v1028_v25 = vpop.f32.mrb[16].mxu1 }
 0x16e   : > { %v1099_v27 = vadd.f32 %v924_v23, %v552_v21  ;;  %v1577_v28 = vpop.f32.mrb[17].mxu0  ;;  %v1125_v29 = vadd.f32 %v1028_v25, %v578_v22  ;;  %v1629_v30 = vpop.f32.mrb[17].mxu1  ;;  %v560_v21 = vld [vmem:[%s2898_s3 + $0x80] sm:$0xff]  ;;  %v586_v22 = vld [vmem:[%s2898_s3 + $0x150] sm:$0xff] }
 0x16f   : > { %v927_v31 = vpop.f32.mrb[18].mxu0  ;;  %v1031_v32 = vpop.f32.mrb[18].mxu1 }
 0x170   : > { %1149 = vst [vmem:[%s2898_s3 + $0x40] sm:$0xff] %v1099_v27  ;;  %v1100_v33 = vadd.f32 %v927_v31, %v553_v24  ;;  %v1578_v34 = vpop.f32.mrb[19].mxu0  ;;  %1175 = vst [vmem:[%s2898_s3 + $0x110] sm:$0xff] %v1125_v29  ;;  %v1126_v35 = vadd.f32 %v1031_v32, %v579_v26  ;;  %v1630_v36 = vpop.f32.mrb[19].mxu1  ;;  %v561_v24 = vld [vmem:[%s2898_s3 + $0x88] sm:$0xff]  ;;  %v587_v26 = vld [vmem:[%s2898_s3 + $0x158] sm:$0xff] }
 0x172   : > { %1150 = vst [vmem:[%s2898_s3 + $0x48] sm:$0xff] %v1100_v33  ;;  %1176 = vst [vmem:[%s2898_s3 + $0x118] sm:$0xff] %v1126_v35 }
 0x175   : > { %v932_v39 = vpop.f32.mrb[20].mxu0  ;;  %v1036_v41 = vpop.f32.mrb[20].mxu1 }
 0x176   : > { %v1101_v43 = vadd.f32 %v932_v39, %v554_v37  ;;  %v1581_v44 = vpop.f32.mrb[21].mxu0  ;;  %v1127_v45 = vadd.f32 %v1036_v41, %v580_v38  ;;  %v1633_v46 = vpop.f32.mrb[21].mxu1  ;;  %v562_v37 = vld [vmem:[%s2898_s3 + $0x90] sm:$0xff]  ;;  %v588_v38 = vld [vmem:[%s2898_s3 + $0x160] sm:$0xff] }
 0x177   : > { %v935_v47 = vpop.f32.mrb[22].mxu0  ;;  %v1039_v48 = vpop.f32.mrb[22].mxu1 }
 0x178   : > { %1151 = vst [vmem:[%s2898_s3 + $0x50] sm:$0xff] %v1101_v43  ;;  %v1102_v49 = vadd.f32 %v935_v47, %v555_v40  ;;  %v1582_v50 = vpop.f32.mrb[23].mxu0  ;;  %1177 = vst [vmem:[%s2898_s3 + $0x120] sm:$0xff] %v1127_v45  ;;  %v1128_v51 = vadd.f32 %v1039_v48, %v581_v42  ;;  %v1634_v52 = vpop.f32.mrb[23].mxu1  ;;  %v563_v40 = vld [vmem:[%s2898_s3 + $0x98] sm:$0xff]  ;;  %v589_v42 = vld [vmem:[%s2898_s3 + $0x168] sm:$0xff] }
 0x17a   : > { %1152 = vst [vmem:[%s2898_s3 + $0x58] sm:$0xff] %v1102_v49  ;;  %1178 = vst [vmem:[%s2898_s3 + $0x128] sm:$0xff] %v1128_v51 }
 0x17d   : > { %v940_v55 = vpop.f32.mrb[24].mxu0  ;;  %v1044_v57 = vpop.f32.mrb[24].mxu1 }
 0x17e   : > { %v1103_v59 = vadd.f32 %v940_v55, %v556_v53  ;;  %v1585_v60 = vpop.f32.mrb[25].mxu0  ;;  %v1129_v61 = vadd.f32 %v1044_v57, %v582_v54  ;;  %v1637_v62 = vpop.f32.mrb[25].mxu1  ;;  %v564_v53 = vld [vmem:[%s2898_s3 + $0xa0] sm:$0xff]  ;;  %v590_v54 = vld [vmem:[%s2898_s3 + $0x170] sm:$0xff] }
 0x17f   : > { %v943_v63 = vpop.f32.mrb[26].mxu0  ;;  %v1047_v0 = vpop.f32.mrb[26].mxu1 }
 0x180   : > { %1153 = vst [vmem:[%s2898_s3 + $0x60] sm:$0xff] %v1103_v59  ;;  %v1104_v1 = vadd.f32 %v943_v63, %v557_v56  ;;  %v1586_v2 = vpop.f32.mrb[27].mxu0  ;;  %1179 = vst [vmem:[%s2898_s3 + $0x130] sm:$0xff] %v1129_v61  ;;  %v1130_v3 = vadd.f32 %v1047_v0, %v583_v58  ;;  %v1638_v4 = vpop.f32.mrb[27].mxu1  ;;  %v565_v56 = vld [vmem:[%s2898_s3 + $0xa8] sm:$0xff]  ;;  %v591_v58 = vld [vmem:[%s2898_s3 + $0x178] sm:$0xff] }
 0x182   : > { %1154 = vst [vmem:[%s2898_s3 + $0x68] sm:$0xff] %v1104_v1  ;;  %1180 = vst [vmem:[%s2898_s3 + $0x138] sm:$0xff] %v1130_v3 }
 0x185   : > { %v948_v7 = vpop.f32.mrb[28].mxu0  ;;  %v1052_v9 = vpop.f32.mrb[28].mxu1 }
 0x186   : > { %v1105_v11 = vadd.f32 %v948_v7, %v558_v5  ;;  %v1589_v12 = vpop.f32.mrb[29].mxu0  ;;  %v1131_v13 = vadd.f32 %v1052_v9, %v584_v6  ;;  %v1641_v14 = vpop.f32.mrb[29].mxu1  ;;  %v566_v5 = vld [vmem:[%s2898_s3 + $0xb0] sm:$0xff]  ;;  %v592_v6 = vld [vmem:[%s2898_s3 + $0x180] sm:$0xff] }
 0x187   : > { %v951_v15 = vpop.f32.mrb[30].mxu0  ;;  %v1055_v16 = vpop.f32.mrb[30].mxu1 }
 0x188   : > { %1155 = vst [vmem:[%s2898_s3 + $0x70] sm:$0xff] %v1105_v11  ;;  %v1106_v17 = vadd.f32 %v951_v15, %v559_v8  ;;  %v1590_v18 = vpop.f32.mrb[31].mxu0  ;;  %1181 = vst [vmem:[%s2898_s3 + $0x140] sm:$0xff] %v1131_v13  ;;  %v1132_v19 = vadd.f32 %v1055_v16, %v585_v10  ;;  %v1642_v20 = vpop.f32.mrb[31].mxu1  ;;  %v567_v8 = vld [vmem:[%s2898_s3 + $0xb8] sm:$0xff]  ;;  %v593_v10 = vld [vmem:[%s2898_s3 + $0x188] sm:$0xff] }
 0x18a   : > { %1156 = vst [vmem:[%s2898_s3 + $0x78] sm:$0xff] %v1106_v17  ;;  %1182 = vst [vmem:[%s2898_s3 + $0x148] sm:$0xff] %v1132_v19 }
 0x18d   : > { %v956_v23 = vpop.f32.mrb[32].mxu0  ;;  %v1060_v25 = vpop.f32.mrb[32].mxu1 }
 0x18e   : > { %v1107_v27 = vadd.f32 %v956_v23, %v560_v21  ;;  %v1593_v28 = vpop.f32.mrb[33].mxu0  ;;  %v1133_v29 = vadd.f32 %v1060_v25, %v586_v22  ;;  %v1645_v30 = vpop.f32.mrb[33].mxu1  ;;  %v568_v21 = vld [vmem:[%s2898_s3 + $0xc0] sm:$0xff]  ;;  %v569_v23 = vld [vmem:[%s2898_s3 + $0xc8] sm:$0xff] }
 0x18f   : > { %v959_v31 = vpop.f32.mrb[34].mxu0  ;;  %v1063_v32 = vpop.f32.mrb[34].mxu1  ;;  %v2531_v30 = vld [vmem:[%s2897_s2] ss:$0 sm:$0xff] (!%p1504_p11) }
 0x190   : > { %1157 = vst [vmem:[%s2898_s3 + $0x80] sm:$0xff] %v1107_v27  ;;  %v1108_v33 = vadd.f32 %v959_v31, %v561_v24  ;;  %v1594_v34 = vpop.f32.mrb[35].mxu0  ;;  %1183 = vst [vmem:[%s2898_s3 + $0x150] sm:$0xff] %v1133_v29  ;;  %v1134_v35 = vadd.f32 %v1063_v32, %v587_v26  ;;  %v1646_v36 = vpop.f32.mrb[35].mxu1  ;;  %v1195_v29 = vld [vmem:[%s2898_s3] sm:$0xff] (!%p1504_p11)  ;;  %v1196_v31 = vld [vmem:[%s2898_s3 + $0x8] sm:$0xff] (!%p1504_p11) }
 0x191   : > { %v1252_v32 = vadd.f32 (!%p1504_p11), %v2531_v30, %v1195_v29  ;;  %v1197_v34 = vld [vmem:[%s2898_s3 + $0x10] sm:$0xff] (!%p1504_p11)  ;;  %v1199_v36 = vld [vmem:[%s2898_s3 + $0x20] sm:$0xff] (!%p1504_p11) }
 0x192   : > { %1158 = vst [vmem:[%s2898_s3 + $0x88] sm:$0xff] %v1108_v33  ;;  %1184 = vst [vmem:[%s2898_s3 + $0x158] sm:$0xff] %v1134_v35  ;;  %v1253_v33 = vadd.f32 (!%p1504_p11), %v2531_v30, %v1196_v31  ;;  %v1198_v35 = vld [vmem:[%s2898_s3 + $0x18] sm:$0xff] (!%p1504_p11)  ;;  %v1227_v31 = vld [vmem:[%s2898_s3 + $0x100] sm:$0xff] (!%p1504_p11) }
 0x193   : > { %1302 = vst [vmem:[%s2898_s3] sm:$0xff] (!%p1504_p11), %v1252_v32  ;;  %v1228_v32 = vld [vmem:[%s2898_s3 + $0x108] sm:$0xff] (!%p1504_p11) }
 0x194   : > { %1303 = vst [vmem:[%s2898_s3 + $0x8] sm:$0xff] (!%p1504_p11), %v1253_v33  ;;  %v1229_v33 = vld [vmem:[%s2898_s3 + $0x110] sm:$0xff] (!%p1504_p11) }
 0x195   : > { %v964_v39 = vpop.f32.mrb[36].mxu0  ;;  %v1068_v41 = vpop.f32.mrb[36].mxu1 }
 0x196   : > { %v1109_v43 = vadd.f32 %v964_v39, %v562_v37  ;;  %v1597_v44 = vpop.f32.mrb[37].mxu0  ;;  %v1135_v45 = vadd.f32 %v1068_v41, %v588_v38  ;;  %v1649_v46 = vpop.f32.mrb[37].mxu1  ;;  %v1254_v37 = vadd.f32 (!%p1504_p11), %v2531_v30, %v1197_v34  ;;  %v1255_v38 = vadd.f32 (!%p1504_p11), %v2531_v30, %v1198_v35  ;;  %v1201_v41 = vld [vmem:[%s2898_s3 + $0x30] sm:$0xff] (!%p1504_p11) }
 0x197   : > { %v967_v47 = vpop.f32.mrb[38].mxu0  ;;  %v1071_v48 = vpop.f32.mrb[38].mxu1  ;;  %v1256_v39 = vadd.f32 (!%p1504_p11), %v2531_v30, %v1199_v36  ;;  %v1258_v44 = vadd.f32 (!%p1504_p11), %v2531_v30, %v1201_v41  ;;  %v1203_v46 = vld [vmem:[%s2898_s3 + $0x40] sm:$0xff] (!%p1504_p11)  ;;  %v1284_v34 = vadd.f32 (!%p1504_p11), %v2531_v30, %v1227_v31  ;;  %v1285_v35 = vadd.f32 (!%p1504_p11), %v2531_v30, %v1228_v32 }
 0x198   : > { %1159 = vst [vmem:[%s2898_s3 + $0x90] sm:$0xff] %v1109_v43  ;;  %v1110_v49 = vadd.f32 %v967_v47, %v563_v40  ;;  %v1598_v50 = vpop.f32.mrb[39].mxu0  ;;  %1185 = vst [vmem:[%s2898_s3 + $0x160] sm:$0xff] %v1135_v45  ;;  %v1136_v51 = vadd.f32 %v1071_v48, %v589_v42  ;;  %v1650_v52 = vpop.f32.mrb[39].mxu1  ;;  %v1200_v40 = vld [vmem:[%s2898_s3 + $0x28] sm:$0xff] (!%p1504_p11)  ;;  %v1202_v42 = vld [vmem:[%s2898_s3 + $0x38] sm:$0xff] (!%p1504_p11)  ;;  %v1286_v36 = vadd.f32 (!%p1504_p11), %v2531_v30, %v1229_v33 }
 0x199   : > { %v1257_v43 = vadd.f32 (!%p1504_p11), %v2531_v30, %v1200_v40  ;;  %v1259_v45 = vadd.f32 (!%p1504_p11), %v2531_v30, %v1202_v42  ;;  %v1204_v47 = vld [vmem:[%s2898_s3 + $0x48] sm:$0xff] (!%p1504_p11)  ;;  %v1205_v48 = vld [vmem:[%s2898_s3 + $0x50] sm:$0xff] (!%p1504_p11)  ;;  %1304 = vst [vmem:[%s2898_s3 + $0x10] sm:$0xff] (!%p1504_p11), %v1254_v37  ;;  %1305 = vst [vmem:[%s2898_s3 + $0x18] sm:$0xff] (!%p1504_p11), %v1255_v38 }
 0x19a   : > { %1160 = vst [vmem:[%s2898_s3 + $0x98] sm:$0xff] %v1110_v49  ;;  %1186 = vst [vmem:[%s2898_s3 + $0x168] sm:$0xff] %v1136_v51  ;;  %v1260_v49 = vadd.f32 (!%p1504_p11), %v2531_v30, %v1203_v46  ;;  %v1261_v50 = vadd.f32 (!%p1504_p11), %v2531_v30, %v1204_v47  ;;  %v1262_v51 = vadd.f32 (!%p1504_p11), %v2531_v30, %v1205_v48  ;;  %v1206_v52 = vld [vmem:[%s2898_s3 + $0x58] sm:$0xff] (!%p1504_p11)  ;;  %v1231_v38 = vld [vmem:[%s2898_s3 + $0x120] sm:$0xff] (!%p1504_p11) }
 0x19b   : > { %1306 = vst [vmem:[%s2898_s3 + $0x20] sm:$0xff] (!%p1504_p11), %v1256_v39  ;;  %1307 = vst [vmem:[%s2898_s3 + $0x28] sm:$0xff] (!%p1504_p11), %v1257_v43  ;;  %v1230_v37 = vld [vmem:[%s2898_s3 + $0x118] sm:$0xff] (!%p1504_p11)  ;;  %v1232_v39 = vld [vmem:[%s2898_s3 + $0x128] sm:$0xff] (!%p1504_p11)  ;;  %v1288_v41 = vadd.f32 (!%p1504_p11), %v2531_v30, %v1231_v38 }
 0x19c   : > { %1308 = vst [vmem:[%s2898_s3 + $0x30] sm:$0xff] (!%p1504_p11), %v1258_v44  ;;  %1309 = vst [vmem:[%s2898_s3 + $0x38] sm:$0xff] (!%p1504_p11), %v1259_v45  ;;  %v1287_v40 = vadd.f32 (!%p1504_p11), %v2531_v30, %v1230_v37  ;;  %v1289_v42 = vadd.f32 (!%p1504_p11), %v2531_v30, %v1232_v39  ;;  %v1233_v43 = vld [vmem:[%s2898_s3 + $0x130] sm:$0xff] (!%p1504_p11)  ;;  %v1234_v44 = vld [vmem:[%s2898_s3 + $0x138] sm:$0xff] (!%p1504_p11) }
 0x19d   : > { %v972_v55 = vpop.f32.mrb[40].mxu0  ;;  %v1076_v57 = vpop.f32.mrb[40].mxu1  ;;  %1310 = vst [vmem:[%s2898_s3 + $0x40] sm:$0xff] (!%p1504_p11), %v1260_v49  ;;  %1311 = vst [vmem:[%s2898_s3 + $0x48] sm:$0xff] (!%p1504_p11), %v1261_v50  ;;  %v1235_v45 = vld [vmem:[%s2898_s3 + $0x140] sm:$0xff] (!%p1504_p11)  ;;  %v1290_v46 = vadd.f32 (!%p1504_p11), %v2531_v30, %v1233_v43  ;;  %v1291_v47 = vadd.f32 (!%p1504_p11), %v2531_v30, %v1234_v44  ;;  %v1236_v49 = vld [vmem:[%s2898_s3 + $0x148] sm:$0xff] (!%p1504_p11) }
 0x19e   : > { %v1111_v59 = vadd.f32 %v972_v55, %v564_v53  ;;  %v1601_v60 = vpop.f32.mrb[41].mxu0  ;;  %v1137_v61 = vadd.f32 %v1076_v57, %v590_v54  ;;  %v1653_v62 = vpop.f32.mrb[41].mxu1  ;;  %v1207_v53 = vld [vmem:[%s2898_s3 + $0x60] sm:$0xff] (!%p1504_p11)  ;;  %v1208_v54 = vld [vmem:[%s2898_s3 + $0x68] sm:$0xff] (!%p1504_p11)  ;;  %v1263_v55 = vadd.f32 (!%p1504_p11), %v2531_v30, %v1206_v52  ;;  %1312 = vst [vmem:[%s2898_s3 + $0x50] sm:$0xff] (!%p1504_p11), %v1262_v51  ;;  %1334 = vst [vmem:[%s2898_s3 + $0x100] sm:$0xff] (!%p1504_p11), %v1284_v34 }
 0x19f   : > { %v975_v63 = vpop.f32.mrb[42].mxu0  ;;  %v1079_v0 = vpop.f32.mrb[42].mxu1  ;;  %v1265_v57 = vadd.f32 (!%p1504_p11), %v2531_v30, %v1208_v54  ;;  %v1211_v60 = vld [vmem:[%s2898_s3 + $0x80] sm:$0xff] (!%p1504_p11)  ;;  %1335 = vst [vmem:[%s2898_s3 + $0x108] sm:$0xff] (!%p1504_p11), %v1285_v35  ;;  %1336 = vst [vmem:[%s2898_s3 + $0x110] sm:$0xff] (!%p1504_p11), %v1286_v36  ;;  %v1292_v48 = vadd.f32 (!%p1504_p11), %v2531_v30, %v1235_v45  ;;  %v1237_v50 = vld [vmem:[%s2898_s3 + $0x150] sm:$0xff] (!%p1504_p11)  ;;  %v1293_v52 = vadd.f32 (!%p1504_p11), %v2531_v30, %v1236_v49 }
 0x1a0   : > { %1161 = vst [vmem:[%s2898_s3 + $0xa0] sm:$0xff] %v1111_v59  ;;  %v1112_v1 = vadd.f32 %v975_v63, %v565_v56  ;;  %v1602_v2 = vpop.f32.mrb[43].mxu0  ;;  %1187 = vst [vmem:[%s2898_s3 + $0x170] sm:$0xff] %v1137_v61  ;;  %v1138_v3 = vadd.f32 %v1079_v0, %v591_v58  ;;  %v1654_v4 = vpop.f32.mrb[43].mxu1  ;;  %v1264_v56 = vadd.f32 (!%p1504_p11), %v2531_v30, %v1207_v53  ;;  %v1209_v58 = vld [vmem:[%s2898_s3 + $0x70] sm:$0xff] (!%p1504_p11)  ;;  %v1210_v59 = vld [vmem:[%s2898_s3 + $0x78] sm:$0xff] (!%p1504_p11) }
 0x1a1   : > { %v1266_v61 = vadd.f32 (!%p1504_p11), %v2531_v30, %v1209_v58  ;;  %v1267_v62 = vadd.f32 (!%p1504_p11), %v2531_v30, %v1210_v59  ;;  %v1268_v63 = vadd.f32 (!%p1504_p11), %v2531_v30, %v1211_v60  ;;  %v1212_v0 = vld [vmem:[%s2898_s3 + $0x88] sm:$0xff] (!%p1504_p11)  ;;  %v1214_v2 = vld [vmem:[%s2898_s3 + $0x98] sm:$0xff] (!%p1504_p11)  ;;  %1313 = vst [vmem:[%s2898_s3 + $0x58] sm:$0xff] (!%p1504_p11), %v1263_v55  ;;  %1315 = vst [vmem:[%s2898_s3 + $0x68] sm:$0xff] (!%p1504_p11), %v1265_v57 }
 0x1a2   : > { %1162 = vst [vmem:[%s2898_s3 + $0xa8] sm:$0xff] %v1112_v1  ;;  %1188 = vst [vmem:[%s2898_s3 + $0x178] sm:$0xff] %v1138_v3  ;;  %v1213_v1 = vld [vmem:[%s2898_s3 + $0x90] sm:$0xff] (!%p1504_p11)  ;;  %v1269_v3 = vadd.f32 (!%p1504_p11), %v2531_v30, %v1212_v0  ;;  %v1238_v51 = vld [vmem:[%s2898_s3 + $0x158] sm:$0xff] (!%p1504_p11)  ;;  %v1294_v53 = vadd.f32 (!%p1504_p11), %v2531_v30, %v1237_v50 }
 0x1a3   : > { %1314 = vst [vmem:[%s2898_s3 + $0x60] sm:$0xff] (!%p1504_p11), %v1264_v56  ;;  %v1270_v4 = vadd.f32 (!%p1504_p11), %v2531_v30, %v1213_v1  ;;  %1316 = vst [vmem:[%s2898_s3 + $0x70] sm:$0xff] (!%p1504_p11), %v1266_v61  ;;  %v1295_v54 = vadd.f32 (!%p1504_p11), %v2531_v30, %v1238_v51  ;;  %v1239_v55 = vld [vmem:[%s2898_s3 + $0x160] sm:$0xff] (!%p1504_p11)  ;;  %v1240_v56 = vld [vmem:[%s2898_s3 + $0x168] sm:$0xff] (!%p1504_p11) }
 0x1a4   : > { %1317 = vst [vmem:[%s2898_s3 + $0x78] sm:$0xff] (!%p1504_p11), %v1267_v62  ;;  %1318 = vst [vmem:[%s2898_s3 + $0x80] sm:$0xff] (!%p1504_p11), %v1268_v63  ;;  %v1296_v58 = vadd.f32 (!%p1504_p11), %v2531_v30, %v1239_v55  ;;  %v1297_v59 = vadd.f32 (!%p1504_p11), %v2531_v30, %v1240_v56 }
 0x1a5   : > { %v980_v7 = vpop.f32.mrb[44].mxu0  ;;  %v1084_v9 = vpop.f32.mrb[44].mxu1  ;;  %1319 = vst [vmem:[%s2898_s3 + $0x88] sm:$0xff] (!%p1504_p11), %v1269_v3  ;;  %1320 = vst [vmem:[%s2898_s3 + $0x90] sm:$0xff] (!%p1504_p11), %v1270_v4 }
 0x1a6   : > { %v1113_v11 = vadd.f32 %v980_v7, %v566_v5  ;;  %v1605_v12 = vpop.f32.mrb[45].mxu0  ;;  %v1139_v13 = vadd.f32 %v1084_v9, %v592_v6  ;;  %v1657_v14 = vpop.f32.mrb[45].mxu1  ;;  %v1271_v5 = vadd.f32 (!%p1504_p11), %v2531_v30, %v1214_v2  ;;  %1337 = vst [vmem:[%s2898_s3 + $0x118] sm:$0xff] (!%p1504_p11), %v1287_v40  ;;  %1338 = vst [vmem:[%s2898_s3 + $0x120] sm:$0xff] (!%p1504_p11), %v1288_v41 }
 0x1a7   : > { %v983_v15 = vpop.f32.mrb[46].mxu0  ;;  %v1087_v16 = vpop.f32.mrb[46].mxu1  ;;  %v1215_v6 = vld [vmem:[%s2898_s3 + $0xa0] sm:$0xff] (!%p1504_p11)  ;;  %1339 = vst [vmem:[%s2898_s3 + $0x128] sm:$0xff] (!%p1504_p11), %v1289_v42  ;;  %v1241_v57 = vld [vmem:[%s2898_s3 + $0x170] sm:$0xff] (!%p1504_p11)  ;;  %1340 = vst [vmem:[%s2898_s3 + $0x130] sm:$0xff] (!%p1504_p11), %v1290_v46 }
 0x1a8   : > { %1163 = vst [vmem:[%s2898_s3 + $0xb0] sm:$0xff] %v1113_v11  ;;  %v1114_v17 = vadd.f32 %v983_v15, %v567_v8  ;;  %v1606_v18 = vpop.f32.mrb[47].mxu0  ;;  %1189 = vst [vmem:[%s2898_s3 + $0x180] sm:$0xff] %v1139_v13  ;;  %v1140_v19 = vadd.f32 %v1087_v16, %v593_v10  ;;  %v1658_v20 = vpop.f32.mrb[47].mxu1  ;;  %v1272_v9 = vadd.f32 (!%p1504_p11), %v2531_v30, %v1215_v6 }
 0x1a9   : > { %v1216_v7 = vld [vmem:[%s2898_s3 + $0xa8] sm:$0xff] (!%p1504_p11)  ;;  %1321 = vst [vmem:[%s2898_s3 + $0x98] sm:$0xff] (!%p1504_p11), %v1271_v5  ;;  %v1221_v18 = vld [vmem:[%s2898_s3 + $0xd0] sm:$0xff] (!%p1504_p11)  ;;  %v1223_v20 = vld [vmem:[%s2898_s3 + $0xe0] sm:$0xff] (!%p1504_p11)  ;;  %v1298_v60 = vadd.f32 (!%p1504_p11), %v2531_v30, %v1241_v57 }
 0x1aa   : > { %1164 = vst [vmem:[%s2898_s3 + $0xb8] sm:$0xff] %v1114_v17  ;;  %1190 = vst [vmem:[%s2898_s3 + $0x188] sm:$0xff] %v1140_v19  ;;  %v1273_v10 = vadd.f32 (!%p1504_p11), %v2531_v30, %v1216_v7  ;;  %v1222_v19 = vld [vmem:[%s2898_s3 + $0xd8] sm:$0xff] (!%p1504_p11) }
 0x1ab   : > { %1322 = vst [vmem:[%s2898_s3 + $0xa0] sm:$0xff] (!%p1504_p11), %v1272_v9  ;;  %1341 = vst [vmem:[%s2898_s3 + $0x138] sm:$0xff] (!%p1504_p11), %v1291_v47  ;;  %v1242_v61 = vld [vmem:[%s2898_s3 + $0x178] sm:$0xff] (!%p1504_p11) }
 0x1ac   : > { %1194 = sbr.rel (%p1504_p11) target bundleno = 445 (0x1bd), region = 81  ;;  %1323 = vst [vmem:[%s2898_s3 + $0xa8] sm:$0xff] (!%p1504_p11), %v1273_v10  ;;  %1342 = vst [vmem:[%s2898_s3 + $0x140] sm:$0xff] (!%p1504_p11), %v1292_v48  ;;  %v1299_v0 = vadd.f32 (!%p1504_p11), %v2531_v30, %v1242_v61 }
 0x1ad   : > { %v988_v22 = vpop.f32.mrb[48].mxu0  ;;  %1343 = vst [vmem:[%s2898_s3 + $0x148] sm:$0xff] (!%p1504_p11), %v1293_v52  ;;  %1344 = vst [vmem:[%s2898_s3 + $0x150] sm:$0xff] (!%p1504_p11), %v1294_v53 }
 0x1ae   : > { %v1115_v24 = vadd.f32 %v988_v22, %v568_v21  ;;  %v1609_v25 = vpop.f32.mrb[49].mxu0  ;;  %v1278_v21 = vadd.f32 (!%p1504_p11), %v2531_v30, %v1221_v18  ;;  %v1279_v22 = vadd.f32 (!%p1504_p11), %v2531_v30, %v1222_v19  ;;  %1345 = vst [vmem:[%s2898_s3 + $0x158] sm:$0xff] (!%p1504_p11), %v1295_v54  ;;  %1346 = vst [vmem:[%s2898_s3 + $0x160] sm:$0xff] (!%p1504_p11), %v1296_v58 }
 0x1af   : > { %v991_v26 = vpop.f32.mrb[50].mxu0  ;;  %v1217_v8 = vld [vmem:[%s2898_s3 + $0xb0] sm:$0xff] (!%p1504_p11)  ;;  %v1243_v62 = vld [vmem:[%s2898_s3 + $0x180] sm:$0xff] (!%p1504_p11)  ;;  %1347 = vst [vmem:[%s2898_s3 + $0x168] sm:$0xff] (!%p1504_p11), %v1297_v59  ;;  %1348 = vst [vmem:[%s2898_s3 + $0x170] sm:$0xff] (!%p1504_p11), %v1298_v60 }
 0x1b0   : > { %1165 = vst [vmem:[%s2898_s3 + $0xc0] sm:$0xff] %v1115_v24  ;;  %v1116_v27 = vadd.f32 %v991_v26, %v569_v23  ;;  %v1610_v28 = vpop.f32.mrb[51].mxu0  ;;  %v1274_v11 = vadd.f32 (!%p1504_p11), %v2531_v30, %v1217_v8  ;;  %v1280_v23 = vadd.f32 (!%p1504_p11), %v2531_v30, %v1223_v20  ;;  %v1224_v24 = vld [vmem:[%s2898_s3 + $0xe8] sm:$0xff] (!%p1504_p11)  ;;  %v1225_v25 = vld [vmem:[%s2898_s3 + $0xf0] sm:$0xff] (!%p1504_p11)  ;;  %v1226_v26 = vld [vmem:[%s2898_s3 + $0xf8] sm:$0xff] (!%p1504_p11)  ;;  %v1300_v1 = vadd.f32 (!%p1504_p11), %v2531_v30, %v1243_v62 }
 0x1b1   : > { %v1218_v12 = vld [vmem:[%s2898_s3 + $0xb8] sm:$0xff] (!%p1504_p11)  ;;  %v1282_v28 = vadd.f32 (!%p1504_p11), %v2531_v30, %v1225_v25  ;;  %v1283_v29 = vadd.f32 (!%p1504_p11), %v2531_v30, %v1226_v26  ;;  %1328 = vst [vmem:[%s2898_s3 + $0xd0] sm:$0xff] (!%p1504_p11), %v1278_v21  ;;  %1329 = vst [vmem:[%s2898_s3 + $0xd8] sm:$0xff] (!%p1504_p11), %v1279_v22  ;;  %v1244_v63 = vld [vmem:[%s2898_s3 + $0x188] sm:$0xff] (!%p1504_p11) }
 0x1b2   : > { %1166 = vst [vmem:[%s2898_s3 + $0xc8] sm:$0xff] %v1116_v27  ;;  %v1275_v15 = vadd.f32 (!%p1504_p11), %v2531_v30, %v1218_v12  ;;  %1324 = vst [vmem:[%s2898_s3 + $0xb0] sm:$0xff] (!%p1504_p11), %v1274_v11  ;;  %v1281_v27 = vadd.f32 (!%p1504_p11), %v2531_v30, %v1224_v24  ;;  %v1301_v2 = vadd.f32 (!%p1504_p11), %v2531_v30, %v1244_v63 }
 0x1b3   : > { %1330 = vst [vmem:[%s2898_s3 + $0xe0] sm:$0xff] %v1280_v23  ;;  %1332 = vst [vmem:[%s2898_s3 + $0xf0] sm:$0xff] %v1282_v28 }
 0x1b4   : > { %1325 = vst [vmem:[%s2898_s3 + $0xb8] sm:$0xff] %v1275_v15  ;;  %1331 = vst [vmem:[%s2898_s3 + $0xe8] sm:$0xff] %v1281_v27 }
 0x1b5   : > { %1333 = vst [vmem:[%s2898_s3 + $0xf8] sm:$0xff] %v1283_v29  ;;  %1349 = vst [vmem:[%s2898_s3 + $0x178] sm:$0xff] %v1299_v0 }
 0x1b6   : > { %1350 = vst [vmem:[%s2898_s3 + $0x180] sm:$0xff] %v1300_v1  ;;  %1351 = vst [vmem:[%s2898_s3 + $0x188] sm:$0xff] %v1301_v2 }
 0x1b7   : > { %v1219_v13 = vld [vmem:[%s2898_s3 + $0xc0] sm:$0xff] }
 0x1b8   : > { %v1276_v16 = vadd.f32 %v2531_v30, %v1219_v13 }
 0x1b9   : > { %v1220_v14 = vld [vmem:[%s2898_s3 + $0xc8] sm:$0xff] }
 0x1ba   : > { %v1277_v17 = vadd.f32 %v2531_v30, %v1220_v14  ;;  %1326 = vst [vmem:[%s2898_s3 + $0xc0] sm:$0xff] %v1276_v16 }
 0x1bc   : > { %1327 = vst [vmem:[%s2898_s3 + $0xc8] sm:$0xff] %v1277_v17 }
 0x1bd PF: > { %s13_s16 = sadd.s32 1, %s1791_s16   ;;  %s2899_s12 = smov %s1779_s13 }
 0x1be   : > { %p10_p12 = scmp.ge.s32.totalorder %s13_s16, 7   ;;  %s2900_s13 = smov %s1851_s20 }
 0x1bf   : > { %s2901_s14 = smov %s1787_s15  ;;  %s2902_s15 = smov %s2904_s17 }
 0x1c0   :  { %12 = sbr.rel (!%p10_p12) target bundleno = 3 (0x3), region = 122 }

// kernel: cnn_forward.17
= control target key start
LH: loop header
LB: loop body
LE: loop exit
PB: predicated region body
PF: predicated region fallthrough
CT: control target
= control target key end

     0   :  { %s2257_s12 = smov 0   ;;  %s2259_s13 = smov 0   ;;  %s4205_s0 = inlined_call_operand.vmem [shape: bf16[400,640], index: 0, kind: input, shape index: {}]   ;;  %s4206_s1 = inlined_call_operand.vmem [shape: bf16[640,256], index: 1, kind: input, shape index: {}]   ;;  %s4207_s2 = inlined_call_operand.vmem [shape: f32[1,256], index: 2, kind: input, shape index: {}]   ;;  %s4208_s3 = inlined_call_operand.vmem [shape: f32[400,256], index: 3, kind: output, shape index: {}]  }
   0x1   :  { %s2261_s14 = smov 0   ;;  %s2263_s15 = smov 0  }
   0x2   :  { %s2265_s16 = smov 0  }
   0x3 LB: > { %s25_s17 = sadd.s32 1, %s2229_s15  ;;  %p48_p1 = scmp.ne.s32.totalorder %s2221_s13, %s2217_s12  ;;  %s2233_s16 = sphi %s2265_s16, %s13_s16   ;;  %s2229_s15 = sphi %s2263_s15, %s4212_s15   ;;  %s2225_s14 = sphi %s2261_s14, %s4211_s14   ;;  %s2221_s13 = sphi %s2259_s13, %s4210_s13   ;;  %s2217_s12 = sphi %s2257_s12, %s4209_s12  }
   0x4   : > { %p26_p0 = scmp.ge.s32.totalorder %s25_s17, 5  ;;  %p49_p2 = scmp.eq.s32.totalorder %s2233_s16, 0 }
   0x5   : > { %s41_s19 = sadd.s32 1, %s2221_s13  ;;  %p2032_p5 = scmp.ge.s32.totalorder %s2233_s16, 5 }
   0x6   : > { %s4214_s17 = smov (%p26_p0, %s25_s17), 0  ;;  %p50_p3 = por %p49_p2, %p48_p1 }
   0x7   : > { %s37_s18 = ssub.s32 %s2229_s15, %s4214_s17  ;;  %164 = sbr.rel (%p2032_p5) target bundleno = 51 (0x33), region = 20 }
   0x8   : > { %p39_p4 = scmp.eq.s32.totalorder %s37_s18, 0 }
   0xa   : > { %s2292_s20 = scalar_select %p39_p4, %s2221_s13, %s41_s19  }
   0xe   : > { %167 = sbr.rel (!%p50_p3) target bundleno = 51 (0x33), region = 24  ;;  %s169_s21 = sand.u32 (%p50_p3), 1, %s2221_s13  }
   0xf   : > { %s2033_s22 = sshll.u32 (%p50_p3), %s2229_s15, 2  ;;  %s2102_s23 = smul.u32 (%p50_p3), 200, %s169_s21 }
  0x10   : > { %s2300_s26 = scalar_lea.vmem (%p50_p3), %s4205_s0, %s2033_s22 }
  0x11   : > { %v192_v0 = vld [vmem:[%s2300_s26] sm:$0xf] (%p50_p3)  ;;  %v194_v1 = vld [vmem:[%s2300_s26 + $0x14] sm:$0xf] (%p50_p3)  ;;  %v196_v2 = vld [vmem:[%s2300_s26 + $0x28] sm:$0xf] (%p50_p3) }
  0x12   : > { %v198_v3 = vld [vmem:[%s2300_s26 + $0x3c] sm:$0xf] (%p50_p3)  ;;  %v200_v4 = vld [vmem:[%s2300_s26 + $0x50] sm:$0xf] (%p50_p3)  ;;  %s2307_s27 = scalar_lea.vmem (%p50_p3), [#allocation2], %s2102_s23 }
  0x13   : > { %193 = vst [vmem:[%s2307_s27] sm:$0xf] (%p50_p3), %v192_v0  ;;  %195 = vst [vmem:[%s2307_s27 + $0x4] sm:$0xf] (%p50_p3), %v194_v1  ;;  %v202_v5 = vld [vmem:[%s2300_s26 + $0x64] sm:$0xf] (%p50_p3) }
  0x14   : > { %197 = vst [vmem:[%s2307_s27 + $0x8] sm:$0xf] (%p50_p3), %v196_v2  ;;  %199 = vst [vmem:[%s2307_s27 + $0xc] sm:$0xf] (%p50_p3), %v198_v3  ;;  %v204_v6 = vld [vmem:[%s2300_s26 + $0x78] sm:$0xf] (%p50_p3) }
  0x15   : > { %201 = vst [vmem:[%s2307_s27 + $0x10] sm:$0xf] %v200_v4  ;;  %v206_v7 = vld [vmem:[%s2300_s26 + $0x8c] sm:$0xf]  ;;  %203 = vst [vmem:[%s2307_s27 + $0x14] sm:$0xf] %v202_v5 }
  0x16   : > { %205 = vst [vmem:[%s2307_s27 + $0x18] sm:$0xf] %v204_v6  ;;  %207 = vst [vmem:[%s2307_s27 + $0x1c] sm:$0xf] %v206_v7  ;;  %v208_v8 = vld [vmem:[%s2300_s26 + $0xa0] sm:$0xf] }
  0x17   : > { %v210_v9 = vld [vmem:[%s2300_s26 + $0xb4] sm:$0xf]  ;;  %v212_v10 = vld [vmem:[%s2300_s26 + $0xc8] sm:$0xf]  ;;  %209 = vst [vmem:[%s2307_s27 + $0x20] sm:$0xf] %v208_v8 }
  0x18   : > { %211 = vst [vmem:[%s2307_s27 + $0x24] sm:$0xf] %v210_v9  ;;  %213 = vst [vmem:[%s2307_s27 + $0x28] sm:$0xf] %v212_v10  ;;  %v214_v11 = vld [vmem:[%s2300_s26 + $0xdc] sm:$0xf] }
  0x19   : > { %v216_v12 = vld [vmem:[%s2300_s26 + $0xf0] sm:$0xf]  ;;  %v218_v13 = vld [vmem:[%s2300_s26 + $0x104] sm:$0xf]  ;;  %215 = vst [vmem:[%s2307_s27 + $0x2c] sm:$0xf] %v214_v11 }
  0x1a   : > { %217 = vst [vmem:[%s2307_s27 + $0x30] sm:$0xf] %v216_v12  ;;  %219 = vst [vmem:[%s2307_s27 + $0x34] sm:$0xf] %v218_v13  ;;  %v220_v14 = vld [vmem:[%s2300_s26 + $0x118] sm:$0xf] }
  0x1b   : > { %v222_v15 = vld [vmem:[%s2300_s26 + $0x12c] sm:$0xf]  ;;  %v224_v16 = vld [vmem:[%s2300_s26 + $0x140] sm:$0xf]  ;;  %221 = vst [vmem:[%s2307_s27 + $0x38] sm:$0xf] %v220_v14 }
  0x1c   : > { %223 = vst [vmem:[%s2307_s27 + $0x3c] sm:$0xf] %v222_v15  ;;  %225 = vst [vmem:[%s2307_s27 + $0x40] sm:$0xf] %v224_v16  ;;  %v226_v17 = vld [vmem:[%s2300_s26 + $0x154] sm:$0xf] }
  0x1d   : > { %v228_v18 = vld [vmem:[%s2300_s26 + $0x168] sm:$0xf]  ;;  %v230_v19 = vld [vmem:[%s2300_s26 + $0x17c] sm:$0xf]  ;;  %227 = vst [vmem:[%s2307_s27 + $0x44] sm:$0xf] %v226_v17 }
  0x1e   : > { %229 = vst [vmem:[%s2307_s27 + $0x48] sm:$0xf] %v228_v18  ;;  %231 = vst [vmem:[%s2307_s27 + $0x4c] sm:$0xf] %v230_v19  ;;  %v232_v20 = vld [vmem:[%s2300_s26 + $0x190] sm:$0xf] }
  0x1f   : > { %v234_v21 = vld [vmem:[%s2300_s26 + $0x1a4] sm:$0xf]  ;;  %v236_v22 = vld [vmem:[%s2300_s26 + $0x1b8] sm:$0xf]  ;;  %233 = vst [vmem:[%s2307_s27 + $0x50] sm:$0xf] %v232_v20 }
  0x20   : > { %235 = vst [vmem:[%s2307_s27 + $0x54] sm:$0xf] %v234_v21  ;;  %237 = vst [vmem:[%s2307_s27 + $0x58] sm:$0xf] %v236_v22  ;;  %v238_v23 = vld [vmem:[%s2300_s26 + $0x1cc] sm:$0xf] }
  0x21   : > { %v240_v24 = vld [vmem:[%s2300_s26 + $0x1e0] sm:$0xf]  ;;  %v242_v25 = vld [vmem:[%s2300_s26 + $0x1f4] sm:$0xf]  ;;  %239 = vst [vmem:[%s2307_s27 + $0x5c] sm:$0xf] %v238_v23 }
  0x22   : > { %241 = vst [vmem:[%s2307_s27 + $0x60] sm:$0xf] %v240_v24  ;;  %243 = vst [vmem:[%s2307_s27 + $0x64] sm:$0xf] %v242_v25  ;;  %v244_v26 = vld [vmem:[%s2300_s26 + $0x208] sm:$0xf] }
  0x23   : > { %v246_v27 = vld [vmem:[%s2300_s26 + $0x21c] sm:$0xf]  ;;  %v248_v28 = vld [vmem:[%s2300_s26 + $0x230] sm:$0xf]  ;;  %245 = vst [vmem:[%s2307_s27 + $0x68] sm:$0xf] %v244_v26 }
  0x24   : > { %247 = vst [vmem:[%s2307_s27 + $0x6c] sm:$0xf] %v246_v27  ;;  %249 = vst [vmem:[%s2307_s27 + $0x70] sm:$0xf] %v248_v28  ;;  %v250_v29 = vld [vmem:[%s2300_s26 + $0x244] sm:$0xf] }
  0x25   : > { %v252_v30 = vld [vmem:[%s2300_s26 + $0x258] sm:$0xf]  ;;  %v254_v31 = vld [vmem:[%s2300_s26 + $0x26c] sm:$0xf]  ;;  %251 = vst [vmem:[%s2307_s27 + $0x74] sm:$0xf] %v250_v29 }
  0x26   : > { %253 = vst [vmem:[%s2307_s27 + $0x78] sm:$0xf] %v252_v30  ;;  %255 = vst [vmem:[%s2307_s27 + $0x7c] sm:$0xf] %v254_v31  ;;  %v256_v32 = vld [vmem:[%s2300_s26 + $0x280] sm:$0xf] }
  0x27   : > { %v258_v33 = vld [vmem:[%s2300_s26 + $0x294] sm:$0xf]  ;;  %v260_v34 = vld [vmem:[%s2300_s26 + $0x2a8] sm:$0xf]  ;;  %257 = vst [vmem:[%s2307_s27 + $0x80] sm:$0xf] %v256_v32 }
  0x28   : > { %259 = vst [vmem:[%s2307_s27 + $0x84] sm:$0xf] %v258_v33  ;;  %261 = vst [vmem:[%s2307_s27 + $0x88] sm:$0xf] %v260_v34  ;;  %v262_v35 = vld [vmem:[%s2300_s26 + $0x2bc] sm:$0xf] }
  0x29   : > { %v264_v36 = vld [vmem:[%s2300_s26 + $0x2d0] sm:$0xf]  ;;  %v266_v37 = vld [vmem:[%s2300_s26 + $0x2e4] sm:$0xf]  ;;  %263 = vst [vmem:[%s2307_s27 + $0x8c] sm:$0xf] %v262_v35 }
  0x2a   : > { %265 = vst [vmem:[%s2307_s27 + $0x90] sm:$0xf] %v264_v36  ;;  %267 = vst [vmem:[%s2307_s27 + $0x94] sm:$0xf] %v266_v37  ;;  %v268_v38 = vld [vmem:[%s2300_s26 + $0x2f8] sm:$0xf] }
  0x2b   : > { %v270_v39 = vld [vmem:[%s2300_s26 + $0x30c] sm:$0xf]  ;;  %v272_v40 = vld [vmem:[%s2300_s26 + $0x320] sm:$0xf]  ;;  %269 = vst [vmem:[%s2307_s27 + $0x98] sm:$0xf] %v268_v38 }
  0x2c   : > { %271 = vst [vmem:[%s2307_s27 + $0x9c] sm:$0xf] %v270_v39  ;;  %273 = vst [vmem:[%s2307_s27 + $0xa0] sm:$0xf] %v272_v40  ;;  %v274_v41 = vld [vmem:[%s2300_s26 + $0x334] sm:$0xf] }
  0x2d   : > { %v276_v42 = vld [vmem:[%s2300_s26 + $0x348] sm:$0xf]  ;;  %v278_v43 = vld [vmem:[%s2300_s26 + $0x35c] sm:$0xf]  ;;  %275 = vst [vmem:[%s2307_s27 + $0xa4] sm:$0xf] %v274_v41 }
  0x2e   : > { %277 = vst [vmem:[%s2307_s27 + $0xa8] sm:$0xf] %v276_v42  ;;  %279 = vst [vmem:[%s2307_s27 + $0xac] sm:$0xf] %v278_v43  ;;  %v280_v44 = vld [vmem:[%s2300_s26 + $0x370] sm:$0xf] }
  0x2f   : > { %v282_v45 = vld [vmem:[%s2300_s26 + $0x384] sm:$0xf]  ;;  %v284_v46 = vld [vmem:[%s2300_s26 + $0x398] sm:$0xf]  ;;  %281 = vst [vmem:[%s2307_s27 + $0xb0] sm:$0xf] %v280_v44 }
  0x30   : > { %283 = vst [vmem:[%s2307_s27 + $0xb4] sm:$0xf] %v282_v45  ;;  %285 = vst [vmem:[%s2307_s27 + $0xb8] sm:$0xf] %v284_v46  ;;  %v286_v47 = vld [vmem:[%s2300_s26 + $0x3ac] sm:$0xf] }
  0x31   : > { %v288_v48 = vld [vmem:[%s2300_s26 + $0x3c0] sm:$0xf]  ;;  %v290_v49 = vld [vmem:[%s2300_s26 + $0x3d4] sm:$0xf]  ;;  %287 = vst [vmem:[%s2307_s27 + $0xbc] sm:$0xf] %v286_v47 }
  0x32   : > { %289 = vst [vmem:[%s2307_s27 + $0xc0] sm:$0xf] %v288_v48  ;;  %291 = vst [vmem:[%s2307_s27 + $0xc4] sm:$0xf] %v290_v49 }
  0x33 PF: > { %p2034_p6 = scmp.ge.s32.totalorder %s2233_s16, 1  ;;  %p428_p7 = scmp.lt.s32.totalorder %s2233_s16, 6 }
  0x35   : > { %p429_p8 = pnand %p2034_p6, %p428_p7 }
  0x36   : > { %s435_s28 = sand.u32 (!%p429_p8), 1, %s2217_s12   ;;  %s2035_s29 = sshll.u32 (!%p429_p8), %s2225_s14, 4 }
  0x37   : > { %432 = sbr.rel (%p429_p8) target bundleno = 506 (0x1fa), region = 69  ;;  %p480_p9 = scmp.lt.s32.totalorder (!%p429_p8), %s2035_s29, 79 }
  0x38   : > { %s2103_s30 = smul.u32 (!%p429_p8), 200, %s435_s28  ;;  %p2038_p10 = scmp.ne.s32.totalorder (!%p429_p8), %s2225_s14, 0 }
  0x3a   : > { %s2413_s8 = scalar_lea.vmem (!%p429_p8), [#allocation2], %s2103_s30 }
  0x3e   : > { %s4216_s29 = smov (!%p480_p9, %s2035_s29), 79  ;;  %511 = sbr.rel (%p2038_p10) target bundleno = 114 (0x72), region = 77 }
  0x3f   : > { %s2085_s4 = sshll.u32 %s4216_s29, 3  ;;  %v2235_v50 = vmov (!%p2038_p10), 0.0  }
  0x40   : > { %s2411_s7 = scalar_lea.vmem %s4206_s1, %s2085_s4  ;;  %512 = vst [vmem:[%s4208_s3] sm:$0xff] (!%p2038_p10), %v2235_v50  ;;  %513 = vst [vmem:[%s4208_s3 + $0x8] sm:$0xff] (!%p2038_p10), %v2235_v50 }
  0x41   : > { %514 = vst [vmem:[%s4208_s3 + $0x10] sm:$0xff] (!%p2038_p10), %v2235_v50  ;;  %515 = vst [vmem:[%s4208_s3 + $0x18] sm:$0xff] (!%p2038_p10), %v2235_v50 }
  0x42   : > { %516 = vst [vmem:[%s4208_s3 + $0x20] sm:$0xff] (!%p2038_p10), %v2235_v50  ;;  %517 = vst [vmem:[%s4208_s3 + $0x28] sm:$0xff] (!%p2038_p10), %v2235_v50 }
  0x43   : > { %518 = vst [vmem:[%s4208_s3 + $0x30] sm:$0xff] (!%p2038_p10), %v2235_v50  ;;  %519 = vst [vmem:[%s4208_s3 + $0x38] sm:$0xff] (!%p2038_p10), %v2235_v50 }
  0x44   : > { %520 = vst [vmem:[%s4208_s3 + $0x40] sm:$0xff] (!%p2038_p10), %v2235_v50  ;;  %521 = vst [vmem:[%s4208_s3 + $0x48] sm:$0xff] (!%p2038_p10), %v2235_v50 }
  0x45   : > { %522 = vst [vmem:[%s4208_s3 + $0x50] sm:$0xff] %v2235_v50  ;;  %523 = vst [vmem:[%s4208_s3 + $0x58] sm:$0xff] %v2235_v50 }
  0x46   : > { %524 = vst [vmem:[%s4208_s3 + $0x60] sm:$0xff] %v2235_v50  ;;  %525 = vst [vmem:[%s4208_s3 + $0x68] sm:$0xff] %v2235_v50 }
  0x47   : > { %526 = vst [vmem:[%s4208_s3 + $0x70] sm:$0xff] %v2235_v50  ;;  %527 = vst [vmem:[%s4208_s3 + $0x78] sm:$0xff] %v2235_v50 }
  0x48   : > { %528 = vst [vmem:[%s4208_s3 + $0x80] sm:$0xff] %v2235_v50  ;;  %529 = vst [vmem:[%s4208_s3 + $0x88] sm:$0xff] %v2235_v50 }
  0x49   : > { %530 = vst [vmem:[%s4208_s3 + $0x90] sm:$0xff] %v2235_v50  ;;  %531 = vst [vmem:[%s4208_s3 + $0x98] sm:$0xff] %v2235_v50 }
  0x4a   : > { %532 = vst [vmem:[%s4208_s3 + $0xa0] sm:$0xff] %v2235_v50  ;;  %533 = vst [vmem:[%s4208_s3 + $0xa8] sm:$0xff] %v2235_v50 }
  0x4b   : > { %534 = vst [vmem:[%s4208_s3 + $0xb0] sm:$0xff] %v2235_v50  ;;  %535 = vst [vmem:[%s4208_s3 + $0xb8] sm:$0xff] %v2235_v50 }
  0x4c   : > { %536 = vst [vmem:[%s4208_s3 + $0xc0] sm:$0xff] %v2235_v50  ;;  %537 = vst [vmem:[%s4208_s3 + $0xc8] sm:$0xff] %v2235_v50 }
  0x4d   : > { %538 = vst [vmem:[%s4208_s3 + $0xd0] sm:$0xff] %v2235_v50  ;;  %539 = vst [vmem:[%s4208_s3 + $0xd8] sm:$0xff] %v2235_v50 }
  0x4e   : > { %540 = vst [vmem:[%s4208_s3 + $0xe0] sm:$0xff] %v2235_v50  ;;  %541 = vst [vmem:[%s4208_s3 + $0xe8] sm:$0xff] %v2235_v50 }
  0x4f   : > { %542 = vst [vmem:[%s4208_s3 + $0xf0] sm:$0xff] %v2235_v50  ;;  %543 = vst [vmem:[%s4208_s3 + $0xf8] sm:$0xff] %v2235_v50 }
  0x50   : > { %544 = vst [vmem:[%s4208_s3 + $0x100] sm:$0xff] %v2235_v50  ;;  %545 = vst [vmem:[%s4208_s3 + $0x108] sm:$0xff] %v2235_v50 }
  0x51   : > { %546 = vst [vmem:[%s4208_s3 + $0x110] sm:$0xff] %v2235_v50  ;;  %547 = vst [vmem:[%s4208_s3 + $0x118] sm:$0xff] %v2235_v50 }
  0x52   : > { %548 = vst [vmem:[%s4208_s3 + $0x120] sm:$0xff] %v2235_v50  ;;  %549 = vst [vmem:[%s4208_s3 + $0x128] sm:$0xff] %v2235_v50 }
  0x53   : > { %550 = vst [vmem:[%s4208_s3 + $0x130] sm:$0xff] %v2235_v50  ;;  %551 = vst [vmem:[%s4208_s3 + $0x138] sm:$0xff] %v2235_v50 }
  0x54   : > { %552 = vst [vmem:[%s4208_s3 + $0x140] sm:$0xff] %v2235_v50  ;;  %553 = vst [vmem:[%s4208_s3 + $0x148] sm:$0xff] %v2235_v50 }
  0x55   : > { %554 = vst [vmem:[%s4208_s3 + $0x150] sm:$0xff] %v2235_v50  ;;  %555 = vst [vmem:[%s4208_s3 + $0x158] sm:$0xff] %v2235_v50 }
  0x56   : > { %556 = vst [vmem:[%s4208_s3 + $0x160] sm:$0xff] %v2235_v50  ;;  %557 = vst [vmem:[%s4208_s3 + $0x168] sm:$0xff] %v2235_v50 }
  0x57   : > { %558 = vst [vmem:[%s4208_s3 + $0x170] sm:$0xff] %v2235_v50  ;;  %559 = vst [vmem:[%s4208_s3 + $0x178] sm:$0xff] %v2235_v50 }
  0x58   : > { %560 = vst [vmem:[%s4208_s3 + $0x180] sm:$0xff] %v2235_v50  ;;  %561 = vst [vmem:[%s4208_s3 + $0x188] sm:$0xff] %v2235_v50 }
  0x59   : > { %562 = vst [vmem:[%s4208_s3 + $0x190] sm:$0xff] %v2235_v50  ;;  %563 = vst [vmem:[%s4208_s3 + $0x198] sm:$0xff] %v2235_v50 }
  0x5a   : > { %564 = vst [vmem:[%s4208_s3 + $0x1a0] sm:$0xff] %v2235_v50  ;;  %565 = vst [vmem:[%s4208_s3 + $0x1a8] sm:$0xff] %v2235_v50 }
  0x5b   : > { %566 = vst [vmem:[%s4208_s3 + $0x1b0] sm:$0xff] %v2235_v50  ;;  %567 = vst [vmem:[%s4208_s3 + $0x1b8] sm:$0xff] %v2235_v50 }
  0x5c   : > { %568 = vst [vmem:[%s4208_s3 + $0x1c0] sm:$0xff] %v2235_v50  ;;  %569 = vst [vmem:[%s4208_s3 + $0x1c8] sm:$0xff] %v2235_v50 }
  0x5d   : > { %570 = vst [vmem:[%s4208_s3 + $0x1d0] sm:$0xff] %v2235_v50  ;;  %571 = vst [vmem:[%s4208_s3 + $0x1d8] sm:$0xff] %v2235_v50 }
  0x5e   : > { %572 = vst [vmem:[%s4208_s3 + $0x1e0] sm:$0xff] %v2235_v50  ;;  %573 = vst [vmem:[%s4208_s3 + $0x1e8] sm:$0xff] %v2235_v50 }
  0x5f   : > { %574 = vst [vmem:[%s4208_s3 + $0x1f0] sm:$0xff] %v2235_v50  ;;  %575 = vst [vmem:[%s4208_s3 + $0x1f8] sm:$0xff] %v2235_v50 }
  0x60   : > { %576 = vst [vmem:[%s4208_s3 + $0x200] sm:$0xff] %v2235_v50  ;;  %577 = vst [vmem:[%s4208_s3 + $0x208] sm:$0xff] %v2235_v50 }
  0x61   : > { %578 = vst [vmem:[%s4208_s3 + $0x210] sm:$0xff] %v2235_v50  ;;  %579 = vst [vmem:[%s4208_s3 + $0x218] sm:$0xff] %v2235_v50 }
  0x62   : > { %580 = vst [vmem:[%s4208_s3 + $0x220] sm:$0xff] %v2235_v50  ;;  %581 = vst [vmem:[%s4208_s3 + $0x228] sm:$0xff] %v2235_v50 }
  0x63   : > { %582 = vst [vmem:[%s4208_s3 + $0x230] sm:$0xff] %v2235_v50  ;;  %583 = vst [vmem:[%s4208_s3 + $0x238] sm:$0xff] %v2235_v50 }
  0x64   : > { %584 = vst [vmem:[%s4208_s3 + $0x240] sm:$0xff] %v2235_v50  ;;  %585 = vst [vmem:[%s4208_s3 + $0x248] sm:$0xff] %v2235_v50 }
  0x65   : > { %586 = vst [vmem:[%s4208_s3 + $0x250] sm:$0xff] %v2235_v50  ;;  %587 = vst [vmem:[%s4208_s3 + $0x258] sm:$0xff] %v2235_v50 }
  0x66   : > { %588 = vst [vmem:[%s4208_s3 + $0x260] sm:$0xff] %v2235_v50  ;;  %589 = vst [vmem:[%s4208_s3 + $0x268] sm:$0xff] %v2235_v50 }
  0x67   : > { %590 = vst [vmem:[%s4208_s3 + $0x270] sm:$0xff] %v2235_v50  ;;  %591 = vst [vmem:[%s4208_s3 + $0x278] sm:$0xff] %v2235_v50 }
  0x68   : > { %592 = vst [vmem:[%s4208_s3 + $0x280] sm:$0xff] %v2235_v50  ;;  %593 = vst [vmem:[%s4208_s3 + $0x288] sm:$0xff] %v2235_v50 }
  0x69   : > { %594 = vst [vmem:[%s4208_s3 + $0x290] sm:$0xff] %v2235_v50  ;;  %595 = vst [vmem:[%s4208_s3 + $0x298] sm:$0xff] %v2235_v50 }
  0x6a   : > { %596 = vst [vmem:[%s4208_s3 + $0x2a0] sm:$0xff] %v2235_v50  ;;  %597 = vst [vmem:[%s4208_s3 + $0x2a8] sm:$0xff] %v2235_v50 }
  0x6b   : > { %598 = vst [vmem:[%s4208_s3 + $0x2b0] sm:$0xff] %v2235_v50  ;;  %599 = vst [vmem:[%s4208_s3 + $0x2b8] sm:$0xff] %v2235_v50 }
  0x6c   : > { %600 = vst [vmem:[%s4208_s3 + $0x2c0] sm:$0xff] %v2235_v50  ;;  %601 = vst [vmem:[%s4208_s3 + $0x2c8] sm:$0xff] %v2235_v50 }
  0x6d   : > { %602 = vst [vmem:[%s4208_s3 + $0x2d0] sm:$0xff] %v2235_v50  ;;  %603 = vst [vmem:[%s4208_s3 + $0x2d8] sm:$0xff] %v2235_v50 }
  0x6e   : > { %604 = vst [vmem:[%s4208_s3 + $0x2e0] sm:$0xff] %v2235_v50  ;;  %605 = vst [vmem:[%s4208_s3 + $0x2e8] sm:$0xff] %v2235_v50 }
  0x6f   : > { %606 = vst [vmem:[%s4208_s3 + $0x2f0] sm:$0xff] %v2235_v50  ;;  %607 = vst [vmem:[%s4208_s3 + $0x2f8] sm:$0xff] %v2235_v50 }
  0x70   : > { %608 = vst [vmem:[%s4208_s3 + $0x300] sm:$0xff] %v2235_v50  ;;  %609 = vst [vmem:[%s4208_s3 + $0x308] sm:$0xff] %v2235_v50 }
  0x71   : > { %610 = vst [vmem:[%s4208_s3 + $0x310] sm:$0xff] %v2235_v50  ;;  %611 = vst [vmem:[%s4208_s3 + $0x318] sm:$0xff] %v2235_v50 }
  0x72 PF: > { %v2146_v51 = vld [vmem:[%s2411_s7 + $0x4] ss:$8 sps:$4 sm:$0xff]   ;;  %v2148_v52 = vld [vmem:[%s2411_s7] ss:$8 sps:$4 sm:$0xff]   ;;  %v2236_v53 = vmov 0   ;;  %v2173_v7 = vld [vmem:[%s2413_s8 + $0x70] sm:$0xff]  }
  0x73   : > { %1040 = vmatprep.mubr.bf16.mxu0 %v2236_v53  ;;  %1170 = vmatprep.mubr.bf16.mxu1 %v2236_v53  ;;  %v2149_v54 = vld [vmem:[%s2411_s7 + $0x14] ss:$8 sps:$4 sm:$0xff]   ;;  %v2151_v55 = vld [vmem:[%s2411_s7 + $0x10] ss:$8 sps:$4 sm:$0xff]   ;;  %v2152_v56 = vld [vmem:[%s2411_s7 + $0x24] ss:$8 sps:$4 sm:$0xff]  }
  0x74   : > { %1008 = vmatprep.subr.bf16.mxu0 %v2146_v51  ;;  %2086 = vmatprep.subr.bf16.mxu1 %v2146_v51  ;;  %v2154_v57 = vld [vmem:[%s2411_s7 + $0x20] ss:$8 sps:$4 sm:$0xff]   ;;  %v2155_v58 = vld [vmem:[%s2411_s7 + $0x34] ss:$8 sps:$4 sm:$0xff]   ;;  %v2157_v59 = vld [vmem:[%s2411_s7 + $0x30] ss:$8 sps:$4 sm:$0xff]  }
  0x75   : > { %1009 = vmatpush1.bf16.msra.mxu0 %v2148_v52  ;;  %2094 = vmatpush1.bf16.msra.mxu1 %v2148_v52  ;;  %v2158_v60 = vld [vmem:[%s2411_s7 + $0x44] ss:$8 sps:$4 sm:$0xff]   ;;  %v2160_v61 = vld [vmem:[%s2411_s7 + $0x40] ss:$8 sps:$4 sm:$0xff]   ;;  %v2161_v62 = vld [vmem:[%s2411_s7 + $0x54] ss:$8 sps:$4 sm:$0xff]  }
  0x76   : > { %1010 = vmatprep.subr.bf16.mxu0 %v2149_v54  ;;  %2087 = vmatprep.subr.bf16.mxu1 %v2149_v54  ;;  %v2163_v63 = vld [vmem:[%s2411_s7 + $0x50] ss:$8 sps:$4 sm:$0xff]   ;;  %v2164_v0 = vld [vmem:[%s2411_s7 + $0x64] ss:$8 sps:$4 sm:$0xff]   ;;  %v2166_v1 = vld [vmem:[%s2411_s7 + $0x60] ss:$8 sps:$4 sm:$0xff]  }
  0x77   : > { %v2167_v2 = vld [vmem:[%s2411_s7 + $0x74] ss:$8 sps:$4 sm:$0xff]   ;;  %v2169_v3 = vld [vmem:[%s2411_s7 + $0x70] ss:$8 sps:$4 sm:$0xff]   ;;  %v2170_v4 = vld [vmem:[%s2413_s8] sm:$0xff]   ;;  %p2080_p11 = scmp.ne.s32.totalorder %s2225_s14, 4 }
  0x78   : > { %v2171_v5 = vld [vmem:[%s2413_s8 + $0x68] sm:$0xff]   ;;  %v2174_v8 = vld [vmem:[%s2413_s8 + $0x10] sm:$0xff]   ;;  %v2175_v9 = vld [vmem:[%s2413_s8 + $0x78] sm:$0xff]  }
  0x79   : > { %1011 = vmatpush1.bf16.msra.mxu0 %v2151_v55  ;;  %2095 = vmatpush1.bf16.msra.mxu1 %v2151_v55  ;;  %v2172_v6 = vld [vmem:[%s2413_s8 + $0x8] sm:$0xff]   ;;  %v2176_v10 = vld [vmem:[%s2413_s8 + $0x18] sm:$0xff]   ;;  %v2177_v11 = vld [vmem:[%s2413_s8 + $0x80] sm:$0xff]  }
  0x7a   : > { %1012 = vmatprep.subr.bf16.mxu0 %v2152_v56  ;;  %2088 = vmatprep.subr.bf16.mxu1 %v2152_v56  ;;  %v2178_v12 = vld [vmem:[%s2413_s8 + $0x20] sm:$0xff]   ;;  %v2179_v13 = vld [vmem:[%s2413_s8 + $0x88] sm:$0xff]   ;;  %v2181_v15 = vld [vmem:[%s2413_s8 + $0x90] sm:$0xff]  }
  0x7b   : > { %v2180_v14 = vld [vmem:[%s2413_s8 + $0x28] sm:$0xff]   ;;  %v2182_v16 = vld [vmem:[%s2413_s8 + $0x30] sm:$0xff]   ;;  %v2183_v17 = vld [vmem:[%s2413_s8 + $0x98] sm:$0xff]  }
  0x7c   : > { %v2184_v18 = vld [vmem:[%s2413_s8 + $0x38] sm:$0xff]   ;;  %v2185_v19 = vld [vmem:[%s2413_s8 + $0xa0] sm:$0xff]   ;;  %v2187_v21 = vld [vmem:[%s2413_s8 + $0xa8] sm:$0xff]  }
  0x7d   : > { %1013 = vmatpush1.bf16.msra.mxu0 %v2154_v57  ;;  %2096 = vmatpush1.bf16.msra.mxu1 %v2154_v57  ;;  %v2186_v20 = vld [vmem:[%s2413_s8 + $0x40] sm:$0xff]   ;;  %v2188_v22 = vld [vmem:[%s2413_s8 + $0x48] sm:$0xff]   ;;  %v2189_v23 = vld [vmem:[%s2413_s8 + $0xb0] sm:$0xff]  }
  0x7e   : > { %1014 = vmatprep.subr.bf16.mxu0 %v2155_v58  ;;  %2089 = vmatprep.subr.bf16.mxu1 %v2155_v58  ;;  %v2190_v24 = vld [vmem:[%s2413_s8 + $0x50] sm:$0xff]   ;;  %v2191_v25 = vld [vmem:[%s2413_s8 + $0xb8] sm:$0xff]   ;;  %v2193_v27 = vld [vmem:[%s2413_s8 + $0xc0] sm:$0xff]  }
  0x7f   : > { %v2192_v26 = vld [vmem:[%s2413_s8 + $0x58] sm:$0xff]   ;;  %v2194_v28 = vld [vmem:[%s2413_s8 + $0x60] sm:$0xff]   ;;  %v614_v34 = vld [vmem:[%s4208_s3 + $0x10] sm:$0xff] }
  0x80   : > { %v612_v29 = vld [vmem:[%s4208_s3] sm:$0xff]  ;;  %v613_v31 = vld [vmem:[%s4208_s3 + $0x8] sm:$0xff]  ;;  %v666_v36 = vld [vmem:[%s4208_s3 + $0x1b0] sm:$0xff] }
  0x81   : > { %1015 = vmatpush1.bf16.msra.mxu0 %v2157_v59  ;;  %2097 = vmatpush1.bf16.msra.mxu1 %v2157_v59  ;;  %v664_v30 = vld [vmem:[%s4208_s3 + $0x1a0] sm:$0xff]  ;;  %v665_v32 = vld [vmem:[%s4208_s3 + $0x1a8] sm:$0xff]  ;;  %v615_v39 = vld [vmem:[%s4208_s3 + $0x18] sm:$0xff] }
  0x82   : > { %1016 = vmatprep.subr.bf16.mxu0 %v2158_v60  ;;  %2090 = vmatprep.subr.bf16.mxu1 %v2158_v60  ;;  %v667_v42 = vld [vmem:[%s4208_s3 + $0x1b8] sm:$0xff]  ;;  %v668_v54 = vld [vmem:[%s4208_s3 + $0x1c0] sm:$0xff]  ;;  %v617_v55 = vld [vmem:[%s4208_s3 + $0x28] sm:$0xff] }
  0x83   : > { %v669_v56 = vld [vmem:[%s4208_s3 + $0x1c8] sm:$0xff]  ;;  %v618_v58 = vld [vmem:[%s4208_s3 + $0x30] sm:$0xff] }
  0x84   : > { %v670_v60 = vld [vmem:[%s4208_s3 + $0x1d0] sm:$0xff] }
  0x85   : > { %1017 = vmatpush1.bf16.msra.mxu0 %v2160_v61  ;;  %2098 = vmatpush1.bf16.msra.mxu1 %v2160_v61 }
  0x86   : > { %1018 = vmatprep.subr.bf16.mxu0 %v2161_v62  ;;  %2091 = vmatprep.subr.bf16.mxu1 %v2161_v62 }
  0x89   : > { %1019 = vmatpush1.bf16.msra.mxu0 %v2163_v63  ;;  %2099 = vmatpush1.bf16.msra.mxu1 %v2163_v63  ;;  %v619_v63 = vld [vmem:[%s4208_s3 + $0x38] sm:$0xff] }
  0x8a   : > { %1020 = vmatprep.subr.bf16.mxu0 %v2164_v0  ;;  %2092 = vmatprep.subr.bf16.mxu1 %v2164_v0 }
  0x8d   : > { %1021 = vmatpush1.bf16.msra.mxu0 %v2166_v1  ;;  %2100 = vmatpush1.bf16.msra.mxu1 %v2166_v1 }
  0x8e   : > { %1022 = vmatprep.subr.bf16.mxu0 %v2167_v2  ;;  %2093 = vmatprep.subr.bf16.mxu1 %v2167_v2  ;;  %v671_v2 = vld [vmem:[%s4208_s3 + $0x1d8] sm:$0xff] }
  0x91   : > { %1023 = vmatpush1.bf16.msra.mxu0 %v2169_v3  ;;  %2101 = vmatpush1.bf16.msra.mxu1 %v2169_v3 }
  0x94   : > { %1041 = vmatmul.mubr.bf16.vlgmr.msra.gmra.mrb[0].mxu0 %v2170_v4  ;;  %1171 = vmatmul.mubr.bf16.vlgmr.msra.gmra.mrb[0].mxu1 %v2171_v5 }
  0x95   : > { %1050 = vmatprep.mubr.bf16.mxu0 %v2236_v53  ;;  %1180 = vmatprep.mubr.bf16.mxu1 %v2236_v53 }
  0x9c   : > { %1051 = vmatmul.mubr.bf16.gmra.mrb[4].mxu0 %v2172_v6  ;;  %1181 = vmatmul.mubr.bf16.gmra.mrb[4].mxu1 %v2173_v7 }
  0x9d   : > { %1060 = vmatprep.mubr.bf16.mxu0 %v2236_v53  ;;  %1190 = vmatprep.mubr.bf16.mxu1 %v2236_v53 }
  0xa4   : > { %1061 = vmatmul.mubr.bf16.gmra.mrb[8].mxu0 %v2174_v8  ;;  %1191 = vmatmul.mubr.bf16.gmra.mrb[8].mxu1 %v2175_v9 }
  0xa5   : > { %1070 = vmatprep.mubr.bf16.mxu0 %v2236_v53  ;;  %1200 = vmatprep.mubr.bf16.mxu1 %v2236_v53 }
  0xac   : > { %1071 = vmatmul.mubr.bf16.gmra.mrb[12].mxu0 %v2176_v10  ;;  %1201 = vmatmul.mubr.bf16.gmra.mrb[12].mxu1 %v2177_v11 }
  0xad   : > { %1080 = vmatprep.mubr.bf16.mxu0 %v2236_v53  ;;  %1210 = vmatprep.mubr.bf16.mxu1 %v2236_v53 }
  0xb4   : > { %1081 = vmatmul.mubr.bf16.gmra.mrb[16].mxu0 %v2178_v12  ;;  %1211 = vmatmul.mubr.bf16.gmra.mrb[16].mxu1 %v2179_v13  ;;  %v620_v13 = vld [vmem:[%s4208_s3 + $0x40] sm:$0xff] }
  0xb5   : > { %1090 = vmatprep.mubr.bf16.mxu0 %v2236_v53  ;;  %1220 = vmatprep.mubr.bf16.mxu1 %v2236_v53 }
  0xbc   : > { %1091 = vmatmul.mubr.bf16.gmra.mrb[20].mxu0 %v2180_v14  ;;  %1221 = vmatmul.mubr.bf16.gmra.mrb[20].mxu1 %v2181_v15  ;;  %v672_v14 = vld [vmem:[%s4208_s3 + $0x1e0] sm:$0xff]  ;;  %v621_v15 = vld [vmem:[%s4208_s3 + $0x48] sm:$0xff] }
  0xbd   : > { %1100 = vmatprep.mubr.bf16.mxu0 %v2236_v53  ;;  %1230 = vmatprep.mubr.bf16.mxu1 %v2236_v53 }
  0xc4   : > { %1101 = vmatmul.mubr.bf16.gmra.mrb[24].mxu0 %v2182_v16  ;;  %1231 = vmatmul.mubr.bf16.gmra.mrb[24].mxu1 %v2183_v17  ;;  %v673_v16 = vld [vmem:[%s4208_s3 + $0x1e8] sm:$0xff] }
  0xc5   : > { %1110 = vmatprep.mubr.bf16.mxu0 %v2236_v53  ;;  %1240 = vmatprep.mubr.bf16.mxu1 %v2236_v53 }
  0xcc   : > { %1111 = vmatmul.mubr.bf16.gmra.mrb[28].mxu0 %v2184_v18  ;;  %1241 = vmatmul.mubr.bf16.gmra.mrb[28].mxu1 %v2185_v19  ;;  %v622_v18 = vld [vmem:[%s4208_s3 + $0x50] sm:$0xff] }
  0xcd   : > { %1120 = vmatprep.mubr.bf16.mxu0 %v2236_v53  ;;  %1250 = vmatprep.mubr.bf16.mxu1 %v2236_v53 }
  0xd4   : > { %1121 = vmatmul.mubr.bf16.gmra.mrb[32].mxu0 %v2186_v20  ;;  %1251 = vmatmul.mubr.bf16.gmra.mrb[32].mxu1 %v2187_v21  ;;  %v674_v20 = vld [vmem:[%s4208_s3 + $0x1f0] sm:$0xff] }
  0xd5   : > { %1130 = vmatprep.mubr.bf16.mxu0 %v2236_v53  ;;  %1260 = vmatprep.mubr.bf16.mxu1 %v2236_v53 }
  0xdc   : > { %1131 = vmatmul.mubr.bf16.gmra.mrb[36].mxu0 %v2188_v22  ;;  %1261 = vmatmul.mubr.bf16.gmra.mrb[36].mxu1 %v2189_v23  ;;  %v623_v23 = vld [vmem:[%s4208_s3 + $0x58] sm:$0xff] }
  0xdd   : > { %1140 = vmatprep.mubr.bf16.mxu0 %v2236_v53  ;;  %1270 = vmatprep.mubr.bf16.mxu1 %v2236_v53 }
  0xe4   : > { %1141 = vmatmul.mubr.bf16.gmra.mrb[40].mxu0 %v2190_v24  ;;  %1271 = vmatmul.mubr.bf16.gmra.mrb[40].mxu1 %v2191_v25 }
  0xe5   : > { %1150 = vmatprep.mubr.bf16.mxu0 %v2236_v53  ;;  %1280 = vmatprep.mubr.bf16.mxu1 %v2236_v53 }
  0xec   : > { %1151 = vmatmul.mubr.bf16.gmra.mrb[44].mxu0 %v2192_v26  ;;  %1281 = vmatmul.mubr.bf16.gmra.mrb[44].mxu1 %v2193_v27  ;;  %v675_v26 = vld [vmem:[%s4208_s3 + $0x1f8] sm:$0xff] }
  0xed   : > { %1160 = vmatprep.mubr.bf16.mxu0 %v2236_v53  ;;  %v616_v53 = vld [vmem:[%s4208_s3 + $0x20] sm:$0xff] }
  0xf4   : > { %1161 = vmatmul.mubr.bf16.gmra.mrb[48].mxu0 %v2194_v28 }
 0x167   : > { %v1042_v33 = vpop.f32.mrb[0].mxu0  ;;  %v1172_v35 = vpop.f32.mrb[0].mxu1 }
 0x168   : > { %v1291_v37 = vadd.f32 %v1042_v33, %v612_v29  ;;  %v1044_v38 = vpop.f32.mrb[1].mxu0  ;;  %v1343_v40 = vadd.f32 %v1172_v35, %v664_v30  ;;  %v1174_v41 = vpop.f32.mrb[1].mxu1 }
 0x169   : > { %v1292_v43 = vadd.f32 %v1044_v38, %v613_v31  ;;  %v1046_v44 = vpop.f32.mrb[2].mxu0  ;;  %v1344_v45 = vadd.f32 %v1174_v41, %v665_v32  ;;  %v1176_v46 = vpop.f32.mrb[2].mxu1  ;;  %v676_v38 = vld [vmem:[%s4208_s3 + $0x200] sm:$0xff] }
 0x16a   : > { %1391 = vst [vmem:[%s4208_s3] sm:$0xff] %v1291_v37  ;;  %v1293_v47 = vadd.f32 %v1046_v44, %v614_v34  ;;  %v1048_v48 = vpop.f32.mrb[3].mxu0  ;;  %1443 = vst [vmem:[%s4208_s3 + $0x1a0] sm:$0xff] %v1343_v40  ;;  %v1345_v49 = vadd.f32 %v1176_v46, %v666_v36  ;;  %v1178_v50 = vpop.f32.mrb[3].mxu1  ;;  %v624_v37 = vld [vmem:[%s4208_s3 + $0x60] sm:$0xff]  ;;  %v677_v40 = vld [vmem:[%s4208_s3 + $0x208] sm:$0xff] }
 0x16b   : > { %1392 = vst [vmem:[%s4208_s3 + $0x8] sm:$0xff] %v1292_v43  ;;  %v1294_v51 = vadd.f32 %v1048_v48, %v615_v39  ;;  %1444 = vst [vmem:[%s4208_s3 + $0x1a8] sm:$0xff] %v1344_v45  ;;  %v1346_v52 = vadd.f32 %v1178_v50, %v667_v42  ;;  %v625_v39 = vld [vmem:[%s4208_s3 + $0x68] sm:$0xff]  ;;  %v626_v42 = vld [vmem:[%s4208_s3 + $0x70] sm:$0xff] }
 0x16c   : > { %1393 = vst [vmem:[%s4208_s3 + $0x10] sm:$0xff] %v1293_v47  ;;  %1445 = vst [vmem:[%s4208_s3 + $0x1b0] sm:$0xff] %v1345_v49  ;;  %v678_v44 = vld [vmem:[%s4208_s3 + $0x210] sm:$0xff]  ;;  %v627_v47 = vld [vmem:[%s4208_s3 + $0x78] sm:$0xff] }
 0x16d   : > { %1394 = vst [vmem:[%s4208_s3 + $0x18] sm:$0xff] %v1294_v51  ;;  %1446 = vst [vmem:[%s4208_s3 + $0x1b8] sm:$0xff] %v1346_v52  ;;  %v679_v50 = vld [vmem:[%s4208_s3 + $0x218] sm:$0xff] }
 0x16f   : > { %v1052_v57 = vpop.f32.mrb[4].mxu0  ;;  %v1182_v59 = vpop.f32.mrb[4].mxu1 }
 0x170   : > { %v1295_v61 = vadd.f32 %v1052_v57, %v616_v53  ;;  %v1054_v62 = vpop.f32.mrb[5].mxu0  ;;  %v1347_v0 = vadd.f32 %v1182_v59, %v668_v54  ;;  %v1184_v1 = vpop.f32.mrb[5].mxu1 }
 0x171   : > { %v1296_v3 = vadd.f32 %v1054_v62, %v617_v55  ;;  %v1056_v4 = vpop.f32.mrb[6].mxu0  ;;  %v1348_v5 = vadd.f32 %v1184_v1, %v669_v56  ;;  %v1186_v6 = vpop.f32.mrb[6].mxu1  ;;  %v680_v62 = vld [vmem:[%s4208_s3 + $0x220] sm:$0xff] }
 0x172   : > { %1395 = vst [vmem:[%s4208_s3 + $0x20] sm:$0xff] %v1295_v61  ;;  %v1297_v7 = vadd.f32 %v1056_v4, %v618_v58  ;;  %v1058_v8 = vpop.f32.mrb[7].mxu0  ;;  %1447 = vst [vmem:[%s4208_s3 + $0x1c0] sm:$0xff] %v1347_v0  ;;  %v1349_v9 = vadd.f32 %v1186_v6, %v670_v60  ;;  %v1188_v10 = vpop.f32.mrb[7].mxu1  ;;  %v628_v61 = vld [vmem:[%s4208_s3 + $0x80] sm:$0xff]  ;;  %v681_v0 = vld [vmem:[%s4208_s3 + $0x228] sm:$0xff] }
 0x173   : > { %1396 = vst [vmem:[%s4208_s3 + $0x28] sm:$0xff] %v1296_v3  ;;  %v1298_v11 = vadd.f32 %v1058_v8, %v619_v63  ;;  %1448 = vst [vmem:[%s4208_s3 + $0x1c8] sm:$0xff] %v1348_v5  ;;  %v1350_v12 = vadd.f32 %v1188_v10, %v671_v2  ;;  %v629_v63 = vld [vmem:[%s4208_s3 + $0x88] sm:$0xff]  ;;  %v630_v2 = vld [vmem:[%s4208_s3 + $0x90] sm:$0xff] }
 0x174   : > { %1397 = vst [vmem:[%s4208_s3 + $0x30] sm:$0xff] %v1297_v7  ;;  %1449 = vst [vmem:[%s4208_s3 + $0x1d0] sm:$0xff] %v1349_v9  ;;  %v682_v4 = vld [vmem:[%s4208_s3 + $0x230] sm:$0xff]  ;;  %v631_v7 = vld [vmem:[%s4208_s3 + $0x98] sm:$0xff] }
 0x175   : > { %1398 = vst [vmem:[%s4208_s3 + $0x38] sm:$0xff] %v1298_v11  ;;  %1450 = vst [vmem:[%s4208_s3 + $0x1d8] sm:$0xff] %v1350_v12  ;;  %v683_v10 = vld [vmem:[%s4208_s3 + $0x238] sm:$0xff] }
 0x177   : > { %v1062_v17 = vpop.f32.mrb[8].mxu0  ;;  %v1192_v19 = vpop.f32.mrb[8].mxu1 }
 0x178   : > { %v1299_v21 = vadd.f32 %v1062_v17, %v620_v13  ;;  %v1064_v22 = vpop.f32.mrb[9].mxu0  ;;  %v1351_v24 = vadd.f32 %v1192_v19, %v672_v14  ;;  %v1194_v25 = vpop.f32.mrb[9].mxu1 }
 0x179   : > { %v1300_v27 = vadd.f32 %v1064_v22, %v621_v15  ;;  %v1066_v28 = vpop.f32.mrb[10].mxu0  ;;  %v1352_v29 = vadd.f32 %v1194_v25, %v673_v16  ;;  %v1196_v30 = vpop.f32.mrb[10].mxu1  ;;  %v684_v22 = vld [vmem:[%s4208_s3 + $0x240] sm:$0xff] }
 0x17a   : > { %1399 = vst [vmem:[%s4208_s3 + $0x40] sm:$0xff] %v1299_v21  ;;  %v1301_v31 = vadd.f32 %v1066_v28, %v622_v18  ;;  %v1068_v32 = vpop.f32.mrb[11].mxu0  ;;  %1451 = vst [vmem:[%s4208_s3 + $0x1e0] sm:$0xff] %v1351_v24  ;;  %v1353_v33 = vadd.f32 %v1196_v30, %v674_v20  ;;  %v1198_v34 = vpop.f32.mrb[11].mxu1  ;;  %v632_v21 = vld [vmem:[%s4208_s3 + $0xa0] sm:$0xff]  ;;  %v685_v24 = vld [vmem:[%s4208_s3 + $0x248] sm:$0xff] }
 0x17b   : > { %1400 = vst [vmem:[%s4208_s3 + $0x48] sm:$0xff] %v1300_v27  ;;  %v1302_v35 = vadd.f32 %v1068_v32, %v623_v23  ;;  %1452 = vst [vmem:[%s4208_s3 + $0x1e8] sm:$0xff] %v1352_v29  ;;  %v1354_v36 = vadd.f32 %v1198_v34, %v675_v26  ;;  %v633_v23 = vld [vmem:[%s4208_s3 + $0xa8] sm:$0xff]  ;;  %v634_v26 = vld [vmem:[%s4208_s3 + $0xb0] sm:$0xff] }
 0x17c   : > { %1401 = vst [vmem:[%s4208_s3 + $0x50] sm:$0xff] %v1301_v31  ;;  %1453 = vst [vmem:[%s4208_s3 + $0x1f0] sm:$0xff] %v1353_v33  ;;  %v686_v28 = vld [vmem:[%s4208_s3 + $0x250] sm:$0xff]  ;;  %v635_v31 = vld [vmem:[%s4208_s3 + $0xb8] sm:$0xff] }
 0x17d   : > { %1402 = vst [vmem:[%s4208_s3 + $0x58] sm:$0xff] %v1302_v35  ;;  %1454 = vst [vmem:[%s4208_s3 + $0x1f8] sm:$0xff] %v1354_v36  ;;  %v687_v34 = vld [vmem:[%s4208_s3 + $0x258] sm:$0xff] }
 0x17f   : > { %v1072_v41 = vpop.f32.mrb[12].mxu0  ;;  %v1202_v43 = vpop.f32.mrb[12].mxu1 }
 0x180   : > { %v1303_v45 = vadd.f32 %v1072_v41, %v624_v37  ;;  %v1074_v46 = vpop.f32.mrb[13].mxu0  ;;  %v1355_v48 = vadd.f32 %v1202_v43, %v676_v38  ;;  %v1204_v49 = vpop.f32.mrb[13].mxu1 }
 0x181   : > { %v1304_v51 = vadd.f32 %v1074_v46, %v625_v39  ;;  %v1076_v52 = vpop.f32.mrb[14].mxu0  ;;  %v1356_v53 = vadd.f32 %v1204_v49, %v677_v40  ;;  %v1206_v54 = vpop.f32.mrb[14].mxu1  ;;  %v688_v46 = vld [vmem:[%s4208_s3 + $0x260] sm:$0xff] }
 0x182   : > { %1403 = vst [vmem:[%s4208_s3 + $0x60] sm:$0xff] %v1303_v45  ;;  %v1305_v55 = vadd.f32 %v1076_v52, %v626_v42  ;;  %v1078_v56 = vpop.f32.mrb[15].mxu0  ;;  %1455 = vst [vmem:[%s4208_s3 + $0x200] sm:$0xff] %v1355_v48  ;;  %v1357_v57 = vadd.f32 %v1206_v54, %v678_v44  ;;  %v1208_v58 = vpop.f32.mrb[15].mxu1  ;;  %v636_v45 = vld [vmem:[%s4208_s3 + $0xc0] sm:$0xff]  ;;  %v689_v48 = vld [vmem:[%s4208_s3 + $0x268] sm:$0xff] }
 0x183   : > { %1404 = vst [vmem:[%s4208_s3 + $0x68] sm:$0xff] %v1304_v51  ;;  %v1306_v59 = vadd.f32 %v1078_v56, %v627_v47  ;;  %1456 = vst [vmem:[%s4208_s3 + $0x208] sm:$0xff] %v1356_v53  ;;  %v1358_v60 = vadd.f32 %v1208_v58, %v679_v50  ;;  %v637_v47 = vld [vmem:[%s4208_s3 + $0xc8] sm:$0xff]  ;;  %v638_v50 = vld [vmem:[%s4208_s3 + $0xd0] sm:$0xff] }
 0x184   : > { %1405 = vst [vmem:[%s4208_s3 + $0x70] sm:$0xff] %v1305_v55  ;;  %1457 = vst [vmem:[%s4208_s3 + $0x210] sm:$0xff] %v1357_v57  ;;  %v690_v52 = vld [vmem:[%s4208_s3 + $0x270] sm:$0xff]  ;;  %v639_v55 = vld [vmem:[%s4208_s3 + $0xd8] sm:$0xff] }
 0x185   : > { %1406 = vst [vmem:[%s4208_s3 + $0x78] sm:$0xff] %v1306_v59  ;;  %1458 = vst [vmem:[%s4208_s3 + $0x218] sm:$0xff] %v1358_v60  ;;  %v691_v58 = vld [vmem:[%s4208_s3 + $0x278] sm:$0xff] }
 0x187   : > { %v1082_v1 = vpop.f32.mrb[16].mxu0  ;;  %v1212_v3 = vpop.f32.mrb[16].mxu1 }
 0x188   : > { %v1307_v5 = vadd.f32 %v1082_v1, %v628_v61  ;;  %v1084_v6 = vpop.f32.mrb[17].mxu0  ;;  %v1359_v8 = vadd.f32 %v1212_v3, %v680_v62  ;;  %v1214_v9 = vpop.f32.mrb[17].mxu1 }
 0x189   : > { %v1308_v11 = vadd.f32 %v1084_v6, %v629_v63  ;;  %v1086_v12 = vpop.f32.mrb[18].mxu0  ;;  %v1360_v13 = vadd.f32 %v1214_v9, %v681_v0  ;;  %v1216_v14 = vpop.f32.mrb[18].mxu1  ;;  %v692_v6 = vld [vmem:[%s4208_s3 + $0x280] sm:$0xff] }
 0x18a   : > { %1407 = vst [vmem:[%s4208_s3 + $0x80] sm:$0xff] %v1307_v5  ;;  %v1309_v15 = vadd.f32 %v1086_v12, %v630_v2  ;;  %v1088_v16 = vpop.f32.mrb[19].mxu0  ;;  %1459 = vst [vmem:[%s4208_s3 + $0x220] sm:$0xff] %v1359_v8  ;;  %v1361_v17 = vadd.f32 %v1216_v14, %v682_v4  ;;  %v1218_v18 = vpop.f32.mrb[19].mxu1  ;;  %v640_v5 = vld [vmem:[%s4208_s3 + $0xe0] sm:$0xff]  ;;  %v693_v8 = vld [vmem:[%s4208_s3 + $0x288] sm:$0xff] }
 0x18b   : > { %1408 = vst [vmem:[%s4208_s3 + $0x88] sm:$0xff] %v1308_v11  ;;  %v1310_v19 = vadd.f32 %v1088_v16, %v631_v7  ;;  %1460 = vst [vmem:[%s4208_s3 + $0x228] sm:$0xff] %v1360_v13  ;;  %v1362_v20 = vadd.f32 %v1218_v18, %v683_v10  ;;  %v641_v7 = vld [vmem:[%s4208_s3 + $0xe8] sm:$0xff]  ;;  %v642_v10 = vld [vmem:[%s4208_s3 + $0xf0] sm:$0xff] }
 0x18c   : > { %1409 = vst [vmem:[%s4208_s3 + $0x90] sm:$0xff] %v1309_v15  ;;  %1461 = vst [vmem:[%s4208_s3 + $0x230] sm:$0xff] %v1361_v17  ;;  %v694_v12 = vld [vmem:[%s4208_s3 + $0x290] sm:$0xff]  ;;  %v643_v15 = vld [vmem:[%s4208_s3 + $0xf8] sm:$0xff] }
 0x18d   : > { %1410 = vst [vmem:[%s4208_s3 + $0x98] sm:$0xff] %v1310_v19  ;;  %1462 = vst [vmem:[%s4208_s3 + $0x238] sm:$0xff] %v1362_v20  ;;  %v695_v18 = vld [vmem:[%s4208_s3 + $0x298] sm:$0xff] }
 0x18f   : > { %v1092_v25 = vpop.f32.mrb[20].mxu0  ;;  %v1222_v27 = vpop.f32.mrb[20].mxu1 }
 0x190   : > { %v1311_v29 = vadd.f32 %v1092_v25, %v632_v21  ;;  %v1094_v30 = vpop.f32.mrb[21].mxu0  ;;  %v1363_v32 = vadd.f32 %v1222_v27, %v684_v22  ;;  %v1224_v33 = vpop.f32.mrb[21].mxu1 }
 0x191   : > { %v1312_v35 = vadd.f32 %v1094_v30, %v633_v23  ;;  %v1096_v36 = vpop.f32.mrb[22].mxu0  ;;  %v1364_v37 = vadd.f32 %v1224_v33, %v685_v24  ;;  %v1226_v38 = vpop.f32.mrb[22].mxu1  ;;  %v696_v30 = vld [vmem:[%s4208_s3 + $0x2a0] sm:$0xff] }
 0x192   : > { %1411 = vst [vmem:[%s4208_s3 + $0xa0] sm:$0xff] %v1311_v29  ;;  %v1313_v39 = vadd.f32 %v1096_v36, %v634_v26  ;;  %v1098_v40 = vpop.f32.mrb[23].mxu0  ;;  %1463 = vst [vmem:[%s4208_s3 + $0x240] sm:$0xff] %v1363_v32  ;;  %v1365_v41 = vadd.f32 %v1226_v38, %v686_v28  ;;  %v1228_v42 = vpop.f32.mrb[23].mxu1  ;;  %v644_v29 = vld [vmem:[%s4208_s3 + $0x100] sm:$0xff]  ;;  %v697_v32 = vld [vmem:[%s4208_s3 + $0x2a8] sm:$0xff] }
 0x193   : > { %1412 = vst [vmem:[%s4208_s3 + $0xa8] sm:$0xff] %v1312_v35  ;;  %v1314_v43 = vadd.f32 %v1098_v40, %v635_v31  ;;  %1464 = vst [vmem:[%s4208_s3 + $0x248] sm:$0xff] %v1364_v37  ;;  %v1366_v44 = vadd.f32 %v1228_v42, %v687_v34  ;;  %v645_v31 = vld [vmem:[%s4208_s3 + $0x108] sm:$0xff]  ;;  %v646_v34 = vld [vmem:[%s4208_s3 + $0x110] sm:$0xff] }
 0x194   : > { %1413 = vst [vmem:[%s4208_s3 + $0xb0] sm:$0xff] %v1313_v39  ;;  %1465 = vst [vmem:[%s4208_s3 + $0x250] sm:$0xff] %v1365_v41  ;;  %v698_v36 = vld [vmem:[%s4208_s3 + $0x2b0] sm:$0xff]  ;;  %v647_v39 = vld [vmem:[%s4208_s3 + $0x118] sm:$0xff] }
 0x195   : > { %1414 = vst [vmem:[%s4208_s3 + $0xb8] sm:$0xff] %v1314_v43  ;;  %1466 = vst [vmem:[%s4208_s3 + $0x258] sm:$0xff] %v1366_v44  ;;  %v699_v42 = vld [vmem:[%s4208_s3 + $0x2b8] sm:$0xff] }
 0x197   : > { %v1102_v49 = vpop.f32.mrb[24].mxu0  ;;  %v1232_v51 = vpop.f32.mrb[24].mxu1 }
 0x198   : > { %v1315_v53 = vadd.f32 %v1102_v49, %v636_v45  ;;  %v1104_v54 = vpop.f32.mrb[25].mxu0  ;;  %v1367_v56 = vadd.f32 %v1232_v51, %v688_v46  ;;  %v1234_v57 = vpop.f32.mrb[25].mxu1 }
 0x199   : > { %v1316_v59 = vadd.f32 %v1104_v54, %v637_v47  ;;  %v1106_v60 = vpop.f32.mrb[26].mxu0  ;;  %v1368_v61 = vadd.f32 %v1234_v57, %v689_v48  ;;  %v1236_v62 = vpop.f32.mrb[26].mxu1  ;;  %v700_v54 = vld [vmem:[%s4208_s3 + $0x2c0] sm:$0xff] }
 0x19a   : > { %1415 = vst [vmem:[%s4208_s3 + $0xc0] sm:$0xff] %v1315_v53  ;;  %v1317_v63 = vadd.f32 %v1106_v60, %v638_v50  ;;  %v1108_v0 = vpop.f32.mrb[27].mxu0  ;;  %1467 = vst [vmem:[%s4208_s3 + $0x260] sm:$0xff] %v1367_v56  ;;  %v1369_v1 = vadd.f32 %v1236_v62, %v690_v52  ;;  %v1238_v2 = vpop.f32.mrb[27].mxu1  ;;  %v648_v53 = vld [vmem:[%s4208_s3 + $0x120] sm:$0xff]  ;;  %v701_v56 = vld [vmem:[%s4208_s3 + $0x2c8] sm:$0xff] }
 0x19b   : > { %1416 = vst [vmem:[%s4208_s3 + $0xc8] sm:$0xff] %v1316_v59  ;;  %v1318_v3 = vadd.f32 %v1108_v0, %v639_v55  ;;  %1468 = vst [vmem:[%s4208_s3 + $0x268] sm:$0xff] %v1368_v61  ;;  %v1370_v4 = vadd.f32 %v1238_v2, %v691_v58  ;;  %v649_v55 = vld [vmem:[%s4208_s3 + $0x128] sm:$0xff]  ;;  %v650_v58 = vld [vmem:[%s4208_s3 + $0x130] sm:$0xff] }
 0x19c   : > { %1417 = vst [vmem:[%s4208_s3 + $0xd0] sm:$0xff] %v1317_v63  ;;  %1469 = vst [vmem:[%s4208_s3 + $0x270] sm:$0xff] %v1369_v1  ;;  %v702_v60 = vld [vmem:[%s4208_s3 + $0x2d0] sm:$0xff]  ;;  %v651_v63 = vld [vmem:[%s4208_s3 + $0x138] sm:$0xff] }
 0x19d   : > { %1418 = vst [vmem:[%s4208_s3 + $0xd8] sm:$0xff] %v1318_v3  ;;  %1470 = vst [vmem:[%s4208_s3 + $0x278] sm:$0xff] %v1370_v4  ;;  %v703_v2 = vld [vmem:[%s4208_s3 + $0x2d8] sm:$0xff] }
 0x19f   : > { %v1112_v9 = vpop.f32.mrb[28].mxu0  ;;  %v1242_v11 = vpop.f32.mrb[28].mxu1 }
 0x1a0   : > { %v1319_v13 = vadd.f32 %v1112_v9, %v640_v5  ;;  %v1114_v14 = vpop.f32.mrb[29].mxu0  ;;  %v1371_v16 = vadd.f32 %v1242_v11, %v692_v6  ;;  %v1244_v17 = vpop.f32.mrb[29].mxu1 }
 0x1a1   : > { %v1320_v19 = vadd.f32 %v1114_v14, %v641_v7  ;;  %v1116_v20 = vpop.f32.mrb[30].mxu0  ;;  %v1372_v21 = vadd.f32 %v1244_v17, %v693_v8  ;;  %v1246_v22 = vpop.f32.mrb[30].mxu1  ;;  %v704_v14 = vld [vmem:[%s4208_s3 + $0x2e0] sm:$0xff] }
 0x1a2   : > { %1419 = vst [vmem:[%s4208_s3 + $0xe0] sm:$0xff] %v1319_v13  ;;  %v1321_v23 = vadd.f32 %v1116_v20, %v642_v10  ;;  %v1118_v24 = vpop.f32.mrb[31].mxu0  ;;  %1471 = vst [vmem:[%s4208_s3 + $0x280] sm:$0xff] %v1371_v16  ;;  %v1373_v25 = vadd.f32 %v1246_v22, %v694_v12  ;;  %v1248_v26 = vpop.f32.mrb[31].mxu1  ;;  %v652_v13 = vld [vmem:[%s4208_s3 + $0x140] sm:$0xff]  ;;  %v705_v16 = vld [vmem:[%s4208_s3 + $0x2e8] sm:$0xff] }
 0x1a3   : > { %1420 = vst [vmem:[%s4208_s3 + $0xe8] sm:$0xff] %v1320_v19  ;;  %v1322_v27 = vadd.f32 %v1118_v24, %v643_v15  ;;  %1472 = vst [vmem:[%s4208_s3 + $0x288] sm:$0xff] %v1372_v21  ;;  %v1374_v28 = vadd.f32 %v1248_v26, %v695_v18  ;;  %v653_v15 = vld [vmem:[%s4208_s3 + $0x148] sm:$0xff]  ;;  %v654_v18 = vld [vmem:[%s4208_s3 + $0x150] sm:$0xff] }
 0x1a4   : > { %1421 = vst [vmem:[%s4208_s3 + $0xf0] sm:$0xff] %v1321_v23  ;;  %1473 = vst [vmem:[%s4208_s3 + $0x290] sm:$0xff] %v1373_v25  ;;  %v706_v20 = vld [vmem:[%s4208_s3 + $0x2f0] sm:$0xff]  ;;  %v655_v23 = vld [vmem:[%s4208_s3 + $0x158] sm:$0xff] }
 0x1a5   : > { %1422 = vst [vmem:[%s4208_s3 + $0xf8] sm:$0xff] %v1322_v27  ;;  %1474 = vst [vmem:[%s4208_s3 + $0x298] sm:$0xff] %v1374_v28  ;;  %v707_v26 = vld [vmem:[%s4208_s3 + $0x2f8] sm:$0xff] }
 0x1a7   : > { %v1122_v33 = vpop.f32.mrb[32].mxu0  ;;  %v1252_v35 = vpop.f32.mrb[32].mxu1 }
 0x1a8   : > { %v1323_v37 = vadd.f32 %v1122_v33, %v644_v29  ;;  %v1124_v38 = vpop.f32.mrb[33].mxu0  ;;  %v1375_v40 = vadd.f32 %v1252_v35, %v696_v30  ;;  %v1254_v41 = vpop.f32.mrb[33].mxu1 }
 0x1a9   : > { %v1324_v43 = vadd.f32 %v1124_v38, %v645_v31  ;;  %v1126_v44 = vpop.f32.mrb[34].mxu0  ;;  %v1376_v45 = vadd.f32 %v1254_v41, %v697_v32  ;;  %v1256_v46 = vpop.f32.mrb[34].mxu1  ;;  %v708_v38 = vld [vmem:[%s4208_s3 + $0x300] sm:$0xff] }
 0x1aa   : > { %1423 = vst [vmem:[%s4208_s3 + $0x100] sm:$0xff] %v1323_v37  ;;  %v1325_v47 = vadd.f32 %v1126_v44, %v646_v34  ;;  %v1128_v48 = vpop.f32.mrb[35].mxu0  ;;  %1475 = vst [vmem:[%s4208_s3 + $0x2a0] sm:$0xff] %v1375_v40  ;;  %v1377_v49 = vadd.f32 %v1256_v46, %v698_v36  ;;  %v1258_v50 = vpop.f32.mrb[35].mxu1  ;;  %v656_v37 = vld [vmem:[%s4208_s3 + $0x160] sm:$0xff]  ;;  %v709_v40 = vld [vmem:[%s4208_s3 + $0x308] sm:$0xff] }
 0x1ab   : > { %1424 = vst [vmem:[%s4208_s3 + $0x108] sm:$0xff] %v1324_v43  ;;  %v1326_v51 = vadd.f32 %v1128_v48, %v647_v39  ;;  %1476 = vst [vmem:[%s4208_s3 + $0x2a8] sm:$0xff] %v1376_v45  ;;  %v1378_v52 = vadd.f32 %v1258_v50, %v699_v42  ;;  %v657_v39 = vld [vmem:[%s4208_s3 + $0x168] sm:$0xff]  ;;  %v658_v42 = vld [vmem:[%s4208_s3 + $0x170] sm:$0xff] }
 0x1ac   : > { %1425 = vst [vmem:[%s4208_s3 + $0x110] sm:$0xff] %v1325_v47  ;;  %1477 = vst [vmem:[%s4208_s3 + $0x2b0] sm:$0xff] %v1377_v49  ;;  %v710_v44 = vld [vmem:[%s4208_s3 + $0x310] sm:$0xff]  ;;  %v659_v47 = vld [vmem:[%s4208_s3 + $0x178] sm:$0xff] }
 0x1ad   : > { %1426 = vst [vmem:[%s4208_s3 + $0x118] sm:$0xff] %v1326_v51  ;;  %1478 = vst [vmem:[%s4208_s3 + $0x2b8] sm:$0xff] %v1378_v52  ;;  %v711_v50 = vld [vmem:[%s4208_s3 + $0x318] sm:$0xff] }
 0x1af   : > { %v1132_v57 = vpop.f32.mrb[36].mxu0  ;;  %v1262_v59 = vpop.f32.mrb[36].mxu1 }
 0x1b0   : > { %v1327_v61 = vadd.f32 %v1132_v57, %v648_v53  ;;  %v1134_v62 = vpop.f32.mrb[37].mxu0  ;;  %v1379_v0 = vadd.f32 %v1262_v59, %v700_v54  ;;  %v1264_v1 = vpop.f32.mrb[37].mxu1 }
 0x1b1   : > { %v1328_v3 = vadd.f32 %v1134_v62, %v649_v55  ;;  %v1136_v4 = vpop.f32.mrb[38].mxu0  ;;  %v1380_v5 = vadd.f32 %v1264_v1, %v701_v56  ;;  %v1266_v6 = vpop.f32.mrb[38].mxu1  ;;  %v661_v62 = vld [vmem:[%s4208_s3 + $0x188] sm:$0xff] }
 0x1b2   : > { %1427 = vst [vmem:[%s4208_s3 + $0x120] sm:$0xff] %v1327_v61  ;;  %v1329_v7 = vadd.f32 %v1136_v4, %v650_v58  ;;  %v1138_v8 = vpop.f32.mrb[39].mxu0  ;;  %1479 = vst [vmem:[%s4208_s3 + $0x2c0] sm:$0xff] %v1379_v0  ;;  %v1381_v9 = vadd.f32 %v1266_v6, %v702_v60  ;;  %v1268_v10 = vpop.f32.mrb[39].mxu1  ;;  %v660_v61 = vld [vmem:[%s4208_s3 + $0x180] sm:$0xff]  ;;  %v662_v0 = vld [vmem:[%s4208_s3 + $0x190] sm:$0xff] }
 0x1b3   : > { %1428 = vst [vmem:[%s4208_s3 + $0x128] sm:$0xff] %v1328_v3  ;;  %v1330_v11 = vadd.f32 %v1138_v8, %v651_v63  ;;  %1480 = vst [vmem:[%s4208_s3 + $0x2c8] sm:$0xff] %v1380_v5  ;;  %v1382_v12 = vadd.f32 %v1268_v10, %v703_v2  ;;  %v663_v3 = vld [vmem:[%s4208_s3 + $0x198] sm:$0xff] }
 0x1b4   : > { %1429 = vst [vmem:[%s4208_s3 + $0x130] sm:$0xff] %v1329_v7  ;;  %1481 = vst [vmem:[%s4208_s3 + $0x2d0] sm:$0xff] %v1381_v9  ;;  %v1597_v9 = vlaneseq (!%p2080_p11) }
 0x1b5   : > { %1430 = vst [vmem:[%s4208_s3 + $0x138] sm:$0xff] %v1330_v11  ;;  %1482 = vst [vmem:[%s4208_s3 + $0x2d8] sm:$0xff] %v1382_v12  ;;  %v1595_v11 = vld [vmem:[%s4207_s2] sm:$0x3] (!%p2080_p11) }
 0x1b6   : > { %v1598_v10 = vshrl.u32 (!%p2080_p11), %v1597_v9, 7  ;;  %v1495_v12 = vld [vmem:[%s4208_s3] sm:$0xff] (!%p2080_p11) }
 0x1b7   : > { %v1142_v17 = vpop.f32.mrb[40].mxu0  ;;  %v1272_v19 = vpop.f32.mrb[40].mxu1 }
 0x1b8   : > { %v1331_v21 = vadd.f32 %v1142_v17, %v652_v13  ;;  %v1144_v22 = vpop.f32.mrb[41].mxu0  ;;  %v1383_v24 = vadd.f32 %v1272_v19, %v704_v14  ;;  %v1274_v25 = vpop.f32.mrb[41].mxu1  ;;  %v1599_v13 = vsub.s32 (!%p2080_p11), 0, %v1598_v10  ;;  %v1496_v14 = vld [vmem:[%s4208_s3 + $0x8] sm:$0xff] (!%p2080_p11)  ;;  %v1498_v17 = vld [vmem:[%s4208_s3 + $0x18] sm:$0xff] (!%p2080_p11) }
 0x1b9   : > { %v1332_v27 = vadd.f32 %v1144_v22, %v653_v15  ;;  %v1146_v28 = vpop.f32.mrb[42].mxu0  ;;  %v1384_v29 = vadd.f32 %v1274_v25, %v705_v16  ;;  %v1276_v30 = vpop.f32.mrb[42].mxu1  ;;  %v1603_v15 = vsub.s32 (!%p2080_p11), 1, %v1598_v10  ;;  %v1497_v16 = vld [vmem:[%s4208_s3 + $0x10] sm:$0xff] (!%p2080_p11) }
 0x1ba   : > { %1431 = vst [vmem:[%s4208_s3 + $0x140] sm:$0xff] %v1331_v21  ;;  %v1333_v31 = vadd.f32 %v1146_v28, %v654_v18  ;;  %v1148_v32 = vpop.f32.mrb[43].mxu0  ;;  %1483 = vst [vmem:[%s4208_s3 + $0x2e0] sm:$0xff] %v1383_v24  ;;  %v1385_v33 = vadd.f32 %v1276_v30, %v706_v20  ;;  %v1278_v34 = vpop.f32.mrb[43].mxu1  ;;  %v1499_v18 = vld [vmem:[%s4208_s3 + $0x20] sm:$0xff] (!%p2080_p11)  ;;  %v3501_v19 = vrot.slane (!%p2080_p11), %v1595_v11, %v1599_v13  ;;  %v1500_v21 = vld [vmem:[%s4208_s3 + $0x28] sm:$0xff] (!%p2080_p11) }
 0x1bb   : > { %1432 = vst [vmem:[%s4208_s3 + $0x148] sm:$0xff] %v1332_v27  ;;  %v1334_v35 = vadd.f32 %v1148_v32, %v655_v23  ;;  %1484 = vst [vmem:[%s4208_s3 + $0x2e8] sm:$0xff] %v1384_v29  ;;  %v1386_v36 = vadd.f32 %v1278_v34, %v707_v26  ;;  %v3503_v20 = vrot.slane (!%p2080_p11), %v1595_v11, %v1603_v15  ;;  %v1501_v22 = vld [vmem:[%s4208_s3 + $0x30] sm:$0xff] (!%p2080_p11)  ;;  %v1502_v23 = vld [vmem:[%s4208_s3 + $0x38] sm:$0xff] (!%p2080_p11) }
 0x1bc   : > { %1433 = vst [vmem:[%s4208_s3 + $0x150] sm:$0xff] %v1333_v31  ;;  %1485 = vst [vmem:[%s4208_s3 + $0x2f0] sm:$0xff] %v1385_v33  ;;  %v1607_v24 = vadd.f32 (!%p2080_p11), %v3501_v19, %v1495_v12  ;;  %v1609_v26 = vadd.f32 (!%p2080_p11), %v3501_v19, %v1497_v16  ;;  %v1503_v28 = vld [vmem:[%s4208_s3 + $0x40] sm:$0xff] (!%p2080_p11)  ;;  %v1504_v29 = vld [vmem:[%s4208_s3 + $0x48] sm:$0xff] (!%p2080_p11)  ;;  %v1611_v31 = vadd.f32 (!%p2080_p11), %v3501_v19, %v1499_v18 }
 0x1bd   : > { %1434 = vst [vmem:[%s4208_s3 + $0x158] sm:$0xff] %v1334_v35  ;;  %1486 = vst [vmem:[%s4208_s3 + $0x2f8] sm:$0xff] %v1386_v36  ;;  %v1608_v25 = vadd.f32 (!%p2080_p11), %v3503_v20, %v1496_v14  ;;  %v1610_v27 = vadd.f32 (!%p2080_p11), %v3503_v20, %v1498_v17  ;;  %v1505_v30 = vld [vmem:[%s4208_s3 + $0x50] sm:$0xff] (!%p2080_p11)  ;;  %v1612_v32 = vadd.f32 (!%p2080_p11), %v3503_v20, %v1500_v21  ;;  %v1506_v35 = vld [vmem:[%s4208_s3 + $0x58] sm:$0xff] (!%p2080_p11) }
 0x1be   : > { %v1613_v33 = vadd.f32 (!%p2080_p11), %v3501_v19, %v1501_v22  ;;  %v1614_v34 = vadd.f32 (!%p2080_p11), %v3503_v20, %v1502_v23  ;;  %v1507_v36 = vld [vmem:[%s4208_s3 + $0x60] sm:$0xff] (!%p2080_p11)  ;;  %v1520_v13 = vld [vmem:[%s4208_s3 + $0xc8] sm:$0xff] (!%p2080_p11)  ;;  %v1521_v14 = vld [vmem:[%s4208_s3 + $0xd0] sm:$0xff] (!%p2080_p11) }
 0x1bf   : > { %v1152_v41 = vpop.f32.mrb[44].mxu0  ;;  %v1282_v43 = vpop.f32.mrb[44].mxu1  ;;  %v1519_v12 = vld [vmem:[%s4208_s3 + $0xc0] sm:$0xff] (!%p2080_p11)  ;;  %v1522_v21 = vld [vmem:[%s4208_s3 + $0xd8] sm:$0xff] (!%p2080_p11)  ;;  %v1524_v23 = vld [vmem:[%s4208_s3 + $0xe8] sm:$0xff] (!%p2080_p11) }
 0x1c0   : > { %v1335_v45 = vadd.f32 %v1152_v41, %v656_v37  ;;  %v1154_v46 = vpop.f32.mrb[45].mxu0  ;;  %v1387_v48 = vadd.f32 %v1282_v43, %v708_v38  ;;  %v1284_v49 = vpop.f32.mrb[45].mxu1  ;;  %v1508_v37 = vld [vmem:[%s4208_s3 + $0x68] sm:$0xff] (!%p2080_p11)  ;;  %v1707_v38 = vmax.f32 (!%p2080_p11), %v1607_v24, 0.0  ;;  %v1710_v41 = vmax.f32 (!%p2080_p11), %v1610_v27, 0.0  ;;  %v1510_v43 = vld [vmem:[%s4208_s3 + $0x78] sm:$0xff] (!%p2080_p11) }
 0x1c1   : > { %v1336_v51 = vadd.f32 %v1154_v46, %v657_v39  ;;  %v1156_v52 = vpop.f32.mrb[46].mxu0  ;;  %v1388_v53 = vadd.f32 %v1284_v49, %v709_v40  ;;  %v1286_v54 = vpop.f32.mrb[46].mxu1  ;;  %v1708_v39 = vmax.f32 (!%p2080_p11), %v1608_v25, 0.0  ;;  %v1709_v40 = vmax.f32 (!%p2080_p11), %v1609_v26, 0.0  ;;  %v1523_v22 = vld [vmem:[%s4208_s3 + $0xe0] sm:$0xff] (!%p2080_p11) }
 0x1c2   : > { %1435 = vst [vmem:[%s4208_s3 + $0x160] sm:$0xff] %v1335_v45  ;;  %v1337_v55 = vadd.f32 %v1156_v52, %v658_v42  ;;  %v1158_v56 = vpop.f32.mrb[47].mxu0  ;;  %1487 = vst [vmem:[%s4208_s3 + $0x300] sm:$0xff] %v1387_v48  ;;  %v1389_v57 = vadd.f32 %v1286_v54, %v710_v44  ;;  %v1288_v58 = vpop.f32.mrb[47].mxu1  ;;  %v1509_v42 = vld [vmem:[%s4208_s3 + $0x70] sm:$0xff] (!%p2080_p11)  ;;  %v1711_v44 = vmax.f32 (!%p2080_p11), %v1611_v31, 0.0  ;;  %v1615_v48 = vadd.f32 (!%p2080_p11), %v3501_v19, %v1503_v28 }
 0x1c3   : > { %1436 = vst [vmem:[%s4208_s3 + $0x168] sm:$0xff] %v1336_v51  ;;  %v1338_v59 = vadd.f32 %v1158_v56, %v659_v47  ;;  %1488 = vst [vmem:[%s4208_s3 + $0x308] sm:$0xff] %v1388_v53  ;;  %v1390_v60 = vadd.f32 %v1288_v58, %v711_v50  ;;  %v1712_v45 = vmax.f32 (!%p2080_p11), %v1612_v32, 0.0  ;;  %v1713_v46 = vmax.f32 (!%p2080_p11), %v1613_v33, 0.0  ;;  %v1511_v52 = vld [vmem:[%s4208_s3 + $0x80] sm:$0xff] (!%p2080_p11)  ;;  %v1512_v53 = vld [vmem:[%s4208_s3 + $0x88] sm:$0xff] (!%p2080_p11) }
 0x1c4   : > { %1437 = vst [vmem:[%s4208_s3 + $0x170] sm:$0xff] %v1337_v55  ;;  %1489 = vst [vmem:[%s4208_s3 + $0x310] sm:$0xff] %v1389_v57  ;;  %v1714_v47 = vmax.f32 (!%p2080_p11), %v1614_v34, 0.0  ;;  %v1616_v49 = vadd.f32 (!%p2080_p11), %v3503_v20, %v1504_v29  ;;  %v1617_v50 = vadd.f32 (!%p2080_p11), %v3501_v19, %v1505_v30  ;;  %v1618_v51 = vadd.f32 (!%p2080_p11), %v3503_v20, %v1506_v35  ;;  %v1513_v54 = vld [vmem:[%s4208_s3 + $0x90] sm:$0xff] (!%p2080_p11)  ;;  %v1526_v29 = vld [vmem:[%s4208_s3 + $0xf8] sm:$0xff] (!%p2080_p11) }
 0x1c5   : > { %1438 = vst [vmem:[%s4208_s3 + $0x178] sm:$0xff] %v1338_v59  ;;  %1490 = vst [vmem:[%s4208_s3 + $0x318] sm:$0xff] %v1390_v60  ;;  %v1619_v55 = vadd.f32 (!%p2080_p11), %v3501_v19, %v1507_v36  ;;  %v1620_v56 = vadd.f32 (!%p2080_p11), %v3503_v20, %v1508_v37  ;;  %v1621_v57 = vadd.f32 (!%p2080_p11), %v3501_v19, %v1509_v42  ;;  %v1514_v59 = vld [vmem:[%s4208_s3 + $0x98] sm:$0xff] (!%p2080_p11)  ;;  %v1515_v60 = vld [vmem:[%s4208_s3 + $0xa0] sm:$0xff] (!%p2080_p11) }
 0x1c6   : > { %1807 = vst [vmem:[%s4208_s3] sm:$0xff] (!%p2080_p11), %v1707_v38  ;;  %1808 = vst [vmem:[%s4208_s3 + $0x8] sm:$0xff] (!%p2080_p11), %v1708_v39  ;;  %v1622_v58 = vadd.f32 (!%p2080_p11), %v3503_v20, %v1510_v43  ;;  %v1624_v9 = vadd.f32 (!%p2080_p11), %v3503_v20, %v1512_v53  ;;  %v1625_v10 = vadd.f32 (!%p2080_p11), %v3501_v19, %v1513_v54  ;;  %v1525_v28 = vld [vmem:[%s4208_s3 + $0xf0] sm:$0xff] (!%p2080_p11)  ;;  %v1527_v38 = vld [vmem:[%s4208_s3 + $0x100] sm:$0xff] (!%p2080_p11) }
 0x1c7   : > { %v1162_v63 = vpop.f32.mrb[48].mxu0  ;;  %1494 = sbr.rel (%p2080_p11) target bundleno = 506 (0x1fa), region = 81  ;;  %1809 = vst [vmem:[%s4208_s3 + $0x10] sm:$0xff] (!%p2080_p11), %v1709_v40  ;;  %1810 = vst [vmem:[%s4208_s3 + $0x18] sm:$0xff] (!%p2080_p11), %v1710_v41  ;;  %v1626_v11 = vadd.f32 (!%p2080_p11), %v3503_v20, %v1514_v59  ;;  %v1627_v15 = vadd.f32 (!%p2080_p11), %v3501_v19, %v1515_v60  ;;  %v1631_v34 = vadd.f32 (!%p2080_p11), %v3501_v19, %v1519_v12  ;;  %v1528_v39 = vld [vmem:[%s4208_s3 + $0x108] sm:$0xff] (!%p2080_p11)  ;;  %v1529_v40 = vld [vmem:[%s4208_s3 + $0x110] sm:$0xff] (!%p2080_p11) }
 0x1c8   : > { %v1339_v1 = vadd.f32 %v1162_v63, %v660_v61  ;;  %v1164_v2 = vpop.f32.mrb[49].mxu0  ;;  %1811 = vst [vmem:[%s4208_s3 + $0x20] sm:$0xff] (!%p2080_p11), %v1711_v44  ;;  %1812 = vst [vmem:[%s4208_s3 + $0x28] sm:$0xff] (!%p2080_p11), %v1712_v45  ;;  %v1516_v61 = vld [vmem:[%s4208_s3 + $0xa8] sm:$0xff] (!%p2080_p11)  ;;  %v1716_v63 = vmax.f32 (!%p2080_p11), %v1616_v49, 0.0  ;;  %v1724_v25 = vmax.f32 (!%p2080_p11), %v1624_v9, 0.0  ;;  %v1632_v35 = vadd.f32 (!%p2080_p11), %v3503_v20, %v1520_v13 }
 0x1c9   : > { %v1340_v4 = vadd.f32 %v1164_v2, %v661_v62  ;;  %v1166_v5 = vpop.f32.mrb[50].mxu0  ;;  %1813 = vst [vmem:[%s4208_s3 + $0x30] sm:$0xff] (!%p2080_p11), %v1713_v46  ;;  %1814 = vst [vmem:[%s4208_s3 + $0x38] sm:$0xff] (!%p2080_p11), %v1714_v47  ;;  %v1715_v62 = vmax.f32 (!%p2080_p11), %v1615_v48, 0.0  ;;  %v1517_v2 = vld [vmem:[%s4208_s3 + $0xb0] sm:$0xff] (!%p2080_p11)  ;;  %v1628_v16 = vadd.f32 (!%p2080_p11), %v3503_v20, %v1516_v61  ;;  %v1725_v26 = vmax.f32 (!%p2080_p11), %v1625_v10, 0.0 }
 0x1ca   : > { %1439 = vst [vmem:[%s4208_s3 + $0x180] sm:$0xff] %v1339_v1  ;;  %v1341_v6 = vadd.f32 %v1166_v5, %v662_v0  ;;  %v1168_v7 = vpop.f32.mrb[51].mxu0  ;;  %v1717_v0 = vmax.f32 (!%p2080_p11), %v1617_v50, 0.0  ;;  %v1718_v1 = vmax.f32 (!%p2080_p11), %v1618_v51, 0.0  ;;  %v1720_v5 = vmax.f32 (!%p2080_p11), %v1620_v56, 0.0  ;;  %1816 = vst [vmem:[%s4208_s3 + $0x48] sm:$0xff] (!%p2080_p11), %v1716_v63 }
 0x1cb   : > { %1440 = vst [vmem:[%s4208_s3 + $0x188] sm:$0xff] %v1340_v4  ;;  %v1342_v8 = vadd.f32 %v1168_v7, %v663_v3  ;;  %v1518_v3 = vld [vmem:[%s4208_s3 + $0xb8] sm:$0xff] (!%p2080_p11)  ;;  %v1719_v4 = vmax.f32 (!%p2080_p11), %v1619_v55, 0.0  ;;  %v1722_v7 = vmax.f32 (!%p2080_p11), %v1622_v58, 0.0  ;;  %1815 = vst [vmem:[%s4208_s3 + $0x40] sm:$0xff] (!%p2080_p11), %v1715_v62  ;;  %v1629_v17 = vadd.f32 (!%p2080_p11), %v3501_v19, %v1517_v2  ;;  %v1531_v46 = vld [vmem:[%s4208_s3 + $0x120] sm:$0xff] (!%p2080_p11) }
 0x1cc   : > { %1441 = vst [vmem:[%s4208_s3 + $0x190] sm:$0xff] %v1341_v6  ;;  %v1721_v6 = vmax.f32 (!%p2080_p11), %v1621_v57, 0.0  ;;  %1817 = vst [vmem:[%s4208_s3 + $0x50] sm:$0xff] (!%p2080_p11), %v1717_v0  ;;  %v1630_v18 = vadd.f32 (!%p2080_p11), %v3503_v20, %v1518_v3  ;;  %v1726_v27 = vmax.f32 (!%p2080_p11), %v1626_v11, 0.0  ;;  %v1727_v30 = vmax.f32 (!%p2080_p11), %v1627_v15, 0.0  ;;  %v1530_v45 = vld [vmem:[%s4208_s3 + $0x118] sm:$0xff] (!%p2080_p11) }
 0x1cd   : > { %1442 = vst [vmem:[%s4208_s3 + $0x198] sm:$0xff] %v1342_v8  ;;  %1818 = vst [vmem:[%s4208_s3 + $0x58] sm:$0xff] (!%p2080_p11), %v1718_v1  ;;  %v1623_v8 = vadd.f32 (!%p2080_p11), %v3501_v19, %v1511_v52  ;;  %v1728_v31 = vmax.f32 (!%p2080_p11), %v1628_v16, 0.0  ;;  %v1729_v32 = vmax.f32 (!%p2080_p11), %v1629_v17, 0.0  ;;  %v1633_v36 = vadd.f32 (!%p2080_p11), %v3501_v19, %v1521_v14  ;;  %v1532_v47 = vld [vmem:[%s4208_s3 + $0x128] sm:$0xff] (!%p2080_p11)  ;;  %v1533_v52 = vld [vmem:[%s4208_s3 + $0x130] sm:$0xff] (!%p2080_p11) }
 0x1ce   : > { %1819 = vst [vmem:[%s4208_s3 + $0x60] sm:$0xff] %v1719_v4  ;;  %1820 = vst [vmem:[%s4208_s3 + $0x68] sm:$0xff] %v1720_v5  ;;  %v1730_v33 = vmax.f32 %v1630_v18, 0.0  ;;  %v1634_v37 = vadd.f32 %v3503_v20, %v1522_v21  ;;  %v1635_v41 = vadd.f32 %v3501_v19, %v1523_v22  ;;  %v1636_v42 = vadd.f32 %v3503_v20, %v1524_v23  ;;  %v1534_v53 = vld [vmem:[%s4208_s3 + $0x138] sm:$0xff]  ;;  %v1535_v62 = vld [vmem:[%s4208_s3 + $0x140] sm:$0xff] }
 0x1cf   : > { %1821 = vst [vmem:[%s4208_s3 + $0x70] sm:$0xff] %v1721_v6  ;;  %1822 = vst [vmem:[%s4208_s3 + $0x78] sm:$0xff] %v1722_v7  ;;  %v1723_v24 = vmax.f32 %v1623_v8, 0.0  ;;  %v1637_v43 = vadd.f32 %v3501_v19, %v1525_v28  ;;  %v1638_v44 = vadd.f32 %v3503_v20, %v1526_v29  ;;  %v1731_v48 = vmax.f32 %v1631_v34, 0.0  ;;  %v1536_v63 = vld [vmem:[%s4208_s3 + $0x148] sm:$0xff]  ;;  %v1537_v0 = vld [vmem:[%s4208_s3 + $0x150] sm:$0xff] }
 0x1d0   : > { %1824 = vst [vmem:[%s4208_s3 + $0x88] sm:$0xff] %v1724_v25  ;;  %1825 = vst [vmem:[%s4208_s3 + $0x90] sm:$0xff] %v1725_v26  ;;  %v1732_v49 = vmax.f32 %v1632_v35, 0.0  ;;  %v1733_v50 = vmax.f32 %v1633_v36, 0.0  ;;  %v1734_v51 = vmax.f32 %v1634_v37, 0.0  ;;  %v1735_v54 = vmax.f32 %v1635_v41, 0.0 }
 0x1d1   : > { %1823 = vst [vmem:[%s4208_s3 + $0x80] sm:$0xff] %v1723_v24  ;;  %1826 = vst [vmem:[%s4208_s3 + $0x98] sm:$0xff] %v1726_v27  ;;  %v1736_v55 = vmax.f32 %v1636_v42, 0.0  ;;  %v1737_v56 = vmax.f32 %v1637_v43, 0.0  ;;  %v1738_v57 = vmax.f32 %v1638_v44, 0.0  ;;  %v1639_v58 = vadd.f32 %v3501_v19, %v1527_v38  ;;  %v1538_v5 = vld [vmem:[%s4208_s3 + $0x158] sm:$0xff] }
 0x1d2   : > { %1827 = vst [vmem:[%s4208_s3 + $0xa0] sm:$0xff] %v1727_v30  ;;  %1828 = vst [vmem:[%s4208_s3 + $0xa8] sm:$0xff] %v1728_v31  ;;  %v1640_v59 = vadd.f32 %v3503_v20, %v1528_v39  ;;  %v1641_v60 = vadd.f32 %v3501_v19, %v1529_v40  ;;  %v1642_v61 = vadd.f32 %v3503_v20, %v1530_v45  ;;  %v1539_v6 = vld [vmem:[%s4208_s3 + $0x160] sm:$0xff]  ;;  %v1540_v7 = vld [vmem:[%s4208_s3 + $0x168] sm:$0xff] }
 0x1d3   : > { %1829 = vst [vmem:[%s4208_s3 + $0xb0] sm:$0xff] %v1729_v32  ;;  %1830 = vst [vmem:[%s4208_s3 + $0xb8] sm:$0xff] %v1730_v33  ;;  %v1643_v1 = vadd.f32 %v3501_v19, %v1531_v46  ;;  %v1644_v2 = vadd.f32 %v3503_v20, %v1532_v47  ;;  %v1645_v3 = vadd.f32 %v3501_v19, %v1533_v52  ;;  %v1739_v8 = vmax.f32 %v1639_v58, 0.0  ;;  %v1541_v12 = vld [vmem:[%s4208_s3 + $0x170] sm:$0xff]  ;;  %v1542_v13 = vld [vmem:[%s4208_s3 + $0x178] sm:$0xff] }
 0x1d4   : > { %1831 = vst [vmem:[%s4208_s3 + $0xc0] sm:$0xff] %v1731_v48  ;;  %1832 = vst [vmem:[%s4208_s3 + $0xc8] sm:$0xff] %v1732_v49  ;;  %v1646_v4 = vadd.f32 %v3503_v20, %v1534_v53  ;;  %v1740_v9 = vmax.f32 %v1640_v59, 0.0  ;;  %v1741_v10 = vmax.f32 %v1641_v60, 0.0  ;;  %v1742_v11 = vmax.f32 %v1642_v61, 0.0  ;;  %v1543_v24 = vld [vmem:[%s4208_s3 + $0x180] sm:$0xff] }
 0x1d5   : > { %1833 = vst [vmem:[%s4208_s3 + $0xd0] sm:$0xff] %v1733_v50  ;;  %1834 = vst [vmem:[%s4208_s3 + $0xd8] sm:$0xff] %v1734_v51  ;;  %v1743_v14 = vmax.f32 %v1643_v1, 0.0  ;;  %v1744_v15 = vmax.f32 %v1644_v2, 0.0  ;;  %v1745_v16 = vmax.f32 %v1645_v3, 0.0  ;;  %v1647_v18 = vadd.f32 %v3501_v19, %v1535_v62  ;;  %v1544_v25 = vld [vmem:[%s4208_s3 + $0x188] sm:$0xff] }
 0x1d6   : > { %1835 = vst [vmem:[%s4208_s3 + $0xe0] sm:$0xff] %v1735_v54  ;;  %1836 = vst [vmem:[%s4208_s3 + $0xe8] sm:$0xff] %v1736_v55  ;;  %v1746_v17 = vmax.f32 %v1646_v4, 0.0  ;;  %v1648_v21 = vadd.f32 %v3503_v20, %v1536_v63  ;;  %v1649_v22 = vadd.f32 %v3501_v19, %v1537_v0  ;;  %v1650_v23 = vadd.f32 %v3503_v20, %v1538_v5  ;;  %v1545_v26 = vld [vmem:[%s4208_s3 + $0x190] sm:$0xff]  ;;  %v1546_v31 = vld [vmem:[%s4208_s3 + $0x198] sm:$0xff] }
 0x1d7   : > { %1837 = vst [vmem:[%s4208_s3 + $0xf0] sm:$0xff] %v1737_v56  ;;  %1838 = vst [vmem:[%s4208_s3 + $0xf8] sm:$0xff] %v1738_v57  ;;  %v1651_v27 = vadd.f32 %v3501_v19, %v1539_v6  ;;  %v1652_v28 = vadd.f32 %v3503_v20, %v1540_v7  ;;  %v1653_v29 = vadd.f32 %v3501_v19, %v1541_v12  ;;  %v1547_v32 = vld [vmem:[%s4208_s3 + $0x1a0] sm:$0xff]  ;;  %v1548_v33 = vld [vmem:[%s4208_s3 + $0x1a8] sm:$0xff]  ;;  %v1747_v34 = vmax.f32 %v1647_v18, 0.0 }
 0x1d8   : > { %1839 = vst [vmem:[%s4208_s3 + $0x100] sm:$0xff] %v1739_v8  ;;  %1840 = vst [vmem:[%s4208_s3 + $0x108] sm:$0xff] %v1740_v9  ;;  %v1654_v30 = vadd.f32 %v3503_v20, %v1542_v13  ;;  %v1748_v35 = vmax.f32 %v1648_v21, 0.0  ;;  %v1749_v36 = vmax.f32 %v1649_v22, 0.0  ;;  %v1750_v37 = vmax.f32 %v1650_v23, 0.0  ;;  %v1549_v38 = vld [vmem:[%s4208_s3 + $0x1b0] sm:$0xff] }
 0x1d9   : > { %1841 = vst [vmem:[%s4208_s3 + $0x110] sm:$0xff] %v1741_v10  ;;  %1842 = vst [vmem:[%s4208_s3 + $0x118] sm:$0xff] %v1742_v11  ;;  %v1550_v39 = vld [vmem:[%s4208_s3 + $0x1b8] sm:$0xff]  ;;  %v1751_v40 = vmax.f32 %v1651_v27, 0.0  ;;  %v1752_v41 = vmax.f32 %v1652_v28, 0.0  ;;  %v1753_v42 = vmax.f32 %v1653_v29, 0.0  ;;  %v1655_v44 = vadd.f32 %v3501_v19, %v1543_v24 }
 0x1da   : > { %1843 = vst [vmem:[%s4208_s3 + $0x120] sm:$0xff] %v1743_v14  ;;  %1844 = vst [vmem:[%s4208_s3 + $0x128] sm:$0xff] %v1744_v15  ;;  %v1754_v43 = vmax.f32 %v1654_v30, 0.0  ;;  %v1656_v45 = vadd.f32 %v3503_v20, %v1544_v25  ;;  %v1657_v46 = vadd.f32 %v3501_v19, %v1545_v26  ;;  %v1658_v47 = vadd.f32 %v3503_v20, %v1546_v31  ;;  %v1551_v48 = vld [vmem:[%s4208_s3 + $0x1c0] sm:$0xff]  ;;  %v1552_v49 = vld [vmem:[%s4208_s3 + $0x1c8] sm:$0xff] }
 0x1db   : > { %1845 = vst [vmem:[%s4208_s3 + $0x130] sm:$0xff] %v1745_v16  ;;  %1846 = vst [vmem:[%s4208_s3 + $0x138] sm:$0xff] %v1746_v17  ;;  %v1553_v50 = vld [vmem:[%s4208_s3 + $0x1d0] sm:$0xff]  ;;  %v1659_v51 = vadd.f32 %v3501_v19, %v1547_v32  ;;  %v1660_v52 = vadd.f32 %v3503_v20, %v1548_v33  ;;  %v1661_v53 = vadd.f32 %v3501_v19, %v1549_v38  ;;  %v1554_v55 = vld [vmem:[%s4208_s3 + $0x1d8] sm:$0xff]  ;;  %v1755_v58 = vmax.f32 %v1655_v44, 0.0 }
 0x1dc   : > { %1847 = vst [vmem:[%s4208_s3 + $0x140] sm:$0xff] %v1747_v34  ;;  %1848 = vst [vmem:[%s4208_s3 + $0x148] sm:$0xff] %v1748_v35  ;;  %v1662_v54 = vadd.f32 %v3503_v20, %v1550_v39  ;;  %v1555_v56 = vld [vmem:[%s4208_s3 + $0x1e0] sm:$0xff]  ;;  %v1556_v57 = vld [vmem:[%s4208_s3 + $0x1e8] sm:$0xff]  ;;  %v1756_v59 = vmax.f32 %v1656_v45, 0.0  ;;  %v1757_v60 = vmax.f32 %v1657_v46, 0.0  ;;  %v1663_v4 = vadd.f32 %v3501_v19, %v1551_v48 }
 0x1dd   : > { %1849 = vst [vmem:[%s4208_s3 + $0x150] sm:$0xff] %v1749_v36  ;;  %1850 = vst [vmem:[%s4208_s3 + $0x158] sm:$0xff] %v1750_v37  ;;  %v1758_v61 = vmax.f32 %v1658_v47, 0.0  ;;  %v1557_v62 = vld [vmem:[%s4208_s3 + $0x1f0] sm:$0xff]  ;;  %v1558_v63 = vld [vmem:[%s4208_s3 + $0x1f8] sm:$0xff]  ;;  %v1759_v0 = vmax.f32 %v1659_v51, 0.0  ;;  %v1664_v5 = vadd.f32 %v3503_v20, %v1552_v49  ;;  %v1665_v6 = vadd.f32 %v3501_v19, %v1553_v50 }
 0x1de   : > { %1851 = vst [vmem:[%s4208_s3 + $0x160] sm:$0xff] %v1751_v40  ;;  %1852 = vst [vmem:[%s4208_s3 + $0x168] sm:$0xff] %v1752_v41  ;;  %v1760_v1 = vmax.f32 %v1660_v52, 0.0  ;;  %v1761_v2 = vmax.f32 %v1661_v53, 0.0  ;;  %v1762_v3 = vmax.f32 %v1662_v54, 0.0  ;;  %v1666_v7 = vadd.f32 %v3503_v20, %v1554_v55  ;;  %v1559_v8 = vld [vmem:[%s4208_s3 + $0x200] sm:$0xff] }
 0x1df   : > { %1853 = vst [vmem:[%s4208_s3 + $0x170] sm:$0xff] %v1753_v42  ;;  %1854 = vst [vmem:[%s4208_s3 + $0x178] sm:$0xff] %v1754_v43  ;;  %v1560_v9 = vld [vmem:[%s4208_s3 + $0x208] sm:$0xff]  ;;  %v1561_v10 = vld [vmem:[%s4208_s3 + $0x210] sm:$0xff]  ;;  %v1667_v11 = vadd.f32 %v3501_v19, %v1555_v56  ;;  %v1668_v12 = vadd.f32 %v3503_v20, %v1556_v57  ;;  %v1669_v13 = vadd.f32 %v3501_v19, %v1557_v62  ;;  %v1763_v18 = vmax.f32 %v1663_v4, 0.0 }
 0x1e0   : > { %1855 = vst [vmem:[%s4208_s3 + $0x180] sm:$0xff] %v1755_v58  ;;  %1856 = vst [vmem:[%s4208_s3 + $0x188] sm:$0xff] %v1756_v59  ;;  %v1670_v14 = vadd.f32 %v3503_v20, %v1558_v63  ;;  %v1562_v15 = vld [vmem:[%s4208_s3 + $0x218] sm:$0xff]  ;;  %v1563_v16 = vld [vmem:[%s4208_s3 + $0x220] sm:$0xff]  ;;  %v1764_v21 = vmax.f32 %v1664_v5, 0.0  ;;  %v1765_v22 = vmax.f32 %v1665_v6, 0.0  ;;  %v1671_v30 = vadd.f32 %v3501_v19, %v1559_v8 }
 0x1e1   : > { %1857 = vst [vmem:[%s4208_s3 + $0x190] sm:$0xff] %v1757_v60  ;;  %1858 = vst [vmem:[%s4208_s3 + $0x198] sm:$0xff] %v1758_v61  ;;  %v1564_v17 = vld [vmem:[%s4208_s3 + $0x228] sm:$0xff]  ;;  %v1766_v23 = vmax.f32 %v1666_v7, 0.0  ;;  %v1565_v24 = vld [vmem:[%s4208_s3 + $0x230] sm:$0xff]  ;;  %v1767_v26 = vmax.f32 %v1667_v11, 0.0  ;;  %v1672_v31 = vadd.f32 %v3503_v20, %v1560_v9  ;;  %v1673_v32 = vadd.f32 %v3501_v19, %v1561_v10 }
 0x1e2   : > { %1859 = vst [vmem:[%s4208_s3 + $0x1a0] sm:$0xff] %v1759_v0  ;;  %1860 = vst [vmem:[%s4208_s3 + $0x1a8] sm:$0xff] %v1760_v1  ;;  %v1566_v25 = vld [vmem:[%s4208_s3 + $0x238] sm:$0xff]  ;;  %v1768_v27 = vmax.f32 %v1668_v12, 0.0  ;;  %v1769_v28 = vmax.f32 %v1669_v13, 0.0  ;;  %v1770_v29 = vmax.f32 %v1670_v14, 0.0  ;;  %v1674_v33 = vadd.f32 %v3503_v20, %v1562_v15 }
 0x1e3   : > { %1861 = vst [vmem:[%s4208_s3 + $0x1b0] sm:$0xff] %v1761_v2  ;;  %1862 = vst [vmem:[%s4208_s3 + $0x1b8] sm:$0xff] %v1762_v3  ;;  %v1567_v34 = vld [vmem:[%s4208_s3 + $0x240] sm:$0xff]  ;;  %v1568_v35 = vld [vmem:[%s4208_s3 + $0x248] sm:$0xff]  ;;  %v1675_v37 = vadd.f32 %v3501_v19, %v1563_v16  ;;  %v1676_v38 = vadd.f32 %v3503_v20, %v1564_v17  ;;  %v1677_v39 = vadd.f32 %v3501_v19, %v1565_v24  ;;  %v1771_v44 = vmax.f32 %v1671_v30, 0.0 }
 0x1e4   : > { %1863 = vst [vmem:[%s4208_s3 + $0x1c0] sm:$0xff] %v1763_v18  ;;  %1864 = vst [vmem:[%s4208_s3 + $0x1c8] sm:$0xff] %v1764_v21  ;;  %v1569_v36 = vld [vmem:[%s4208_s3 + $0x250] sm:$0xff]  ;;  %v1678_v40 = vadd.f32 %v3503_v20, %v1566_v25  ;;  %v1570_v41 = vld [vmem:[%s4208_s3 + $0x258] sm:$0xff]  ;;  %v1772_v45 = vmax.f32 %v1672_v31, 0.0  ;;  %v1773_v46 = vmax.f32 %v1673_v32, 0.0  ;;  %v1679_v54 = vadd.f32 %v3501_v19, %v1567_v34 }
 0x1e5   : > { %1865 = vst [vmem:[%s4208_s3 + $0x1d0] sm:$0xff] %v1765_v22  ;;  %1866 = vst [vmem:[%s4208_s3 + $0x1d8] sm:$0xff] %v1766_v23  ;;  %v1571_v42 = vld [vmem:[%s4208_s3 + $0x260] sm:$0xff]  ;;  %v1572_v43 = vld [vmem:[%s4208_s3 + $0x268] sm:$0xff]  ;;  %v1774_v47 = vmax.f32 %v1674_v33, 0.0  ;;  %v1775_v50 = vmax.f32 %v1675_v37, 0.0  ;;  %v1680_v55 = vadd.f32 %v3503_v20, %v1568_v35  ;;  %v1681_v56 = vadd.f32 %v3501_v19, %v1569_v36 }
 0x1e6   : > { %1867 = vst [vmem:[%s4208_s3 + $0x1e0] sm:$0xff] %v1767_v26  ;;  %1868 = vst [vmem:[%s4208_s3 + $0x1e8] sm:$0xff] %v1768_v27  ;;  %v1573_v48 = vld [vmem:[%s4208_s3 + $0x270] sm:$0xff]  ;;  %v1574_v49 = vld [vmem:[%s4208_s3 + $0x278] sm:$0xff]  ;;  %v1776_v51 = vmax.f32 %v1676_v38, 0.0  ;;  %v1777_v52 = vmax.f32 %v1677_v39, 0.0  ;;  %v1682_v57 = vadd.f32 %v3503_v20, %v1570_v41  ;;  %v1683_v61 = vadd.f32 %v3501_v19, %v1571_v42 }
 0x1e7   : > { %1869 = vst [vmem:[%s4208_s3 + $0x1f0] sm:$0xff] %v1769_v28  ;;  %1870 = vst [vmem:[%s4208_s3 + $0x1f8] sm:$0xff] %v1770_v29  ;;  %v1778_v53 = vmax.f32 %v1678_v40, 0.0  ;;  %v1575_v58 = vld [vmem:[%s4208_s3 + $0x280] sm:$0xff]  ;;  %v1576_v59 = vld [vmem:[%s4208_s3 + $0x288] sm:$0xff]  ;;  %v1684_v62 = vadd.f32 %v3503_v20, %v1572_v43  ;;  %v1685_v63 = vadd.f32 %v3501_v19, %v1573_v48  ;;  %v1686_v0 = vadd.f32 %v3503_v20, %v1574_v49 }
 0x1e8   : > { %1871 = vst [vmem:[%s4208_s3 + $0x200] sm:$0xff] %v1771_v44  ;;  %1872 = vst [vmem:[%s4208_s3 + $0x208] sm:$0xff] %v1772_v45  ;;  %v1577_v60 = vld [vmem:[%s4208_s3 + $0x290] sm:$0xff]  ;;  %v1578_v1 = vld [vmem:[%s4208_s3 + $0x298] sm:$0xff]  ;;  %v1779_v4 = vmax.f32 %v1679_v54, 0.0  ;;  %v1780_v5 = vmax.f32 %v1680_v55, 0.0  ;;  %v1687_v14 = vadd.f32 %v3501_v19, %v1575_v58  ;;  %v1688_v15 = vadd.f32 %v3503_v20, %v1576_v59 }
 0x1e9   : > { %1873 = vst [vmem:[%s4208_s3 + $0x210] sm:$0xff] %v1773_v46  ;;  %1874 = vst [vmem:[%s4208_s3 + $0x218] sm:$0xff] %v1774_v47  ;;  %v1579_v2 = vld [vmem:[%s4208_s3 + $0x2a0] sm:$0xff]  ;;  %v1580_v3 = vld [vmem:[%s4208_s3 + $0x2a8] sm:$0xff]  ;;  %v1781_v6 = vmax.f32 %v1681_v56, 0.0  ;;  %v1782_v7 = vmax.f32 %v1682_v57, 0.0  ;;  %v1689_v16 = vadd.f32 %v3501_v19, %v1577_v60  ;;  %v1690_v17 = vadd.f32 %v3503_v20, %v1578_v1 }
 0x1ea   : > { %1875 = vst [vmem:[%s4208_s3 + $0x220] sm:$0xff] %v1775_v50  ;;  %1876 = vst [vmem:[%s4208_s3 + $0x228] sm:$0xff] %v1776_v51  ;;  %v1581_v8 = vld [vmem:[%s4208_s3 + $0x2b0] sm:$0xff]  ;;  %v1582_v9 = vld [vmem:[%s4208_s3 + $0x2b8] sm:$0xff]  ;;  %v1783_v10 = vmax.f32 %v1683_v61, 0.0  ;;  %v1784_v11 = vmax.f32 %v1684_v62, 0.0  ;;  %v1691_v23 = vadd.f32 %v3501_v19, %v1579_v2  ;;  %v1692_v24 = vadd.f32 %v3503_v20, %v1580_v3 }
 0x1eb   : > { %1877 = vst [vmem:[%s4208_s3 + $0x230] sm:$0xff] %v1777_v52  ;;  %1878 = vst [vmem:[%s4208_s3 + $0x238] sm:$0xff] %v1778_v53  ;;  %v1785_v12 = vmax.f32 %v1685_v63, 0.0  ;;  %v1786_v13 = vmax.f32 %v1686_v0, 0.0  ;;  %v1583_v18 = vld [vmem:[%s4208_s3 + $0x2c0] sm:$0xff]  ;;  %v1584_v21 = vld [vmem:[%s4208_s3 + $0x2c8] sm:$0xff]  ;;  %v1693_v25 = vadd.f32 %v3501_v19, %v1581_v8  ;;  %v1694_v26 = vadd.f32 %v3503_v20, %v1582_v9 }
 0x1ec   : > { %1879 = vst [vmem:[%s4208_s3 + $0x240] sm:$0xff] %v1779_v4  ;;  %1880 = vst [vmem:[%s4208_s3 + $0x248] sm:$0xff] %v1780_v5  ;;  %v1585_v22 = vld [vmem:[%s4208_s3 + $0x2d0] sm:$0xff]  ;;  %v1586_v27 = vld [vmem:[%s4208_s3 + $0x2d8] sm:$0xff]  ;;  %v1787_v30 = vmax.f32 %v1687_v14, 0.0  ;;  %v1788_v31 = vmax.f32 %v1688_v15, 0.0  ;;  %v1695_v40 = vadd.f32 %v3501_v19, %v1583_v18  ;;  %v1696_v41 = vadd.f32 %v3503_v20, %v1584_v21 }
 0x1ed   : > { %1881 = vst [vmem:[%s4208_s3 + $0x250] sm:$0xff] %v1781_v6  ;;  %1882 = vst [vmem:[%s4208_s3 + $0x258] sm:$0xff] %v1782_v7  ;;  %v1587_v28 = vld [vmem:[%s4208_s3 + $0x2e0] sm:$0xff]  ;;  %v1588_v29 = vld [vmem:[%s4208_s3 + $0x2e8] sm:$0xff]  ;;  %v1789_v32 = vmax.f32 %v1689_v16, 0.0  ;;  %v1790_v33 = vmax.f32 %v1690_v17, 0.0  ;;  %v1697_v42 = vadd.f32 %v3501_v19, %v1585_v22  ;;  %v1698_v43 = vadd.f32 %v3503_v20, %v1586_v27 }
 0x1ee   : > { %1883 = vst [vmem:[%s4208_s3 + $0x260] sm:$0xff] %v1783_v10  ;;  %1884 = vst [vmem:[%s4208_s3 + $0x268] sm:$0xff] %v1784_v11  ;;  %v1589_v34 = vld [vmem:[%s4208_s3 + $0x2f0] sm:$0xff]  ;;  %v1590_v35 = vld [vmem:[%s4208_s3 + $0x2f8] sm:$0xff]  ;;  %v1791_v36 = vmax.f32 %v1691_v23, 0.0  ;;  %v1792_v37 = vmax.f32 %v1692_v24, 0.0  ;;  %v1699_v45 = vadd.f32 %v3501_v19, %v1587_v28  ;;  %v1700_v46 = vadd.f32 %v3503_v20, %v1588_v29 }
 0x1ef   : > { %1885 = vst [vmem:[%s4208_s3 + $0x270] sm:$0xff] %v1785_v12  ;;  %1886 = vst [vmem:[%s4208_s3 + $0x278] sm:$0xff] %v1786_v13  ;;  %v1793_v38 = vmax.f32 %v1693_v25, 0.0  ;;  %v1794_v39 = vmax.f32 %v1694_v26, 0.0  ;;  %v1591_v44 = vld [vmem:[%s4208_s3 + $0x300] sm:$0xff]  ;;  %v1701_v47 = vadd.f32 %v3501_v19, %v1589_v34  ;;  %v1702_v48 = vadd.f32 %v3503_v20, %v1590_v35  ;;  %v1592_v49 = vld [vmem:[%s4208_s3 + $0x308] sm:$0xff] }
 0x1f0   : > { %1887 = vst [vmem:[%s4208_s3 + $0x280] sm:$0xff] %v1787_v30  ;;  %1888 = vst [vmem:[%s4208_s3 + $0x288] sm:$0xff] %v1788_v31  ;;  %v1593_v50 = vld [vmem:[%s4208_s3 + $0x310] sm:$0xff]  ;;  %v1594_v51 = vld [vmem:[%s4208_s3 + $0x318] sm:$0xff]  ;;  %v1795_v52 = vmax.f32 %v1695_v40, 0.0  ;;  %v1796_v53 = vmax.f32 %v1696_v41, 0.0  ;;  %v1703_v60 = vadd.f32 %v3501_v19, %v1591_v44  ;;  %v1704_v61 = vadd.f32 %v3503_v20, %v1592_v49 }
 0x1f1   : > { %1889 = vst [vmem:[%s4208_s3 + $0x290] sm:$0xff] %v1789_v32  ;;  %1890 = vst [vmem:[%s4208_s3 + $0x298] sm:$0xff] %v1790_v33  ;;  %v1797_v54 = vmax.f32 %v1697_v42, 0.0  ;;  %v1798_v55 = vmax.f32 %v1698_v43, 0.0  ;;  %v1799_v56 = vmax.f32 %v1699_v45, 0.0  ;;  %v1800_v57 = vmax.f32 %v1700_v46, 0.0 }
 0x1f2   : > { %1891 = vst [vmem:[%s4208_s3 + $0x2a0] sm:$0xff] %v1791_v36  ;;  %1892 = vst [vmem:[%s4208_s3 + $0x2a8] sm:$0xff] %v1792_v37  ;;  %v1801_v58 = vmax.f32 %v1701_v47, 0.0  ;;  %v1802_v59 = vmax.f32 %v1702_v48, 0.0  ;;  %v1705_v62 = vadd.f32 %v3501_v19, %v1593_v50  ;;  %v1706_v63 = vadd.f32 %v3503_v20, %v1594_v51 }
 0x1f3   : > { %1893 = vst [vmem:[%s4208_s3 + $0x2b0] sm:$0xff] %v1793_v38  ;;  %1894 = vst [vmem:[%s4208_s3 + $0x2b8] sm:$0xff] %v1794_v39  ;;  %v1803_v0 = vmax.f32 %v1703_v60, 0.0  ;;  %v1804_v19 = vmax.f32 %v1704_v61, 0.0 }
 0x1f4   : > { %1895 = vst [vmem:[%s4208_s3 + $0x2c0] sm:$0xff] %v1795_v52  ;;  %1896 = vst [vmem:[%s4208_s3 + $0x2c8] sm:$0xff] %v1796_v53  ;;  %v1805_v1 = vmax.f32 %v1705_v62, 0.0  ;;  %v1806_v20 = vmax.f32 %v1706_v63, 0.0 }
 0x1f5   : > { %1897 = vst [vmem:[%s4208_s3 + $0x2d0] sm:$0xff] %v1797_v54  ;;  %1898 = vst [vmem:[%s4208_s3 + $0x2d8] sm:$0xff] %v1798_v55 }
 0x1f6   : > { %1899 = vst [vmem:[%s4208_s3 + $0x2e0] sm:$0xff] %v1799_v56  ;;  %1900 = vst [vmem:[%s4208_s3 + $0x2e8] sm:$0xff] %v1800_v57 }
 0x1f7   : > { %1901 = vst [vmem:[%s4208_s3 + $0x2f0] sm:$0xff] %v1801_v58  ;;  %1902 = vst [vmem:[%s4208_s3 + $0x2f8] sm:$0xff] %v1802_v59 }
 0x1f8   : > { %1903 = vst [vmem:[%s4208_s3 + $0x300] sm:$0xff] %v1803_v0  ;;  %1904 = vst [vmem:[%s4208_s3 + $0x308] sm:$0xff] %v1804_v19 }
 0x1f9   : > { %1905 = vst [vmem:[%s4208_s3 + $0x310] sm:$0xff] %v1805_v1  ;;  %1906 = vst [vmem:[%s4208_s3 + $0x318] sm:$0xff] %v1806_v20 }
 0x1fa PF: > { %s13_s16 = sadd.s32 1, %s2233_s16   ;;  %s4209_s12 = smov %s2221_s13 }
 0x1fb   : > { %p10_p12 = scmp.ge.s32.totalorder %s13_s16, 7   ;;  %s4210_s13 = smov %s2292_s20 }
 0x1fc   : > { %s4211_s14 = smov %s2229_s15  ;;  %s4212_s15 = smov %s4214_s17 }
 0x1fd   :  { %12 = sbr.rel (!%p10_p12) target bundleno = 3 (0x3), region = 122 }

// kernel: cnn_forward.19
= control target key start
LH: loop header
LB: loop body
LE: loop exit
PB: predicated region body
PF: predicated region fallthrough
CT: control target
= control target key end

     0   :  { %v561_v1 = vmov 0   ;;  %v419_v24 = vlaneseq  ;;  %s777_s1 = inlined_call_operand.vmem [shape: bf16[128,256], index: 1, kind: input, shape index: {}]   ;;  %s778_s0 = inlined_call_operand.vmem [shape: bf16[112,128], index: 0, kind: input, shape index: {}]   ;;  %s779_s2 = inlined_call_operand.vmem [shape: f32[1,256], index: 2, kind: input, shape index: {}]   ;;  %s780_s3 = inlined_call_operand.vmem [shape: f32[112,256], index: 3, kind: output, shape index: {}]  }
   0x1   :  { %v530_v0 = vld [vmem:[%s777_s1 + $0x4] ss:$8 sps:$4 sm:$0xff]   ;;  %259 = vmatprep.mubr.bf16.mxu0 %v561_v1  ;;  %299 = vmatprep.mubr.bf16.mxu1 %v561_v1  ;;  %v532_v2 = vld [vmem:[%s777_s1] ss:$8 sps:$4 sm:$0xff]   ;;  %v533_v3 = vld [vmem:[%s777_s1 + $0x14] ss:$8 sps:$4 sm:$0xff]  }
   0x2   :  { %227 = vmatprep.subr.bf16.mxu0 %v530_v0  ;;  %512 = vmatprep.subr.bf16.mxu1 %v530_v0  ;;  %v535_v4 = vld [vmem:[%s777_s1 + $0x10] ss:$8 sps:$4 sm:$0xff]   ;;  %v536_v5 = vld [vmem:[%s777_s1 + $0x24] ss:$8 sps:$4 sm:$0xff]   ;;  %v538_v6 = vld [vmem:[%s777_s1 + $0x20] ss:$8 sps:$4 sm:$0xff]  }
   0x3   :  { %228 = vmatpush1.bf16.msra.mxu0 %v532_v2  ;;  %520 = vmatpush1.bf16.msra.mxu1 %v532_v2  ;;  %v539_v7 = vld [vmem:[%s777_s1 + $0x34] ss:$8 sps:$4 sm:$0xff]   ;;  %v541_v8 = vld [vmem:[%s777_s1 + $0x30] ss:$8 sps:$4 sm:$0xff]   ;;  %v542_v9 = vld [vmem:[%s777_s1 + $0x44] ss:$8 sps:$4 sm:$0xff]  }
   0x4   :  { %229 = vmatprep.subr.bf16.mxu0 %v533_v3  ;;  %513 = vmatprep.subr.bf16.mxu1 %v533_v3  ;;  %v544_v10 = vld [vmem:[%s777_s1 + $0x40] ss:$8 sps:$4 sm:$0xff]   ;;  %v545_v11 = vld [vmem:[%s777_s1 + $0x54] ss:$8 sps:$4 sm:$0xff]   ;;  %v547_v12 = vld [vmem:[%s777_s1 + $0x50] ss:$8 sps:$4 sm:$0xff]  }
   0x5   :  { %v548_v13 = vld [vmem:[%s777_s1 + $0x64] ss:$8 sps:$4 sm:$0xff]   ;;  %v550_v14 = vld [vmem:[%s777_s1 + $0x60] ss:$8 sps:$4 sm:$0xff]   ;;  %v551_v15 = vld [vmem:[%s777_s1 + $0x74] ss:$8 sps:$4 sm:$0xff]  }
   0x6   :  { %v553_v16 = vld [vmem:[%s777_s1 + $0x70] ss:$8 sps:$4 sm:$0xff]   ;;  %v554_v17 = vld [vmem:[%s778_s0] sm:$0xff]   ;;  %v556_v19 = vld [vmem:[%s778_s0 + $0x8] sm:$0xff]   ;;  %v420_v25 = vshrl.u32 %v419_v24, 7 }
   0x7   :  { %230 = vmatpush1.bf16.msra.mxu0 %v535_v4  ;;  %521 = vmatpush1.bf16.msra.mxu1 %v535_v4  ;;  %v555_v18 = vld [vmem:[%s778_s0 + $0x20] sm:$0xff]   ;;  %v557_v20 = vld [vmem:[%s778_s0 + $0x28] sm:$0xff]   ;;  %v558_v21 = vld [vmem:[%s778_s0 + $0x10] sm:$0xff]  }
   0x8   :  { %231 = vmatprep.subr.bf16.mxu0 %v536_v5  ;;  %514 = vmatprep.subr.bf16.mxu1 %v536_v5  ;;  %v559_v22 = vld [vmem:[%s778_s0 + $0x30] sm:$0xff]   ;;  %v560_v23 = vld [vmem:[%s778_s0 + $0x18] sm:$0xff]   ;;  %v421_v26 = vsub.s32 0, %v420_v25  ;;  %v417_v27 = vld [vmem:[%s779_s2] sm:$0x3]  ;;  %v425_v28 = vsub.s32 1, %v420_v25 }
   0xa   :  { %v661_v29 = vrot.slane %v417_v27, %v421_v26  ;;  %v663_v31 = vrot.slane %v417_v27, %v425_v28 }
   0xb   :  { %232 = vmatpush1.bf16.msra.mxu0 %v538_v6  ;;  %522 = vmatpush1.bf16.msra.mxu1 %v538_v6 }
   0xc   :  { %233 = vmatprep.subr.bf16.mxu0 %v539_v7  ;;  %515 = vmatprep.subr.bf16.mxu1 %v539_v7 }
   0xf   :  { %234 = vmatpush1.bf16.msra.mxu0 %v541_v8  ;;  %523 = vmatpush1.bf16.msra.mxu1 %v541_v8 }
  0x10   :  { %235 = vmatprep.subr.bf16.mxu0 %v542_v9  ;;  %516 = vmatprep.subr.bf16.mxu1 %v542_v9 }
  0x13   :  { %236 = vmatpush1.bf16.msra.mxu0 %v544_v10  ;;  %524 = vmatpush1.bf16.msra.mxu1 %v544_v10 }
  0x14   :  { %237 = vmatprep.subr.bf16.mxu0 %v545_v11  ;;  %517 = vmatprep.subr.bf16.mxu1 %v545_v11 }
  0x17   :  { %238 = vmatpush1.bf16.msra.mxu0 %v547_v12  ;;  %525 = vmatpush1.bf16.msra.mxu1 %v547_v12 }
  0x18   :  { %239 = vmatprep.subr.bf16.mxu0 %v548_v13  ;;  %518 = vmatprep.subr.bf16.mxu1 %v548_v13 }
  0x1b   :  { %240 = vmatpush1.bf16.msra.mxu0 %v550_v14  ;;  %526 = vmatpush1.bf16.msra.mxu1 %v550_v14 }
  0x1c   :  { %241 = vmatprep.subr.bf16.mxu0 %v551_v15  ;;  %519 = vmatprep.subr.bf16.mxu1 %v551_v15 }
  0x1f   :  { %242 = vmatpush1.bf16.msra.mxu0 %v553_v16  ;;  %527 = vmatpush1.bf16.msra.mxu1 %v553_v16 }
  0x22   :  { %260 = vmatmul.mubr.bf16.vlgmr.msra.gmra.mrb[0].mxu0 %v554_v17  ;;  %300 = vmatmul.mubr.bf16.vlgmr.msra.gmra.mrb[0].mxu1 %v555_v18 }
  0x23   :  { %269 = vmatprep.mubr.bf16.mxu0 %v561_v1  ;;  %309 = vmatprep.mubr.bf16.mxu1 %v561_v1 }
  0x2a   :  { %270 = vmatmul.mubr.bf16.gmra.mrb[4].mxu0 %v556_v19  ;;  %310 = vmatmul.mubr.bf16.gmra.mrb[4].mxu1 %v557_v20 }
  0x2b   :  { %279 = vmatprep.mubr.bf16.mxu0 %v561_v1  ;;  %319 = vmatprep.mubr.bf16.mxu1 %v561_v1 }
  0x32   :  { %280 = vmatmul.mubr.bf16.gmra.mrb[8].mxu0 %v558_v21  ;;  %320 = vmatmul.mubr.bf16.gmra.mrb[8].mxu1 %v559_v22 }
  0x33   :  { %289 = vmatprep.mubr.bf16.mxu0 %v561_v1 }
  0x3a   :  { %290 = vmatmul.mubr.bf16.gmra.mrb[12].mxu0 %v560_v23 }
  0xf5   :  { %v261_v30 = vpop.f32.mrb[0].mxu0  ;;  %v301_v32 = vpop.f32.mrb[0].mxu1 }
  0xf6   :  { %v263_v33 = vpop.f32.mrb[1].mxu0  ;;  %v303_v34 = vpop.f32.mrb[1].mxu1  ;;  %v429_v37 = vadd.f32 %v661_v29, %v261_v30  ;;  %v445_v39 = vadd.f32 %v661_v29, %v301_v32 }
  0xf7   :  { %v265_v35 = vpop.f32.mrb[2].mxu0  ;;  %v305_v36 = vpop.f32.mrb[2].mxu1  ;;  %v430_v41 = vadd.f32 %v663_v31, %v263_v33  ;;  %v446_v42 = vadd.f32 %v663_v31, %v303_v34 }
  0xf8   :  { %v267_v38 = vpop.f32.mrb[3].mxu0  ;;  %v307_v40 = vpop.f32.mrb[3].mxu1  ;;  %457 = vst [vmem:[%s780_s3] sm:$0xff] %v429_v37  ;;  %v431_v43 = vadd.f32 %v661_v29, %v265_v35  ;;  %473 = vst [vmem:[%s780_s3 + $0x80] sm:$0xff] %v445_v39  ;;  %v447_v44 = vadd.f32 %v661_v29, %v305_v36 }
  0xf9   :  { %458 = vst [vmem:[%s780_s3 + $0x8] sm:$0xff] %v430_v41  ;;  %v432_v45 = vadd.f32 %v663_v31, %v267_v38  ;;  %474 = vst [vmem:[%s780_s3 + $0x88] sm:$0xff] %v446_v42  ;;  %v448_v46 = vadd.f32 %v663_v31, %v307_v40 }
  0xfa   :  { %459 = vst [vmem:[%s780_s3 + $0x10] sm:$0xff] %v431_v43  ;;  %475 = vst [vmem:[%s780_s3 + $0x90] sm:$0xff] %v447_v44 }
  0xfb   :  { %460 = vst [vmem:[%s780_s3 + $0x18] sm:$0xff] %v432_v45  ;;  %476 = vst [vmem:[%s780_s3 + $0x98] sm:$0xff] %v448_v46 }
  0xfd   :  { %v271_v47 = vpop.f32.mrb[4].mxu0  ;;  %v311_v48 = vpop.f32.mrb[4].mxu1 }
  0xfe   :  { %v273_v49 = vpop.f32.mrb[5].mxu0  ;;  %v313_v50 = vpop.f32.mrb[5].mxu1  ;;  %v433_v53 = vadd.f32 %v661_v29, %v271_v47  ;;  %v449_v55 = vadd.f32 %v661_v29, %v311_v48 }
  0xff   :  { %v275_v51 = vpop.f32.mrb[6].mxu0  ;;  %v315_v52 = vpop.f32.mrb[6].mxu1  ;;  %v434_v57 = vadd.f32 %v663_v31, %v273_v49  ;;  %v450_v58 = vadd.f32 %v663_v31, %v313_v50 }
 0x100   :  { %v277_v54 = vpop.f32.mrb[7].mxu0  ;;  %v317_v56 = vpop.f32.mrb[7].mxu1  ;;  %461 = vst [vmem:[%s780_s3 + $0x20] sm:$0xff] %v433_v53  ;;  %v435_v59 = vadd.f32 %v661_v29, %v275_v51  ;;  %477 = vst [vmem:[%s780_s3 + $0xa0] sm:$0xff] %v449_v55  ;;  %v451_v60 = vadd.f32 %v661_v29, %v315_v52 }
 0x101   :  { %462 = vst [vmem:[%s780_s3 + $0x28] sm:$0xff] %v434_v57  ;;  %v436_v61 = vadd.f32 %v663_v31, %v277_v54  ;;  %478 = vst [vmem:[%s780_s3 + $0xa8] sm:$0xff] %v450_v58  ;;  %v452_v62 = vadd.f32 %v663_v31, %v317_v56 }
 0x102   :  { %463 = vst [vmem:[%s780_s3 + $0x30] sm:$0xff] %v435_v59  ;;  %479 = vst [vmem:[%s780_s3 + $0xb0] sm:$0xff] %v451_v60 }
 0x103   :  { %464 = vst [vmem:[%s780_s3 + $0x38] sm:$0xff] %v436_v61  ;;  %480 = vst [vmem:[%s780_s3 + $0xb8] sm:$0xff] %v452_v62 }
 0x105   :  { %v281_v63 = vpop.f32.mrb[8].mxu0  ;;  %v321_v0 = vpop.f32.mrb[8].mxu1 }
 0x106   :  { %v283_v1 = vpop.f32.mrb[9].mxu0  ;;  %v323_v2 = vpop.f32.mrb[9].mxu1  ;;  %v437_v5 = vadd.f32 %v661_v29, %v281_v63  ;;  %v453_v7 = vadd.f32 %v661_v29, %v321_v0 }
 0x107   :  { %v285_v3 = vpop.f32.mrb[10].mxu0  ;;  %v325_v4 = vpop.f32.mrb[10].mxu1  ;;  %v438_v9 = vadd.f32 %v663_v31, %v283_v1  ;;  %v454_v10 = vadd.f32 %v663_v31, %v323_v2 }
 0x108   :  { %v287_v6 = vpop.f32.mrb[11].mxu0  ;;  %v327_v8 = vpop.f32.mrb[11].mxu1  ;;  %465 = vst [vmem:[%s780_s3 + $0x40] sm:$0xff] %v437_v5  ;;  %v439_v11 = vadd.f32 %v661_v29, %v285_v3  ;;  %481 = vst [vmem:[%s780_s3 + $0xc0] sm:$0xff] %v453_v7  ;;  %v455_v12 = vadd.f32 %v661_v29, %v325_v4 }
 0x109   :  { %466 = vst [vmem:[%s780_s3 + $0x48] sm:$0xff] %v438_v9  ;;  %v440_v13 = vadd.f32 %v663_v31, %v287_v6  ;;  %482 = vst [vmem:[%s780_s3 + $0xc8] sm:$0xff] %v454_v10  ;;  %v456_v14 = vadd.f32 %v663_v31, %v327_v8 }
 0x10a   :  { %467 = vst [vmem:[%s780_s3 + $0x50] sm:$0xff] %v439_v11  ;;  %483 = vst [vmem:[%s780_s3 + $0xd0] sm:$0xff] %v455_v12 }
 0x10b   :  { %468 = vst [vmem:[%s780_s3 + $0x58] sm:$0xff] %v440_v13  ;;  %484 = vst [vmem:[%s780_s3 + $0xd8] sm:$0xff] %v456_v14 }
 0x10d   :  { %v291_v15 = vpop.f32.mrb[12].mxu0 }
 0x10e   :  { %v293_v16 = vpop.f32.mrb[13].mxu0  ;;  %v441_v18 = vadd.f32 %v661_v29, %v291_v15 }
 0x10f   :  { %v295_v17 = vpop.f32.mrb[14].mxu0  ;;  %v442_v20 = vadd.f32 %v663_v31, %v293_v16 }
 0x110   :  { %v297_v19 = vpop.f32.mrb[15].mxu0  ;;  %469 = vst [vmem:[%s780_s3 + $0x60] sm:$0xff] %v441_v18  ;;  %v443_v21 = vadd.f32 %v661_v29, %v295_v17 }
 0x111   :  { %470 = vst [vmem:[%s780_s3 + $0x68] sm:$0xff] %v442_v20  ;;  %v444_v22 = vadd.f32 %v663_v31, %v297_v19 }
 0x112   :  { %471 = vst [vmem:[%s780_s3 + $0x70] sm:$0xff] %v443_v21 }
 0x113   :  { %472 = vst [vmem:[%s780_s3 + $0x78] sm:$0xff] %v444_v22 }

// kernel: cnn_forward.18
= control target key start
LH: loop header
LB: loop body
LE: loop exit
PB: predicated region body
PF: predicated region fallthrough
CT: control target
= control target key end

     0   :  { %s1822_s12 = smov 0   ;;  %s1824_s13 = smov 0   ;;  %s2500_s0 = inlined_call_operand.vmem [shape: bf16[112,2560], index: 0, kind: input, shape index: {}]   ;;  %s2501_s1 = inlined_call_operand.vmem [shape: bf16[2560,256], index: 1, kind: input, shape index: {}]   ;;  %s2502_s2 = inlined_call_operand.vmem [shape: f32[1,256], index: 2, kind: input, shape index: {}]   ;;  %s2503_s3 = inlined_call_operand.vmem [shape: f32[112,256], index: 3, kind: output, shape index: {}]  }
   0x1   :  { %s1826_s14 = smov 0   ;;  %s1828_s15 = smov 0  }
   0x2   :  { %s1830_s16 = smov 0  }
   0x3 LB: > { %s25_s17 = sadd.s32 1, %s1795_s15  ;;  %p48_p1 = scmp.ne.s32.totalorder %s1787_s13, %s1783_s12  ;;  %s1799_s16 = sphi %s1830_s16, %s13_s16   ;;  %s1795_s15 = sphi %s1828_s15, %s2507_s15   ;;  %s1791_s14 = sphi %s1826_s14, %s2506_s14   ;;  %s1787_s13 = sphi %s1824_s13, %s2505_s13   ;;  %s1783_s12 = sphi %s1822_s12, %s2504_s12  }
   0x4   : > { %p26_p0 = scmp.ge.s32.totalorder %s25_s17, 5  ;;  %p49_p2 = scmp.eq.s32.totalorder %s1799_s16, 0 }
   0x5   : > { %s41_s19 = sadd.s32 1, %s1787_s13  ;;  %p1445_p5 = scmp.ge.s32.totalorder %s1799_s16, 5 }
   0x6   : > { %s2509_s17 = smov (%p26_p0, %s25_s17), 0  ;;  %p50_p3 = por %p49_p2, %p48_p1 }
   0x7   : > { %s37_s18 = ssub.s32 %s1795_s15, %s2509_s17  ;;  %164 = sbr.rel (%p1445_p5) target bundleno = 33 (0x21), region = 20 }
   0x8   : > { %p39_p4 = scmp.eq.s32.totalorder %s37_s18, 0 }
   0xa   : > { %s1857_s20 = scalar_select %p39_p4, %s1787_s13, %s41_s19  }
   0xe   : > { %167 = sbr.rel (!%p50_p3) target bundleno = 33 (0x21), region = 24  ;;  %s169_s21 = sand.u32 (%p50_p3), 1, %s1787_s13  }
   0xf   : > { %s1550_s22 = sshll.u32 (%p50_p3), %s1795_s15, 4  ;;  %s1580_s23 = smul.u32 (%p50_p3), 224, %s169_s21 }
  0x10   : > { %s1865_s26 = scalar_lea.vmem (%p50_p3), %s2500_s0, %s1550_s22 }
  0x11   : > { %v190_v0 = vld [vmem:[%s1865_s26] sm:$0xff] (%p50_p3)  ;;  %v192_v1 = vld [vmem:[%s1865_s26 + $0x8] sm:$0xff] (%p50_p3)  ;;  %v194_v2 = vld [vmem:[%s1865_s26 + $0x50] sm:$0xff] (%p50_p3)  ;;  %s1873_s27 = scalar_lea.vmem (%p50_p3), [#allocation2], %s1580_s23 }
  0x12   : > { %v196_v3 = vld [vmem:[%s1865_s26 + $0x58] sm:$0xff] (%p50_p3)  ;;  %v198_v4 = vld [vmem:[%s1865_s26 + $0xa0] sm:$0xff] (%p50_p3)  ;;  %v200_v5 = vld [vmem:[%s1865_s26 + $0xa8] sm:$0xff] (%p50_p3)  ;;  %191 = vst [vmem:[%s1873_s27] sm:$0xff] (%p50_p3), %v190_v0 }
  0x13   : > { %193 = vst [vmem:[%s1873_s27 + $0x8] sm:$0xff] (%p50_p3), %v192_v1  ;;  %195 = vst [vmem:[%s1873_s27 + $0x10] sm:$0xff] (%p50_p3), %v194_v2  ;;  %v202_v6 = vld [vmem:[%s1865_s26 + $0xf0] sm:$0xff] (%p50_p3)  ;;  %v204_v7 = vld [vmem:[%s1865_s26 + $0xf8] sm:$0xff] (%p50_p3) }
  0x14   : > { %197 = vst [vmem:[%s1873_s27 + $0x18] sm:$0xff] (%p50_p3), %v196_v3  ;;  %199 = vst [vmem:[%s1873_s27 + $0x20] sm:$0xff] (%p50_p3), %v198_v4  ;;  %v206_v8 = vld [vmem:[%s1865_s26 + $0x140] sm:$0xff] (%p50_p3)  ;;  %v208_v9 = vld [vmem:[%s1865_s26 + $0x148] sm:$0xff] (%p50_p3) }
  0x15   : > { %201 = vst [vmem:[%s1873_s27 + $0x28] sm:$0xff] %v200_v5  ;;  %203 = vst [vmem:[%s1873_s27 + $0x30] sm:$0xff] %v202_v6  ;;  %v210_v10 = vld [vmem:[%s1865_s26 + $0x190] sm:$0xff]  ;;  %v212_v11 = vld [vmem:[%s1865_s26 + $0x198] sm:$0xff] }
  0x16   : > { %205 = vst [vmem:[%s1873_s27 + $0x38] sm:$0xff] %v204_v7  ;;  %207 = vst [vmem:[%s1873_s27 + $0x40] sm:$0xff] %v206_v8  ;;  %v214_v12 = vld [vmem:[%s1865_s26 + $0x1e0] sm:$0xff]  ;;  %v216_v13 = vld [vmem:[%s1865_s26 + $0x1e8] sm:$0xff] }
  0x17   : > { %209 = vst [vmem:[%s1873_s27 + $0x48] sm:$0xff] %v208_v9  ;;  %211 = vst [vmem:[%s1873_s27 + $0x50] sm:$0xff] %v210_v10  ;;  %v218_v14 = vld [vmem:[%s1865_s26 + $0x230] sm:$0xff]  ;;  %v220_v15 = vld [vmem:[%s1865_s26 + $0x238] sm:$0xff] }
  0x18   : > { %213 = vst [vmem:[%s1873_s27 + $0x58] sm:$0xff] %v212_v11  ;;  %215 = vst [vmem:[%s1873_s27 + $0x60] sm:$0xff] %v214_v12  ;;  %v222_v16 = vld [vmem:[%s1865_s26 + $0x280] sm:$0xff]  ;;  %v224_v17 = vld [vmem:[%s1865_s26 + $0x288] sm:$0xff] }
  0x19   : > { %217 = vst [vmem:[%s1873_s27 + $0x68] sm:$0xff] %v216_v13  ;;  %219 = vst [vmem:[%s1873_s27 + $0x70] sm:$0xff] %v218_v14  ;;  %v226_v18 = vld [vmem:[%s1865_s26 + $0x2d0] sm:$0xff]  ;;  %v228_v19 = vld [vmem:[%s1865_s26 + $0x2d8] sm:$0xff] }
  0x1a   : > { %221 = vst [vmem:[%s1873_s27 + $0x78] sm:$0xff] %v220_v15  ;;  %223 = vst [vmem:[%s1873_s27 + $0x80] sm:$0xff] %v222_v16  ;;  %v230_v20 = vld [vmem:[%s1865_s26 + $0x320] sm:$0xff]  ;;  %v232_v21 = vld [vmem:[%s1865_s26 + $0x328] sm:$0xff] }
  0x1b   : > { %225 = vst [vmem:[%s1873_s27 + $0x88] sm:$0xff] %v224_v17  ;;  %227 = vst [vmem:[%s1873_s27 + $0x90] sm:$0xff] %v226_v18  ;;  %v234_v22 = vld [vmem:[%s1865_s26 + $0x370] sm:$0xff]  ;;  %v236_v23 = vld [vmem:[%s1865_s26 + $0x378] sm:$0xff] }
  0x1c   : > { %229 = vst [vmem:[%s1873_s27 + $0x98] sm:$0xff] %v228_v19  ;;  %231 = vst [vmem:[%s1873_s27 + $0xa0] sm:$0xff] %v230_v20  ;;  %v238_v24 = vld [vmem:[%s1865_s26 + $0x3c0] sm:$0xff]  ;;  %v240_v25 = vld [vmem:[%s1865_s26 + $0x3c8] sm:$0xff] }
  0x1d   : > { %233 = vst [vmem:[%s1873_s27 + $0xa8] sm:$0xff] %v232_v21  ;;  %235 = vst [vmem:[%s1873_s27 + $0xb0] sm:$0xff] %v234_v22  ;;  %v242_v26 = vld [vmem:[%s1865_s26 + $0x410] sm:$0xff]  ;;  %v244_v27 = vld [vmem:[%s1865_s26 + $0x418] sm:$0xff] }
  0x1e   : > { %237 = vst [vmem:[%s1873_s27 + $0xb8] sm:$0xff] %v236_v23  ;;  %239 = vst [vmem:[%s1873_s27 + $0xc0] sm:$0xff] %v238_v24 }
  0x1f   : > { %241 = vst [vmem:[%s1873_s27 + $0xc8] sm:$0xff] %v240_v25  ;;  %243 = vst [vmem:[%s1873_s27 + $0xd0] sm:$0xff] %v242_v26 }
  0x20   : > { %245 = vst [vmem:[%s1873_s27 + $0xd8] sm:$0xff] %v244_v27 }
  0x21 PF: > { %p1448_p6 = scmp.ge.s32.totalorder %s1799_s16, 1  ;;  %p265_p7 = scmp.lt.s32.totalorder %s1799_s16, 6 }
  0x23   : > { %p266_p8 = pnand %p1448_p6, %p265_p7 }
  0x24   : > { %s272_s28 = sand.u32 (!%p266_p8), 1, %s1783_s12   ;;  %s1449_s29 = sshll.u32 (!%p266_p8), %s1791_s14, 6 }
  0x25   : > { %269 = sbr.rel (%p266_p8) target bundleno = 404 (0x194), region = 51  ;;  %p318_p9 = scmp.lt.s32.totalorder (!%p266_p8), %s1449_s29, 319 }
  0x26   : > { %s1581_s30 = smul.u32 (!%p266_p8), 224, %s272_s28  ;;  %p1452_p10 = scmp.ne.s32.totalorder (!%p266_p8), %s1791_s14, 0 }
  0x28   : > { %s1934_s8 = scalar_lea.vmem (!%p266_p8), [#allocation2], %s1581_s30 }
  0x2c   : > { %s2511_s29 = smov (!%p318_p9, %s1449_s29), 319  ;;  %348 = sbr.rel (%p1452_p10) target bundleno = 60 (0x3c), region = 59 }
  0x2d   : > { %s1551_s4 = sshll.u32 %s2511_s29, 3  ;;  %v1801_v28 = vmov (!%p1452_p10), 0.0  }
  0x2e   : > { %s1932_s7 = scalar_lea.vmem %s2501_s1, %s1551_s4  ;;  %349 = vst [vmem:[%s2503_s3] sm:$0xff] (!%p1452_p10), %v1801_v28  ;;  %350 = vst [vmem:[%s2503_s3 + $0x8] sm:$0xff] (!%p1452_p10), %v1801_v28 }
  0x2f   : > { %351 = vst [vmem:[%s2503_s3 + $0x10] sm:$0xff] (!%p1452_p10), %v1801_v28  ;;  %352 = vst [vmem:[%s2503_s3 + $0x18] sm:$0xff] (!%p1452_p10), %v1801_v28 }
  0x30   : > { %353 = vst [vmem:[%s2503_s3 + $0x20] sm:$0xff] (!%p1452_p10), %v1801_v28  ;;  %354 = vst [vmem:[%s2503_s3 + $0x28] sm:$0xff] (!%p1452_p10), %v1801_v28 }
  0x31   : > { %355 = vst [vmem:[%s2503_s3 + $0x30] sm:$0xff] (!%p1452_p10), %v1801_v28  ;;  %356 = vst [vmem:[%s2503_s3 + $0x38] sm:$0xff] (!%p1452_p10), %v1801_v28 }
  0x32   : > { %357 = vst [vmem:[%s2503_s3 + $0x40] sm:$0xff] (!%p1452_p10), %v1801_v28  ;;  %358 = vst [vmem:[%s2503_s3 + $0x48] sm:$0xff] (!%p1452_p10), %v1801_v28 }
  0x33   : > { %359 = vst [vmem:[%s2503_s3 + $0x50] sm:$0xff] %v1801_v28  ;;  %360 = vst [vmem:[%s2503_s3 + $0x58] sm:$0xff] %v1801_v28 }
  0x34   : > { %361 = vst [vmem:[%s2503_s3 + $0x60] sm:$0xff] %v1801_v28  ;;  %362 = vst [vmem:[%s2503_s3 + $0x68] sm:$0xff] %v1801_v28 }
  0x35   : > { %363 = vst [vmem:[%s2503_s3 + $0x70] sm:$0xff] %v1801_v28  ;;  %364 = vst [vmem:[%s2503_s3 + $0x78] sm:$0xff] %v1801_v28 }
  0x36   : > { %365 = vst [vmem:[%s2503_s3 + $0x80] sm:$0xff] %v1801_v28  ;;  %366 = vst [vmem:[%s2503_s3 + $0x88] sm:$0xff] %v1801_v28 }
  0x37   : > { %367 = vst [vmem:[%s2503_s3 + $0x90] sm:$0xff] %v1801_v28  ;;  %368 = vst [vmem:[%s2503_s3 + $0x98] sm:$0xff] %v1801_v28 }
  0x38   : > { %369 = vst [vmem:[%s2503_s3 + $0xa0] sm:$0xff] %v1801_v28  ;;  %370 = vst [vmem:[%s2503_s3 + $0xa8] sm:$0xff] %v1801_v28 }
  0x39   : > { %371 = vst [vmem:[%s2503_s3 + $0xb0] sm:$0xff] %v1801_v28  ;;  %372 = vst [vmem:[%s2503_s3 + $0xb8] sm:$0xff] %v1801_v28 }
  0x3a   : > { %373 = vst [vmem:[%s2503_s3 + $0xc0] sm:$0xff] %v1801_v28  ;;  %374 = vst [vmem:[%s2503_s3 + $0xc8] sm:$0xff] %v1801_v28 }
  0x3b   : > { %375 = vst [vmem:[%s2503_s3 + $0xd0] sm:$0xff] %v1801_v28  ;;  %376 = vst [vmem:[%s2503_s3 + $0xd8] sm:$0xff] %v1801_v28 }
  0x3c PF: > { %v1623_v29 = vld [vmem:[%s1932_s7 + $0x4] ss:$8 sps:$4 sm:$0xff]   ;;  %v1627_v31 = vld [vmem:[%s1932_s7] ss:$8 sps:$4 sm:$0xff]   ;;  %v1629_v33 = vld [vmem:[%s1932_s7 + $0x14] ss:$8 sps:$4 sm:$0xff]  }
  0x3d   : > { %v1625_v30 = vld [vmem:[%s1932_s7 + $0x104] ss:$8 sps:$4 sm:$0xff]   ;;  %957 = vmatprep.subr.bf16.mxu1 %v1623_v29  ;;  %v1628_v32 = vld [vmem:[%s1932_s7 + $0x100] ss:$8 sps:$4 sm:$0xff]   ;;  %v1631_v34 = vld [vmem:[%s1932_s7 + $0x114] ss:$8 sps:$4 sm:$0xff]  }
  0x3e   : > { %1060 = vmatprep.subr.bf16.mxu0 %v1625_v30  ;;  %958 = vmatpush1.bf16.msra.mxu1 %v1627_v31  ;;  %v1633_v35 = vld [vmem:[%s1932_s7 + $0x10] ss:$8 sps:$4 sm:$0xff]   ;;  %v1635_v37 = vld [vmem:[%s1932_s7 + $0x24] ss:$8 sps:$4 sm:$0xff]   ;;  %v1639_v39 = vld [vmem:[%s1932_s7 + $0x20] ss:$8 sps:$4 sm:$0xff]  }
  0x3f   : > { %1061 = vmatpush1.bf16.msra.mxu0 %v1628_v32  ;;  %959 = vmatprep.subr.bf16.mxu1 %v1629_v33  ;;  %v1634_v36 = vld [vmem:[%s1932_s7 + $0x110] ss:$8 sps:$4 sm:$0xff]   ;;  %v1637_v38 = vld [vmem:[%s1932_s7 + $0x124] ss:$8 sps:$4 sm:$0xff]   ;;  %v1640_v40 = vld [vmem:[%s1932_s7 + $0x120] ss:$8 sps:$4 sm:$0xff]  }
  0x40   : > { %1062 = vmatprep.subr.bf16.mxu0 %v1631_v34  ;;  %v1641_v41 = vld [vmem:[%s1932_s7 + $0x34] ss:$8 sps:$4 sm:$0xff]   ;;  %v1645_v43 = vld [vmem:[%s1932_s7 + $0x30] ss:$8 sps:$4 sm:$0xff]   ;;  %v1647_v45 = vld [vmem:[%s1932_s7 + $0x44] ss:$8 sps:$4 sm:$0xff]  }
  0x41   : > { %v1643_v42 = vld [vmem:[%s1932_s7 + $0x134] ss:$8 sps:$4 sm:$0xff]   ;;  %v1646_v44 = vld [vmem:[%s1932_s7 + $0x130] ss:$8 sps:$4 sm:$0xff]   ;;  %v1649_v46 = vld [vmem:[%s1932_s7 + $0x144] ss:$8 sps:$4 sm:$0xff]  }
  0x42   : > { %960 = vmatpush1.bf16.msra.mxu1 %v1633_v35  ;;  %v1651_v47 = vld [vmem:[%s1932_s7 + $0x40] ss:$8 sps:$4 sm:$0xff]   ;;  %v1653_v49 = vld [vmem:[%s1932_s7 + $0x54] ss:$8 sps:$4 sm:$0xff]   ;;  %v1657_v51 = vld [vmem:[%s1932_s7 + $0x50] ss:$8 sps:$4 sm:$0xff]  }
  0x43   : > { %1063 = vmatpush1.bf16.msra.mxu0 %v1634_v36  ;;  %961 = vmatprep.subr.bf16.mxu1 %v1635_v37  ;;  %v1652_v48 = vld [vmem:[%s1932_s7 + $0x140] ss:$8 sps:$4 sm:$0xff]   ;;  %v1655_v50 = vld [vmem:[%s1932_s7 + $0x154] ss:$8 sps:$4 sm:$0xff]   ;;  %v1658_v52 = vld [vmem:[%s1932_s7 + $0x150] ss:$8 sps:$4 sm:$0xff]  }
  0x44   : > { %1064 = vmatprep.subr.bf16.mxu0 %v1637_v38  ;;  %v1659_v53 = vld [vmem:[%s1932_s7 + $0x64] ss:$8 sps:$4 sm:$0xff]   ;;  %v1663_v55 = vld [vmem:[%s1932_s7 + $0x60] ss:$8 sps:$4 sm:$0xff]   ;;  %v1665_v57 = vld [vmem:[%s1932_s7 + $0x74] ss:$8 sps:$4 sm:$0xff]  }
  0x45   : > { %v1661_v54 = vld [vmem:[%s1932_s7 + $0x164] ss:$8 sps:$4 sm:$0xff]   ;;  %v1664_v56 = vld [vmem:[%s1932_s7 + $0x160] ss:$8 sps:$4 sm:$0xff]   ;;  %v1667_v58 = vld [vmem:[%s1932_s7 + $0x174] ss:$8 sps:$4 sm:$0xff]  }
  0x46   : > { %962 = vmatpush1.bf16.msra.mxu1 %v1639_v39  ;;  %v1669_v59 = vld [vmem:[%s1932_s7 + $0x70] ss:$8 sps:$4 sm:$0xff]   ;;  %v1671_v61 = vld [vmem:[%s1932_s7 + $0x84] ss:$8 sps:$4 sm:$0xff]   ;;  %v1675_v63 = vld [vmem:[%s1932_s7 + $0x80] ss:$8 sps:$4 sm:$0xff]  }
  0x47   : > { %1065 = vmatpush1.bf16.msra.mxu0 %v1640_v40  ;;  %963 = vmatprep.subr.bf16.mxu1 %v1641_v41  ;;  %v1670_v60 = vld [vmem:[%s1932_s7 + $0x170] ss:$8 sps:$4 sm:$0xff]   ;;  %v1673_v62 = vld [vmem:[%s1932_s7 + $0x184] ss:$8 sps:$4 sm:$0xff]   ;;  %v1676_v0 = vld [vmem:[%s1932_s7 + $0x180] ss:$8 sps:$4 sm:$0xff]  }
  0x48   : > { %1066 = vmatprep.subr.bf16.mxu0 %v1643_v42  ;;  %v1677_v1 = vld [vmem:[%s1932_s7 + $0x94] ss:$8 sps:$4 sm:$0xff]   ;;  %v1681_v3 = vld [vmem:[%s1932_s7 + $0x90] ss:$8 sps:$4 sm:$0xff]   ;;  %v1683_v5 = vld [vmem:[%s1932_s7 + $0xa4] ss:$8 sps:$4 sm:$0xff]  }
  0x49   : > { %v1679_v2 = vld [vmem:[%s1932_s7 + $0x194] ss:$8 sps:$4 sm:$0xff]   ;;  %v1682_v4 = vld [vmem:[%s1932_s7 + $0x190] ss:$8 sps:$4 sm:$0xff]   ;;  %v1685_v6 = vld [vmem:[%s1932_s7 + $0x1a4] ss:$8 sps:$4 sm:$0xff]  }
  0x4a   : > { %964 = vmatpush1.bf16.msra.mxu1 %v1645_v43  ;;  %v1687_v7 = vld [vmem:[%s1932_s7 + $0xa0] ss:$8 sps:$4 sm:$0xff]   ;;  %v1689_v9 = vld [vmem:[%s1932_s7 + $0xb4] ss:$8 sps:$4 sm:$0xff]   ;;  %v1693_v11 = vld [vmem:[%s1932_s7 + $0xb0] ss:$8 sps:$4 sm:$0xff]  }
  0x4b   : > { %1067 = vmatpush1.bf16.msra.mxu0 %v1646_v44  ;;  %965 = vmatprep.subr.bf16.mxu1 %v1647_v45  ;;  %v1688_v8 = vld [vmem:[%s1932_s7 + $0x1a0] ss:$8 sps:$4 sm:$0xff]   ;;  %v1691_v10 = vld [vmem:[%s1932_s7 + $0x1b4] ss:$8 sps:$4 sm:$0xff]   ;;  %v1694_v12 = vld [vmem:[%s1932_s7 + $0x1b0] ss:$8 sps:$4 sm:$0xff]  }
  0x4c   : > { %1068 = vmatprep.subr.bf16.mxu0 %v1649_v46  ;;  %v1695_v13 = vld [vmem:[%s1932_s7 + $0xc4] ss:$8 sps:$4 sm:$0xff]   ;;  %v1699_v17 = vld [vmem:[%s1932_s7 + $0xc0] ss:$8 sps:$4 sm:$0xff]   ;;  %v1701_v19 = vld [vmem:[%s1932_s7 + $0xd4] ss:$8 sps:$4 sm:$0xff]  }
  0x4d   : > { %v1721_v14 = vld [vmem:[%s1934_s8 + $0x4] ss:$16 sps:$4 sm:$0xff]   ;;  %v1724_v16 = vld [vmem:[%s1934_s8 + $0xc] ss:$16 sps:$4 sm:$0xff]   ;;  %v1700_v18 = vld [vmem:[%s1932_s7 + $0x1c0] ss:$8 sps:$4 sm:$0xff]  }
  0x4e   : > { %966 = vmatpush1.bf16.msra.mxu1 %v1651_v47  ;;  %v1697_v15 = vld [vmem:[%s1932_s7 + $0x1c4] ss:$8 sps:$4 sm:$0xff]   ;;  %989 = vmatprep.mubr.bf16.mxu1 %v1721_v14  ;;  %v1703_v20 = vld [vmem:[%s1932_s7 + $0x1d4] ss:$8 sps:$4 sm:$0xff]   ;;  %v1705_v21 = vld [vmem:[%s1932_s7 + $0xd0] ss:$8 sps:$4 sm:$0xff]  }
  0x4f   : > { %1069 = vmatpush1.bf16.msra.mxu0 %v1652_v48  ;;  %967 = vmatprep.subr.bf16.mxu1 %v1653_v49  ;;  %v1706_v22 = vld [vmem:[%s1932_s7 + $0x1d0] ss:$8 sps:$4 sm:$0xff]   ;;  %v1707_v23 = vld [vmem:[%s1932_s7 + $0xe4] ss:$8 sps:$4 sm:$0xff]   ;;  %v1711_v25 = vld [vmem:[%s1932_s7 + $0xe0] ss:$8 sps:$4 sm:$0xff]  }
  0x50   : > { %1070 = vmatprep.subr.bf16.mxu0 %v1655_v50  ;;  %1092 = vmatprep.mubr.bf16.mxu0 %v1724_v16  ;;  %v1709_v24 = vld [vmem:[%s1932_s7 + $0x1e4] ss:$8 sps:$4 sm:$0xff]   ;;  %v1712_v26 = vld [vmem:[%s1932_s7 + $0x1e0] ss:$8 sps:$4 sm:$0xff]   ;;  %v1713_v27 = vld [vmem:[%s1932_s7 + $0xf4] ss:$8 sps:$4 sm:$0xff]  }
  0x51   : > { %v1715_v28 = vld [vmem:[%s1932_s7 + $0x1f4] ss:$8 sps:$4 sm:$0xff]   ;;  %v1717_v29 = vld [vmem:[%s1932_s7 + $0xf0] ss:$8 sps:$4 sm:$0xff]   ;;  %v381_v14 = vld [vmem:[%s2503_s3 + $0x20] sm:$0xff]  ;;  %p1545_p11 = scmp.ne.s32.totalorder %s1791_s14, 4 }
  0x52   : > { %968 = vmatpush1.bf16.msra.mxu1 %v1657_v51  ;;  %v1718_v30 = vld [vmem:[%s1932_s7 + $0x1f0] ss:$8 sps:$4 sm:$0xff]   ;;  %v1725_v33 = vld [vmem:[%s1934_s8 + $0x24] ss:$16 sps:$4 sm:$0xff]   ;;  %v1727_v34 = vld [vmem:[%s1934_s8 + $0x2c] ss:$16 sps:$4 sm:$0xff]  }
  0x53   : > { %1071 = vmatpush1.bf16.msra.mxu0 %v1658_v52  ;;  %969 = vmatprep.subr.bf16.mxu1 %v1659_v53  ;;  %v1719_v31 = vld [vmem:[%s1934_s8] ss:$16 sps:$4 sm:$0xff]   ;;  %v1722_v32 = vld [vmem:[%s1934_s8 + $0x8] ss:$16 sps:$4 sm:$0xff]   ;;  %v1731_v37 = vld [vmem:[%s1934_s8 + $0x44] ss:$16 sps:$4 sm:$0xff]  }
  0x54   : > { %1072 = vmatprep.subr.bf16.mxu0 %v1661_v54  ;;  %v1729_v35 = vld [vmem:[%s1934_s8 + $0x20] ss:$16 sps:$4 sm:$0xff]   ;;  %v1730_v36 = vld [vmem:[%s1934_s8 + $0x28] ss:$16 sps:$4 sm:$0xff]   ;;  %v1733_v38 = vld [vmem:[%s1934_s8 + $0x4c] ss:$16 sps:$4 sm:$0xff]  }
  0x55   : > { %v1735_v39 = vld [vmem:[%s1934_s8 + $0x40] ss:$16 sps:$4 sm:$0xff]   ;;  %v1736_v40 = vld [vmem:[%s1934_s8 + $0x48] ss:$16 sps:$4 sm:$0xff]   ;;  %v1737_v41 = vld [vmem:[%s1934_s8 + $0x64] ss:$16 sps:$4 sm:$0xff]  }
  0x56   : > { %970 = vmatpush1.bf16.msra.mxu1 %v1663_v55  ;;  %v1739_v42 = vld [vmem:[%s1934_s8 + $0x6c] ss:$16 sps:$4 sm:$0xff]   ;;  %v1741_v43 = vld [vmem:[%s1934_s8 + $0x60] ss:$16 sps:$4 sm:$0xff]   ;;  %v1742_v44 = vld [vmem:[%s1934_s8 + $0x68] ss:$16 sps:$4 sm:$0xff]  }
  0x57   : > { %1073 = vmatpush1.bf16.msra.mxu0 %v1664_v56  ;;  %971 = vmatprep.subr.bf16.mxu1 %v1665_v57  ;;  %v1743_v45 = vld [vmem:[%s1934_s8 + $0x84] ss:$16 sps:$4 sm:$0xff]   ;;  %v1745_v46 = vld [vmem:[%s1934_s8 + $0x8c] ss:$16 sps:$4 sm:$0xff]   ;;  %v1747_v47 = vld [vmem:[%s1934_s8 + $0x80] ss:$16 sps:$4 sm:$0xff]  }
  0x58   : > { %1074 = vmatprep.subr.bf16.mxu0 %v1667_v58  ;;  %v1748_v48 = vld [vmem:[%s1934_s8 + $0x88] ss:$16 sps:$4 sm:$0xff]   ;;  %v1749_v49 = vld [vmem:[%s1934_s8 + $0xa4] ss:$16 sps:$4 sm:$0xff]   ;;  %v1751_v50 = vld [vmem:[%s1934_s8 + $0xac] ss:$16 sps:$4 sm:$0xff]  }
  0x59   : > { %v1753_v51 = vld [vmem:[%s1934_s8 + $0xa0] ss:$16 sps:$4 sm:$0xff]   ;;  %v1754_v52 = vld [vmem:[%s1934_s8 + $0xa8] ss:$16 sps:$4 sm:$0xff]   ;;  %v1755_v53 = vld [vmem:[%s1934_s8 + $0xc4] ss:$16 sps:$4 sm:$0xff]  }
  0x5a   : > { %972 = vmatpush1.bf16.msra.mxu1 %v1669_v59  ;;  %v1757_v54 = vld [vmem:[%s1934_s8 + $0xcc] ss:$16 sps:$4 sm:$0xff]   ;;  %v1759_v55 = vld [vmem:[%s1934_s8 + $0xc0] ss:$16 sps:$4 sm:$0xff]   ;;  %v1760_v56 = vld [vmem:[%s1934_s8 + $0xc8] ss:$16 sps:$4 sm:$0xff]  }
  0x5b   : > { %1075 = vmatpush1.bf16.msra.mxu0 %v1670_v60  ;;  %973 = vmatprep.subr.bf16.mxu1 %v1671_v61  ;;  %v377_v58 = vld [vmem:[%s2503_s3] sm:$0xff] }
  0x5c   : > { %1076 = vmatprep.subr.bf16.mxu0 %v1673_v62  ;;  %v378_v62 = vld [vmem:[%s2503_s3 + $0x8] sm:$0xff] }
  0x5e   : > { %974 = vmatpush1.bf16.msra.mxu1 %v1675_v63 }
  0x5f   : > { %1077 = vmatpush1.bf16.msra.mxu0 %v1676_v0  ;;  %975 = vmatprep.subr.bf16.mxu1 %v1677_v1 }
  0x60   : > { %1078 = vmatprep.subr.bf16.mxu0 %v1679_v2  ;;  %v379_v2 = vld [vmem:[%s2503_s3 + $0x10] sm:$0xff] }
  0x62   : > { %976 = vmatpush1.bf16.msra.mxu1 %v1681_v3 }
  0x63   : > { %1079 = vmatpush1.bf16.msra.mxu0 %v1682_v4  ;;  %977 = vmatprep.subr.bf16.mxu1 %v1683_v5 }
  0x64   : > { %1080 = vmatprep.subr.bf16.mxu0 %v1685_v6 }
  0x66   : > { %978 = vmatpush1.bf16.msra.mxu1 %v1687_v7  ;;  %v380_v7 = vld [vmem:[%s2503_s3 + $0x18] sm:$0xff] }
  0x67   : > { %1081 = vmatpush1.bf16.msra.mxu0 %v1688_v8  ;;  %979 = vmatprep.subr.bf16.mxu1 %v1689_v9 }
  0x68   : > { %1082 = vmatprep.subr.bf16.mxu0 %v1691_v10 }
  0x6a   : > { %980 = vmatpush1.bf16.msra.mxu1 %v1693_v11 }
  0x6b   : > { %1083 = vmatpush1.bf16.msra.mxu0 %v1694_v12  ;;  %981 = vmatprep.subr.bf16.mxu1 %v1695_v13 }
  0x6c   : > { %1084 = vmatprep.subr.bf16.mxu0 %v1697_v15 }
  0x6e   : > { %982 = vmatpush1.bf16.msra.mxu1 %v1699_v17 }
  0x6f   : > { %1085 = vmatpush1.bf16.msra.mxu0 %v1700_v18  ;;  %983 = vmatprep.subr.bf16.mxu1 %v1701_v19  ;;  %v382_v18 = vld [vmem:[%s2503_s3 + $0x28] sm:$0xff] }
  0x70   : > { %1086 = vmatprep.subr.bf16.mxu0 %v1703_v20 }
  0x72   : > { %984 = vmatpush1.bf16.msra.mxu1 %v1705_v21 }
  0x73   : > { %1087 = vmatpush1.bf16.msra.mxu0 %v1706_v22  ;;  %985 = vmatprep.subr.bf16.mxu1 %v1707_v23  ;;  %v383_v22 = vld [vmem:[%s2503_s3 + $0x30] sm:$0xff] }
  0x74   : > { %1088 = vmatprep.subr.bf16.mxu0 %v1709_v24 }
  0x76   : > { %986 = vmatpush1.bf16.msra.mxu1 %v1711_v25 }
  0x77   : > { %1089 = vmatpush1.bf16.msra.mxu0 %v1712_v26  ;;  %987 = vmatprep.subr.bf16.mxu1 %v1713_v27  ;;  %v384_v27 = vld [vmem:[%s2503_s3 + $0x38] sm:$0xff] }
  0x78   : > { %1090 = vmatprep.subr.bf16.mxu0 %v1715_v28 }
  0x7a   : > { %988 = vmatpush1.bf16.msra.mxu1 %v1717_v29 }
  0x7b   : > { %1091 = vmatpush1.bf16.msra.mxu0 %v1718_v30 }
  0x7d   : > { %990 = vmatmul.mubr.bf16.vlgmr.msra.gmra.mrb[0].mxu1 %v1719_v31 }
  0x7e   : > { %1093 = vmatmul.mubr.bf16.vlgmr.msra.gmra.mrb[0].mxu0 %v1722_v32  ;;  %999 = vmatprep.mubr.bf16.mxu1 %v1725_v33 }
  0x7f   : > { %1102 = vmatprep.mubr.bf16.mxu0 %v1727_v34  ;;  %v385_v34 = vld [vmem:[%s2503_s3 + $0x40] sm:$0xff] }
  0x85   : > { %1000 = vmatmul.mubr.bf16.gmra.mrb[4].mxu1 %v1729_v35 }
  0x86   : > { %1103 = vmatmul.mubr.bf16.gmra.mrb[4].mxu0 %v1730_v36  ;;  %1009 = vmatprep.mubr.bf16.mxu1 %v1731_v37 }
  0x87   : > { %1112 = vmatprep.mubr.bf16.mxu0 %v1733_v38  ;;  %v386_v38 = vld [vmem:[%s2503_s3 + $0x48] sm:$0xff] }
  0x8d   : > { %1010 = vmatmul.mubr.bf16.gmra.mrb[8].mxu1 %v1735_v39 }
  0x8e   : > { %1113 = vmatmul.mubr.bf16.gmra.mrb[8].mxu0 %v1736_v40  ;;  %1019 = vmatprep.mubr.bf16.mxu1 %v1737_v41 }
  0x8f   : > { %1122 = vmatprep.mubr.bf16.mxu0 %v1739_v42  ;;  %v387_v42 = vld [vmem:[%s2503_s3 + $0x50] sm:$0xff] }
  0x95   : > { %1020 = vmatmul.mubr.bf16.gmra.mrb[12].mxu1 %v1741_v43 }
  0x96   : > { %1123 = vmatmul.mubr.bf16.gmra.mrb[12].mxu0 %v1742_v44  ;;  %1029 = vmatprep.mubr.bf16.mxu1 %v1743_v45 }
  0x97   : > { %1132 = vmatprep.mubr.bf16.mxu0 %v1745_v46 }
  0x9d   : > { %1030 = vmatmul.mubr.bf16.gmra.mrb[16].mxu1 %v1747_v47  ;;  %v388_v47 = vld [vmem:[%s2503_s3 + $0x58] sm:$0xff] }
  0x9e   : > { %1133 = vmatmul.mubr.bf16.gmra.mrb[16].mxu0 %v1748_v48  ;;  %1039 = vmatprep.mubr.bf16.mxu1 %v1749_v49 }
  0x9f   : > { %1142 = vmatprep.mubr.bf16.mxu0 %v1751_v50 }
  0xa5   : > { %1040 = vmatmul.mubr.bf16.gmra.mrb[20].mxu1 %v1753_v51 }
  0xa6   : > { %1143 = vmatmul.mubr.bf16.gmra.mrb[20].mxu0 %v1754_v52  ;;  %1049 = vmatprep.mubr.bf16.mxu1 %v1755_v53 }
  0xa7   : > { %1152 = vmatprep.mubr.bf16.mxu0 %v1757_v54  ;;  %v389_v54 = vld [vmem:[%s2503_s3 + $0x60] sm:$0xff] }
  0xad   : > { %1050 = vmatmul.mubr.bf16.gmra.mrb[24].mxu1 %v1759_v55 }
  0xae   : > { %1153 = vmatmul.mubr.bf16.gmra.mrb[24].mxu0 %v1760_v56 }
 0x150   : > { %v991_v57 = vpop.f32.mrb[0].mxu1 }
 0x151   : > { %v1094_v59 = vpop.f32.mrb[0].mxu0  ;;  %v993_v61 = vpop.f32.mrb[1].mxu1 }
 0x152   : > { %v1095_v60 = vadd.f32 %v1094_v59, %v991_v57  ;;  %v1096_v63 = vpop.f32.mrb[1].mxu0  ;;  %v995_v1 = vpop.f32.mrb[2].mxu1 }
 0x153   : > { %v1097_v0 = vadd.f32 %v1096_v63, %v993_v61  ;;  %v1098_v3 = vpop.f32.mrb[2].mxu0  ;;  %v997_v6 = vpop.f32.mrb[3].mxu1 }
 0x154   : > { %v1163_v4 = vadd.f32 %v1095_v60, %v377_v58  ;;  %v1099_v5 = vadd.f32 %v1098_v3, %v995_v1  ;;  %v1100_v8 = vpop.f32.mrb[3].mxu0  ;;  %v390_v58 = vld [vmem:[%s2503_s3 + $0x68] sm:$0xff]  ;;  %v392_v3 = vld [vmem:[%s2503_s3 + $0x78] sm:$0xff] }
 0x155   : > { %v1164_v9 = vadd.f32 %v1097_v0, %v378_v62  ;;  %v1101_v10 = vadd.f32 %v1100_v8, %v997_v6  ;;  %v391_v62 = vld [vmem:[%s2503_s3 + $0x70] sm:$0xff] }
 0x156   : > { %1191 = vst [vmem:[%s2503_s3] sm:$0xff] %v1163_v4  ;;  %v1165_v11 = vadd.f32 %v1099_v5, %v379_v2 }
 0x157   : > { %1192 = vst [vmem:[%s2503_s3 + $0x8] sm:$0xff] %v1164_v9  ;;  %v1166_v12 = vadd.f32 %v1101_v10, %v380_v7  ;;  %v393_v10 = vld [vmem:[%s2503_s3 + $0x80] sm:$0xff] }
 0x158   : > { %1193 = vst [vmem:[%s2503_s3 + $0x10] sm:$0xff] %v1165_v11  ;;  %v1001_v13 = vpop.f32.mrb[4].mxu1 }
 0x159   : > { %1194 = vst [vmem:[%s2503_s3 + $0x18] sm:$0xff] %v1166_v12  ;;  %v1104_v15 = vpop.f32.mrb[4].mxu0  ;;  %v1003_v17 = vpop.f32.mrb[5].mxu1 }
 0x15a   : > { %v1105_v16 = vadd.f32 %v1104_v15, %v1001_v13  ;;  %v1106_v19 = vpop.f32.mrb[5].mxu0  ;;  %v1005_v21 = vpop.f32.mrb[6].mxu1 }
 0x15b   : > { %v1107_v20 = vadd.f32 %v1106_v19, %v1003_v17  ;;  %v1108_v23 = vpop.f32.mrb[6].mxu0  ;;  %v1007_v26 = vpop.f32.mrb[7].mxu1 }
 0x15c   : > { %v1167_v24 = vadd.f32 %v1105_v16, %v381_v14  ;;  %v1109_v25 = vadd.f32 %v1108_v23, %v1005_v21  ;;  %v1110_v28 = vpop.f32.mrb[7].mxu0  ;;  %v394_v14 = vld [vmem:[%s2503_s3 + $0x88] sm:$0xff]  ;;  %v396_v23 = vld [vmem:[%s2503_s3 + $0x98] sm:$0xff] }
 0x15d   : > { %v1168_v29 = vadd.f32 %v1107_v20, %v382_v18  ;;  %v1111_v30 = vadd.f32 %v1110_v28, %v1007_v26  ;;  %v395_v18 = vld [vmem:[%s2503_s3 + $0x90] sm:$0xff] }
 0x15e   : > { %1195 = vst [vmem:[%s2503_s3 + $0x20] sm:$0xff] %v1167_v24  ;;  %v1169_v31 = vadd.f32 %v1109_v25, %v383_v22 }
 0x15f   : > { %1196 = vst [vmem:[%s2503_s3 + $0x28] sm:$0xff] %v1168_v29  ;;  %v1170_v32 = vadd.f32 %v1111_v30, %v384_v27  ;;  %v397_v30 = vld [vmem:[%s2503_s3 + $0xa0] sm:$0xff] }
 0x160   : > { %1197 = vst [vmem:[%s2503_s3 + $0x30] sm:$0xff] %v1169_v31  ;;  %v1011_v33 = vpop.f32.mrb[8].mxu1 }
 0x161   : > { %1198 = vst [vmem:[%s2503_s3 + $0x38] sm:$0xff] %v1170_v32  ;;  %v1114_v35 = vpop.f32.mrb[8].mxu0  ;;  %v1013_v37 = vpop.f32.mrb[9].mxu1 }
 0x162   : > { %v1115_v36 = vadd.f32 %v1114_v35, %v1011_v33  ;;  %v1116_v39 = vpop.f32.mrb[9].mxu0  ;;  %v1015_v41 = vpop.f32.mrb[10].mxu1 }
 0x163   : > { %v1117_v40 = vadd.f32 %v1116_v39, %v1013_v37  ;;  %v1118_v43 = vpop.f32.mrb[10].mxu0  ;;  %v1017_v46 = vpop.f32.mrb[11].mxu1 }
 0x164   : > { %v1171_v44 = vadd.f32 %v1115_v36, %v385_v34  ;;  %v1119_v45 = vadd.f32 %v1118_v43, %v1015_v41  ;;  %v1120_v48 = vpop.f32.mrb[11].mxu0  ;;  %v398_v34 = vld [vmem:[%s2503_s3 + $0xa8] sm:$0xff]  ;;  %v400_v43 = vld [vmem:[%s2503_s3 + $0xb8] sm:$0xff] }
 0x165   : > { %v1172_v49 = vadd.f32 %v1117_v40, %v386_v38  ;;  %v1121_v50 = vadd.f32 %v1120_v48, %v1017_v46  ;;  %v399_v38 = vld [vmem:[%s2503_s3 + $0xb0] sm:$0xff] }
 0x166   : > { %1199 = vst [vmem:[%s2503_s3 + $0x40] sm:$0xff] %v1171_v44  ;;  %v1173_v51 = vadd.f32 %v1119_v45, %v387_v42 }
 0x167   : > { %1200 = vst [vmem:[%s2503_s3 + $0x48] sm:$0xff] %v1172_v49  ;;  %v1174_v52 = vadd.f32 %v1121_v50, %v388_v47  ;;  %v401_v50 = vld [vmem:[%s2503_s3 + $0xc0] sm:$0xff] }
 0x168   : > { %1201 = vst [vmem:[%s2503_s3 + $0x50] sm:$0xff] %v1173_v51  ;;  %v1021_v53 = vpop.f32.mrb[12].mxu1 }
 0x169   : > { %1202 = vst [vmem:[%s2503_s3 + $0x58] sm:$0xff] %v1174_v52  ;;  %v1124_v55 = vpop.f32.mrb[12].mxu0  ;;  %v1023_v57 = vpop.f32.mrb[13].mxu1 }
 0x16a   : > { %v1125_v56 = vadd.f32 %v1124_v55, %v1021_v53  ;;  %v1126_v59 = vpop.f32.mrb[13].mxu0  ;;  %v1025_v61 = vpop.f32.mrb[14].mxu1 }
 0x16b   : > { %v1127_v60 = vadd.f32 %v1126_v59, %v1023_v57  ;;  %v1128_v63 = vpop.f32.mrb[14].mxu0  ;;  %v1027_v2 = vpop.f32.mrb[15].mxu1 }
 0x16c   : > { %v1175_v0 = vadd.f32 %v1125_v56, %v389_v54  ;;  %v1129_v1 = vadd.f32 %v1128_v63, %v1025_v61  ;;  %v1130_v4 = vpop.f32.mrb[15].mxu0  ;;  %v402_v54 = vld [vmem:[%s2503_s3 + $0xc8] sm:$0xff]  ;;  %v404_v63 = vld [vmem:[%s2503_s3 + $0xd8] sm:$0xff] }
 0x16d   : > { %v1176_v5 = vadd.f32 %v1127_v60, %v390_v58  ;;  %v1131_v6 = vadd.f32 %v1130_v4, %v1027_v2  ;;  %v403_v58 = vld [vmem:[%s2503_s3 + $0xd0] sm:$0xff] }
 0x16e   : > { %1203 = vst [vmem:[%s2503_s3 + $0x60] sm:$0xff] %v1175_v0  ;;  %v1177_v7 = vadd.f32 %v1129_v1, %v391_v62 }
 0x16f   : > { %1204 = vst [vmem:[%s2503_s3 + $0x68] sm:$0xff] %v1176_v5  ;;  %v1178_v8 = vadd.f32 %v1131_v6, %v392_v3  ;;  %v1253_v5 = vlaneseq (!%p1545_p11)  ;;  %v1251_v6 = vld [vmem:[%s2502_s2] sm:$0x3] (!%p1545_p11) }
 0x170   : > { %1205 = vst [vmem:[%s2503_s3 + $0x70] sm:$0xff] %v1177_v7  ;;  %v1031_v9 = vpop.f32.mrb[16].mxu1 }
 0x171   : > { %1206 = vst [vmem:[%s2503_s3 + $0x78] sm:$0xff] %v1178_v8  ;;  %v1134_v11 = vpop.f32.mrb[16].mxu0  ;;  %v1033_v13 = vpop.f32.mrb[17].mxu1  ;;  %v1254_v7 = vshrl.u32 (!%p1545_p11), %v1253_v5, 7  ;;  %v1223_v8 = vld [vmem:[%s2503_s3] sm:$0xff] (!%p1545_p11) }
 0x172   : > { %v1135_v12 = vadd.f32 %v1134_v11, %v1031_v9  ;;  %v1136_v15 = vpop.f32.mrb[17].mxu0  ;;  %v1035_v17 = vpop.f32.mrb[18].mxu1  ;;  %v1224_v9 = vld [vmem:[%s2503_s3 + $0x8] sm:$0xff] (!%p1545_p11)  ;;  %v1226_v11 = vld [vmem:[%s2503_s3 + $0x18] sm:$0xff] (!%p1545_p11) }
 0x173   : > { %v1137_v16 = vadd.f32 %v1136_v15, %v1033_v13  ;;  %v1138_v19 = vpop.f32.mrb[18].mxu0  ;;  %v1037_v22 = vpop.f32.mrb[19].mxu1  ;;  %v1259_v13 = vsub.s32 (!%p1545_p11), 1, %v1254_v7  ;;  %v1228_v15 = vld [vmem:[%s2503_s3 + $0x28] sm:$0xff] (!%p1545_p11) }
 0x174   : > { %v1179_v20 = vadd.f32 %v1135_v12, %v393_v10  ;;  %v1139_v21 = vadd.f32 %v1138_v19, %v1035_v17  ;;  %v1140_v24 = vpop.f32.mrb[19].mxu0  ;;  %v1225_v10 = vld [vmem:[%s2503_s3 + $0x10] sm:$0xff] (!%p1545_p11)  ;;  %v1255_v12 = vsub.s32 (!%p1545_p11), 0, %v1254_v7  ;;  %v1230_v17 = vld [vmem:[%s2503_s3 + $0x38] sm:$0xff] (!%p1545_p11)  ;;  %v1232_v19 = vld [vmem:[%s2503_s3 + $0x48] sm:$0xff] (!%p1545_p11) }
 0x175   : > { %v1180_v25 = vadd.f32 %v1137_v16, %v394_v14  ;;  %v1141_v26 = vadd.f32 %v1140_v24, %v1037_v22  ;;  %v1227_v14 = vld [vmem:[%s2503_s3 + $0x20] sm:$0xff] (!%p1545_p11)  ;;  %v1229_v16 = vld [vmem:[%s2503_s3 + $0x30] sm:$0xff] (!%p1545_p11) }
 0x176   : > { %1207 = vst [vmem:[%s2503_s3 + $0x80] sm:$0xff] %v1179_v20  ;;  %v1181_v27 = vadd.f32 %v1139_v21, %v395_v18  ;;  %v1231_v18 = vld [vmem:[%s2503_s3 + $0x40] sm:$0xff] (!%p1545_p11)  ;;  %v2315_v20 = vrot.slane (!%p1545_p11), %v1251_v6, %v1255_v12  ;;  %v2317_v21 = vrot.slane (!%p1545_p11), %v1251_v6, %v1259_v13  ;;  %v1233_v22 = vld [vmem:[%s2503_s3 + $0x50] sm:$0xff] (!%p1545_p11) }
 0x177   : > { %1208 = vst [vmem:[%s2503_s3 + $0x88] sm:$0xff] %v1180_v25  ;;  %v1182_v28 = vadd.f32 %v1141_v26, %v396_v23  ;;  %v1234_v23 = vld [vmem:[%s2503_s3 + $0x58] sm:$0xff] (!%p1545_p11)  ;;  %v1235_v24 = vld [vmem:[%s2503_s3 + $0x60] sm:$0xff] (!%p1545_p11)  ;;  %v1236_v25 = vld [vmem:[%s2503_s3 + $0x68] sm:$0xff] (!%p1545_p11) }
 0x178   : > { %1209 = vst [vmem:[%s2503_s3 + $0x90] sm:$0xff] %v1181_v27  ;;  %v1041_v29 = vpop.f32.mrb[20].mxu1  ;;  %v1237_v26 = vld [vmem:[%s2503_s3 + $0x70] sm:$0xff] (!%p1545_p11)  ;;  %v1238_v27 = vld [vmem:[%s2503_s3 + $0x78] sm:$0xff] (!%p1545_p11) }
 0x179   : > { %1210 = vst [vmem:[%s2503_s3 + $0x98] sm:$0xff] %v1182_v28  ;;  %v1144_v31 = vpop.f32.mrb[20].mxu0  ;;  %v1043_v33 = vpop.f32.mrb[21].mxu1  ;;  %v1263_v28 = vadd.f32 (!%p1545_p11), %v2315_v20, %v1223_v8 }
 0x17a   : > { %v1145_v32 = vadd.f32 %v1144_v31, %v1041_v29  ;;  %v1146_v35 = vpop.f32.mrb[21].mxu0  ;;  %v1045_v37 = vpop.f32.mrb[22].mxu1  ;;  %v1264_v29 = vadd.f32 (!%p1545_p11), %v2317_v21, %v1224_v9  ;;  %v1266_v31 = vadd.f32 (!%p1545_p11), %v2317_v21, %v1226_v11 }
 0x17b   : > { %v1147_v36 = vadd.f32 %v1146_v35, %v1043_v33  ;;  %v1148_v39 = vpop.f32.mrb[22].mxu0  ;;  %v1047_v42 = vpop.f32.mrb[23].mxu1  ;;  %v1267_v35 = vadd.f32 (!%p1545_p11), %v2315_v20, %v1227_v14  ;;  %1291 = vst [vmem:[%s2503_s3] sm:$0xff] (!%p1545_p11), %v1263_v28 }
 0x17c   : > { %v1183_v40 = vadd.f32 %v1145_v32, %v397_v30  ;;  %v1149_v41 = vadd.f32 %v1148_v39, %v1045_v37  ;;  %v1150_v44 = vpop.f32.mrb[23].mxu0  ;;  %v1265_v30 = vadd.f32 (!%p1545_p11), %v2315_v20, %v1225_v10  ;;  %v1269_v37 = vadd.f32 (!%p1545_p11), %v2315_v20, %v1229_v16  ;;  %1292 = vst [vmem:[%s2503_s3 + $0x8] sm:$0xff] (!%p1545_p11), %v1264_v29 }
 0x17d   : > { %v1184_v45 = vadd.f32 %v1147_v36, %v398_v34  ;;  %v1151_v46 = vadd.f32 %v1150_v44, %v1047_v42  ;;  %v1239_v32 = vld [vmem:[%s2503_s3 + $0x80] sm:$0xff] (!%p1545_p11)  ;;  %v1268_v36 = vadd.f32 (!%p1545_p11), %v2317_v21, %v1228_v15  ;;  %1294 = vst [vmem:[%s2503_s3 + $0x18] sm:$0xff] (!%p1545_p11), %v1266_v31  ;;  %v1271_v42 = vadd.f32 (!%p1545_p11), %v2315_v20, %v1231_v18 }
 0x17e   : > { %1211 = vst [vmem:[%s2503_s3 + $0xa0] sm:$0xff] %v1183_v40  ;;  %v1185_v47 = vadd.f32 %v1149_v41, %v399_v38  ;;  %v1240_v33 = vld [vmem:[%s2503_s3 + $0x88] sm:$0xff] (!%p1545_p11)  ;;  %v1270_v38 = vadd.f32 (!%p1545_p11), %v2317_v21, %v1230_v17  ;;  %1293 = vst [vmem:[%s2503_s3 + $0x10] sm:$0xff] (!%p1545_p11), %v1265_v30  ;;  %v1273_v44 = vadd.f32 (!%p1545_p11), %v2315_v20, %v1233_v22 }
 0x17f   : > { %1212 = vst [vmem:[%s2503_s3 + $0xa8] sm:$0xff] %v1184_v45  ;;  %v1186_v48 = vadd.f32 %v1151_v46, %v400_v43  ;;  %v1241_v34 = vld [vmem:[%s2503_s3 + $0x90] sm:$0xff] (!%p1545_p11)  ;;  %v1272_v43 = vadd.f32 (!%p1545_p11), %v2317_v21, %v1232_v19  ;;  %v1274_v45 = vadd.f32 (!%p1545_p11), %v2317_v21, %v1234_v23  ;;  %1295 = vst [vmem:[%s2503_s3 + $0x20] sm:$0xff] (!%p1545_p11), %v1267_v35 }
 0x180   : > { %1213 = vst [vmem:[%s2503_s3 + $0xb0] sm:$0xff] %v1185_v47  ;;  %v1051_v49 = vpop.f32.mrb[24].mxu1  ;;  %v1242_v39 = vld [vmem:[%s2503_s3 + $0x98] sm:$0xff] (!%p1545_p11)  ;;  %1296 = vst [vmem:[%s2503_s3 + $0x28] sm:$0xff] (!%p1545_p11), %v1268_v36 }
 0x181   : > { %1214 = vst [vmem:[%s2503_s3 + $0xb8] sm:$0xff] %v1186_v48  ;;  %v1154_v51 = vpop.f32.mrb[24].mxu0  ;;  %v1053_v53 = vpop.f32.mrb[25].mxu1  ;;  %1297 = vst [vmem:[%s2503_s3 + $0x30] sm:$0xff] (!%p1545_p11), %v1269_v37 }
 0x182   : > { %v1155_v52 = vadd.f32 %v1154_v51, %v1051_v49  ;;  %v1156_v55 = vpop.f32.mrb[25].mxu0  ;;  %v1055_v57 = vpop.f32.mrb[26].mxu1  ;;  %1298 = vst [vmem:[%s2503_s3 + $0x38] sm:$0xff] (!%p1545_p11), %v1270_v38  ;;  %v1275_v49 = vadd.f32 (!%p1545_p11), %v2315_v20, %v1235_v24  ;;  %v1277_v51 = vadd.f32 (!%p1545_p11), %v2315_v20, %v1237_v26  ;;  %1299 = vst [vmem:[%s2503_s3 + $0x40] sm:$0xff] (!%p1545_p11), %v1271_v42 }
 0x183   : > { %v1157_v56 = vadd.f32 %v1156_v55, %v1053_v53  ;;  %v1158_v59 = vpop.f32.mrb[26].mxu0  ;;  %v1057_v62 = vpop.f32.mrb[27].mxu1  ;;  %1222 = sbr.rel (%p1545_p11) target bundleno = 404 (0x194), region = 63  ;;  %1300 = vst [vmem:[%s2503_s3 + $0x48] sm:$0xff] (!%p1545_p11), %v1272_v43  ;;  %1301 = vst [vmem:[%s2503_s3 + $0x50] sm:$0xff] (!%p1545_p11), %v1273_v44 }
 0x184   : > { %v1187_v60 = vadd.f32 %v1155_v52, %v401_v50  ;;  %v1159_v61 = vadd.f32 %v1158_v59, %v1055_v57  ;;  %v1160_v0 = vpop.f32.mrb[27].mxu0  ;;  %v1276_v50 = vadd.f32 (!%p1545_p11), %v2317_v21, %v1236_v25  ;;  %v1278_v52 = vadd.f32 (!%p1545_p11), %v2317_v21, %v1238_v27  ;;  %1302 = vst [vmem:[%s2503_s3 + $0x58] sm:$0xff] (!%p1545_p11), %v1274_v45 }
 0x185   : > { %v1188_v1 = vadd.f32 %v1157_v56, %v402_v54  ;;  %v1161_v2 = vadd.f32 %v1160_v0, %v1057_v62  ;;  %v1243_v40 = vld [vmem:[%s2503_s3 + $0xa0] sm:$0xff] (!%p1545_p11)  ;;  %v1279_v56 = vadd.f32 (!%p1545_p11), %v2315_v20, %v1239_v32  ;;  %v1280_v57 = vadd.f32 (!%p1545_p11), %v2317_v21, %v1240_v33  ;;  %1303 = vst [vmem:[%s2503_s3 + $0x60] sm:$0xff] (!%p1545_p11), %v1275_v49 }
 0x186   : > { %1215 = vst [vmem:[%s2503_s3 + $0xc0] sm:$0xff] %v1187_v60  ;;  %v1189_v3 = vadd.f32 %v1159_v61, %v403_v58  ;;  %v1244_v41 = vld [vmem:[%s2503_s3 + $0xa8] sm:$0xff] (!%p1545_p11)  ;;  %v1281_v58 = vadd.f32 (!%p1545_p11), %v2315_v20, %v1241_v34  ;;  %v1282_v59 = vadd.f32 (!%p1545_p11), %v2317_v21, %v1242_v39  ;;  %1304 = vst [vmem:[%s2503_s3 + $0x68] sm:$0xff] (!%p1545_p11), %v1276_v50 }
 0x187   : > { %1216 = vst [vmem:[%s2503_s3 + $0xc8] sm:$0xff] %v1188_v1  ;;  %v1190_v4 = vadd.f32 %v1161_v2, %v404_v63  ;;  %v1245_v46 = vld [vmem:[%s2503_s3 + $0xb0] sm:$0xff] (!%p1545_p11)  ;;  %1305 = vst [vmem:[%s2503_s3 + $0x70] sm:$0xff] (!%p1545_p11), %v1277_v51  ;;  %v1283_v60 = vadd.f32 (!%p1545_p11), %v2315_v20, %v1243_v40  ;;  %v1284_v61 = vadd.f32 (!%p1545_p11), %v2317_v21, %v1244_v41 }
 0x188   : > { %1217 = vst [vmem:[%s2503_s3 + $0xd0] sm:$0xff] %v1189_v3  ;;  %v1246_v47 = vld [vmem:[%s2503_s3 + $0xb8] sm:$0xff] (!%p1545_p11)  ;;  %1306 = vst [vmem:[%s2503_s3 + $0x78] sm:$0xff] (!%p1545_p11), %v1278_v52  ;;  %v1285_v62 = vadd.f32 (!%p1545_p11), %v2315_v20, %v1245_v46 }
 0x189   : > { %1218 = vst [vmem:[%s2503_s3 + $0xd8] sm:$0xff] %v1190_v4  ;;  %v1286_v63 = vadd.f32 (!%p1545_p11), %v2317_v21, %v1246_v47  ;;  %1307 = vst [vmem:[%s2503_s3 + $0x80] sm:$0xff] (!%p1545_p11), %v1279_v56 }
 0x18a   : > { %1308 = vst [vmem:[%s2503_s3 + $0x88] sm:$0xff] %v1280_v57  ;;  %1309 = vst [vmem:[%s2503_s3 + $0x90] sm:$0xff] %v1281_v58 }
 0x18b   : > { %1310 = vst [vmem:[%s2503_s3 + $0x98] sm:$0xff] %v1282_v59  ;;  %1311 = vst [vmem:[%s2503_s3 + $0xa0] sm:$0xff] %v1283_v60 }
 0x18c   : > { %1312 = vst [vmem:[%s2503_s3 + $0xa8] sm:$0xff] %v1284_v61  ;;  %1313 = vst [vmem:[%s2503_s3 + $0xb0] sm:$0xff] %v1285_v62 }
 0x18d   : > { %v1247_v48 = vld [vmem:[%s2503_s3 + $0xc0] sm:$0xff]  ;;  %1314 = vst [vmem:[%s2503_s3 + $0xb8] sm:$0xff] %v1286_v63 }
 0x18e   : > { %v1248_v53 = vld [vmem:[%s2503_s3 + $0xc8] sm:$0xff]  ;;  %v1287_v0 = vadd.f32 %v2315_v20, %v1247_v48 }
 0x18f   : > { %v1249_v54 = vld [vmem:[%s2503_s3 + $0xd0] sm:$0xff]  ;;  %v1288_v1 = vadd.f32 %v2317_v21, %v1248_v53 }
 0x190   : > { %v1250_v55 = vld [vmem:[%s2503_s3 + $0xd8] sm:$0xff]  ;;  %v1289_v2 = vadd.f32 %v2315_v20, %v1249_v54  ;;  %1315 = vst [vmem:[%s2503_s3 + $0xc0] sm:$0xff] %v1287_v0 }
 0x191   : > { %v1290_v3 = vadd.f32 %v2317_v21, %v1250_v55  ;;  %1316 = vst [vmem:[%s2503_s3 + $0xc8] sm:$0xff] %v1288_v1 }
 0x192   : > { %1317 = vst [vmem:[%s2503_s3 + $0xd0] sm:$0xff] %v1289_v2 }
 0x193   : > { %1318 = vst [vmem:[%s2503_s3 + $0xd8] sm:$0xff] %v1290_v3 }
 0x194 PF: > { %s13_s16 = sadd.s32 1, %s1799_s16   ;;  %s2504_s12 = smov %s1787_s13 }
 0x195   : > { %p10_p12 = scmp.ge.s32.totalorder %s13_s16, 7   ;;  %s2505_s13 = smov %s1857_s20 }
 0x196   : > { %s2506_s14 = smov %s1795_s15  ;;  %s2507_s15 = smov %s2509_s17 }
 0x197   :  { %12 = sbr.rel (!%p10_p12) target bundleno = 3 (0x3), region = 104 }

// kernel: cnn_forward.20
= control target key start
LH: loop header
LB: loop body
LE: loop exit
PB: predicated region body
PF: predicated region fallthrough
CT: control target
= control target key end

     0   :  { %s1850_s12 = smov 0   ;;  %s1852_s13 = smov 0   ;;  %s2528_s0 = inlined_call_operand.vmem [shape: bf16[112,2560], index: 0, kind: input, shape index: {}]   ;;  %s2529_s1 = inlined_call_operand.vmem [shape: bf16[2560,256], index: 1, kind: input, shape index: {}]   ;;  %s2530_s2 = inlined_call_operand.vmem [shape: f32[1,256], index: 2, kind: input, shape index: {}]   ;;  %s2531_s3 = inlined_call_operand.vmem [shape: f32[112,256], index: 3, kind: output, shape index: {}]  }
   0x1   :  { %s1854_s14 = smov 0   ;;  %s1856_s15 = smov 0  }
   0x2   :  { %s1858_s16 = smov 0  }
   0x3 LB: > { %s25_s17 = sadd.s32 1, %s1823_s15  ;;  %p48_p1 = scmp.ne.s32.totalorder %s1815_s13, %s1811_s12  ;;  %s1827_s16 = sphi %s1858_s16, %s13_s16   ;;  %s1823_s15 = sphi %s1856_s15, %s2535_s15   ;;  %s1819_s14 = sphi %s1854_s14, %s2534_s14   ;;  %s1815_s13 = sphi %s1852_s13, %s2533_s13   ;;  %s1811_s12 = sphi %s1850_s12, %s2532_s12  }
   0x4   : > { %p26_p0 = scmp.ge.s32.totalorder %s25_s17, 5  ;;  %p49_p2 = scmp.eq.s32.totalorder %s1827_s16, 0 }
   0x5   : > { %s41_s19 = sadd.s32 1, %s1815_s13  ;;  %p1473_p5 = scmp.ge.s32.totalorder %s1827_s16, 5 }
   0x6   : > { %s2537_s17 = smov (%p26_p0, %s25_s17), 0  ;;  %p50_p3 = por %p49_p2, %p48_p1 }
   0x7   : > { %s37_s18 = ssub.s32 %s1823_s15, %s2537_s17  ;;  %164 = sbr.rel (%p1473_p5) target bundleno = 33 (0x21), region = 20 }
   0x8   : > { %p39_p4 = scmp.eq.s32.totalorder %s37_s18, 0 }
   0xa   : > { %s1885_s20 = scalar_select %p39_p4, %s1815_s13, %s41_s19  }
   0xe   : > { %167 = sbr.rel (!%p50_p3) target bundleno = 33 (0x21), region = 24  ;;  %s169_s21 = sand.u32 (%p50_p3), 1, %s1815_s13  }
   0xf   : > { %s1578_s22 = sshll.u32 (%p50_p3), %s1823_s15, 4  ;;  %s1608_s23 = smul.u32 (%p50_p3), 224, %s169_s21 }
  0x10   : > { %s1893_s26 = scalar_lea.vmem (%p50_p3), %s2528_s0, %s1578_s22 }
  0x11   : > { %v190_v0 = vld [vmem:[%s1893_s26] sm:$0xff] (%p50_p3)  ;;  %v192_v1 = vld [vmem:[%s1893_s26 + $0x8] sm:$0xff] (%p50_p3)  ;;  %v194_v2 = vld [vmem:[%s1893_s26 + $0x50] sm:$0xff] (%p50_p3)  ;;  %s1901_s27 = scalar_lea.vmem (%p50_p3), [#allocation2], %s1608_s23 }
  0x12   : > { %v196_v3 = vld [vmem:[%s1893_s26 + $0x58] sm:$0xff] (%p50_p3)  ;;  %v198_v4 = vld [vmem:[%s1893_s26 + $0xa0] sm:$0xff] (%p50_p3)  ;;  %v200_v5 = vld [vmem:[%s1893_s26 + $0xa8] sm:$0xff] (%p50_p3)  ;;  %191 = vst [vmem:[%s1901_s27] sm:$0xff] (%p50_p3), %v190_v0 }
  0x13   : > { %193 = vst [vmem:[%s1901_s27 + $0x8] sm:$0xff] (%p50_p3), %v192_v1  ;;  %195 = vst [vmem:[%s1901_s27 + $0x10] sm:$0xff] (%p50_p3), %v194_v2  ;;  %v202_v6 = vld [vmem:[%s1893_s26 + $0xf0] sm:$0xff] (%p50_p3)  ;;  %v204_v7 = vld [vmem:[%s1893_s26 + $0xf8] sm:$0xff] (%p50_p3) }
  0x14   : > { %197 = vst [vmem:[%s1901_s27 + $0x18] sm:$0xff] (%p50_p3), %v196_v3  ;;  %199 = vst [vmem:[%s1901_s27 + $0x20] sm:$0xff] (%p50_p3), %v198_v4  ;;  %v206_v8 = vld [vmem:[%s1893_s26 + $0x140] sm:$0xff] (%p50_p3)  ;;  %v208_v9 = vld [vmem:[%s1893_s26 + $0x148] sm:$0xff] (%p50_p3) }
  0x15   : > { %201 = vst [vmem:[%s1901_s27 + $0x28] sm:$0xff] %v200_v5  ;;  %203 = vst [vmem:[%s1901_s27 + $0x30] sm:$0xff] %v202_v6  ;;  %v210_v10 = vld [vmem:[%s1893_s26 + $0x190] sm:$0xff]  ;;  %v212_v11 = vld [vmem:[%s1893_s26 + $0x198] sm:$0xff] }
  0x16   : > { %205 = vst [vmem:[%s1901_s27 + $0x38] sm:$0xff] %v204_v7  ;;  %207 = vst [vmem:[%s1901_s27 + $0x40] sm:$0xff] %v206_v8  ;;  %v214_v12 = vld [vmem:[%s1893_s26 + $0x1e0] sm:$0xff]  ;;  %v216_v13 = vld [vmem:[%s1893_s26 + $0x1e8] sm:$0xff] }
  0x17   : > { %209 = vst [vmem:[%s1901_s27 + $0x48] sm:$0xff] %v208_v9  ;;  %211 = vst [vmem:[%s1901_s27 + $0x50] sm:$0xff] %v210_v10  ;;  %v218_v14 = vld [vmem:[%s1893_s26 + $0x230] sm:$0xff]  ;;  %v220_v15 = vld [vmem:[%s1893_s26 + $0x238] sm:$0xff] }
  0x18   : > { %213 = vst [vmem:[%s1901_s27 + $0x58] sm:$0xff] %v212_v11  ;;  %215 = vst [vmem:[%s1901_s27 + $0x60] sm:$0xff] %v214_v12  ;;  %v222_v16 = vld [vmem:[%s1893_s26 + $0x280] sm:$0xff]  ;;  %v224_v17 = vld [vmem:[%s1893_s26 + $0x288] sm:$0xff] }
  0x19   : > { %217 = vst [vmem:[%s1901_s27 + $0x68] sm:$0xff] %v216_v13  ;;  %219 = vst [vmem:[%s1901_s27 + $0x70] sm:$0xff] %v218_v14  ;;  %v226_v18 = vld [vmem:[%s1893_s26 + $0x2d0] sm:$0xff]  ;;  %v228_v19 = vld [vmem:[%s1893_s26 + $0x2d8] sm:$0xff] }
  0x1a   : > { %221 = vst [vmem:[%s1901_s27 + $0x78] sm:$0xff] %v220_v15  ;;  %223 = vst [vmem:[%s1901_s27 + $0x80] sm:$0xff] %v222_v16  ;;  %v230_v20 = vld [vmem:[%s1893_s26 + $0x320] sm:$0xff]  ;;  %v232_v21 = vld [vmem:[%s1893_s26 + $0x328] sm:$0xff] }
  0x1b   : > { %225 = vst [vmem:[%s1901_s27 + $0x88] sm:$0xff] %v224_v17  ;;  %227 = vst [vmem:[%s1901_s27 + $0x90] sm:$0xff] %v226_v18  ;;  %v234_v22 = vld [vmem:[%s1893_s26 + $0x370] sm:$0xff]  ;;  %v236_v23 = vld [vmem:[%s1893_s26 + $0x378] sm:$0xff] }
  0x1c   : > { %229 = vst [vmem:[%s1901_s27 + $0x98] sm:$0xff] %v228_v19  ;;  %231 = vst [vmem:[%s1901_s27 + $0xa0] sm:$0xff] %v230_v20  ;;  %v238_v24 = vld [vmem:[%s1893_s26 + $0x3c0] sm:$0xff]  ;;  %v240_v25 = vld [vmem:[%s1893_s26 + $0x3c8] sm:$0xff] }
  0x1d   : > { %233 = vst [vmem:[%s1901_s27 + $0xa8] sm:$0xff] %v232_v21  ;;  %235 = vst [vmem:[%s1901_s27 + $0xb0] sm:$0xff] %v234_v22  ;;  %v242_v26 = vld [vmem:[%s1893_s26 + $0x410] sm:$0xff]  ;;  %v244_v27 = vld [vmem:[%s1893_s26 + $0x418] sm:$0xff] }
  0x1e   : > { %237 = vst [vmem:[%s1901_s27 + $0xb8] sm:$0xff] %v236_v23  ;;  %239 = vst [vmem:[%s1901_s27 + $0xc0] sm:$0xff] %v238_v24 }
  0x1f   : > { %241 = vst [vmem:[%s1901_s27 + $0xc8] sm:$0xff] %v240_v25  ;;  %243 = vst [vmem:[%s1901_s27 + $0xd0] sm:$0xff] %v242_v26 }
  0x20   : > { %245 = vst [vmem:[%s1901_s27 + $0xd8] sm:$0xff] %v244_v27 }
  0x21 PF: > { %p1476_p6 = scmp.ge.s32.totalorder %s1827_s16, 1  ;;  %p265_p7 = scmp.lt.s32.totalorder %s1827_s16, 6 }
  0x23   : > { %p266_p8 = pnand %p1476_p6, %p265_p7 }
  0x24   : > { %s272_s28 = sand.u32 (!%p266_p8), 1, %s1811_s12   ;;  %s1477_s29 = sshll.u32 (!%p266_p8), %s1819_s14, 6 }
  0x25   : > { %269 = sbr.rel (%p266_p8) target bundleno = 406 (0x196), region = 51  ;;  %p318_p9 = scmp.lt.s32.totalorder (!%p266_p8), %s1477_s29, 319 }
  0x26   : > { %s1609_s30 = smul.u32 (!%p266_p8), 224, %s272_s28  ;;  %p1480_p10 = scmp.ne.s32.totalorder (!%p266_p8), %s1819_s14, 0 }
  0x28   : > { %s1962_s8 = scalar_lea.vmem (!%p266_p8), [#allocation2], %s1609_s30 }
  0x2c   : > { %s2539_s29 = smov (!%p318_p9, %s1477_s29), 319  ;;  %348 = sbr.rel (%p1480_p10) target bundleno = 60 (0x3c), region = 59 }
  0x2d   : > { %s1579_s4 = sshll.u32 %s2539_s29, 3  ;;  %v1829_v28 = vmov (!%p1480_p10), 0.0  }
  0x2e   : > { %s1960_s7 = scalar_lea.vmem %s2529_s1, %s1579_s4  ;;  %349 = vst [vmem:[%s2531_s3] sm:$0xff] (!%p1480_p10), %v1829_v28  ;;  %350 = vst [vmem:[%s2531_s3 + $0x8] sm:$0xff] (!%p1480_p10), %v1829_v28 }
  0x2f   : > { %351 = vst [vmem:[%s2531_s3 + $0x10] sm:$0xff] (!%p1480_p10), %v1829_v28  ;;  %352 = vst [vmem:[%s2531_s3 + $0x18] sm:$0xff] (!%p1480_p10), %v1829_v28 }
  0x30   : > { %353 = vst [vmem:[%s2531_s3 + $0x20] sm:$0xff] (!%p1480_p10), %v1829_v28  ;;  %354 = vst [vmem:[%s2531_s3 + $0x28] sm:$0xff] (!%p1480_p10), %v1829_v28 }
  0x31   : > { %355 = vst [vmem:[%s2531_s3 + $0x30] sm:$0xff] (!%p1480_p10), %v1829_v28  ;;  %356 = vst [vmem:[%s2531_s3 + $0x38] sm:$0xff] (!%p1480_p10), %v1829_v28 }
  0x32   : > { %357 = vst [vmem:[%s2531_s3 + $0x40] sm:$0xff] (!%p1480_p10), %v1829_v28  ;;  %358 = vst [vmem:[%s2531_s3 + $0x48] sm:$0xff] (!%p1480_p10), %v1829_v28 }
  0x33   : > { %359 = vst [vmem:[%s2531_s3 + $0x50] sm:$0xff] %v1829_v28  ;;  %360 = vst [vmem:[%s2531_s3 + $0x58] sm:$0xff] %v1829_v28 }
  0x34   : > { %361 = vst [vmem:[%s2531_s3 + $0x60] sm:$0xff] %v1829_v28  ;;  %362 = vst [vmem:[%s2531_s3 + $0x68] sm:$0xff] %v1829_v28 }
  0x35   : > { %363 = vst [vmem:[%s2531_s3 + $0x70] sm:$0xff] %v1829_v28  ;;  %364 = vst [vmem:[%s2531_s3 + $0x78] sm:$0xff] %v1829_v28 }
  0x36   : > { %365 = vst [vmem:[%s2531_s3 + $0x80] sm:$0xff] %v1829_v28  ;;  %366 = vst [vmem:[%s2531_s3 + $0x88] sm:$0xff] %v1829_v28 }
  0x37   : > { %367 = vst [vmem:[%s2531_s3 + $0x90] sm:$0xff] %v1829_v28  ;;  %368 = vst [vmem:[%s2531_s3 + $0x98] sm:$0xff] %v1829_v28 }
  0x38   : > { %369 = vst [vmem:[%s2531_s3 + $0xa0] sm:$0xff] %v1829_v28  ;;  %370 = vst [vmem:[%s2531_s3 + $0xa8] sm:$0xff] %v1829_v28 }
  0x39   : > { %371 = vst [vmem:[%s2531_s3 + $0xb0] sm:$0xff] %v1829_v28  ;;  %372 = vst [vmem:[%s2531_s3 + $0xb8] sm:$0xff] %v1829_v28 }
  0x3a   : > { %373 = vst [vmem:[%s2531_s3 + $0xc0] sm:$0xff] %v1829_v28  ;;  %374 = vst [vmem:[%s2531_s3 + $0xc8] sm:$0xff] %v1829_v28 }
  0x3b   : > { %375 = vst [vmem:[%s2531_s3 + $0xd0] sm:$0xff] %v1829_v28  ;;  %376 = vst [vmem:[%s2531_s3 + $0xd8] sm:$0xff] %v1829_v28 }
  0x3c PF: > { %v1651_v29 = vld [vmem:[%s1960_s7 + $0x4] ss:$8 sps:$4 sm:$0xff]   ;;  %v1655_v31 = vld [vmem:[%s1960_s7] ss:$8 sps:$4 sm:$0xff]   ;;  %v1657_v33 = vld [vmem:[%s1960_s7 + $0x14] ss:$8 sps:$4 sm:$0xff]  }
  0x3d   : > { %v1653_v30 = vld [vmem:[%s1960_s7 + $0x104] ss:$8 sps:$4 sm:$0xff]   ;;  %957 = vmatprep.subr.bf16.mxu1 %v1651_v29  ;;  %v1656_v32 = vld [vmem:[%s1960_s7 + $0x100] ss:$8 sps:$4 sm:$0xff]   ;;  %v1659_v34 = vld [vmem:[%s1960_s7 + $0x114] ss:$8 sps:$4 sm:$0xff]  }
  0x3e   : > { %1060 = vmatprep.subr.bf16.mxu0 %v1653_v30  ;;  %958 = vmatpush1.bf16.msra.mxu1 %v1655_v31  ;;  %v1661_v35 = vld [vmem:[%s1960_s7 + $0x10] ss:$8 sps:$4 sm:$0xff]   ;;  %v1663_v37 = vld [vmem:[%s1960_s7 + $0x24] ss:$8 sps:$4 sm:$0xff]   ;;  %v1667_v39 = vld [vmem:[%s1960_s7 + $0x20] ss:$8 sps:$4 sm:$0xff]  }
  0x3f   : > { %1061 = vmatpush1.bf16.msra.mxu0 %v1656_v32  ;;  %959 = vmatprep.subr.bf16.mxu1 %v1657_v33  ;;  %v1662_v36 = vld [vmem:[%s1960_s7 + $0x110] ss:$8 sps:$4 sm:$0xff]   ;;  %v1665_v38 = vld [vmem:[%s1960_s7 + $0x124] ss:$8 sps:$4 sm:$0xff]   ;;  %v1668_v40 = vld [vmem:[%s1960_s7 + $0x120] ss:$8 sps:$4 sm:$0xff]  }
  0x40   : > { %1062 = vmatprep.subr.bf16.mxu0 %v1659_v34  ;;  %v1669_v41 = vld [vmem:[%s1960_s7 + $0x34] ss:$8 sps:$4 sm:$0xff]   ;;  %v1673_v43 = vld [vmem:[%s1960_s7 + $0x30] ss:$8 sps:$4 sm:$0xff]   ;;  %v1675_v45 = vld [vmem:[%s1960_s7 + $0x44] ss:$8 sps:$4 sm:$0xff]  }
  0x41   : > { %v1671_v42 = vld [vmem:[%s1960_s7 + $0x134] ss:$8 sps:$4 sm:$0xff]   ;;  %v1674_v44 = vld [vmem:[%s1960_s7 + $0x130] ss:$8 sps:$4 sm:$0xff]   ;;  %v1677_v46 = vld [vmem:[%s1960_s7 + $0x144] ss:$8 sps:$4 sm:$0xff]  }
  0x42   : > { %960 = vmatpush1.bf16.msra.mxu1 %v1661_v35  ;;  %v1679_v47 = vld [vmem:[%s1960_s7 + $0x40] ss:$8 sps:$4 sm:$0xff]   ;;  %v1681_v49 = vld [vmem:[%s1960_s7 + $0x54] ss:$8 sps:$4 sm:$0xff]   ;;  %v1685_v51 = vld [vmem:[%s1960_s7 + $0x50] ss:$8 sps:$4 sm:$0xff]  }
  0x43   : > { %1063 = vmatpush1.bf16.msra.mxu0 %v1662_v36  ;;  %961 = vmatprep.subr.bf16.mxu1 %v1663_v37  ;;  %v1680_v48 = vld [vmem:[%s1960_s7 + $0x140] ss:$8 sps:$4 sm:$0xff]   ;;  %v1683_v50 = vld [vmem:[%s1960_s7 + $0x154] ss:$8 sps:$4 sm:$0xff]   ;;  %v1686_v52 = vld [vmem:[%s1960_s7 + $0x150] ss:$8 sps:$4 sm:$0xff]  }
  0x44   : > { %1064 = vmatprep.subr.bf16.mxu0 %v1665_v38  ;;  %v1687_v53 = vld [vmem:[%s1960_s7 + $0x64] ss:$8 sps:$4 sm:$0xff]   ;;  %v1691_v55 = vld [vmem:[%s1960_s7 + $0x60] ss:$8 sps:$4 sm:$0xff]   ;;  %v1693_v57 = vld [vmem:[%s1960_s7 + $0x74] ss:$8 sps:$4 sm:$0xff]  }
  0x45   : > { %v1689_v54 = vld [vmem:[%s1960_s7 + $0x164] ss:$8 sps:$4 sm:$0xff]   ;;  %v1692_v56 = vld [vmem:[%s1960_s7 + $0x160] ss:$8 sps:$4 sm:$0xff]   ;;  %v1695_v58 = vld [vmem:[%s1960_s7 + $0x174] ss:$8 sps:$4 sm:$0xff]  }
  0x46   : > { %962 = vmatpush1.bf16.msra.mxu1 %v1667_v39  ;;  %v1697_v59 = vld [vmem:[%s1960_s7 + $0x70] ss:$8 sps:$4 sm:$0xff]   ;;  %v1699_v61 = vld [vmem:[%s1960_s7 + $0x84] ss:$8 sps:$4 sm:$0xff]   ;;  %v1703_v63 = vld [vmem:[%s1960_s7 + $0x80] ss:$8 sps:$4 sm:$0xff]  }
  0x47   : > { %1065 = vmatpush1.bf16.msra.mxu0 %v1668_v40  ;;  %963 = vmatprep.subr.bf16.mxu1 %v1669_v41  ;;  %v1698_v60 = vld [vmem:[%s1960_s7 + $0x170] ss:$8 sps:$4 sm:$0xff]   ;;  %v1701_v62 = vld [vmem:[%s1960_s7 + $0x184] ss:$8 sps:$4 sm:$0xff]   ;;  %v1704_v0 = vld [vmem:[%s1960_s7 + $0x180] ss:$8 sps:$4 sm:$0xff]  }
  0x48   : > { %1066 = vmatprep.subr.bf16.mxu0 %v1671_v42  ;;  %v1705_v1 = vld [vmem:[%s1960_s7 + $0x94] ss:$8 sps:$4 sm:$0xff]   ;;  %v1709_v3 = vld [vmem:[%s1960_s7 + $0x90] ss:$8 sps:$4 sm:$0xff]   ;;  %v1711_v5 = vld [vmem:[%s1960_s7 + $0xa4] ss:$8 sps:$4 sm:$0xff]  }
  0x49   : > { %v1707_v2 = vld [vmem:[%s1960_s7 + $0x194] ss:$8 sps:$4 sm:$0xff]   ;;  %v1710_v4 = vld [vmem:[%s1960_s7 + $0x190] ss:$8 sps:$4 sm:$0xff]   ;;  %v1713_v6 = vld [vmem:[%s1960_s7 + $0x1a4] ss:$8 sps:$4 sm:$0xff]  }
  0x4a   : > { %964 = vmatpush1.bf16.msra.mxu1 %v1673_v43  ;;  %v1715_v7 = vld [vmem:[%s1960_s7 + $0xa0] ss:$8 sps:$4 sm:$0xff]   ;;  %v1717_v9 = vld [vmem:[%s1960_s7 + $0xb4] ss:$8 sps:$4 sm:$0xff]   ;;  %v1721_v11 = vld [vmem:[%s1960_s7 + $0xb0] ss:$8 sps:$4 sm:$0xff]  }
  0x4b   : > { %1067 = vmatpush1.bf16.msra.mxu0 %v1674_v44  ;;  %965 = vmatprep.subr.bf16.mxu1 %v1675_v45  ;;  %v1716_v8 = vld [vmem:[%s1960_s7 + $0x1a0] ss:$8 sps:$4 sm:$0xff]   ;;  %v1719_v10 = vld [vmem:[%s1960_s7 + $0x1b4] ss:$8 sps:$4 sm:$0xff]   ;;  %v1722_v12 = vld [vmem:[%s1960_s7 + $0x1b0] ss:$8 sps:$4 sm:$0xff]  }
  0x4c   : > { %1068 = vmatprep.subr.bf16.mxu0 %v1677_v46  ;;  %v1723_v13 = vld [vmem:[%s1960_s7 + $0xc4] ss:$8 sps:$4 sm:$0xff]   ;;  %v1727_v17 = vld [vmem:[%s1960_s7 + $0xc0] ss:$8 sps:$4 sm:$0xff]   ;;  %v1729_v19 = vld [vmem:[%s1960_s7 + $0xd4] ss:$8 sps:$4 sm:$0xff]  }
  0x4d   : > { %v1749_v14 = vld [vmem:[%s1962_s8 + $0x4] ss:$16 sps:$4 sm:$0xff]   ;;  %v1752_v16 = vld [vmem:[%s1962_s8 + $0xc] ss:$16 sps:$4 sm:$0xff]   ;;  %v1728_v18 = vld [vmem:[%s1960_s7 + $0x1c0] ss:$8 sps:$4 sm:$0xff]  }
  0x4e   : > { %966 = vmatpush1.bf16.msra.mxu1 %v1679_v47  ;;  %v1725_v15 = vld [vmem:[%s1960_s7 + $0x1c4] ss:$8 sps:$4 sm:$0xff]   ;;  %989 = vmatprep.mubr.bf16.mxu1 %v1749_v14  ;;  %v1731_v20 = vld [vmem:[%s1960_s7 + $0x1d4] ss:$8 sps:$4 sm:$0xff]   ;;  %v1733_v21 = vld [vmem:[%s1960_s7 + $0xd0] ss:$8 sps:$4 sm:$0xff]  }
  0x4f   : > { %1069 = vmatpush1.bf16.msra.mxu0 %v1680_v48  ;;  %967 = vmatprep.subr.bf16.mxu1 %v1681_v49  ;;  %v1734_v22 = vld [vmem:[%s1960_s7 + $0x1d0] ss:$8 sps:$4 sm:$0xff]   ;;  %v1735_v23 = vld [vmem:[%s1960_s7 + $0xe4] ss:$8 sps:$4 sm:$0xff]   ;;  %v1739_v25 = vld [vmem:[%s1960_s7 + $0xe0] ss:$8 sps:$4 sm:$0xff]  }
  0x50   : > { %1070 = vmatprep.subr.bf16.mxu0 %v1683_v50  ;;  %1092 = vmatprep.mubr.bf16.mxu0 %v1752_v16  ;;  %v1737_v24 = vld [vmem:[%s1960_s7 + $0x1e4] ss:$8 sps:$4 sm:$0xff]   ;;  %v1740_v26 = vld [vmem:[%s1960_s7 + $0x1e0] ss:$8 sps:$4 sm:$0xff]   ;;  %v1741_v27 = vld [vmem:[%s1960_s7 + $0xf4] ss:$8 sps:$4 sm:$0xff]  }
  0x51   : > { %v1743_v28 = vld [vmem:[%s1960_s7 + $0x1f4] ss:$8 sps:$4 sm:$0xff]   ;;  %v1745_v29 = vld [vmem:[%s1960_s7 + $0xf0] ss:$8 sps:$4 sm:$0xff]   ;;  %v381_v14 = vld [vmem:[%s2531_s3 + $0x20] sm:$0xff]  ;;  %p1573_p11 = scmp.ne.s32.totalorder %s1819_s14, 4 }
  0x52   : > { %968 = vmatpush1.bf16.msra.mxu1 %v1685_v51  ;;  %v1746_v30 = vld [vmem:[%s1960_s7 + $0x1f0] ss:$8 sps:$4 sm:$0xff]   ;;  %v1753_v33 = vld [vmem:[%s1962_s8 + $0x24] ss:$16 sps:$4 sm:$0xff]   ;;  %v1755_v34 = vld [vmem:[%s1962_s8 + $0x2c] ss:$16 sps:$4 sm:$0xff]  }
  0x53   : > { %1071 = vmatpush1.bf16.msra.mxu0 %v1686_v52  ;;  %969 = vmatprep.subr.bf16.mxu1 %v1687_v53  ;;  %v1747_v31 = vld [vmem:[%s1962_s8] ss:$16 sps:$4 sm:$0xff]   ;;  %v1750_v32 = vld [vmem:[%s1962_s8 + $0x8] ss:$16 sps:$4 sm:$0xff]   ;;  %v1759_v37 = vld [vmem:[%s1962_s8 + $0x44] ss:$16 sps:$4 sm:$0xff]  }
  0x54   : > { %1072 = vmatprep.subr.bf16.mxu0 %v1689_v54  ;;  %v1757_v35 = vld [vmem:[%s1962_s8 + $0x20] ss:$16 sps:$4 sm:$0xff]   ;;  %v1758_v36 = vld [vmem:[%s1962_s8 + $0x28] ss:$16 sps:$4 sm:$0xff]   ;;  %v1761_v38 = vld [vmem:[%s1962_s8 + $0x4c] ss:$16 sps:$4 sm:$0xff]  }
  0x55   : > { %v1763_v39 = vld [vmem:[%s1962_s8 + $0x40] ss:$16 sps:$4 sm:$0xff]   ;;  %v1764_v40 = vld [vmem:[%s1962_s8 + $0x48] ss:$16 sps:$4 sm:$0xff]   ;;  %v1765_v41 = vld [vmem:[%s1962_s8 + $0x64] ss:$16 sps:$4 sm:$0xff]  }
  0x56   : > { %970 = vmatpush1.bf16.msra.mxu1 %v1691_v55  ;;  %v1767_v42 = vld [vmem:[%s1962_s8 + $0x6c] ss:$16 sps:$4 sm:$0xff]   ;;  %v1769_v43 = vld [vmem:[%s1962_s8 + $0x60] ss:$16 sps:$4 sm:$0xff]   ;;  %v1770_v44 = vld [vmem:[%s1962_s8 + $0x68] ss:$16 sps:$4 sm:$0xff]  }
  0x57   : > { %1073 = vmatpush1.bf16.msra.mxu0 %v1692_v56  ;;  %971 = vmatprep.subr.bf16.mxu1 %v1693_v57  ;;  %v1771_v45 = vld [vmem:[%s1962_s8 + $0x84] ss:$16 sps:$4 sm:$0xff]   ;;  %v1773_v46 = vld [vmem:[%s1962_s8 + $0x8c] ss:$16 sps:$4 sm:$0xff]   ;;  %v1775_v47 = vld [vmem:[%s1962_s8 + $0x80] ss:$16 sps:$4 sm:$0xff]  }
  0x58   : > { %1074 = vmatprep.subr.bf16.mxu0 %v1695_v58  ;;  %v1776_v48 = vld [vmem:[%s1962_s8 + $0x88] ss:$16 sps:$4 sm:$0xff]   ;;  %v1777_v49 = vld [vmem:[%s1962_s8 + $0xa4] ss:$16 sps:$4 sm:$0xff]   ;;  %v1779_v50 = vld [vmem:[%s1962_s8 + $0xac] ss:$16 sps:$4 sm:$0xff]  }
  0x59   : > { %v1781_v51 = vld [vmem:[%s1962_s8 + $0xa0] ss:$16 sps:$4 sm:$0xff]   ;;  %v1782_v52 = vld [vmem:[%s1962_s8 + $0xa8] ss:$16 sps:$4 sm:$0xff]   ;;  %v1783_v53 = vld [vmem:[%s1962_s8 + $0xc4] ss:$16 sps:$4 sm:$0xff]  }
  0x5a   : > { %972 = vmatpush1.bf16.msra.mxu1 %v1697_v59  ;;  %v1785_v54 = vld [vmem:[%s1962_s8 + $0xcc] ss:$16 sps:$4 sm:$0xff]   ;;  %v1787_v55 = vld [vmem:[%s1962_s8 + $0xc0] ss:$16 sps:$4 sm:$0xff]   ;;  %v1788_v56 = vld [vmem:[%s1962_s8 + $0xc8] ss:$16 sps:$4 sm:$0xff]  }
  0x5b   : > { %1075 = vmatpush1.bf16.msra.mxu0 %v1698_v60  ;;  %973 = vmatprep.subr.bf16.mxu1 %v1699_v61  ;;  %v377_v58 = vld [vmem:[%s2531_s3] sm:$0xff] }
  0x5c   : > { %1076 = vmatprep.subr.bf16.mxu0 %v1701_v62  ;;  %v378_v62 = vld [vmem:[%s2531_s3 + $0x8] sm:$0xff] }
  0x5e   : > { %974 = vmatpush1.bf16.msra.mxu1 %v1703_v63 }
  0x5f   : > { %1077 = vmatpush1.bf16.msra.mxu0 %v1704_v0  ;;  %975 = vmatprep.subr.bf16.mxu1 %v1705_v1 }
  0x60   : > { %1078 = vmatprep.subr.bf16.mxu0 %v1707_v2  ;;  %v379_v2 = vld [vmem:[%s2531_s3 + $0x10] sm:$0xff] }
  0x62   : > { %976 = vmatpush1.bf16.msra.mxu1 %v1709_v3 }
  0x63   : > { %1079 = vmatpush1.bf16.msra.mxu0 %v1710_v4  ;;  %977 = vmatprep.subr.bf16.mxu1 %v1711_v5 }
  0x64   : > { %1080 = vmatprep.subr.bf16.mxu0 %v1713_v6 }
  0x66   : > { %978 = vmatpush1.bf16.msra.mxu1 %v1715_v7  ;;  %v380_v7 = vld [vmem:[%s2531_s3 + $0x18] sm:$0xff] }
  0x67   : > { %1081 = vmatpush1.bf16.msra.mxu0 %v1716_v8  ;;  %979 = vmatprep.subr.bf16.mxu1 %v1717_v9 }
  0x68   : > { %1082 = vmatprep.subr.bf16.mxu0 %v1719_v10 }
  0x6a   : > { %980 = vmatpush1.bf16.msra.mxu1 %v1721_v11 }
  0x6b   : > { %1083 = vmatpush1.bf16.msra.mxu0 %v1722_v12  ;;  %981 = vmatprep.subr.bf16.mxu1 %v1723_v13 }
  0x6c   : > { %1084 = vmatprep.subr.bf16.mxu0 %v1725_v15 }
  0x6e   : > { %982 = vmatpush1.bf16.msra.mxu1 %v1727_v17 }
  0x6f   : > { %1085 = vmatpush1.bf16.msra.mxu0 %v1728_v18  ;;  %983 = vmatprep.subr.bf16.mxu1 %v1729_v19  ;;  %v382_v18 = vld [vmem:[%s2531_s3 + $0x28] sm:$0xff] }
  0x70   : > { %1086 = vmatprep.subr.bf16.mxu0 %v1731_v20 }
  0x72   : > { %984 = vmatpush1.bf16.msra.mxu1 %v1733_v21 }
  0x73   : > { %1087 = vmatpush1.bf16.msra.mxu0 %v1734_v22  ;;  %985 = vmatprep.subr.bf16.mxu1 %v1735_v23  ;;  %v383_v22 = vld [vmem:[%s2531_s3 + $0x30] sm:$0xff] }
  0x74   : > { %1088 = vmatprep.subr.bf16.mxu0 %v1737_v24 }
  0x76   : > { %986 = vmatpush1.bf16.msra.mxu1 %v1739_v25 }
  0x77   : > { %1089 = vmatpush1.bf16.msra.mxu0 %v1740_v26  ;;  %987 = vmatprep.subr.bf16.mxu1 %v1741_v27  ;;  %v384_v27 = vld [vmem:[%s2531_s3 + $0x38] sm:$0xff] }
  0x78   : > { %1090 = vmatprep.subr.bf16.mxu0 %v1743_v28 }
  0x7a   : > { %988 = vmatpush1.bf16.msra.mxu1 %v1745_v29 }
  0x7b   : > { %1091 = vmatpush1.bf16.msra.mxu0 %v1746_v30 }
  0x7d   : > { %990 = vmatmul.mubr.bf16.vlgmr.msra.gmra.mrb[0].mxu1 %v1747_v31 }
  0x7e   : > { %1093 = vmatmul.mubr.bf16.vlgmr.msra.gmra.mrb[0].mxu0 %v1750_v32  ;;  %999 = vmatprep.mubr.bf16.mxu1 %v1753_v33 }
  0x7f   : > { %1102 = vmatprep.mubr.bf16.mxu0 %v1755_v34  ;;  %v385_v34 = vld [vmem:[%s2531_s3 + $0x40] sm:$0xff] }
  0x85   : > { %1000 = vmatmul.mubr.bf16.gmra.mrb[4].mxu1 %v1757_v35 }
  0x86   : > { %1103 = vmatmul.mubr.bf16.gmra.mrb[4].mxu0 %v1758_v36  ;;  %1009 = vmatprep.mubr.bf16.mxu1 %v1759_v37 }
  0x87   : > { %1112 = vmatprep.mubr.bf16.mxu0 %v1761_v38  ;;  %v386_v38 = vld [vmem:[%s2531_s3 + $0x48] sm:$0xff] }
  0x8d   : > { %1010 = vmatmul.mubr.bf16.gmra.mrb[8].mxu1 %v1763_v39 }
  0x8e   : > { %1113 = vmatmul.mubr.bf16.gmra.mrb[8].mxu0 %v1764_v40  ;;  %1019 = vmatprep.mubr.bf16.mxu1 %v1765_v41 }
  0x8f   : > { %1122 = vmatprep.mubr.bf16.mxu0 %v1767_v42  ;;  %v387_v42 = vld [vmem:[%s2531_s3 + $0x50] sm:$0xff] }
  0x95   : > { %1020 = vmatmul.mubr.bf16.gmra.mrb[12].mxu1 %v1769_v43 }
  0x96   : > { %1123 = vmatmul.mubr.bf16.gmra.mrb[12].mxu0 %v1770_v44  ;;  %1029 = vmatprep.mubr.bf16.mxu1 %v1771_v45 }
  0x97   : > { %1132 = vmatprep.mubr.bf16.mxu0 %v1773_v46 }
  0x9d   : > { %1030 = vmatmul.mubr.bf16.gmra.mrb[16].mxu1 %v1775_v47  ;;  %v388_v47 = vld [vmem:[%s2531_s3 + $0x58] sm:$0xff] }
  0x9e   : > { %1133 = vmatmul.mubr.bf16.gmra.mrb[16].mxu0 %v1776_v48  ;;  %1039 = vmatprep.mubr.bf16.mxu1 %v1777_v49 }
  0x9f   : > { %1142 = vmatprep.mubr.bf16.mxu0 %v1779_v50 }
  0xa5   : > { %1040 = vmatmul.mubr.bf16.gmra.mrb[20].mxu1 %v1781_v51 }
  0xa6   : > { %1143 = vmatmul.mubr.bf16.gmra.mrb[20].mxu0 %v1782_v52  ;;  %1049 = vmatprep.mubr.bf16.mxu1 %v1783_v53 }
  0xa7   : > { %1152 = vmatprep.mubr.bf16.mxu0 %v1785_v54  ;;  %v389_v54 = vld [vmem:[%s2531_s3 + $0x60] sm:$0xff] }
  0xad   : > { %1050 = vmatmul.mubr.bf16.gmra.mrb[24].mxu1 %v1787_v55 }
  0xae   : > { %1153 = vmatmul.mubr.bf16.gmra.mrb[24].mxu0 %v1788_v56 }
 0x150   : > { %v991_v57 = vpop.f32.mrb[0].mxu1 }
 0x151   : > { %v1094_v59 = vpop.f32.mrb[0].mxu0  ;;  %v993_v61 = vpop.f32.mrb[1].mxu1 }
 0x152   : > { %v1095_v60 = vadd.f32 %v1094_v59, %v991_v57  ;;  %v1096_v63 = vpop.f32.mrb[1].mxu0  ;;  %v995_v1 = vpop.f32.mrb[2].mxu1 }
 0x153   : > { %v1097_v0 = vadd.f32 %v1096_v63, %v993_v61  ;;  %v1098_v3 = vpop.f32.mrb[2].mxu0  ;;  %v997_v6 = vpop.f32.mrb[3].mxu1 }
 0x154   : > { %v1163_v4 = vadd.f32 %v1095_v60, %v377_v58  ;;  %v1099_v5 = vadd.f32 %v1098_v3, %v995_v1  ;;  %v1100_v8 = vpop.f32.mrb[3].mxu0  ;;  %v390_v58 = vld [vmem:[%s2531_s3 + $0x68] sm:$0xff]  ;;  %v392_v3 = vld [vmem:[%s2531_s3 + $0x78] sm:$0xff] }
 0x155   : > { %v1164_v9 = vadd.f32 %v1097_v0, %v378_v62  ;;  %v1101_v10 = vadd.f32 %v1100_v8, %v997_v6  ;;  %v391_v62 = vld [vmem:[%s2531_s3 + $0x70] sm:$0xff] }
 0x156   : > { %1191 = vst [vmem:[%s2531_s3] sm:$0xff] %v1163_v4  ;;  %v1165_v11 = vadd.f32 %v1099_v5, %v379_v2 }
 0x157   : > { %1192 = vst [vmem:[%s2531_s3 + $0x8] sm:$0xff] %v1164_v9  ;;  %v1166_v12 = vadd.f32 %v1101_v10, %v380_v7  ;;  %v393_v10 = vld [vmem:[%s2531_s3 + $0x80] sm:$0xff] }
 0x158   : > { %1193 = vst [vmem:[%s2531_s3 + $0x10] sm:$0xff] %v1165_v11  ;;  %v1001_v13 = vpop.f32.mrb[4].mxu1 }
 0x159   : > { %1194 = vst [vmem:[%s2531_s3 + $0x18] sm:$0xff] %v1166_v12  ;;  %v1104_v15 = vpop.f32.mrb[4].mxu0  ;;  %v1003_v17 = vpop.f32.mrb[5].mxu1 }
 0x15a   : > { %v1105_v16 = vadd.f32 %v1104_v15, %v1001_v13  ;;  %v1106_v19 = vpop.f32.mrb[5].mxu0  ;;  %v1005_v21 = vpop.f32.mrb[6].mxu1 }
 0x15b   : > { %v1107_v20 = vadd.f32 %v1106_v19, %v1003_v17  ;;  %v1108_v23 = vpop.f32.mrb[6].mxu0  ;;  %v1007_v26 = vpop.f32.mrb[7].mxu1 }
 0x15c   : > { %v1167_v24 = vadd.f32 %v1105_v16, %v381_v14  ;;  %v1109_v25 = vadd.f32 %v1108_v23, %v1005_v21  ;;  %v1110_v28 = vpop.f32.mrb[7].mxu0  ;;  %v394_v14 = vld [vmem:[%s2531_s3 + $0x88] sm:$0xff]  ;;  %v396_v23 = vld [vmem:[%s2531_s3 + $0x98] sm:$0xff] }
 0x15d   : > { %v1168_v29 = vadd.f32 %v1107_v20, %v382_v18  ;;  %v1111_v30 = vadd.f32 %v1110_v28, %v1007_v26  ;;  %v395_v18 = vld [vmem:[%s2531_s3 + $0x90] sm:$0xff] }
 0x15e   : > { %1195 = vst [vmem:[%s2531_s3 + $0x20] sm:$0xff] %v1167_v24  ;;  %v1169_v31 = vadd.f32 %v1109_v25, %v383_v22 }
 0x15f   : > { %1196 = vst [vmem:[%s2531_s3 + $0x28] sm:$0xff] %v1168_v29  ;;  %v1170_v32 = vadd.f32 %v1111_v30, %v384_v27  ;;  %v397_v30 = vld [vmem:[%s2531_s3 + $0xa0] sm:$0xff] }
 0x160   : > { %1197 = vst [vmem:[%s2531_s3 + $0x30] sm:$0xff] %v1169_v31  ;;  %v1011_v33 = vpop.f32.mrb[8].mxu1 }
 0x161   : > { %1198 = vst [vmem:[%s2531_s3 + $0x38] sm:$0xff] %v1170_v32  ;;  %v1114_v35 = vpop.f32.mrb[8].mxu0  ;;  %v1013_v37 = vpop.f32.mrb[9].mxu1 }
 0x162   : > { %v1115_v36 = vadd.f32 %v1114_v35, %v1011_v33  ;;  %v1116_v39 = vpop.f32.mrb[9].mxu0  ;;  %v1015_v41 = vpop.f32.mrb[10].mxu1 }
 0x163   : > { %v1117_v40 = vadd.f32 %v1116_v39, %v1013_v37  ;;  %v1118_v43 = vpop.f32.mrb[10].mxu0  ;;  %v1017_v46 = vpop.f32.mrb[11].mxu1 }
 0x164   : > { %v1171_v44 = vadd.f32 %v1115_v36, %v385_v34  ;;  %v1119_v45 = vadd.f32 %v1118_v43, %v1015_v41  ;;  %v1120_v48 = vpop.f32.mrb[11].mxu0  ;;  %v398_v34 = vld [vmem:[%s2531_s3 + $0xa8] sm:$0xff]  ;;  %v400_v43 = vld [vmem:[%s2531_s3 + $0xb8] sm:$0xff] }
 0x165   : > { %v1172_v49 = vadd.f32 %v1117_v40, %v386_v38  ;;  %v1121_v50 = vadd.f32 %v1120_v48, %v1017_v46  ;;  %v399_v38 = vld [vmem:[%s2531_s3 + $0xb0] sm:$0xff] }
 0x166   : > { %1199 = vst [vmem:[%s2531_s3 + $0x40] sm:$0xff] %v1171_v44  ;;  %v1173_v51 = vadd.f32 %v1119_v45, %v387_v42 }
 0x167   : > { %1200 = vst [vmem:[%s2531_s3 + $0x48] sm:$0xff] %v1172_v49  ;;  %v1174_v52 = vadd.f32 %v1121_v50, %v388_v47  ;;  %v401_v50 = vld [vmem:[%s2531_s3 + $0xc0] sm:$0xff] }
 0x168   : > { %1201 = vst [vmem:[%s2531_s3 + $0x50] sm:$0xff] %v1173_v51  ;;  %v1021_v53 = vpop.f32.mrb[12].mxu1 }
 0x169   : > { %1202 = vst [vmem:[%s2531_s3 + $0x58] sm:$0xff] %v1174_v52  ;;  %v1124_v55 = vpop.f32.mrb[12].mxu0  ;;  %v1023_v57 = vpop.f32.mrb[13].mxu1 }
 0x16a   : > { %v1125_v56 = vadd.f32 %v1124_v55, %v1021_v53  ;;  %v1126_v59 = vpop.f32.mrb[13].mxu0  ;;  %v1025_v61 = vpop.f32.mrb[14].mxu1 }
 0x16b   : > { %v1127_v60 = vadd.f32 %v1126_v59, %v1023_v57  ;;  %v1128_v63 = vpop.f32.mrb[14].mxu0  ;;  %v1027_v2 = vpop.f32.mrb[15].mxu1 }
 0x16c   : > { %v1175_v0 = vadd.f32 %v1125_v56, %v389_v54  ;;  %v1129_v1 = vadd.f32 %v1128_v63, %v1025_v61  ;;  %v1130_v4 = vpop.f32.mrb[15].mxu0  ;;  %v402_v54 = vld [vmem:[%s2531_s3 + $0xc8] sm:$0xff]  ;;  %v404_v63 = vld [vmem:[%s2531_s3 + $0xd8] sm:$0xff] }
 0x16d   : > { %v1176_v5 = vadd.f32 %v1127_v60, %v390_v58  ;;  %v1131_v6 = vadd.f32 %v1130_v4, %v1027_v2  ;;  %v403_v58 = vld [vmem:[%s2531_s3 + $0xd0] sm:$0xff] }
 0x16e   : > { %1203 = vst [vmem:[%s2531_s3 + $0x60] sm:$0xff] %v1175_v0  ;;  %v1177_v7 = vadd.f32 %v1129_v1, %v391_v62 }
 0x16f   : > { %1204 = vst [vmem:[%s2531_s3 + $0x68] sm:$0xff] %v1176_v5  ;;  %v1178_v8 = vadd.f32 %v1131_v6, %v392_v3  ;;  %v1253_v5 = vlaneseq (!%p1573_p11) }
 0x170   : > { %1205 = vst [vmem:[%s2531_s3 + $0x70] sm:$0xff] %v1177_v7  ;;  %v1031_v9 = vpop.f32.mrb[16].mxu1  ;;  %v1251_v7 = vld [vmem:[%s2530_s2] sm:$0x3] (!%p1573_p11) }
 0x171   : > { %1206 = vst [vmem:[%s2531_s3 + $0x78] sm:$0xff] %v1178_v8  ;;  %v1134_v11 = vpop.f32.mrb[16].mxu0  ;;  %v1033_v13 = vpop.f32.mrb[17].mxu1  ;;  %v1254_v6 = vshrl.u32 (!%p1573_p11), %v1253_v5, 7  ;;  %v1223_v8 = vld [vmem:[%s2531_s3] sm:$0xff] (!%p1573_p11) }
 0x172   : > { %v1135_v12 = vadd.f32 %v1134_v11, %v1031_v9  ;;  %v1136_v15 = vpop.f32.mrb[17].mxu0  ;;  %v1035_v17 = vpop.f32.mrb[18].mxu1 }
 0x173   : > { %v1137_v16 = vadd.f32 %v1136_v15, %v1033_v13  ;;  %v1138_v19 = vpop.f32.mrb[18].mxu0  ;;  %v1037_v22 = vpop.f32.mrb[19].mxu1  ;;  %v1255_v9 = vsub.s32 (!%p1573_p11), 0, %v1254_v6  ;;  %v1259_v11 = vsub.s32 (!%p1573_p11), 1, %v1254_v6  ;;  %v1226_v13 = vld [vmem:[%s2531_s3 + $0x18] sm:$0xff] (!%p1573_p11) }
 0x174   : > { %v1179_v20 = vadd.f32 %v1135_v12, %v393_v10  ;;  %v1139_v21 = vadd.f32 %v1138_v19, %v1035_v17  ;;  %v1140_v24 = vpop.f32.mrb[19].mxu0  ;;  %v1224_v10 = vld [vmem:[%s2531_s3 + $0x8] sm:$0xff] (!%p1573_p11)  ;;  %v1225_v12 = vld [vmem:[%s2531_s3 + $0x10] sm:$0xff] (!%p1573_p11)  ;;  %v1230_v19 = vld [vmem:[%s2531_s3 + $0x38] sm:$0xff] (!%p1573_p11) }
 0x175   : > { %v1180_v25 = vadd.f32 %v1137_v16, %v394_v14  ;;  %v1141_v26 = vadd.f32 %v1140_v24, %v1037_v22  ;;  %v1227_v14 = vld [vmem:[%s2531_s3 + $0x20] sm:$0xff] (!%p1573_p11)  ;;  %v2328_v15 = vrot.slane (!%p1573_p11), %v1251_v7, %v1255_v9  ;;  %v2330_v16 = vrot.slane (!%p1573_p11), %v1251_v7, %v1259_v11  ;;  %v1228_v17 = vld [vmem:[%s2531_s3 + $0x28] sm:$0xff] (!%p1573_p11) }
 0x176   : > { %1207 = vst [vmem:[%s2531_s3 + $0x80] sm:$0xff] %v1179_v20  ;;  %v1181_v27 = vadd.f32 %v1139_v21, %v395_v18  ;;  %v1229_v18 = vld [vmem:[%s2531_s3 + $0x30] sm:$0xff] (!%p1573_p11)  ;;  %v1231_v24 = vld [vmem:[%s2531_s3 + $0x40] sm:$0xff] (!%p1573_p11) }
 0x177   : > { %1208 = vst [vmem:[%s2531_s3 + $0x88] sm:$0xff] %v1180_v25  ;;  %v1182_v28 = vadd.f32 %v1141_v26, %v396_v23  ;;  %v1263_v20 = vadd.f32 (!%p1573_p11), %v2328_v15, %v1223_v8  ;;  %v1264_v21 = vadd.f32 (!%p1573_p11), %v2330_v16, %v1224_v10  ;;  %v1265_v22 = vadd.f32 (!%p1573_p11), %v2328_v15, %v1225_v12  ;;  %v1232_v25 = vld [vmem:[%s2531_s3 + $0x48] sm:$0xff] (!%p1573_p11)  ;;  %v1233_v26 = vld [vmem:[%s2531_s3 + $0x50] sm:$0xff] (!%p1573_p11) }
 0x178   : > { %1209 = vst [vmem:[%s2531_s3 + $0x90] sm:$0xff] %v1181_v27  ;;  %v1041_v29 = vpop.f32.mrb[20].mxu1  ;;  %v1266_v23 = vadd.f32 (!%p1573_p11), %v2330_v16, %v1226_v13  ;;  %v1267_v27 = vadd.f32 (!%p1573_p11), %v2328_v15, %v1227_v14 }
 0x179   : > { %1210 = vst [vmem:[%s2531_s3 + $0x98] sm:$0xff] %v1182_v28  ;;  %v1144_v31 = vpop.f32.mrb[20].mxu0  ;;  %v1043_v33 = vpop.f32.mrb[21].mxu1  ;;  %v1268_v28 = vadd.f32 (!%p1573_p11), %v2330_v16, %v1228_v17 }
 0x17a   : > { %v1145_v32 = vadd.f32 %v1144_v31, %v1041_v29  ;;  %v1146_v35 = vpop.f32.mrb[21].mxu0  ;;  %v1045_v37 = vpop.f32.mrb[22].mxu1  ;;  %v1269_v29 = vadd.f32 (!%p1573_p11), %v2328_v15, %v1229_v18  ;;  %v1234_v31 = vld [vmem:[%s2531_s3 + $0x58] sm:$0xff] (!%p1573_p11) }
 0x17b   : > { %v1147_v36 = vadd.f32 %v1146_v35, %v1043_v33  ;;  %v1148_v39 = vpop.f32.mrb[22].mxu0  ;;  %v1047_v42 = vpop.f32.mrb[23].mxu1  ;;  %v1236_v33 = vld [vmem:[%s2531_s3 + $0x68] sm:$0xff] (!%p1573_p11)  ;;  %v1292_v35 = vmax.f32 (!%p1573_p11), %v1264_v21, 0.0 }
 0x17c   : > { %v1183_v40 = vadd.f32 %v1145_v32, %v397_v30  ;;  %v1149_v41 = vadd.f32 %v1148_v39, %v1045_v37  ;;  %v1150_v44 = vpop.f32.mrb[23].mxu0  ;;  %v1270_v30 = vadd.f32 (!%p1573_p11), %v2330_v16, %v1230_v19  ;;  %v1235_v32 = vld [vmem:[%s2531_s3 + $0x60] sm:$0xff] (!%p1573_p11)  ;;  %v1294_v37 = vmax.f32 (!%p1573_p11), %v1266_v23, 0.0  ;;  %v1238_v39 = vld [vmem:[%s2531_s3 + $0x78] sm:$0xff] (!%p1573_p11) }
 0x17d   : > { %v1184_v45 = vadd.f32 %v1147_v36, %v398_v34  ;;  %v1151_v46 = vadd.f32 %v1150_v44, %v1047_v42  ;;  %v1291_v34 = vmax.f32 (!%p1573_p11), %v1263_v20, 0.0  ;;  %v1293_v36 = vmax.f32 (!%p1573_p11), %v1265_v22, 0.0  ;;  %1320 = vst [vmem:[%s2531_s3 + $0x8] sm:$0xff] (!%p1573_p11), %v1292_v35 }
 0x17e   : > { %1211 = vst [vmem:[%s2531_s3 + $0xa0] sm:$0xff] %v1183_v40  ;;  %v1185_v47 = vadd.f32 %v1149_v41, %v399_v38  ;;  %v1237_v38 = vld [vmem:[%s2531_s3 + $0x70] sm:$0xff] (!%p1573_p11)  ;;  %v1295_v40 = vmax.f32 (!%p1573_p11), %v1267_v27, 0.0  ;;  %v1296_v41 = vmax.f32 (!%p1573_p11), %v1268_v28, 0.0  ;;  %v1297_v42 = vmax.f32 (!%p1573_p11), %v1269_v29, 0.0  ;;  %1322 = vst [vmem:[%s2531_s3 + $0x18] sm:$0xff] (!%p1573_p11), %v1294_v37 }
 0x17f   : > { %1212 = vst [vmem:[%s2531_s3 + $0xa8] sm:$0xff] %v1184_v45  ;;  %v1186_v48 = vadd.f32 %v1151_v46, %v400_v43  ;;  %v1298_v43 = vmax.f32 (!%p1573_p11), %v1270_v30, 0.0  ;;  %1319 = vst [vmem:[%s2531_s3] sm:$0xff] (!%p1573_p11), %v1291_v34  ;;  %v1271_v44 = vadd.f32 (!%p1573_p11), %v2328_v15, %v1231_v24  ;;  %v1272_v45 = vadd.f32 (!%p1573_p11), %v2330_v16, %v1232_v25 }
 0x180   : > { %1213 = vst [vmem:[%s2531_s3 + $0xb0] sm:$0xff] %v1185_v47  ;;  %v1051_v49 = vpop.f32.mrb[24].mxu1  ;;  %1321 = vst [vmem:[%s2531_s3 + $0x10] sm:$0xff] (!%p1573_p11), %v1293_v36  ;;  %v1273_v46 = vadd.f32 (!%p1573_p11), %v2328_v15, %v1233_v26  ;;  %v1274_v47 = vadd.f32 (!%p1573_p11), %v2330_v16, %v1234_v31 }
 0x181   : > { %1214 = vst [vmem:[%s2531_s3 + $0xb8] sm:$0xff] %v1186_v48  ;;  %v1154_v51 = vpop.f32.mrb[24].mxu0  ;;  %v1053_v53 = vpop.f32.mrb[25].mxu1  ;;  %v1239_v48 = vld [vmem:[%s2531_s3 + $0x80] sm:$0xff] (!%p1573_p11)  ;;  %1323 = vst [vmem:[%s2531_s3 + $0x20] sm:$0xff] (!%p1573_p11), %v1295_v40 }
 0x182   : > { %v1155_v52 = vadd.f32 %v1154_v51, %v1051_v49  ;;  %v1156_v55 = vpop.f32.mrb[25].mxu0  ;;  %v1055_v57 = vpop.f32.mrb[26].mxu1  ;;  %v1240_v49 = vld [vmem:[%s2531_s3 + $0x88] sm:$0xff] (!%p1573_p11)  ;;  %1324 = vst [vmem:[%s2531_s3 + $0x28] sm:$0xff] (!%p1573_p11), %v1296_v41  ;;  %1325 = vst [vmem:[%s2531_s3 + $0x30] sm:$0xff] (!%p1573_p11), %v1297_v42  ;;  %v1275_v51 = vadd.f32 (!%p1573_p11), %v2328_v15, %v1235_v32 }
 0x183   : > { %v1157_v56 = vadd.f32 %v1156_v55, %v1053_v53  ;;  %v1158_v59 = vpop.f32.mrb[26].mxu0  ;;  %v1057_v62 = vpop.f32.mrb[27].mxu1  ;;  %1222 = sbr.rel (%p1573_p11) target bundleno = 406 (0x196), region = 63  ;;  %1326 = vst [vmem:[%s2531_s3 + $0x38] sm:$0xff] (!%p1573_p11), %v1298_v43  ;;  %v1277_v53 = vadd.f32 (!%p1573_p11), %v2328_v15, %v1237_v38  ;;  %v1242_v55 = vld [vmem:[%s2531_s3 + $0x98] sm:$0xff] (!%p1573_p11)  ;;  %v1280_v5 = vadd.f32 (!%p1573_p11), %v2330_v16, %v1240_v49 }
 0x184   : > { %v1187_v60 = vadd.f32 %v1155_v52, %v401_v50  ;;  %v1159_v61 = vadd.f32 %v1158_v59, %v1055_v57  ;;  %v1160_v0 = vpop.f32.mrb[27].mxu0  ;;  %v1241_v50 = vld [vmem:[%s2531_s3 + $0x90] sm:$0xff] (!%p1573_p11)  ;;  %v1276_v52 = vadd.f32 (!%p1573_p11), %v2330_v16, %v1236_v33  ;;  %v1300_v59 = vmax.f32 (!%p1573_p11), %v1272_v45, 0.0 }
 0x185   : > { %v1188_v1 = vadd.f32 %v1157_v56, %v402_v54  ;;  %v1161_v2 = vadd.f32 %v1160_v0, %v1057_v62  ;;  %v1278_v54 = vadd.f32 (!%p1573_p11), %v2330_v16, %v1238_v39  ;;  %v1243_v56 = vld [vmem:[%s2531_s3 + $0xa0] sm:$0xff] (!%p1573_p11)  ;;  %v1303_v0 = vmax.f32 (!%p1573_p11), %v1275_v51, 0.0 }
 0x186   : > { %1215 = vst [vmem:[%s2531_s3 + $0xc0] sm:$0xff] %v1187_v60  ;;  %v1189_v3 = vadd.f32 %v1159_v61, %v403_v58  ;;  %v1244_v57 = vld [vmem:[%s2531_s3 + $0xa8] sm:$0xff] (!%p1573_p11)  ;;  %v1299_v58 = vmax.f32 (!%p1573_p11), %v1271_v44, 0.0  ;;  %v1301_v60 = vmax.f32 (!%p1573_p11), %v1273_v46, 0.0  ;;  %v1302_v61 = vmax.f32 (!%p1573_p11), %v1274_v47, 0.0  ;;  %1328 = vst [vmem:[%s2531_s3 + $0x48] sm:$0xff] (!%p1573_p11), %v1300_v59 }
 0x187   : > { %1216 = vst [vmem:[%s2531_s3 + $0xc8] sm:$0xff] %v1188_v1  ;;  %v1190_v4 = vadd.f32 %v1161_v2, %v404_v63  ;;  %v1245_v62 = vld [vmem:[%s2531_s3 + $0xb0] sm:$0xff] (!%p1573_p11)  ;;  %v1304_v1 = vmax.f32 (!%p1573_p11), %v1276_v52, 0.0  ;;  %v1305_v2 = vmax.f32 (!%p1573_p11), %v1277_v53, 0.0  ;;  %v1281_v6 = vadd.f32 (!%p1573_p11), %v2328_v15, %v1241_v50  ;;  %1331 = vst [vmem:[%s2531_s3 + $0x60] sm:$0xff] (!%p1573_p11), %v1303_v0 }
 0x188   : > { %1217 = vst [vmem:[%s2531_s3 + $0xd0] sm:$0xff] %v1189_v3  ;;  %v1246_v63 = vld [vmem:[%s2531_s3 + $0xb8] sm:$0xff] (!%p1573_p11)  ;;  %v1306_v3 = vmax.f32 (!%p1573_p11), %v1278_v54, 0.0  ;;  %1327 = vst [vmem:[%s2531_s3 + $0x40] sm:$0xff] (!%p1573_p11), %v1299_v58  ;;  %v1282_v7 = vadd.f32 (!%p1573_p11), %v2330_v16, %v1242_v55  ;;  %v1283_v9 = vadd.f32 (!%p1573_p11), %v2328_v15, %v1243_v56  ;;  %v1284_v10 = vadd.f32 (!%p1573_p11), %v2330_v16, %v1244_v57 }
 0x189   : > { %1218 = vst [vmem:[%s2531_s3 + $0xd8] sm:$0xff] %v1190_v4  ;;  %1329 = vst [vmem:[%s2531_s3 + $0x50] sm:$0xff] (!%p1573_p11), %v1301_v60  ;;  %v1279_v4 = vadd.f32 (!%p1573_p11), %v2328_v15, %v1239_v48  ;;  %v1285_v11 = vadd.f32 (!%p1573_p11), %v2328_v15, %v1245_v62  ;;  %v1286_v12 = vadd.f32 (!%p1573_p11), %v2330_v16, %v1246_v63  ;;  %v1308_v19 = vmax.f32 (!%p1573_p11), %v1280_v5, 0.0 }
 0x18a   : > { %1330 = vst [vmem:[%s2531_s3 + $0x58] sm:$0xff] %v1302_v61  ;;  %1332 = vst [vmem:[%s2531_s3 + $0x68] sm:$0xff] %v1304_v1  ;;  %v1309_v20 = vmax.f32 %v1281_v6, 0.0  ;;  %v1310_v21 = vmax.f32 %v1282_v7, 0.0  ;;  %v1311_v22 = vmax.f32 %v1283_v9, 0.0  ;;  %v1312_v23 = vmax.f32 %v1284_v10, 0.0 }
 0x18b   : > { %1333 = vst [vmem:[%s2531_s3 + $0x70] sm:$0xff] %v1305_v2  ;;  %1334 = vst [vmem:[%s2531_s3 + $0x78] sm:$0xff] %v1306_v3  ;;  %v1307_v18 = vmax.f32 %v1279_v4, 0.0  ;;  %v1313_v24 = vmax.f32 %v1285_v11, 0.0  ;;  %v1314_v25 = vmax.f32 %v1286_v12, 0.0 }
 0x18c   : > { %1336 = vst [vmem:[%s2531_s3 + $0x88] sm:$0xff] %v1308_v19  ;;  %1337 = vst [vmem:[%s2531_s3 + $0x90] sm:$0xff] %v1309_v20 }
 0x18d   : > { %v1247_v8 = vld [vmem:[%s2531_s3 + $0xc0] sm:$0xff]  ;;  %1335 = vst [vmem:[%s2531_s3 + $0x80] sm:$0xff] %v1307_v18  ;;  %1338 = vst [vmem:[%s2531_s3 + $0x98] sm:$0xff] %v1310_v21 }
 0x18e   : > { %v1248_v13 = vld [vmem:[%s2531_s3 + $0xc8] sm:$0xff]  ;;  %v1287_v26 = vadd.f32 %v2328_v15, %v1247_v8  ;;  %1339 = vst [vmem:[%s2531_s3 + $0xa0] sm:$0xff] %v1311_v22  ;;  %1340 = vst [vmem:[%s2531_s3 + $0xa8] sm:$0xff] %v1312_v23 }
 0x18f   : > { %v1249_v14 = vld [vmem:[%s2531_s3 + $0xd0] sm:$0xff]  ;;  %v1288_v27 = vadd.f32 %v2330_v16, %v1248_v13  ;;  %1341 = vst [vmem:[%s2531_s3 + $0xb0] sm:$0xff] %v1313_v24  ;;  %1342 = vst [vmem:[%s2531_s3 + $0xb8] sm:$0xff] %v1314_v25 }
 0x190   : > { %v1250_v17 = vld [vmem:[%s2531_s3 + $0xd8] sm:$0xff]  ;;  %v1289_v28 = vadd.f32 %v2328_v15, %v1249_v14  ;;  %v1315_v30 = vmax.f32 %v1287_v26, 0.0 }
 0x191   : > { %v1290_v29 = vadd.f32 %v2330_v16, %v1250_v17  ;;  %v1316_v15 = vmax.f32 %v1288_v27, 0.0 }
 0x192   : > { %v1317_v31 = vmax.f32 %v1289_v28, 0.0  ;;  %1343 = vst [vmem:[%s2531_s3 + $0xc0] sm:$0xff] %v1315_v30 }
 0x193   : > { %v1318_v16 = vmax.f32 %v1290_v29, 0.0  ;;  %1344 = vst [vmem:[%s2531_s3 + $0xc8] sm:$0xff] %v1316_v15 }
 0x194   : > { %1345 = vst [vmem:[%s2531_s3 + $0xd0] sm:$0xff] %v1317_v31 }
 0x195   : > { %1346 = vst [vmem:[%s2531_s3 + $0xd8] sm:$0xff] %v1318_v16 }
 0x196 PF: > { %s13_s16 = sadd.s32 1, %s1827_s16   ;;  %s2532_s12 = smov %s1815_s13 }
 0x197   : > { %p10_p12 = scmp.ge.s32.totalorder %s13_s16, 7   ;;  %s2533_s13 = smov %s1885_s20 }
 0x198   : > { %s2534_s14 = smov %s1823_s15  ;;  %s2535_s15 = smov %s2537_s17 }
 0x199   :  { %12 = sbr.rel (!%p10_p12) target bundleno = 3 (0x3), region = 104 }

// kernel: cnn_forward.23
= control target key start
LH: loop header
LB: loop body
LE: loop exit
PB: predicated region body
PF: predicated region fallthrough
CT: control target
= control target key end

     0   :  { %s1021_s12 = smov 0   ;;  %s1023_s13 = smov 0   ;;  %s1161_s0 = inlined_call_operand.vmem [shape: bf16[16,1024], index: 0, kind: input, shape index: {}]   ;;  %s1162_s1 = inlined_call_operand.vmem [shape: bf16[1024,128], index: 1, kind: input, shape index: {}]   ;;  %s1163_s2 = inlined_call_operand.vmem [shape: f32[1,128], index: 2, kind: input, shape index: {}]   ;;  %s1164_s3 = inlined_call_operand.vmem [shape: f32[16,128], index: 3, kind: output, shape index: {}]  }
   0x1   :  { %s1025_s14 = smov 0   ;;  %s1027_s15 = smov 0  }
   0x2   :  { %s1029_s16 = smov 0  }
   0x3 LB: > { %s25_s17 = sadd.s32 1, %s994_s15  ;;  %p48_p1 = scmp.ne.s32.totalorder %s986_s13, %s982_s12  ;;  %s998_s16 = sphi %s1029_s16, %s13_s16   ;;  %s994_s15 = sphi %s1027_s15, %s1168_s15   ;;  %s990_s14 = sphi %s1025_s14, %s1167_s14   ;;  %s986_s13 = sphi %s1023_s13, %s1166_s13   ;;  %s982_s12 = sphi %s1021_s12, %s1165_s12  }
   0x4   : > { %p26_p0 = scmp.ge.s32.totalorder %s25_s17, 2  ;;  %p49_p2 = scmp.eq.s32.totalorder %s998_s16, 0 }
   0x5   : > { %s41_s19 = sadd.s32 1, %s986_s13  ;;  %p785_p5 = scmp.ge.s32.totalorder %s998_s16, 2 }
   0x6   : > { %s1170_s17 = smov (%p26_p0, %s25_s17), 0  ;;  %p50_p3 = por %p49_p2, %p48_p1 }
   0x7   : > { %s37_s18 = ssub.s32 %s994_s15, %s1170_s17  ;;  %162 = sbr.rel (%p785_p5) target bundleno = 21 (0x15), region = 20 }
   0x8   : > { %p39_p4 = scmp.eq.s32.totalorder %s37_s18, 0 }
   0xa   : > { %s1056_s20 = scalar_select %p39_p4, %s986_s13, %s41_s19  }
   0xe   : > { %165 = sbr.rel (!%p50_p3) target bundleno = 21 (0x15), region = 24  ;;  %s167_s21 = sand.u32 (%p50_p3), 1, %s986_s13  }
   0xf   : > { %s836_s22 = sshll.u32 (%p50_p3), %s994_s15, 4  ;;  %s786_s23 = sshll.u32 (%p50_p3), %s167_s21, 5 }
  0x10   : > { %s175_s26 = scalar_lea.vmem (%p50_p3), %s1161_s0, %s836_s22  ;;  %s169_s27 = scalar_lea.vmem (%p50_p3), [#allocation2], %s786_s23 }
  0x11   : > { %v188_v0 = vld [vmem:[%s175_s26] sm:$0xff] (%p50_p3)  ;;  %v190_v1 = vld [vmem:[%s175_s26 + $0x8] sm:$0xff] (%p50_p3) }
  0x12   : > { %v192_v2 = vld [vmem:[%s175_s26 + $0x20] sm:$0xff] (%p50_p3)  ;;  %189 = vst [vmem:[%s169_s27] sm:$0xff] (%p50_p3), %v188_v0  ;;  %191 = vst [vmem:[%s169_s27 + $0x8] sm:$0xff] (%p50_p3), %v190_v1  ;;  %v194_v3 = vld [vmem:[%s175_s26 + $0x28] sm:$0xff] (%p50_p3) }
  0x13   : > { %193 = vst [vmem:[%s169_s27 + $0x10] sm:$0xff] (%p50_p3), %v192_v2  ;;  %195 = vst [vmem:[%s169_s27 + $0x18] sm:$0xff] (%p50_p3), %v194_v3 }
  0x15 PF: > { %p789_p6 = scmp.ge.s32.totalorder %s998_s16, 1  ;;  %p212_p7 = scmp.lt.s32.totalorder %s998_s16, 3 }
  0x17   : > { %p213_p8 = pnand %p789_p6, %p212_p7 }
  0x18   : > { %s219_s28 = sand.u32 (!%p213_p8), 1, %s982_s12   ;;  %s791_s29 = sshll.u32 (!%p213_p8), %s990_s14, 6 }
  0x19   : > { %216 = sbr.rel (%p213_p8) target bundleno = 306 (0x132), region = 51  ;;  %s790_s30 = sshll.u32 (!%p213_p8), %s219_s28, 5 }
  0x1a   : > { %p259_p9 = scmp.lt.s32.totalorder (!%p213_p8), %s791_s29, 127  ;;  %s1073_s8 = scalar_lea.vmem (!%p213_p8), [#allocation2], %s790_s30 }
  0x1b   : > { %p793_p10 = scmp.ne.s32.totalorder (!%p213_p8), %s990_s14, 0 }
  0x20   : > { %s1172_s29 = smov (!%p259_p9, %s791_s29), 127  ;;  %283 = sbr.rel (%p793_p10) target bundleno = 39 (0x27), region = 59 }
  0x21   : > { %s792_s4 = sshll.u32 %s1172_s29, 2  ;;  %v1000_v4 = vmov (!%p793_p10), 0.0  }
  0x22   : > { %s1071_s7 = scalar_lea.vmem %s1162_s1, %s792_s4  ;;  %284 = vst [vmem:[%s1164_s3] sm:$0xff] (!%p793_p10), %v1000_v4  ;;  %285 = vst [vmem:[%s1164_s3 + $0x8] sm:$0xff] (!%p793_p10), %v1000_v4 }
  0x27 PF: > { %v922_v5 = vld [vmem:[%s1071_s7 + $0x40] sm:$0xff]   ;;  %v926_v9 = vld [vmem:[%s1071_s7 + $0x48] sm:$0xff]   ;;  %v930_v13 = vld [vmem:[%s1071_s7 + $0x50] sm:$0xff]   ;;  %p830_p11 = scmp.ne.s32.totalorder %s990_s14, 1 }
  0x28   : > { %v923_v6 = vld [vmem:[%s1071_s7 + $0xc0] sm:$0xff]   ;;  %837 = vmatprep.subr.bf16.mxu0 %v922_v5  ;;  %v927_v10 = vld [vmem:[%s1071_s7 + $0xc8] sm:$0xff]   ;;  %v931_v14 = vld [vmem:[%s1071_s7 + $0xd0] sm:$0xff]  }
  0x29   : > { %v924_v7 = vld [vmem:[%s1071_s7] sm:$0xff]   ;;  %859 = vmatprep.subr.bf16.mxu1 %v923_v6  ;;  %v928_v11 = vld [vmem:[%s1071_s7 + $0x8] sm:$0xff]   ;;  %v932_v15 = vld [vmem:[%s1071_s7 + $0x10] sm:$0xff]  }
  0x2a   : > { %v925_v8 = vld [vmem:[%s1071_s7 + $0x80] sm:$0xff]   ;;  %838 = vmatpush3.bf16.msra.mxu0 %v924_v7  ;;  %v929_v12 = vld [vmem:[%s1071_s7 + $0x88] sm:$0xff]   ;;  %v933_v16 = vld [vmem:[%s1071_s7 + $0x90] sm:$0xff]  }
  0x2b   : > { %860 = vmatpush3.bf16.msra.mxu1 %v925_v8  ;;  %839 = vmatprep.subr.bf16.mxu0 %v926_v9  ;;  %v934_v17 = vld [vmem:[%s1071_s7 + $0x58] sm:$0xff]   ;;  %v938_v21 = vld [vmem:[%s1071_s7 + $0x60] sm:$0xff]   ;;  %v942_v25 = vld [vmem:[%s1071_s7 + $0x68] sm:$0xff]  }
  0x2c   : > { %861 = vmatprep.subr.bf16.mxu1 %v927_v10  ;;  %v935_v18 = vld [vmem:[%s1071_s7 + $0xd8] sm:$0xff]   ;;  %v939_v22 = vld [vmem:[%s1071_s7 + $0xe0] sm:$0xff]   ;;  %v943_v26 = vld [vmem:[%s1071_s7 + $0xe8] sm:$0xff]  }
  0x2d   : > { %v936_v19 = vld [vmem:[%s1071_s7 + $0x18] sm:$0xff]   ;;  %v940_v23 = vld [vmem:[%s1071_s7 + $0x20] sm:$0xff]   ;;  %v944_v27 = vld [vmem:[%s1071_s7 + $0x28] sm:$0xff]  }
  0x2e   : > { %840 = vmatpush3.bf16.msra.mxu0 %v928_v11  ;;  %v937_v20 = vld [vmem:[%s1071_s7 + $0x98] sm:$0xff]   ;;  %v941_v24 = vld [vmem:[%s1071_s7 + $0xa0] sm:$0xff]   ;;  %v945_v28 = vld [vmem:[%s1071_s7 + $0xa8] sm:$0xff]  }
  0x2f   : > { %862 = vmatpush3.bf16.msra.mxu1 %v929_v12  ;;  %841 = vmatprep.subr.bf16.mxu0 %v930_v13  ;;  %v946_v29 = vld [vmem:[%s1071_s7 + $0x70] sm:$0xff]   ;;  %v950_v33 = vld [vmem:[%s1071_s7 + $0x78] sm:$0xff]   ;;  %v286_v50 = vld [vmem:[%s1164_s3] sm:$0xff] }
  0x30   : > { %863 = vmatprep.subr.bf16.mxu1 %v931_v14  ;;  %v947_v30 = vld [vmem:[%s1071_s7 + $0xf0] sm:$0xff]   ;;  %v951_v34 = vld [vmem:[%s1071_s7 + $0xf8] sm:$0xff]   ;;  %v287_v55 = vld [vmem:[%s1164_s3 + $0x8] sm:$0xff] }
  0x31   : > { %v948_v31 = vld [vmem:[%s1071_s7 + $0x30] sm:$0xff]   ;;  %v952_v35 = vld [vmem:[%s1071_s7 + $0x38] sm:$0xff]   ;;  %v831_v60 = vld [vmem:[%s1163_s2] ss:$0 sm:$0xff] (!%p830_p11) }
  0x32   : > { %842 = vmatpush3.bf16.msra.mxu0 %v932_v15  ;;  %v949_v32 = vld [vmem:[%s1071_s7 + $0xb0] sm:$0xff]   ;;  %v953_v36 = vld [vmem:[%s1071_s7 + $0xb8] sm:$0xff]  }
  0x33   : > { %864 = vmatpush3.bf16.msra.mxu1 %v933_v16  ;;  %843 = vmatprep.subr.bf16.mxu0 %v934_v17  ;;  %v954_v37 = vld [vmem:[%s1073_s8] ss:$16 sps:$4 sm:$0xff]   ;;  %v956_v38 = vld [vmem:[%s1073_s8 + $0x4] ss:$16 sps:$4 sm:$0xff]   ;;  %v957_v39 = vld [vmem:[%s1073_s8 + $0x8] ss:$16 sps:$4 sm:$0xff]  }
  0x34   : > { %865 = vmatprep.subr.bf16.mxu1 %v935_v18  ;;  %v959_v40 = vld [vmem:[%s1073_s8 + $0xc] ss:$16 sps:$4 sm:$0xff]   ;;  %600 = vmatprep.mubr.bf16.mxu0 %v956_v38 }
  0x35   : > { %641 = vmatprep.mubr.bf16.mxu1 %v959_v40 }
  0x36   : > { %844 = vmatpush3.bf16.msra.mxu0 %v936_v19 }
  0x37   : > { %866 = vmatpush3.bf16.msra.mxu1 %v937_v20  ;;  %845 = vmatprep.subr.bf16.mxu0 %v938_v21 }
  0x38   : > { %867 = vmatprep.subr.bf16.mxu1 %v939_v22 }
  0x3a   : > { %846 = vmatpush3.bf16.msra.mxu0 %v940_v23 }
  0x3b   : > { %868 = vmatpush3.bf16.msra.mxu1 %v941_v24  ;;  %847 = vmatprep.subr.bf16.mxu0 %v942_v25 }
  0x3c   : > { %869 = vmatprep.subr.bf16.mxu1 %v943_v26 }
  0x3e   : > { %848 = vmatpush3.bf16.msra.mxu0 %v944_v27 }
  0x3f   : > { %870 = vmatpush3.bf16.msra.mxu1 %v945_v28  ;;  %849 = vmatprep.subr.bf16.mxu0 %v946_v29 }
  0x40   : > { %871 = vmatprep.subr.bf16.mxu1 %v947_v30 }
  0x42   : > { %850 = vmatpush3.bf16.msra.mxu0 %v948_v31 }
  0x43   : > { %872 = vmatpush3.bf16.msra.mxu1 %v949_v32  ;;  %851 = vmatprep.subr.bf16.mxu0 %v950_v33 }
  0x44   : > { %873 = vmatprep.subr.bf16.mxu1 %v951_v34 }
  0x46   : > { %852 = vmatpush3.bf16.msra.mxu0 %v952_v35 }
  0x47   : > { %874 = vmatpush3.bf16.msra.mxu1 %v953_v36 }
  0x49   : > { %601 = vmatmul.mubr.bf16.vlgmr.msra.gmra.mrb[0].mxu0 %v954_v37 }
  0x4a   : > { %642 = vmatmul.mubr.bf16.vlgmr.msra.gmra.mrb[0].mxu1 %v957_v39 }
 0x11c   : > { %v853_v41 = vpop.f32.mrb[0].mxu0 }
 0x11d   : > { %v875_v42 = vpop.f32.mrb[0].mxu1  ;;  %v854_v43 = vpop.f32.mrb[1].mxu0 }
 0x11e   : > { %v855_v44 = vadd.f32 %v854_v43, %v853_v41  ;;  %v876_v45 = vpop.f32.mrb[1].mxu1  ;;  %v856_v46 = vpop.f32.mrb[2].mxu0 }
 0x11f   : > { %v877_v47 = vadd.f32 %v876_v45, %v875_v42  ;;  %v878_v48 = vpop.f32.mrb[2].mxu1  ;;  %v857_v49 = vpop.f32.mrb[3].mxu0 }
 0x120   : > { %v858_v51 = vadd.f32 %v857_v49, %v856_v46  ;;  %v879_v52 = vpop.f32.mrb[3].mxu1 }
 0x121   : > { %v644_v53 = vadd.f32 %v877_v47, %v855_v44  ;;  %v880_v54 = vadd.f32 %v879_v52, %v878_v48  ;;  %657 = sbr.rel (%p830_p11) target bundleno = 306 (0x132), region = 63 }
 0x123   : > { %v650_v56 = vadd.f32 %v644_v53, %v286_v50  ;;  %v647_v57 = vadd.f32 %v880_v54, %v858_v51 }
 0x125   : > { %652 = vst [vmem:[%s1164_s3] sm:$0xff] %v650_v56  ;;  %v651_v58 = vadd.f32 %v647_v57, %v287_v55 }
 0x127   : > { %653 = vst [vmem:[%s1164_s3 + $0x8] sm:$0xff] %v651_v58 }
 0x12c   : > { %v658_v59 = vld [vmem:[%s1164_s3] sm:$0xff] }
 0x12d   : > { %v667_v62 = vadd.f32 %v831_v60, %v658_v59 }
 0x12e   : > { %v659_v61 = vld [vmem:[%s1164_s3 + $0x8] sm:$0xff] }
 0x12f   : > { %v668_v63 = vadd.f32 %v831_v60, %v659_v61  ;;  %669 = vst [vmem:[%s1164_s3] sm:$0xff] %v667_v62 }
 0x131   : > { %670 = vst [vmem:[%s1164_s3 + $0x8] sm:$0xff] %v668_v63 }
 0x132 PF: > { %s13_s16 = sadd.s32 1, %s998_s16   ;;  %s1165_s12 = smov %s986_s13 }
 0x133   : > { %p10_p12 = scmp.ge.s32.totalorder %s13_s16, 4   ;;  %s1166_s13 = smov %s1056_s20 }
 0x134   : > { %s1167_s14 = smov %s994_s15  ;;  %s1168_s15 = smov %s1170_s17 }
 0x135   :  { %12 = sbr.rel (!%p10_p12) target bundleno = 3 (0x3), region = 104 }

// kernel: cnn_forward.22
= control target key start
LH: loop header
LB: loop body
LE: loop exit
PB: predicated region body
PF: predicated region fallthrough
CT: control target
= control target key end

     0   :  { %s2044_s0 = inlined_call_operand.vmem [shape: bf16[16,12800], index: 0, kind: input, shape index: {}]   ;;  %s2045_s1 = inlined_call_operand.vmem [shape: bf16[12800,1024], index: 1, kind: input, shape index: {}]   ;;  %s2046_s2 = inlined_call_operand.vmem [shape: f32[1,1024], index: 2, kind: input, shape index: {}]   ;;  %s2047_s3 = inlined_call_operand.vmem [shape: f32[16,1024], index: 3, kind: output, shape index: {}]  }
   0x1   :  { %2049 = sst [smem:[#allocation6_spill]] %s2044_s0 }
   0x2   :  { %2050 = sst [smem:[#allocation7_spill]] %s2045_s1 }
   0x3   :  { %s1642_s12 = smov 0   ;;  %s1644_s13 = smov 0  }
   0x4   :  { %s1646_s14 = smov 0   ;;  %s1648_s15 = smov 0  }
   0x5   :  { %s1650_s16 = smov 0   ;;  %s1652_s17 = smov 0  }
   0x6   :  { %s1654_s18 = smov 0   ;;  %s1656_s19 = smov 0  }
   0x7   :  { %s1658_s20 = smov 0   ;;  %s1660_s21 = smov 0  }
   0x8   :  { %s1662_s22 = smov 0  }
   0x9 LB: > { %s1243_s23 = sadd.s32 4294967295, %s1619_s22   ;;  %s25_s24 = sadd.s32 1, %s1611_s20  ;;  %s1619_s22 = sphi %s1662_s22, %s13_s22   ;;  %s1615_s21 = sphi %s1660_s21, %s2067_s21   ;;  %s1611_s20 = sphi %s1658_s20, %s2066_s20   ;;  %s1607_s19 = sphi %s1656_s19, %s2065_s19   ;;  %s1603_s18 = sphi %s1654_s18, %s2064_s18   ;;  %s1599_s17 = sphi %s1652_s17, %s2063_s17   ;;  %s1595_s16 = sphi %s1650_s16, %s2062_s16   ;;  %s1591_s15 = sphi %s1648_s15, %s2061_s15   ;;  %s1587_s14 = sphi %s1646_s14, %s2060_s14   ;;  %s1583_s13 = sphi %s1644_s13, %s2059_s13   ;;  %s1579_s12 = sphi %s1642_s12, %s2058_s12  }
   0xa   : > { %p26_p0 = scmp.ge.s32.totalorder %s25_s24, 25  ;;  %s28_s25 = sadd.s32 1, %s1615_s21 }
   0xb   : > { %s41_s26 = sadd.s32 1, %s1599_s17  ;;  %p48_p1 = scmp.ne.s32.totalorder %s1599_s17, %s1595_s16 }
   0xc   : > { %s2069_s24 = smov (%p26_p0, %s25_s24), 0  ;;  %s2071_s25 = smov (!%p26_p0, %s28_s25), %s1615_s21 }
   0xd   : > { %s37_s27 = ssub.s32 %s1611_s20, %s2069_s24  ;;  %p49_p2 = scmp.eq.s32.totalorder %s1619_s22, 0 }
   0xe   : > { %p30_p3 = scmp.ge.s32.totalorder %s2071_s25, 4  ;;  %p39_p4 = scmp.eq.s32.totalorder %s37_s27, 0 }
   0xf   : > { %p1709_p5 = por %p49_p2, %p48_p1  ;;  %s69_s29 = sadd.s32 1, %s1591_s15 }
  0x10   : > { %s2073_s25 = smov (%p30_p3, %s2071_s25), 0  ;;  %p76_p6 = scmp.ne.s32.totalorder %s1591_s15, %s1587_s14 }
  0x11   : > { %2052 = sst [smem:[#allocation5_spill]] %s2073_s25  ;;  %s65_s4 = ssub.s32 %s1615_s21, %s2073_s25 }
  0x12   : > { %s1717_s30 = scalar_select %p39_p4, %s1599_s17, %s41_s26  }
  0x13   : > { %s66_s5 = sor.u32 %s65_s4, %s37_s27  ;;  %p121_p7 = scmp.eq.s32.totalorder %s65_s4, 0 }
  0x14   : > { %p67_p8 = scmp.eq.s32.totalorder %s66_s5, 0  ;;  %p1723_p9 = por %p76_p6, %p49_p2 }
  0x15   : > { %s123_s7 = sadd.s32 1, %s1583_s13  ;;  %p133_p10 = scmp.ne.s32.totalorder %s1583_s13, %s1579_s12 }
  0x16   : > { %s1731_s8 = scalar_select %p67_p8, %s1591_s15, %s69_s29  }
  0x17   : > { %s1734_s9 = scalar_select %p121_p7, %s1583_s13, %s123_s7  }
  0x18   : > { %p134_p11 = scmp.eq.s32.totalorder %s1243_s23, 99  ;;  %p1246_p13 = scmp.ge.s32.totalorder %s1619_s22, 100 }
  0x1a   : > { %p1736_p12 = por %p134_p11, %p133_p10  ;;  %156 = sbr.rel (%p1246_p13) target bundleno = 119 (0x77), region = 16 }
  0x21   : > { %159 = sbr.rel (!%p1709_p5) target bundleno = 45 (0x2d), region = 20  ;;  %s161_s11 = sand.u32 (%p1709_p5), 1, %s1599_s17  }
  0x22   : > { %s1335_s26 = sshll.u32 (%p1709_p5), %s1611_s20, 4  ;;  %s1247_s27 = sshll.u32 (%p1709_p5), %s161_s11, 5 }
  0x23   : > { %s2055_s0 = sld [smem:[#allocation6_spill]] (%p1709_p5)  ;;  %s163_s23 = scalar_lea.vmem (%p1709_p5), [#allocation2], %s1247_s27 }
  0x29   : > { %s169_s5 = scalar_lea.vmem %s2055_s0, %s1335_s26 }
  0x2a   : > { %v182_v0 = vld [vmem:[%s169_s5] sm:$0xff]  ;;  %v184_v1 = vld [vmem:[%s169_s5 + $0x8] sm:$0xff]  ;;  %v186_v2 = vld [vmem:[%s169_s5 + $0x190] sm:$0xff] }
  0x2b   : > { %183 = vst [vmem:[%s163_s23] sm:$0xff] %v182_v0  ;;  %185 = vst [vmem:[%s163_s23 + $0x8] sm:$0xff] %v184_v1  ;;  %v188_v3 = vld [vmem:[%s169_s5 + $0x198] sm:$0xff] }
  0x2c   : > { %187 = vst [vmem:[%s163_s23 + $0x10] sm:$0xff] %v186_v2  ;;  %189 = vst [vmem:[%s163_s23 + $0x18] sm:$0xff] %v188_v3 }
  0x2d PF: > { %195 = sbr.rel (!%p1723_p9) target bundleno = 119 (0x77), region = 43  ;;  %s197_s28 = sand.u32 (%p1723_p9), 1, %s1591_s15  }
  0x2e   : > { %s1252_s7 = sshll.u32 (%p1723_p9), %s1615_s21, 1  ;;  %s1250_s11 = sshll.u32 (%p1723_p9), %s197_s28, 9 }
  0x2f   : > { %s1336_s26 = sshll.u32 (%p1723_p9), %s1611_s20, 9  ;;  %s2056_s1 = sld [smem:[#allocation7_spill]] (%p1723_p9) }
  0x30   : > { %s203_s29 = sadd.s32 (%p1723_p9), %s1336_s26, %s1252_s7  ;;  %s1761_s6 = scalar_lea.vmem (%p1723_p9), [#allocation3], %s1250_s11 }
  0x31   : > { %s1254_s4 = sshll.u32 (%p1723_p9), %s203_s29, 2 }
  0x35   : > { %s1756_s25 = scalar_lea.vmem %s2056_s1, %s1254_s4 }
  0x36   : > { %v359_v4 = vld [vmem:[%s1756_s25] sm:$0xff] }
  0x37   : > { %v361_v5 = vld [vmem:[%s1756_s25 + $0x20] sm:$0xff]  ;;  %360 = vst [vmem:[%s1761_s6] sm:$0xff] %v359_v4 }
  0x38   : > { %v363_v6 = vld [vmem:[%s1756_s25 + $0x40] sm:$0xff]  ;;  %362 = vst [vmem:[%s1761_s6 + $0x8] sm:$0xff] %v361_v5 }
  0x39   : > { %364 = vst [vmem:[%s1761_s6 + $0x10] sm:$0xff] %v363_v6  ;;  %v365_v7 = vld [vmem:[%s1756_s25 + $0x60] sm:$0xff] }
  0x3a   : > { %v367_v8 = vld [vmem:[%s1756_s25 + $0x80] sm:$0xff]  ;;  %366 = vst [vmem:[%s1761_s6 + $0x18] sm:$0xff] %v365_v7 }
  0x3b   : > { %v369_v9 = vld [vmem:[%s1756_s25 + $0xa0] sm:$0xff]  ;;  %368 = vst [vmem:[%s1761_s6 + $0x20] sm:$0xff] %v367_v8 }
  0x3c   : > { %370 = vst [vmem:[%s1761_s6 + $0x28] sm:$0xff] %v369_v9  ;;  %v371_v10 = vld [vmem:[%s1756_s25 + $0xc0] sm:$0xff] }
  0x3d   : > { %v373_v11 = vld [vmem:[%s1756_s25 + $0xe0] sm:$0xff]  ;;  %372 = vst [vmem:[%s1761_s6 + $0x30] sm:$0xff] %v371_v10 }
  0x3e   : > { %v375_v12 = vld [vmem:[%s1756_s25 + $0x100] sm:$0xff]  ;;  %374 = vst [vmem:[%s1761_s6 + $0x38] sm:$0xff] %v373_v11 }
  0x3f   : > { %376 = vst [vmem:[%s1761_s6 + $0x40] sm:$0xff] %v375_v12  ;;  %v377_v13 = vld [vmem:[%s1756_s25 + $0x120] sm:$0xff] }
  0x40   : > { %v379_v14 = vld [vmem:[%s1756_s25 + $0x140] sm:$0xff]  ;;  %378 = vst [vmem:[%s1761_s6 + $0x48] sm:$0xff] %v377_v13 }
  0x41   : > { %v381_v15 = vld [vmem:[%s1756_s25 + $0x160] sm:$0xff]  ;;  %380 = vst [vmem:[%s1761_s6 + $0x50] sm:$0xff] %v379_v14 }
  0x42   : > { %382 = vst [vmem:[%s1761_s6 + $0x58] sm:$0xff] %v381_v15  ;;  %v383_v16 = vld [vmem:[%s1756_s25 + $0x180] sm:$0xff] }
  0x43   : > { %v385_v17 = vld [vmem:[%s1756_s25 + $0x1a0] sm:$0xff]  ;;  %384 = vst [vmem:[%s1761_s6 + $0x60] sm:$0xff] %v383_v16 }
  0x44   : > { %v387_v18 = vld [vmem:[%s1756_s25 + $0x1c0] sm:$0xff]  ;;  %386 = vst [vmem:[%s1761_s6 + $0x68] sm:$0xff] %v385_v17 }
  0x45   : > { %388 = vst [vmem:[%s1761_s6 + $0x70] sm:$0xff] %v387_v18  ;;  %v389_v19 = vld [vmem:[%s1756_s25 + $0x1e0] sm:$0xff] }
  0x46   : > { %v391_v20 = vld [vmem:[%s1756_s25 + $0x200] sm:$0xff]  ;;  %390 = vst [vmem:[%s1761_s6 + $0x78] sm:$0xff] %v389_v19 }
  0x47   : > { %v393_v21 = vld [vmem:[%s1756_s25 + $0x220] sm:$0xff]  ;;  %392 = vst [vmem:[%s1761_s6 + $0x80] sm:$0xff] %v391_v20 }
  0x48   : > { %394 = vst [vmem:[%s1761_s6 + $0x88] sm:$0xff] %v393_v21  ;;  %v395_v22 = vld [vmem:[%s1756_s25 + $0x240] sm:$0xff] }
  0x49   : > { %v397_v23 = vld [vmem:[%s1756_s25 + $0x260] sm:$0xff]  ;;  %396 = vst [vmem:[%s1761_s6 + $0x90] sm:$0xff] %v395_v22 }
  0x4a   : > { %v399_v24 = vld [vmem:[%s1756_s25 + $0x280] sm:$0xff]  ;;  %398 = vst [vmem:[%s1761_s6 + $0x98] sm:$0xff] %v397_v23 }
  0x4b   : > { %400 = vst [vmem:[%s1761_s6 + $0xa0] sm:$0xff] %v399_v24  ;;  %v401_v25 = vld [vmem:[%s1756_s25 + $0x2a0] sm:$0xff] }
  0x4c   : > { %v403_v26 = vld [vmem:[%s1756_s25 + $0x2c0] sm:$0xff]  ;;  %402 = vst [vmem:[%s1761_s6 + $0xa8] sm:$0xff] %v401_v25 }
  0x4d   : > { %v405_v27 = vld [vmem:[%s1756_s25 + $0x2e0] sm:$0xff]  ;;  %404 = vst [vmem:[%s1761_s6 + $0xb0] sm:$0xff] %v403_v26 }
  0x4e   : > { %406 = vst [vmem:[%s1761_s6 + $0xb8] sm:$0xff] %v405_v27  ;;  %v407_v28 = vld [vmem:[%s1756_s25 + $0x300] sm:$0xff] }
  0x4f   : > { %v409_v29 = vld [vmem:[%s1756_s25 + $0x320] sm:$0xff]  ;;  %408 = vst [vmem:[%s1761_s6 + $0xc0] sm:$0xff] %v407_v28 }
  0x50   : > { %v411_v30 = vld [vmem:[%s1756_s25 + $0x340] sm:$0xff]  ;;  %410 = vst [vmem:[%s1761_s6 + $0xc8] sm:$0xff] %v409_v29 }
  0x51   : > { %412 = vst [vmem:[%s1761_s6 + $0xd0] sm:$0xff] %v411_v30  ;;  %v413_v31 = vld [vmem:[%s1756_s25 + $0x360] sm:$0xff] }
  0x52   : > { %v415_v32 = vld [vmem:[%s1756_s25 + $0x380] sm:$0xff]  ;;  %414 = vst [vmem:[%s1761_s6 + $0xd8] sm:$0xff] %v413_v31 }
  0x53   : > { %v417_v33 = vld [vmem:[%s1756_s25 + $0x3a0] sm:$0xff]  ;;  %416 = vst [vmem:[%s1761_s6 + $0xe0] sm:$0xff] %v415_v32 }
  0x54   : > { %418 = vst [vmem:[%s1761_s6 + $0xe8] sm:$0xff] %v417_v33  ;;  %v419_v34 = vld [vmem:[%s1756_s25 + $0x3c0] sm:$0xff] }
  0x55   : > { %v421_v35 = vld [vmem:[%s1756_s25 + $0x3e0] sm:$0xff]  ;;  %420 = vst [vmem:[%s1761_s6 + $0xf0] sm:$0xff] %v419_v34 }
  0x56   : > { %v423_v36 = vld [vmem:[%s1756_s25 + $0x400] sm:$0xff]  ;;  %422 = vst [vmem:[%s1761_s6 + $0xf8] sm:$0xff] %v421_v35 }
  0x57   : > { %424 = vst [vmem:[%s1761_s6 + $0x100] sm:$0xff] %v423_v36  ;;  %v425_v37 = vld [vmem:[%s1756_s25 + $0x420] sm:$0xff] }
  0x58   : > { %v427_v38 = vld [vmem:[%s1756_s25 + $0x440] sm:$0xff]  ;;  %426 = vst [vmem:[%s1761_s6 + $0x108] sm:$0xff] %v425_v37 }
  0x59   : > { %v429_v39 = vld [vmem:[%s1756_s25 + $0x460] sm:$0xff]  ;;  %428 = vst [vmem:[%s1761_s6 + $0x110] sm:$0xff] %v427_v38 }
  0x5a   : > { %430 = vst [vmem:[%s1761_s6 + $0x118] sm:$0xff] %v429_v39  ;;  %v431_v40 = vld [vmem:[%s1756_s25 + $0x480] sm:$0xff] }
  0x5b   : > { %v433_v41 = vld [vmem:[%s1756_s25 + $0x4a0] sm:$0xff]  ;;  %432 = vst [vmem:[%s1761_s6 + $0x120] sm:$0xff] %v431_v40 }
  0x5c   : > { %v435_v42 = vld [vmem:[%s1756_s25 + $0x4c0] sm:$0xff]  ;;  %434 = vst [vmem:[%s1761_s6 + $0x128] sm:$0xff] %v433_v41 }
  0x5d   : > { %436 = vst [vmem:[%s1761_s6 + $0x130] sm:$0xff] %v435_v42  ;;  %v437_v43 = vld [vmem:[%s1756_s25 + $0x4e0] sm:$0xff] }
  0x5e   : > { %v439_v44 = vld [vmem:[%s1756_s25 + $0x500] sm:$0xff]  ;;  %438 = vst [vmem:[%s1761_s6 + $0x138] sm:$0xff] %v437_v43 }
  0x5f   : > { %v441_v45 = vld [vmem:[%s1756_s25 + $0x520] sm:$0xff]  ;;  %440 = vst [vmem:[%s1761_s6 + $0x140] sm:$0xff] %v439_v44 }
  0x60   : > { %442 = vst [vmem:[%s1761_s6 + $0x148] sm:$0xff] %v441_v45  ;;  %v443_v46 = vld [vmem:[%s1756_s25 + $0x540] sm:$0xff] }
  0x61   : > { %v445_v47 = vld [vmem:[%s1756_s25 + $0x560] sm:$0xff]  ;;  %444 = vst [vmem:[%s1761_s6 + $0x150] sm:$0xff] %v443_v46 }
  0x62   : > { %v447_v48 = vld [vmem:[%s1756_s25 + $0x580] sm:$0xff]  ;;  %446 = vst [vmem:[%s1761_s6 + $0x158] sm:$0xff] %v445_v47 }
  0x63   : > { %448 = vst [vmem:[%s1761_s6 + $0x160] sm:$0xff] %v447_v48  ;;  %v449_v49 = vld [vmem:[%s1756_s25 + $0x5a0] sm:$0xff] }
  0x64   : > { %v451_v50 = vld [vmem:[%s1756_s25 + $0x5c0] sm:$0xff]  ;;  %450 = vst [vmem:[%s1761_s6 + $0x168] sm:$0xff] %v449_v49 }
  0x65   : > { %v453_v51 = vld [vmem:[%s1756_s25 + $0x5e0] sm:$0xff]  ;;  %452 = vst [vmem:[%s1761_s6 + $0x170] sm:$0xff] %v451_v50 }
  0x66   : > { %454 = vst [vmem:[%s1761_s6 + $0x178] sm:$0xff] %v453_v51  ;;  %v455_v52 = vld [vmem:[%s1756_s25 + $0x600] sm:$0xff] }
  0x67   : > { %v457_v53 = vld [vmem:[%s1756_s25 + $0x620] sm:$0xff]  ;;  %456 = vst [vmem:[%s1761_s6 + $0x180] sm:$0xff] %v455_v52 }
  0x68   : > { %v459_v54 = vld [vmem:[%s1756_s25 + $0x640] sm:$0xff]  ;;  %458 = vst [vmem:[%s1761_s6 + $0x188] sm:$0xff] %v457_v53 }
  0x69   : > { %460 = vst [vmem:[%s1761_s6 + $0x190] sm:$0xff] %v459_v54  ;;  %v461_v55 = vld [vmem:[%s1756_s25 + $0x660] sm:$0xff] }
  0x6a   : > { %v463_v56 = vld [vmem:[%s1756_s25 + $0x680] sm:$0xff]  ;;  %462 = vst [vmem:[%s1761_s6 + $0x198] sm:$0xff] %v461_v55 }
  0x6b   : > { %v465_v57 = vld [vmem:[%s1756_s25 + $0x6a0] sm:$0xff]  ;;  %464 = vst [vmem:[%s1761_s6 + $0x1a0] sm:$0xff] %v463_v56 }
  0x6c   : > { %466 = vst [vmem:[%s1761_s6 + $0x1a8] sm:$0xff] %v465_v57  ;;  %v467_v58 = vld [vmem:[%s1756_s25 + $0x6c0] sm:$0xff] }
  0x6d   : > { %v469_v59 = vld [vmem:[%s1756_s25 + $0x6e0] sm:$0xff]  ;;  %468 = vst [vmem:[%s1761_s6 + $0x1b0] sm:$0xff] %v467_v58 }
  0x6e   : > { %v471_v60 = vld [vmem:[%s1756_s25 + $0x700] sm:$0xff]  ;;  %470 = vst [vmem:[%s1761_s6 + $0x1b8] sm:$0xff] %v469_v59 }
  0x6f   : > { %472 = vst [vmem:[%s1761_s6 + $0x1c0] sm:$0xff] %v471_v60  ;;  %v473_v61 = vld [vmem:[%s1756_s25 + $0x720] sm:$0xff] }
  0x70   : > { %v475_v62 = vld [vmem:[%s1756_s25 + $0x740] sm:$0xff]  ;;  %474 = vst [vmem:[%s1761_s6 + $0x1c8] sm:$0xff] %v473_v61 }
  0x71   : > { %v477_v63 = vld [vmem:[%s1756_s25 + $0x760] sm:$0xff]  ;;  %476 = vst [vmem:[%s1761_s6 + $0x1d0] sm:$0xff] %v475_v62 }
  0x72   : > { %478 = vst [vmem:[%s1761_s6 + $0x1d8] sm:$0xff] %v477_v63  ;;  %v479_v0 = vld [vmem:[%s1756_s25 + $0x780] sm:$0xff] }
  0x73   : > { %v481_v1 = vld [vmem:[%s1756_s25 + $0x7a0] sm:$0xff]  ;;  %480 = vst [vmem:[%s1761_s6 + $0x1e0] sm:$0xff] %v479_v0 }
  0x74   : > { %v483_v2 = vld [vmem:[%s1756_s25 + $0x7c0] sm:$0xff]  ;;  %482 = vst [vmem:[%s1761_s6 + $0x1e8] sm:$0xff] %v481_v1 }
  0x75   : > { %484 = vst [vmem:[%s1761_s6 + $0x1f0] sm:$0xff] %v483_v2  ;;  %v485_v3 = vld [vmem:[%s1756_s25 + $0x7e0] sm:$0xff] }
  0x76   : > { %486 = vst [vmem:[%s1761_s6 + $0x1f8] sm:$0xff] %v485_v3 }
  0x77 PF: > { %p1255_p0 = scmp.ge.s32.totalorder %s1619_s22, 1  ;;  %p499_p1 = scmp.lt.s32.totalorder %s1619_s22, 101 }
  0x79   : > { %p500_p2 = pnand %p1255_p0, %p499_p1 }
  0x7a   : > { %s506_s0 = sand.u32 (!%p500_p2), 1, %s1595_s16   ;;  %s513_s5 = sand.u32 (!%p500_p2), 1, %s1587_s14  }
  0x7b   : > { %503 = sbr.rel (%p500_p2) target bundleno = 443 (0x1bb), region = 85  ;;  %s1256_s23 = sshll.u32 (!%p500_p2), %s506_s0, 5 }
  0x7c   : > { %s1257_s28 = sshll.u32 (!%p500_p2), %s513_s5, 9  ;;  %s540_s7 = sand.u32 (!%p500_p2), 1, %s1579_s12  }
  0x7d   : > { %s1259_s11 = sshll.u32 (!%p500_p2), %s1607_s19, 1  ;;  %s1258_s25 = sshll.u32 (!%p500_p2), %s540_s7, 5 }
  0x7e   : > { %p548_p3 = scmp.lt.s32.totalorder (!%p500_p2), %s1259_s11, 7  ;;  %s1900_s27 = scalar_lea.vmem (!%p500_p2), [#allocation2], %s1256_s23 }
  0x7f   : > { %s1902_s6 = scalar_lea.vmem (!%p500_p2), [#allocation3], %s1257_s28  ;;  %s1904_s1 = scalar_lea.vmem (!%p500_p2), [#allocation4], %s1258_s25 }
  0x80   : > { %p1260_p4 = scmp.ne.s32.totalorder (!%p500_p2), %s1603_s18, 0 }
  0x82   : > { %s2075_s11 = smov (!%p548_p3, %s1259_s11), 7  ;;  %557 = sbr.rel (%p1260_p4) target bundleno = 137 (0x89), region = 97 }
  0x83   : > { %s550_s4 = scalar_lea.vmem %s2046_s2, %s2075_s11  ;;  %v1621_v4 = vmov (!%p1260_p4), 0.0  }
  0x84   : > { %558 = vst [vmem:[%s1904_s1] sm:$0xff] (!%p1260_p4), %v1621_v4  ;;  %559 = vst [vmem:[%s1904_s1 + $0x8] sm:$0xff] (!%p1260_p4), %v1621_v4 }
  0x85   : > { %560 = vst [vmem:[%s1904_s1 + $0x10] sm:$0xff] (!%p1260_p4), %v1621_v4  ;;  %561 = vst [vmem:[%s1904_s1 + $0x18] sm:$0xff] (!%p1260_p4), %v1621_v4 }
  0x89 PF: > { %v1431_v5 = vld [vmem:[%s1902_s6 + $0x4] ss:$8 sps:$4 sm:$0xff]   ;;  %v1435_v7 = vld [vmem:[%s1902_s6] ss:$8 sps:$4 sm:$0xff]   ;;  %v1437_v9 = vld [vmem:[%s1902_s6 + $0x14] ss:$8 sps:$4 sm:$0xff]  }
  0x8a   : > { %v1433_v6 = vld [vmem:[%s1902_s6 + $0x104] ss:$8 sps:$4 sm:$0xff]   ;;  %974 = vmatprep.subr.bf16.mxu1 %v1431_v5  ;;  %v1436_v8 = vld [vmem:[%s1902_s6 + $0x100] ss:$8 sps:$4 sm:$0xff]   ;;  %v1439_v10 = vld [vmem:[%s1902_s6 + $0x114] ss:$8 sps:$4 sm:$0xff]  }
  0x8b   : > { %1017 = vmatprep.subr.bf16.mxu0 %v1433_v6  ;;  %975 = vmatpush1.bf16.msra.mxu1 %v1435_v7  ;;  %v1441_v11 = vld [vmem:[%s1902_s6 + $0x10] ss:$8 sps:$4 sm:$0xff]   ;;  %v1443_v13 = vld [vmem:[%s1902_s6 + $0x24] ss:$8 sps:$4 sm:$0xff]   ;;  %v1447_v15 = vld [vmem:[%s1902_s6 + $0x20] ss:$8 sps:$4 sm:$0xff]  }
  0x8c   : > { %1018 = vmatpush1.bf16.msra.mxu0 %v1436_v8  ;;  %976 = vmatprep.subr.bf16.mxu1 %v1437_v9  ;;  %v1442_v12 = vld [vmem:[%s1902_s6 + $0x110] ss:$8 sps:$4 sm:$0xff]   ;;  %v1445_v14 = vld [vmem:[%s1902_s6 + $0x124] ss:$8 sps:$4 sm:$0xff]   ;;  %v1448_v16 = vld [vmem:[%s1902_s6 + $0x120] ss:$8 sps:$4 sm:$0xff]  }
  0x8d   : > { %1019 = vmatprep.subr.bf16.mxu0 %v1439_v10  ;;  %v1449_v17 = vld [vmem:[%s1902_s6 + $0x34] ss:$8 sps:$4 sm:$0xff]   ;;  %v1453_v19 = vld [vmem:[%s1902_s6 + $0x30] ss:$8 sps:$4 sm:$0xff]   ;;  %v1455_v21 = vld [vmem:[%s1902_s6 + $0x44] ss:$8 sps:$4 sm:$0xff]  }
  0x8e   : > { %v1451_v18 = vld [vmem:[%s1902_s6 + $0x134] ss:$8 sps:$4 sm:$0xff]   ;;  %v1454_v20 = vld [vmem:[%s1902_s6 + $0x130] ss:$8 sps:$4 sm:$0xff]   ;;  %v1457_v22 = vld [vmem:[%s1902_s6 + $0x144] ss:$8 sps:$4 sm:$0xff]  }
  0x8f   : > { %977 = vmatpush1.bf16.msra.mxu1 %v1441_v11  ;;  %v1459_v23 = vld [vmem:[%s1902_s6 + $0x40] ss:$8 sps:$4 sm:$0xff]   ;;  %v1461_v25 = vld [vmem:[%s1902_s6 + $0x54] ss:$8 sps:$4 sm:$0xff]   ;;  %v1465_v27 = vld [vmem:[%s1902_s6 + $0x50] ss:$8 sps:$4 sm:$0xff]  }
  0x90   : > { %1020 = vmatpush1.bf16.msra.mxu0 %v1442_v12  ;;  %978 = vmatprep.subr.bf16.mxu1 %v1443_v13  ;;  %v1460_v24 = vld [vmem:[%s1902_s6 + $0x140] ss:$8 sps:$4 sm:$0xff]   ;;  %v1463_v26 = vld [vmem:[%s1902_s6 + $0x154] ss:$8 sps:$4 sm:$0xff]   ;;  %v1466_v28 = vld [vmem:[%s1902_s6 + $0x150] ss:$8 sps:$4 sm:$0xff]  }
  0x91   : > { %1021 = vmatprep.subr.bf16.mxu0 %v1445_v14  ;;  %v1467_v29 = vld [vmem:[%s1902_s6 + $0x64] ss:$8 sps:$4 sm:$0xff]   ;;  %v1471_v31 = vld [vmem:[%s1902_s6 + $0x60] ss:$8 sps:$4 sm:$0xff]   ;;  %v1473_v33 = vld [vmem:[%s1902_s6 + $0x74] ss:$8 sps:$4 sm:$0xff]  }
  0x92   : > { %v1469_v30 = vld [vmem:[%s1902_s6 + $0x164] ss:$8 sps:$4 sm:$0xff]   ;;  %v1472_v32 = vld [vmem:[%s1902_s6 + $0x160] ss:$8 sps:$4 sm:$0xff]   ;;  %v1475_v34 = vld [vmem:[%s1902_s6 + $0x174] ss:$8 sps:$4 sm:$0xff]  }
  0x93   : > { %979 = vmatpush1.bf16.msra.mxu1 %v1447_v15  ;;  %v1477_v35 = vld [vmem:[%s1902_s6 + $0x70] ss:$8 sps:$4 sm:$0xff]   ;;  %v1479_v37 = vld [vmem:[%s1902_s6 + $0x84] ss:$8 sps:$4 sm:$0xff]   ;;  %v1483_v39 = vld [vmem:[%s1902_s6 + $0x80] ss:$8 sps:$4 sm:$0xff]  }
  0x94   : > { %1022 = vmatpush1.bf16.msra.mxu0 %v1448_v16  ;;  %980 = vmatprep.subr.bf16.mxu1 %v1449_v17  ;;  %v1478_v36 = vld [vmem:[%s1902_s6 + $0x170] ss:$8 sps:$4 sm:$0xff]   ;;  %v1481_v38 = vld [vmem:[%s1902_s6 + $0x184] ss:$8 sps:$4 sm:$0xff]   ;;  %v1484_v40 = vld [vmem:[%s1902_s6 + $0x180] ss:$8 sps:$4 sm:$0xff]  }
  0x95   : > { %1023 = vmatprep.subr.bf16.mxu0 %v1451_v18  ;;  %v1485_v41 = vld [vmem:[%s1902_s6 + $0x94] ss:$8 sps:$4 sm:$0xff]   ;;  %v1489_v43 = vld [vmem:[%s1902_s6 + $0x90] ss:$8 sps:$4 sm:$0xff]   ;;  %v1491_v45 = vld [vmem:[%s1902_s6 + $0xa4] ss:$8 sps:$4 sm:$0xff]  }
  0x96   : > { %v1487_v42 = vld [vmem:[%s1902_s6 + $0x194] ss:$8 sps:$4 sm:$0xff]   ;;  %v1490_v44 = vld [vmem:[%s1902_s6 + $0x190] ss:$8 sps:$4 sm:$0xff]   ;;  %v1493_v46 = vld [vmem:[%s1902_s6 + $0x1a4] ss:$8 sps:$4 sm:$0xff]  }
  0x97   : > { %981 = vmatpush1.bf16.msra.mxu1 %v1453_v19  ;;  %v1495_v47 = vld [vmem:[%s1902_s6 + $0xa0] ss:$8 sps:$4 sm:$0xff]   ;;  %v1497_v49 = vld [vmem:[%s1902_s6 + $0xb4] ss:$8 sps:$4 sm:$0xff]   ;;  %v1501_v51 = vld [vmem:[%s1902_s6 + $0xb0] ss:$8 sps:$4 sm:$0xff]  }
  0x98   : > { %1024 = vmatpush1.bf16.msra.mxu0 %v1454_v20  ;;  %982 = vmatprep.subr.bf16.mxu1 %v1455_v21  ;;  %v1496_v48 = vld [vmem:[%s1902_s6 + $0x1a0] ss:$8 sps:$4 sm:$0xff]   ;;  %v1499_v50 = vld [vmem:[%s1902_s6 + $0x1b4] ss:$8 sps:$4 sm:$0xff]   ;;  %v1502_v53 = vld [vmem:[%s1902_s6 + $0x1b0] ss:$8 sps:$4 sm:$0xff]  }
  0x99   : > { %1025 = vmatprep.subr.bf16.mxu0 %v1457_v22  ;;  %v1529_v52 = vld [vmem:[%s1900_s27 + $0x4] ss:$16 sps:$4 sm:$0xff]   ;;  %v1532_v56 = vld [vmem:[%s1900_s27 + $0xc] ss:$16 sps:$4 sm:$0xff]   ;;  %v1507_v57 = vld [vmem:[%s1902_s6 + $0xc0] ss:$8 sps:$4 sm:$0xff]  }
  0x9a   : > { %v1503_v54 = vld [vmem:[%s1902_s6 + $0xc4] ss:$8 sps:$4 sm:$0xff]   ;;  %1006 = vmatprep.mubr.bf16.mxu1 %v1529_v52  ;;  %1049 = vmatprep.mubr.bf16.mxu0 %v1532_v56  ;;  %v1508_v58 = vld [vmem:[%s1902_s6 + $0x1c0] ss:$8 sps:$4 sm:$0xff]   ;;  %v1509_v59 = vld [vmem:[%s1902_s6 + $0xd4] ss:$8 sps:$4 sm:$0xff]  }
  0x9b   : > { %983 = vmatpush1.bf16.msra.mxu1 %v1459_v23  ;;  %v1505_v55 = vld [vmem:[%s1902_s6 + $0x1c4] ss:$8 sps:$4 sm:$0xff]   ;;  %v1511_v60 = vld [vmem:[%s1902_s6 + $0x1d4] ss:$8 sps:$4 sm:$0xff]   ;;  %v1513_v61 = vld [vmem:[%s1902_s6 + $0xd0] ss:$8 sps:$4 sm:$0xff]  }
  0x9c   : > { %1026 = vmatpush1.bf16.msra.mxu0 %v1460_v24  ;;  %984 = vmatprep.subr.bf16.mxu1 %v1461_v25  ;;  %v1514_v62 = vld [vmem:[%s1902_s6 + $0x1d0] ss:$8 sps:$4 sm:$0xff]   ;;  %v1515_v63 = vld [vmem:[%s1902_s6 + $0xe4] ss:$8 sps:$4 sm:$0xff]   ;;  %v1519_v1 = vld [vmem:[%s1902_s6 + $0xe0] ss:$8 sps:$4 sm:$0xff]  }
  0x9d   : > { %1027 = vmatprep.subr.bf16.mxu0 %v1463_v26  ;;  %v1517_v0 = vld [vmem:[%s1902_s6 + $0x1e4] ss:$8 sps:$4 sm:$0xff]   ;;  %v1520_v2 = vld [vmem:[%s1902_s6 + $0x1e0] ss:$8 sps:$4 sm:$0xff]   ;;  %v1521_v3 = vld [vmem:[%s1902_s6 + $0xf4] ss:$8 sps:$4 sm:$0xff]  }
  0x9e   : > { %v1523_v4 = vld [vmem:[%s1902_s6 + $0x1f4] ss:$8 sps:$4 sm:$0xff]   ;;  %v1525_v5 = vld [vmem:[%s1902_s6 + $0xf0] ss:$8 sps:$4 sm:$0xff]   ;;  %v562_v10 = vld [vmem:[%s1904_s1] sm:$0xff]  ;;  %p1329_p5 = scmp.ne.s32.totalorder %s1603_s18, 24 }
  0x9f   : > { %985 = vmatpush1.bf16.msra.mxu1 %v1465_v27  ;;  %v1526_v6 = vld [vmem:[%s1902_s6 + $0x1f0] ss:$8 sps:$4 sm:$0xff]   ;;  %v563_v14 = vld [vmem:[%s1904_s1 + $0x8] sm:$0xff] }
  0xa0   : > { %1028 = vmatpush1.bf16.msra.mxu0 %v1466_v28  ;;  %986 = vmatprep.subr.bf16.mxu1 %v1467_v29  ;;  %v1527_v7 = vld [vmem:[%s1900_s27] ss:$16 sps:$4 sm:$0xff]   ;;  %v1530_v8 = vld [vmem:[%s1900_s27 + $0x8] ss:$16 sps:$4 sm:$0xff]   ;;  %v1078_v29 = vlaneseq (!%p1329_p5) }
  0xa1   : > { %1029 = vmatprep.subr.bf16.mxu0 %v1469_v30  ;;  %v564_v18 = vld [vmem:[%s1904_s1 + $0x10] sm:$0xff]  ;;  %v565_v23 = vld [vmem:[%s1904_s1 + $0x18] sm:$0xff] }
  0xa2   : > { %v1079_v30 = vshrl.u32 (!%p1329_p5), %v1078_v29, 7 }
  0xa3   : > { %987 = vmatpush1.bf16.msra.mxu1 %v1471_v31  ;;  %v1076_v31 = vld [vmem:[%s550_s4] sm:$0x3] (!%p1329_p5) }
  0xa4   : > { %1030 = vmatpush1.bf16.msra.mxu0 %v1472_v32  ;;  %988 = vmatprep.subr.bf16.mxu1 %v1473_v33  ;;  %v1080_v33 = vsub.s32 (!%p1329_p5), 0, %v1079_v30 }
  0xa5   : > { %1031 = vmatprep.subr.bf16.mxu0 %v1475_v34  ;;  %v1084_v34 = vsub.s32 (!%p1329_p5), 1, %v1079_v30 }
  0xa7   : > { %989 = vmatpush1.bf16.msra.mxu1 %v1477_v35 }
  0xa8   : > { %1032 = vmatpush1.bf16.msra.mxu0 %v1478_v36  ;;  %990 = vmatprep.subr.bf16.mxu1 %v1479_v37 }
  0xa9   : > { %1033 = vmatprep.subr.bf16.mxu0 %v1481_v38  ;;  %v1081_v38 = vrot.slane (!%p1329_p5), %v1076_v31, %v1080_v33 }
  0xab   : > { %991 = vmatpush1.bf16.msra.mxu1 %v1483_v39  ;;  %v1085_v39 = vrot.slane (!%p1329_p5), %v1076_v31, %v1084_v34 }
  0xac   : > { %1034 = vmatpush1.bf16.msra.mxu0 %v1484_v40  ;;  %992 = vmatprep.subr.bf16.mxu1 %v1485_v41 }
  0xad   : > { %1035 = vmatprep.subr.bf16.mxu0 %v1487_v42 }
  0xaf   : > { %993 = vmatpush1.bf16.msra.mxu1 %v1489_v43 }
  0xb0   : > { %1036 = vmatpush1.bf16.msra.mxu0 %v1490_v44  ;;  %994 = vmatprep.subr.bf16.mxu1 %v1491_v45 }
  0xb1   : > { %1037 = vmatprep.subr.bf16.mxu0 %v1493_v46 }
  0xb3   : > { %995 = vmatpush1.bf16.msra.mxu1 %v1495_v47 }
  0xb4   : > { %1038 = vmatpush1.bf16.msra.mxu0 %v1496_v48  ;;  %996 = vmatprep.subr.bf16.mxu1 %v1497_v49 }
  0xb5   : > { %1039 = vmatprep.subr.bf16.mxu0 %v1499_v50 }
  0xb7   : > { %997 = vmatpush1.bf16.msra.mxu1 %v1501_v51 }
  0xb8   : > { %1040 = vmatpush1.bf16.msra.mxu0 %v1502_v53  ;;  %998 = vmatprep.subr.bf16.mxu1 %v1503_v54 }
  0xb9   : > { %1041 = vmatprep.subr.bf16.mxu0 %v1505_v55 }
  0xbb   : > { %999 = vmatpush1.bf16.msra.mxu1 %v1507_v57 }
  0xbc   : > { %1042 = vmatpush1.bf16.msra.mxu0 %v1508_v58  ;;  %1000 = vmatprep.subr.bf16.mxu1 %v1509_v59 }
  0xbd   : > { %1043 = vmatprep.subr.bf16.mxu0 %v1511_v60 }
  0xbf   : > { %1001 = vmatpush1.bf16.msra.mxu1 %v1513_v61 }
  0xc0   : > { %1044 = vmatpush1.bf16.msra.mxu0 %v1514_v62  ;;  %1002 = vmatprep.subr.bf16.mxu1 %v1515_v63 }
  0xc1   : > { %1045 = vmatprep.subr.bf16.mxu0 %v1517_v0 }
  0xc3   : > { %1003 = vmatpush1.bf16.msra.mxu1 %v1519_v1 }
  0xc4   : > { %1046 = vmatpush1.bf16.msra.mxu0 %v1520_v2  ;;  %1004 = vmatprep.subr.bf16.mxu1 %v1521_v3 }
  0xc5   : > { %1047 = vmatprep.subr.bf16.mxu0 %v1523_v4 }
  0xc7   : > { %1005 = vmatpush1.bf16.msra.mxu1 %v1525_v5 }
  0xc8   : > { %1048 = vmatpush1.bf16.msra.mxu0 %v1526_v6 }
  0xca   : > { %1007 = vmatmul.mubr.bf16.vlgmr.msra.gmra.mrb[0].mxu1 %v1527_v7 }
  0xcb   : > { %1050 = vmatmul.mubr.bf16.vlgmr.msra.gmra.mrb[0].mxu0 %v1530_v8 }
 0x19d   : > { %v1008_v9 = vpop.f32.mrb[0].mxu1 }
 0x19e   : > { %v1051_v11 = vpop.f32.mrb[0].mxu0  ;;  %v1010_v13 = vpop.f32.mrb[1].mxu1 }
 0x19f   : > { %v1052_v12 = vadd.f32 %v1051_v11, %v1008_v9  ;;  %v1053_v15 = vpop.f32.mrb[1].mxu0  ;;  %v1012_v17 = vpop.f32.mrb[2].mxu1 }
 0x1a0   : > { %v1054_v16 = vadd.f32 %v1053_v15, %v1010_v13  ;;  %v1055_v19 = vpop.f32.mrb[2].mxu0  ;;  %v1014_v22 = vpop.f32.mrb[3].mxu1  ;;  %1071 = sbr.rel (%p1329_p5) target bundleno = 435 (0x1b3), region = 101 }
 0x1a1   : > { %v1060_v20 = vadd.f32 %v1052_v12, %v562_v10  ;;  %v1056_v21 = vadd.f32 %v1055_v19, %v1012_v17  ;;  %v1057_v24 = vpop.f32.mrb[3].mxu0 }
 0x1a2   : > { %v1061_v25 = vadd.f32 %v1054_v16, %v563_v14  ;;  %v1058_v26 = vadd.f32 %v1057_v24, %v1014_v22 }
 0x1a3   : > { %1064 = vst [vmem:[%s1904_s1] sm:$0xff] %v1060_v20  ;;  %v1062_v27 = vadd.f32 %v1056_v21, %v564_v18 }
 0x1a4   : > { %1065 = vst [vmem:[%s1904_s1 + $0x8] sm:$0xff] %v1061_v25  ;;  %v1063_v28 = vadd.f32 %v1058_v26, %v565_v23 }
 0x1a5   : > { %1066 = vst [vmem:[%s1904_s1 + $0x10] sm:$0xff] %v1062_v27 }
 0x1a6   : > { %1067 = vst [vmem:[%s1904_s1 + $0x18] sm:$0xff] %v1063_v28 }
 0x1aa   : > { %v1072_v32 = vld [vmem:[%s1904_s1] sm:$0xff] }
 0x1ab   : > { %v1073_v35 = vld [vmem:[%s1904_s1 + $0x8] sm:$0xff]  ;;  %v1088_v40 = vadd.f32 %v1081_v38, %v1072_v32 }
 0x1ac   : > { %v1074_v36 = vld [vmem:[%s1904_s1 + $0x10] sm:$0xff]  ;;  %v1089_v41 = vadd.f32 %v1085_v39, %v1073_v35 }
 0x1ad   : > { %v1075_v37 = vld [vmem:[%s1904_s1 + $0x18] sm:$0xff]  ;;  %v1090_v42 = vadd.f32 %v1081_v38, %v1074_v36  ;;  %v1092_v44 = vmax.f32 %v1088_v40, 0.0 }
 0x1ae   : > { %v1091_v43 = vadd.f32 %v1085_v39, %v1075_v37  ;;  %v1093_v45 = vmax.f32 %v1089_v41, 0.0 }
 0x1af   : > { %v1094_v46 = vmax.f32 %v1090_v42, 0.0  ;;  %1096 = vst [vmem:[%s1904_s1] sm:$0xff] %v1092_v44 }
 0x1b0   : > { %v1095_v47 = vmax.f32 %v1091_v43, 0.0  ;;  %1097 = vst [vmem:[%s1904_s1 + $0x8] sm:$0xff] %v1093_v45 }
 0x1b1   : > { %1098 = vst [vmem:[%s1904_s1 + $0x10] sm:$0xff] %v1094_v46 }
 0x1b2   : > { %1099 = vst [vmem:[%s1904_s1 + $0x18] sm:$0xff] %v1095_v47 }
 0x1b3 PF: > { %1106 = sbr.rel (!%p1736_p12) target bundleno = 443 (0x1bb), region = 105  ;;  %s1337_s16 = sshll.u32 (%p1736_p12), %s1607_s19, 4 }
 0x1b4   : > { %s1112_s5 = scalar_lea.vmem (%p1736_p12), %s2047_s3, %s1337_s16 }
 0x1b6   : > { %v1125_v48 = vld [vmem:[%s1904_s1] sm:$0xff] (%p1736_p12) }
 0x1b7   : > { %v1127_v49 = vld [vmem:[%s1904_s1 + $0x8] sm:$0xff] (%p1736_p12)  ;;  %1126 = vst [vmem:[%s1112_s5] sm:$0xff] (%p1736_p12), %v1125_v48 }
 0x1b8   : > { %v1129_v50 = vld [vmem:[%s1904_s1 + $0x10] sm:$0xff] (%p1736_p12)  ;;  %1128 = vst [vmem:[%s1112_s5 + $0x8] sm:$0xff] (%p1736_p12), %v1127_v49 }
 0x1b9   : > { %v1131_v51 = vld [vmem:[%s1904_s1 + $0x18] sm:$0xff] (%p1736_p12)  ;;  %1130 = vst [vmem:[%s1112_s5 + $0x40] sm:$0xff] (%p1736_p12), %v1129_v50 }
 0x1ba   : > { %1132 = vst [vmem:[%s1112_s5 + $0x48] sm:$0xff] %v1131_v51 }
 0x1bb PF: > { %s13_s22 = sadd.s32 1, %s1619_s22   ;;  %s2057_s10 = sld [smem:[#allocation5_spill]] }
 0x1bc   : > { %p10_p6 = scmp.ge.s32.totalorder %s13_s22, 102   ;;  %s2058_s12 = smov %s1583_s13 }
 0x1bd   : > { %s2059_s13 = smov %s1734_s9  ;;  %s2060_s14 = smov %s1591_s15 }
 0x1be   : > { %s2061_s15 = smov %s1731_s8  ;;  %s2062_s16 = smov %s1599_s17 }
 0x1bf   : > { %s2063_s17 = smov %s1717_s30  ;;  %s2064_s18 = smov %s1611_s20 }
 0x1c0   : > { %s2065_s19 = smov %s1615_s21  ;;  %s2066_s20 = smov %s2069_s24 }
 0x1c1   : > { %s2067_s21 = smov %s2057_s10  ;;  %12 = sbr.rel (!%p10_p6) target bundleno = 9 (0x9), region = 170 }

</bundles_post_ra>
